<compile_context>
chip_gen: v7x
topology: tpu7x:2x2x1
jax: 0.10.0
libtpu: 0.0.40
codegen_flags: <defaults>
</compile_context>

<pallas_src>
import jax
import jax.numpy as jnp
from jax import lax
from jax.experimental import pallas as pl
from jax.experimental.pallas import tpu as pltpu

# ---- problem constants (from the PyTorch module) ----
C_IN, C_OUT = 160, 320
H = W = 14
HW = H * W                         # 196
PAD = 1
KH = KW = 3
HP, WP = H + 2 * PAD, W + 2 * PAD  # 16, 16
NPAD = HP * WP                     # 256 flattened padded positions (matmul N)
MAX_SHIFT = (KH - 1) * WP + (KW - 1)   # 34
EPS = 1e-3

# ---- kernel layout constants ----
YP_LANES = 384                     # padded-activation lane extent (>= NPAD + MAX_SHIFT = 290), 3 lane tiles
NTAPS = KH * KW                    # 9
C_LO = 128                         # aligned low-channel group per tap
C_HI = C_IN - C_LO                 # 32
K_LO = NTAPS * C_LO                # 1152
KTOT = K_LO + NTAPS * C_HI         # 1440 real contraction rows
KTOT_PAD = 1536                    # 12 lane-tiles; rows 1440..1535 are zeros (weight & im2col)
C_OUT_PAD = 384                    # 320 padded to a multiple of 128 (lane-dense output)
MCH = 192                          # output-channel rows per dot -> f32 acc is 48 vregs (no spill)


def bn_relu_conv_kernel(x_ref, gamma_ref, beta_ref, w_ref, o_ref, ypad_ref, col_ref):
    # x_ref:     (C_IN, HW)          f32   raw input, channel-major (= NCHW reshaped, no transpose)
    # gamma/beta:(C_IN, 1)           f32
    # w_ref:     (C_OUT_PAD, KTOT_PAD) bf16  pre-packed conv weight (see prepare_conv_weight)
    # o_ref:     (C_OUT_PAD, NPAD)   f32   conv output on the padded 16x16 grid
    # ypad_ref:  (C_IN, YP_LANES)    f32   scratch: zero-padded BN+ReLU activation
    # col_ref:   (KTOT_PAD, NPAD)    bf16  scratch: transposed im2col matrix

    # ---- BatchNorm training-mode batch statistics (f32, two-pass variance) ----
    x = x_ref[...]                                              # (C_IN, HW)
    inv_n = jnp.float32(1.0 / HW)
    mean = jnp.sum(x, axis=1, keepdims=True) * inv_n            # (C_IN, 1)
    xc = x - mean
    var = jnp.sum(xc * xc, axis=1, keepdims=True) * inv_n       # biased variance (torch BN fwd)
    scale = gamma_ref[...] * lax.rsqrt(var + EPS)               # (C_IN, 1)
    shift = beta_ref[...] - mean * scale
    scale_w = jnp.broadcast_to(scale, (C_IN, W))                # hoisted broadcasts
    shift_w = jnp.broadcast_to(shift, (C_IN, W))

    # ---- zero-padded, BN+ReLU'd activation (channel-major); pad columns stay exact zeros ----
    ypad_ref[...] = jnp.zeros((C_IN, YP_LANES), jnp.float32)
    for h in range(H):                                          # 14 one-time strided row placements
        seg = x_ref[:, h * W:(h + 1) * W]                       # (C_IN, W)
        base = (h + PAD) * WP + PAD
        ypad_ref[:, base:base + W] = jnp.maximum(seg * scale_w + shift_w, 0.0)

    # ---- transposed im2col: K rows = [tap t, ch 0:128]*9  ++  [tap t, ch 128:160]*9  ++ zeros ----
    # All stores below are sublane-aligned (offsets multiples of 32); the lane-offset reads are the
    # only unaligned accesses and happen once per tap.
    for t in range(NTAPS):
        kh, kw = t // KW, t % KW
        blk = ypad_ref[:, pl.ds(kh * WP + kw, NPAD)].astype(jnp.bfloat16)   # (C_IN, NPAD)
        col_ref[t * C_LO:(t + 1) * C_LO, :] = blk[:C_LO, :]
        col_ref[K_LO + t * C_HI:K_LO + (t + 1) * C_HI, :] = blk[C_LO:, :]
    col_ref[KTOT:KTOT_PAD, :] = jnp.zeros((KTOT_PAD - KTOT, NPAD), jnp.bfloat16)

    # ---- the whole 3x3 conv as 2 fat MXU matmuls (K=1536, N=256 full-width), f32 accumulation ----
    for m in range(C_OUT_PAD // MCH):
        o_ref[m * MCH:(m + 1) * MCH, :] = jnp.dot(
            w_ref[m * MCH:(m + 1) * MCH, :], col_ref[...],
            preferred_element_type=jnp.float32)


def prepare_conv_weight(w_oihw):
    """Hoisted (call once): (C_OUT, C_IN, KH, KW) -> (C_OUT_PAD, KTOT_PAD) bf16, K-layout matching col_ref."""
    w_t = jnp.transpose(w_oihw.astype(jnp.float32), (2, 3, 1, 0)).reshape(NTAPS, C_IN, C_OUT)  # [t,c,o]
    lo = jnp.transpose(w_t[:, :C_LO, :], (2, 0, 1)).reshape(C_OUT, K_LO)           # [o, t*128 + c]
    hi = jnp.transpose(w_t[:, C_LO:, :], (2, 0, 1)).reshape(C_OUT, NTAPS * C_HI)   # [o, t*32 + (c-128)]
    w_l = jnp.concatenate(
        [lo, hi, jnp.zeros((C_OUT, KTOT_PAD - KTOT), jnp.float32)], axis=1)        # (320, 1536)
    w_l = jnp.pad(w_l, ((0, C_OUT_PAD - C_OUT), (0, 0)))                           # (384, 1536)
    return w_l.astype(jnp.bfloat16)


def model_forward(x_nchw, gamma, beta, w_prep):
    """x_nchw: (1, 160, 14, 14) f32; w_prep from prepare_conv_weight; returns (1, 320, 14, 14) f32."""
    x_cm = x_nchw.reshape(C_IN, HW).astype(jnp.float32)        # free reshape of NCHW (batch=1)
    g = gamma.reshape(C_IN, 1).astype(jnp.float32)
    b = beta.reshape(C_IN, 1).astype(jnp.float32)

    out = pl.pallas_call(
        bn_relu_conv_kernel,
        out_shape=jax.ShapeDtypeStruct((C_OUT_PAD, NPAD), jnp.float32),
        grid=(1,),                                             # single step: no per-step overhead
        in_specs=[
            pl.BlockSpec((C_IN, HW), lambda i: (0, 0)),                # x
            pl.BlockSpec((C_IN, 1), lambda i: (0, 0)),                 # gamma
            pl.BlockSpec((C_IN, 1), lambda i: (0, 0)),                 # beta
            pl.BlockSpec((C_OUT_PAD, KTOT_PAD), lambda i: (0, 0)),     # packed weight
        ],
        out_specs=pl.BlockSpec((C_OUT_PAD, NPAD), lambda i: (0, 0)),
        scratch_shapes=[
            pltpu.VMEM((C_IN, YP_LANES), jnp.float32),                 # padded activation
            pltpu.VMEM((KTOT_PAD, NPAD), jnp.bfloat16),                # transposed im2col
        ],
        compiler_params=pltpu.CompilerParams(dimension_semantics=("arbitrary",)),
    )(x_cm, g, b, w_prep)

    # channel-major result -> NCHW needs only a slice/reshape (no transpose)
    out = out[:C_OUT, :].reshape(C_OUT, HP, WP)[:, :H, :W]
    return out[None]                                           # (1, C_OUT, H, W)


if __name__ == "__main__":
    key = jax.random.PRNGKey(0)
    kx, kw_ = jax.random.split(key)

    # deterministic inputs / parameters (shapes from the module's __init__)
    x = jax.random.normal(kx, (1, C_IN, H, W), jnp.float32)
    gamma = jnp.ones((C_IN,), jnp.float32)                     # BatchNorm weight init
    beta = jnp.zeros((C_IN,), jnp.float32)                     # BatchNorm bias init
    fan_in = C_IN * KH * KW
    w_oihw = jax.random.normal(kw_, (C_OUT, C_IN, KH, KW), jnp.float32) / jnp.sqrt(fan_in)

    w_prep = jax.block_until_ready(prepare_conv_weight(w_oihw))    # hoisted out of the hot path
    fwd = jax.jit(model_forward)
    out = jax.block_until_ready(fwd(x, gamma, beta, w_prep))
    assert out.shape == (1, C_OUT, H, W)

    # pure-JAX reference (BatchNorm training-mode stats + ReLU + conv, f32)
    mean = x.mean(axis=(0, 2, 3), keepdims=True)
    var = x.var(axis=(0, 2, 3), keepdims=True)                  # biased variance, like torch BN fwd
    y = jnp.maximum((x - mean) / jnp.sqrt(var + EPS)
                    * gamma.reshape(1, -1, 1, 1) + beta.reshape(1, -1, 1, 1), 0.0)
    ref = lax.conv_general_dilated(y, w_oihw, window_strides=(1, 1),
                                   padding=((1, 1), (1, 1)),
                                   dimension_numbers=("NCHW", "OIHW", "NCHW"))
    err = float(jnp.max(jnp.abs(out - ref)))
    if err < 5e-2:
        print("KERNEL_OK")
    else:
        print("MISMATCH", err)
</pallas_src>

<mosaic_0001>
module attributes {stable_mosaic.version = 11 : i64} {
  func.func @bn_relu_conv_kernel(%arg0: i32, %arg1: memref<160x196xf32, #tpu.memory_space<vmem>>, %arg2: memref<160x1xf32, #tpu.memory_space<vmem>>, %arg3: memref<160x1xf32, #tpu.memory_space<vmem>>, %arg4: memref<384x1536xbf16, #tpu.memory_space<vmem>>, %arg5: memref<384x256xf32, #tpu.memory_space<vmem>>, %arg6: memref<160x384xf32, #tpu.memory_space<vmem>>, %arg7: memref<1536x256xbf16, #tpu.memory_space<vmem>>) attributes {dimension_semantics = [#tpu.dimension_semantics<arbitrary>], iteration_bounds = array<i64: 1>, scalar_prefetch = 0 : i64, scratch_operands = 2 : i64, tpu.core_type = #tpu.core_type<tc>, window_params = [{pipeline_mode = #tpu.pipeline_mode<synchronous>, transform_indices = @transform_0, window_bounds = array<i64: 160, 196>}, {pipeline_mode = #tpu.pipeline_mode<synchronous>, transform_indices = @transform_1, window_bounds = array<i64: 160, 1>}, {pipeline_mode = #tpu.pipeline_mode<synchronous>, transform_indices = @transform_2, window_bounds = array<i64: 160, 1>}, {pipeline_mode = #tpu.pipeline_mode<synchronous>, transform_indices = @transform_3, window_bounds = array<i64: 384, 1536>}, {pipeline_mode = #tpu.pipeline_mode<synchronous>, transform_indices = @transform_4, window_bounds = array<i64: 384, 256>}]} {
    %c0 = arith.constant 0 : index
    %c0_0 = arith.constant 0 : index
    %0 = vector.load %arg1[%c0, %c0_0] : memref<160x196xf32, #tpu.memory_space<vmem>>, vector<160x196xf32>
    %cst = arith.constant dense<0.000000e+00> : vector<160xf32>
    %1 = vector.multi_reduction <add>, %0, %cst [1] : vector<160x196xf32> to vector<160xf32>
    %2 = vector.shape_cast %1 : vector<160xf32> to vector<160x1xf32>
    %cst_1 = arith.constant 0.00510204071 : f32
    %3 = vector.broadcast %cst_1 : f32 to vector<160x1xf32>
    %4 = arith.mulf %2, %3 : vector<160x1xf32>
    %5 = vector.broadcast %4 : vector<160x1xf32> to vector<160x196xf32>
    %6 = arith.subf %0, %5 : vector<160x196xf32>
    %7 = arith.mulf %6, %6 : vector<160x196xf32>
    %cst_2 = arith.constant dense<0.000000e+00> : vector<160xf32>
    %8 = vector.multi_reduction <add>, %7, %cst_2 [1] : vector<160x196xf32> to vector<160xf32>
    %9 = vector.shape_cast %8 : vector<160xf32> to vector<160x1xf32>
    %cst_3 = arith.constant 0.00510204071 : f32
    %10 = vector.broadcast %cst_3 : f32 to vector<160x1xf32>
    %11 = arith.mulf %9, %10 : vector<160x1xf32>
    %c0_4 = arith.constant 0 : index
    %c0_5 = arith.constant 0 : index
    %12 = vector.load %arg2[%c0_4, %c0_5] : memref<160x1xf32, #tpu.memory_space<vmem>>, vector<160x1xf32>
    %cst_6 = arith.constant 1.000000e-03 : f32
    %13 = vector.broadcast %cst_6 : f32 to vector<160x1xf32>
    %14 = arith.addf %11, %13 : vector<160x1xf32>
    %15 = math.rsqrt %14 : vector<160x1xf32>
    %16 = arith.mulf %12, %15 : vector<160x1xf32>
    %c0_7 = arith.constant 0 : index
    %c0_8 = arith.constant 0 : index
    %17 = vector.load %arg3[%c0_7, %c0_8] : memref<160x1xf32, #tpu.memory_space<vmem>>, vector<160x1xf32>
    %18 = arith.mulf %4, %16 : vector<160x1xf32>
    %19 = arith.subf %17, %18 : vector<160x1xf32>
    %20 = vector.shape_cast %16 : vector<160x1xf32> to vector<160x1xf32>
    %21 = vector.broadcast %20 : vector<160x1xf32> to vector<160x14xf32>
    %22 = vector.shape_cast %19 : vector<160x1xf32> to vector<160x1xf32>
    %23 = vector.broadcast %22 : vector<160x1xf32> to vector<160x14xf32>
    %cst_9 = arith.constant 0.000000e+00 : f32
    %24 = vector.broadcast %cst_9 : f32 to vector<160x384xf32>
    %c0_10 = arith.constant 0 : index
    %c0_11 = arith.constant 0 : index
    %25 = vector.load %arg6[%c0_10, %c0_11] : memref<160x384xf32, #tpu.memory_space<vmem>>, vector<160x384xf32>
    tpu.vector_store %arg6[%c0_10, %c0_11], %24 {strides = array<i32>} : memref<160x384xf32, #tpu.memory_space<vmem>>, vector<160x384xf32>,
    %c0_12 = arith.constant 0 : index
    %c0_13 = arith.constant 0 : index
    %26 = vector.load %arg1[%c0_12, %c0_13] : memref<160x196xf32, #tpu.memory_space<vmem>>, vector<160x14xf32>
    %27 = arith.mulf %26, %21 : vector<160x14xf32>
    %28 = arith.addf %27, %23 : vector<160x14xf32>
    %cst_14 = arith.constant 0.000000e+00 : f32
    %29 = vector.broadcast %cst_14 : f32 to vector<160x14xf32>
    %30 = arith.maximumf %28, %29 : vector<160x14xf32>
    %c0_15 = arith.constant 0 : index
    %c17 = arith.constant 17 : index
    %31 = vector.load %arg6[%c0_15, %c17] : memref<160x384xf32, #tpu.memory_space<vmem>>, vector<160x14xf32>
    tpu.vector_store %arg6[%c0_15, %c17], %30 {strides = array<i32>} : memref<160x384xf32, #tpu.memory_space<vmem>>, vector<160x14xf32>,
    %c0_16 = arith.constant 0 : index
    %c14 = arith.constant 14 : index
    %32 = vector.load %arg1[%c0_16, %c14] : memref<160x196xf32, #tpu.memory_space<vmem>>, vector<160x14xf32>
    %33 = arith.mulf %32, %21 : vector<160x14xf32>
    %34 = arith.addf %33, %23 : vector<160x14xf32>
    %cst_17 = arith.constant 0.000000e+00 : f32
    %35 = vector.broadcast %cst_17 : f32 to vector<160x14xf32>
    %36 = arith.maximumf %34, %35 : vector<160x14xf32>
    %c0_18 = arith.constant 0 : index
    %c33 = arith.constant 33 : index
    %37 = vector.load %arg6[%c0_18, %c33] : memref<160x384xf32, #tpu.memory_space<vmem>>, vector<160x14xf32>
    tpu.vector_store %arg6[%c0_18, %c33], %36 {strides = array<i32>} : memref<160x384xf32, #tpu.memory_space<vmem>>, vector<160x14xf32>,
    %c0_19 = arith.constant 0 : index
    %c28 = arith.constant 28 : index
    %38 = vector.load %arg1[%c0_19, %c28] : memref<160x196xf32, #tpu.memory_space<vmem>>, vector<160x14xf32>
    %39 = arith.mulf %38, %21 : vector<160x14xf32>
    %40 = arith.addf %39, %23 : vector<160x14xf32>
    %cst_20 = arith.constant 0.000000e+00 : f32
    %41 = vector.broadcast %cst_20 : f32 to vector<160x14xf32>
    %42 = arith.maximumf %40, %41 : vector<160x14xf32>
    %c0_21 = arith.constant 0 : index
    %c49 = arith.constant 49 : index
    %43 = vector.load %arg6[%c0_21, %c49] : memref<160x384xf32, #tpu.memory_space<vmem>>, vector<160x14xf32>
    tpu.vector_store %arg6[%c0_21, %c49], %42 {strides = array<i32>} : memref<160x384xf32, #tpu.memory_space<vmem>>, vector<160x14xf32>,
    %c0_22 = arith.constant 0 : index
    %c42 = arith.constant 42 : index
    %44 = vector.load %arg1[%c0_22, %c42] : memref<160x196xf32, #tpu.memory_space<vmem>>, vector<160x14xf32>
    %45 = arith.mulf %44, %21 : vector<160x14xf32>
    %46 = arith.addf %45, %23 : vector<160x14xf32>
    %cst_23 = arith.constant 0.000000e+00 : f32
    %47 = vector.broadcast %cst_23 : f32 to vector<160x14xf32>
    %48 = arith.maximumf %46, %47 : vector<160x14xf32>
    %c0_24 = arith.constant 0 : index
    %c65 = arith.constant 65 : index
    %49 = vector.load %arg6[%c0_24, %c65] : memref<160x384xf32, #tpu.memory_space<vmem>>, vector<160x14xf32>
    tpu.vector_store %arg6[%c0_24, %c65], %48 {strides = array<i32>} : memref<160x384xf32, #tpu.memory_space<vmem>>, vector<160x14xf32>,
    %c0_25 = arith.constant 0 : index
    %c56 = arith.constant 56 : index
    %50 = vector.load %arg1[%c0_25, %c56] : memref<160x196xf32, #tpu.memory_space<vmem>>, vector<160x14xf32>
    %51 = arith.mulf %50, %21 : vector<160x14xf32>
    %52 = arith.addf %51, %23 : vector<160x14xf32>
    %cst_26 = arith.constant 0.000000e+00 : f32
    %53 = vector.broadcast %cst_26 : f32 to vector<160x14xf32>
    %54 = arith.maximumf %52, %53 : vector<160x14xf32>
    %c0_27 = arith.constant 0 : index
    %c81 = arith.constant 81 : index
    %55 = vector.load %arg6[%c0_27, %c81] : memref<160x384xf32, #tpu.memory_space<vmem>>, vector<160x14xf32>
    tpu.vector_store %arg6[%c0_27, %c81], %54 {strides = array<i32>} : memref<160x384xf32, #tpu.memory_space<vmem>>, vector<160x14xf32>,
    %c0_28 = arith.constant 0 : index
    %c70 = arith.constant 70 : index
    %56 = vector.load %arg1[%c0_28, %c70] : memref<160x196xf32, #tpu.memory_space<vmem>>, vector<160x14xf32>
    %57 = arith.mulf %56, %21 : vector<160x14xf32>
    %58 = arith.addf %57, %23 : vector<160x14xf32>
    %cst_29 = arith.constant 0.000000e+00 : f32
    %59 = vector.broadcast %cst_29 : f32 to vector<160x14xf32>
    %60 = arith.maximumf %58, %59 : vector<160x14xf32>
    %c0_30 = arith.constant 0 : index
    %c97 = arith.constant 97 : index
    %61 = vector.load %arg6[%c0_30, %c97] : memref<160x384xf32, #tpu.memory_space<vmem>>, vector<160x14xf32>
    tpu.vector_store %arg6[%c0_30, %c97], %60 {strides = array<i32>} : memref<160x384xf32, #tpu.memory_space<vmem>>, vector<160x14xf32>,
    %c0_31 = arith.constant 0 : index
    %c84 = arith.constant 84 : index
    %62 = vector.load %arg1[%c0_31, %c84] : memref<160x196xf32, #tpu.memory_space<vmem>>, vector<160x14xf32>
    %63 = arith.mulf %62, %21 : vector<160x14xf32>
    %64 = arith.addf %63, %23 : vector<160x14xf32>
    %cst_32 = arith.constant 0.000000e+00 : f32
    %65 = vector.broadcast %cst_32 : f32 to vector<160x14xf32>
    %66 = arith.maximumf %64, %65 : vector<160x14xf32>
    %c0_33 = arith.constant 0 : index
    %c113 = arith.constant 113 : index
    %67 = vector.load %arg6[%c0_33, %c113] : memref<160x384xf32, #tpu.memory_space<vmem>>, vector<160x14xf32>
    tpu.vector_store %arg6[%c0_33, %c113], %66 {strides = array<i32>} : memref<160x384xf32, #tpu.memory_space<vmem>>, vector<160x14xf32>,
    %c0_34 = arith.constant 0 : index
    %c98 = arith.constant 98 : index
    %68 = vector.load %arg1[%c0_34, %c98] : memref<160x196xf32, #tpu.memory_space<vmem>>, vector<160x14xf32>
    %69 = arith.mulf %68, %21 : vector<160x14xf32>
    %70 = arith.addf %69, %23 : vector<160x14xf32>
    %cst_35 = arith.constant 0.000000e+00 : f32
    %71 = vector.broadcast %cst_35 : f32 to vector<160x14xf32>
    %72 = arith.maximumf %70, %71 : vector<160x14xf32>
    %c0_36 = arith.constant 0 : index
    %c129 = arith.constant 129 : index
    %73 = vector.load %arg6[%c0_36, %c129] : memref<160x384xf32, #tpu.memory_space<vmem>>, vector<160x14xf32>
    tpu.vector_store %arg6[%c0_36, %c129], %72 {strides = array<i32>} : memref<160x384xf32, #tpu.memory_space<vmem>>, vector<160x14xf32>,
    %c0_37 = arith.constant 0 : index
    %c112 = arith.constant 112 : index
    %74 = vector.load %arg1[%c0_37, %c112] : memref<160x196xf32, #tpu.memory_space<vmem>>, vector<160x14xf32>
    %75 = arith.mulf %74, %21 : vector<160x14xf32>
    %76 = arith.addf %75, %23 : vector<160x14xf32>
    %cst_38 = arith.constant 0.000000e+00 : f32
    %77 = vector.broadcast %cst_38 : f32 to vector<160x14xf32>
    %78 = arith.maximumf %76, %77 : vector<160x14xf32>
    %c0_39 = arith.constant 0 : index
    %c145 = arith.constant 145 : index
    %79 = vector.load %arg6[%c0_39, %c145] : memref<160x384xf32, #tpu.memory_space<vmem>>, vector<160x14xf32>
    tpu.vector_store %arg6[%c0_39, %c145], %78 {strides = array<i32>} : memref<160x384xf32, #tpu.memory_space<vmem>>, vector<160x14xf32>,
    %c0_40 = arith.constant 0 : index
    %c126 = arith.constant 126 : index
    %80 = vector.load %arg1[%c0_40, %c126] : memref<160x196xf32, #tpu.memory_space<vmem>>, vector<160x14xf32>
    %81 = arith.mulf %80, %21 : vector<160x14xf32>
    %82 = arith.addf %81, %23 : vector<160x14xf32>
    %cst_41 = arith.constant 0.000000e+00 : f32
    %83 = vector.broadcast %cst_41 : f32 to vector<160x14xf32>
    %84 = arith.maximumf %82, %83 : vector<160x14xf32>
    %c0_42 = arith.constant 0 : index
    %c161 = arith.constant 161 : index
    %85 = vector.load %arg6[%c0_42, %c161] : memref<160x384xf32, #tpu.memory_space<vmem>>, vector<160x14xf32>
    tpu.vector_store %arg6[%c0_42, %c161], %84 {strides = array<i32>} : memref<160x384xf32, #tpu.memory_space<vmem>>, vector<160x14xf32>,
    %c0_43 = arith.constant 0 : index
    %c140 = arith.constant 140 : index
    %86 = vector.load %arg1[%c0_43, %c140] : memref<160x196xf32, #tpu.memory_space<vmem>>, vector<160x14xf32>
    %87 = arith.mulf %86, %21 : vector<160x14xf32>
    %88 = arith.addf %87, %23 : vector<160x14xf32>
    %cst_44 = arith.constant 0.000000e+00 : f32
    %89 = vector.broadcast %cst_44 : f32 to vector<160x14xf32>
    %90 = arith.maximumf %88, %89 : vector<160x14xf32>
    %c0_45 = arith.constant 0 : index
    %c177 = arith.constant 177 : index
    %91 = vector.load %arg6[%c0_45, %c177] : memref<160x384xf32, #tpu.memory_space<vmem>>, vector<160x14xf32>
    tpu.vector_store %arg6[%c0_45, %c177], %90 {strides = array<i32>} : memref<160x384xf32, #tpu.memory_space<vmem>>, vector<160x14xf32>,
    %c0_46 = arith.constant 0 : index
    %c154 = arith.constant 154 : index
    %92 = vector.load %arg1[%c0_46, %c154] : memref<160x196xf32, #tpu.memory_space<vmem>>, vector<160x14xf32>
    %93 = arith.mulf %92, %21 : vector<160x14xf32>
    %94 = arith.addf %93, %23 : vector<160x14xf32>
    %cst_47 = arith.constant 0.000000e+00 : f32
    %95 = vector.broadcast %cst_47 : f32 to vector<160x14xf32>
    %96 = arith.maximumf %94, %95 : vector<160x14xf32>
    %c0_48 = arith.constant 0 : index
    %c193 = arith.constant 193 : index
    %97 = vector.load %arg6[%c0_48, %c193] : memref<160x384xf32, #tpu.memory_space<vmem>>, vector<160x14xf32>
    tpu.vector_store %arg6[%c0_48, %c193], %96 {strides = array<i32>} : memref<160x384xf32, #tpu.memory_space<vmem>>, vector<160x14xf32>,
    %c0_49 = arith.constant 0 : index
    %c168 = arith.constant 168 : index
    %98 = vector.load %arg1[%c0_49, %c168] : memref<160x196xf32, #tpu.memory_space<vmem>>, vector<160x14xf32>
    %99 = arith.mulf %98, %21 : vector<160x14xf32>
    %100 = arith.addf %99, %23 : vector<160x14xf32>
    %cst_50 = arith.constant 0.000000e+00 : f32
    %101 = vector.broadcast %cst_50 : f32 to vector<160x14xf32>
    %102 = arith.maximumf %100, %101 : vector<160x14xf32>
    %c0_51 = arith.constant 0 : index
    %c209 = arith.constant 209 : index
    %103 = vector.load %arg6[%c0_51, %c209] : memref<160x384xf32, #tpu.memory_space<vmem>>, vector<160x14xf32>
    tpu.vector_store %arg6[%c0_51, %c209], %102 {strides = array<i32>} : memref<160x384xf32, #tpu.memory_space<vmem>>, vector<160x14xf32>,
    %c0_52 = arith.constant 0 : index
    %c182 = arith.constant 182 : index
    %104 = vector.load %arg1[%c0_52, %c182] : memref<160x196xf32, #tpu.memory_space<vmem>>, vector<160x14xf32>
    %105 = arith.mulf %104, %21 : vector<160x14xf32>
    %106 = arith.addf %105, %23 : vector<160x14xf32>
    %cst_53 = arith.constant 0.000000e+00 : f32
    %107 = vector.broadcast %cst_53 : f32 to vector<160x14xf32>
    %108 = arith.maximumf %106, %107 : vector<160x14xf32>
    %c0_54 = arith.constant 0 : index
    %c225 = arith.constant 225 : index
    %109 = vector.load %arg6[%c0_54, %c225] : memref<160x384xf32, #tpu.memory_space<vmem>>, vector<160x14xf32>
    tpu.vector_store %arg6[%c0_54, %c225], %108 {strides = array<i32>} : memref<160x384xf32, #tpu.memory_space<vmem>>, vector<160x14xf32>,
    %c0_55 = arith.constant 0 : index
    %c0_56 = arith.constant 0 : index
    %110 = vector.load %arg6[%c0_55, %c0_56] : memref<160x384xf32, #tpu.memory_space<vmem>>, vector<160x256xf32>
    %111 = arith.truncf %110 : vector<160x256xf32> to vector<160x256xbf16>
    %112 = vector.extract_strided_slice %111 {offsets = [0, 0], sizes = [128, 256], strides = [1, 1]} : vector<160x256xbf16> to vector<128x256xbf16>
    %c0_57 = arith.constant 0 : index
    %c0_58 = arith.constant 0 : index
    %113 = vector.load %arg7[%c0_57, %c0_58] : memref<1536x256xbf16, #tpu.memory_space<vmem>>, vector<128x256xbf16>
    tpu.vector_store %arg7[%c0_57, %c0_58], %112 {strides = array<i32>} : memref<1536x256xbf16, #tpu.memory_space<vmem>>, vector<128x256xbf16>,
    %114 = vector.extract_strided_slice %111 {offsets = [128, 0], sizes = [32, 256], strides = [1, 1]} : vector<160x256xbf16> to vector<32x256xbf16>
    %c1152 = arith.constant 1152 : index
    %c0_59 = arith.constant 0 : index
    %115 = vector.load %arg7[%c1152, %c0_59] : memref<1536x256xbf16, #tpu.memory_space<vmem>>, vector<32x256xbf16>
    tpu.vector_store %arg7[%c1152, %c0_59], %114 {strides = array<i32>} : memref<1536x256xbf16, #tpu.memory_space<vmem>>, vector<32x256xbf16>,
    %c0_60 = arith.constant 0 : index
    %c1 = arith.constant 1 : index
    %116 = vector.load %arg6[%c0_60, %c1] : memref<160x384xf32, #tpu.memory_space<vmem>>, vector<160x256xf32>
    %117 = arith.truncf %116 : vector<160x256xf32> to vector<160x256xbf16>
    %118 = vector.extract_strided_slice %117 {offsets = [0, 0], sizes = [128, 256], strides = [1, 1]} : vector<160x256xbf16> to vector<128x256xbf16>
    %c128 = arith.constant 128 : index
    %c0_61 = arith.constant 0 : index
    %119 = vector.load %arg7[%c128, %c0_61] : memref<1536x256xbf16, #tpu.memory_space<vmem>>, vector<128x256xbf16>
    tpu.vector_store %arg7[%c128, %c0_61], %118 {strides = array<i32>} : memref<1536x256xbf16, #tpu.memory_space<vmem>>, vector<128x256xbf16>,
    %120 = vector.extract_strided_slice %117 {offsets = [128, 0], sizes = [32, 256], strides = [1, 1]} : vector<160x256xbf16> to vector<32x256xbf16>
    %c1184 = arith.constant 1184 : index
    %c0_62 = arith.constant 0 : index
    %121 = vector.load %arg7[%c1184, %c0_62] : memref<1536x256xbf16, #tpu.memory_space<vmem>>, vector<32x256xbf16>
    tpu.vector_store %arg7[%c1184, %c0_62], %120 {strides = array<i32>} : memref<1536x256xbf16, #tpu.memory_space<vmem>>, vector<32x256xbf16>,
    %c0_63 = arith.constant 0 : index
    %c2 = arith.constant 2 : index
    %122 = vector.load %arg6[%c0_63, %c2] : memref<160x384xf32, #tpu.memory_space<vmem>>, vector<160x256xf32>
    %123 = arith.truncf %122 : vector<160x256xf32> to vector<160x256xbf16>
    %124 = vector.extract_strided_slice %123 {offsets = [0, 0], sizes = [128, 256], strides = [1, 1]} : vector<160x256xbf16> to vector<128x256xbf16>
    %c256 = arith.constant 256 : index
    %c0_64 = arith.constant 0 : index
    %125 = vector.load %arg7[%c256, %c0_64] : memref<1536x256xbf16, #tpu.memory_space<vmem>>, vector<128x256xbf16>
    tpu.vector_store %arg7[%c256, %c0_64], %124 {strides = array<i32>} : memref<1536x256xbf16, #tpu.memory_space<vmem>>, vector<128x256xbf16>,
    %126 = vector.extract_strided_slice %123 {offsets = [128, 0], sizes = [32, 256], strides = [1, 1]} : vector<160x256xbf16> to vector<32x256xbf16>
    %c1216 = arith.constant 1216 : index
    %c0_65 = arith.constant 0 : index
    %127 = vector.load %arg7[%c1216, %c0_65] : memref<1536x256xbf16, #tpu.memory_space<vmem>>, vector<32x256xbf16>
    tpu.vector_store %arg7[%c1216, %c0_65], %126 {strides = array<i32>} : memref<1536x256xbf16, #tpu.memory_space<vmem>>, vector<32x256xbf16>,
    %c0_66 = arith.constant 0 : index
    %c16 = arith.constant 16 : index
    %128 = vector.load %arg6[%c0_66, %c16] : memref<160x384xf32, #tpu.memory_space<vmem>>, vector<160x256xf32>
    %129 = arith.truncf %128 : vector<160x256xf32> to vector<160x256xbf16>
    %130 = vector.extract_strided_slice %129 {offsets = [0, 0], sizes = [128, 256], strides = [1, 1]} : vector<160x256xbf16> to vector<128x256xbf16>
    %c384 = arith.constant 384 : index
    %c0_67 = arith.constant 0 : index
    %131 = vector.load %arg7[%c384, %c0_67] : memref<1536x256xbf16, #tpu.memory_space<vmem>>, vector<128x256xbf16>
    tpu.vector_store %arg7[%c384, %c0_67], %130 {strides = array<i32>} : memref<1536x256xbf16, #tpu.memory_space<vmem>>, vector<128x256xbf16>,
    %132 = vector.extract_strided_slice %129 {offsets = [128, 0], sizes = [32, 256], strides = [1, 1]} : vector<160x256xbf16> to vector<32x256xbf16>
    %c1248 = arith.constant 1248 : index
    %c0_68 = arith.constant 0 : index
    %133 = vector.load %arg7[%c1248, %c0_68] : memref<1536x256xbf16, #tpu.memory_space<vmem>>, vector<32x256xbf16>
    tpu.vector_store %arg7[%c1248, %c0_68], %132 {strides = array<i32>} : memref<1536x256xbf16, #tpu.memory_space<vmem>>, vector<32x256xbf16>,
    %c0_69 = arith.constant 0 : index
    %c17_70 = arith.constant 17 : index
    %134 = vector.load %arg6[%c0_69, %c17_70] : memref<160x384xf32, #tpu.memory_space<vmem>>, vector<160x256xf32>
    %135 = arith.truncf %134 : vector<160x256xf32> to vector<160x256xbf16>
    %136 = vector.extract_strided_slice %135 {offsets = [0, 0], sizes = [128, 256], strides = [1, 1]} : vector<160x256xbf16> to vector<128x256xbf16>
    %c512 = arith.constant 512 : index
    %c0_71 = arith.constant 0 : index
    %137 = vector.load %arg7[%c512, %c0_71] : memref<1536x256xbf16, #tpu.memory_space<vmem>>, vector<128x256xbf16>
    tpu.vector_store %arg7[%c512, %c0_71], %136 {strides = array<i32>} : memref<1536x256xbf16, #tpu.memory_space<vmem>>, vector<128x256xbf16>,
    %138 = vector.extract_strided_slice %135 {offsets = [128, 0], sizes = [32, 256], strides = [1, 1]} : vector<160x256xbf16> to vector<32x256xbf16>
    %c1280 = arith.constant 1280 : index
    %c0_72 = arith.constant 0 : index
    %139 = vector.load %arg7[%c1280, %c0_72] : memref<1536x256xbf16, #tpu.memory_space<vmem>>, vector<32x256xbf16>
    tpu.vector_store %arg7[%c1280, %c0_72], %138 {strides = array<i32>} : memref<1536x256xbf16, #tpu.memory_space<vmem>>, vector<32x256xbf16>,
    %c0_73 = arith.constant 0 : index
    %c18 = arith.constant 18 : index
    %140 = vector.load %arg6[%c0_73, %c18] : memref<160x384xf32, #tpu.memory_space<vmem>>, vector<160x256xf32>
    %141 = arith.truncf %140 : vector<160x256xf32> to vector<160x256xbf16>
    %142 = vector.extract_strided_slice %141 {offsets = [0, 0], sizes = [128, 256], strides = [1, 1]} : vector<160x256xbf16> to vector<128x256xbf16>
    %c640 = arith.constant 640 : index
    %c0_74 = arith.constant 0 : index
    %143 = vector.load %arg7[%c640, %c0_74] : memref<1536x256xbf16, #tpu.memory_space<vmem>>, vector<128x256xbf16>
    tpu.vector_store %arg7[%c640, %c0_74], %142 {strides = array<i32>} : memref<1536x256xbf16, #tpu.memory_space<vmem>>, vector<128x256xbf16>,
    %144 = vector.extract_strided_slice %141 {offsets = [128, 0], sizes = [32, 256], strides = [1, 1]} : vector<160x256xbf16> to vector<32x256xbf16>
    %c1312 = arith.constant 1312 : index
    %c0_75 = arith.constant 0 : index
    %145 = vector.load %arg7[%c1312, %c0_75] : memref<1536x256xbf16, #tpu.memory_space<vmem>>, vector<32x256xbf16>
    tpu.vector_store %arg7[%c1312, %c0_75], %144 {strides = array<i32>} : memref<1536x256xbf16, #tpu.memory_space<vmem>>, vector<32x256xbf16>,
    %c0_76 = arith.constant 0 : index
    %c32 = arith.constant 32 : index
    %146 = vector.load %arg6[%c0_76, %c32] : memref<160x384xf32, #tpu.memory_space<vmem>>, vector<160x256xf32>
    %147 = arith.truncf %146 : vector<160x256xf32> to vector<160x256xbf16>
    %148 = vector.extract_strided_slice %147 {offsets = [0, 0], sizes = [128, 256], strides = [1, 1]} : vector<160x256xbf16> to vector<128x256xbf16>
    %c768 = arith.constant 768 : index
    %c0_77 = arith.constant 0 : index
    %149 = vector.load %arg7[%c768, %c0_77] : memref<1536x256xbf16, #tpu.memory_space<vmem>>, vector<128x256xbf16>
    tpu.vector_store %arg7[%c768, %c0_77], %148 {strides = array<i32>} : memref<1536x256xbf16, #tpu.memory_space<vmem>>, vector<128x256xbf16>,
    %150 = vector.extract_strided_slice %147 {offsets = [128, 0], sizes = [32, 256], strides = [1, 1]} : vector<160x256xbf16> to vector<32x256xbf16>
    %c1344 = arith.constant 1344 : index
    %c0_78 = arith.constant 0 : index
    %151 = vector.load %arg7[%c1344, %c0_78] : memref<1536x256xbf16, #tpu.memory_space<vmem>>, vector<32x256xbf16>
    tpu.vector_store %arg7[%c1344, %c0_78], %150 {strides = array<i32>} : memref<1536x256xbf16, #tpu.memory_space<vmem>>, vector<32x256xbf16>,
    %c0_79 = arith.constant 0 : index
    %c33_80 = arith.constant 33 : index
    %152 = vector.load %arg6[%c0_79, %c33_80] : memref<160x384xf32, #tpu.memory_space<vmem>>, vector<160x256xf32>
    %153 = arith.truncf %152 : vector<160x256xf32> to vector<160x256xbf16>
    %154 = vector.extract_strided_slice %153 {offsets = [0, 0], sizes = [128, 256], strides = [1, 1]} : vector<160x256xbf16> to vector<128x256xbf16>
    %c896 = arith.constant 896 : index
    %c0_81 = arith.constant 0 : index
    %155 = vector.load %arg7[%c896, %c0_81] : memref<1536x256xbf16, #tpu.memory_space<vmem>>, vector<128x256xbf16>
    tpu.vector_store %arg7[%c896, %c0_81], %154 {strides = array<i32>} : memref<1536x256xbf16, #tpu.memory_space<vmem>>, vector<128x256xbf16>,
    %156 = vector.extract_strided_slice %153 {offsets = [128, 0], sizes = [32, 256], strides = [1, 1]} : vector<160x256xbf16> to vector<32x256xbf16>
    %c1376 = arith.constant 1376 : index
    %c0_82 = arith.constant 0 : index
    %157 = vector.load %arg7[%c1376, %c0_82] : memref<1536x256xbf16, #tpu.memory_space<vmem>>, vector<32x256xbf16>
    tpu.vector_store %arg7[%c1376, %c0_82], %156 {strides = array<i32>} : memref<1536x256xbf16, #tpu.memory_space<vmem>>, vector<32x256xbf16>,
    %c0_83 = arith.constant 0 : index
    %c34 = arith.constant 34 : index
    %158 = vector.load %arg6[%c0_83, %c34] : memref<160x384xf32, #tpu.memory_space<vmem>>, vector<160x256xf32>
    %159 = arith.truncf %158 : vector<160x256xf32> to vector<160x256xbf16>
    %160 = vector.extract_strided_slice %159 {offsets = [0, 0], sizes = [128, 256], strides = [1, 1]} : vector<160x256xbf16> to vector<128x256xbf16>
    %c1024 = arith.constant 1024 : index
    %c0_84 = arith.constant 0 : index
    %161 = vector.load %arg7[%c1024, %c0_84] : memref<1536x256xbf16, #tpu.memory_space<vmem>>, vector<128x256xbf16>
    tpu.vector_store %arg7[%c1024, %c0_84], %160 {strides = array<i32>} : memref<1536x256xbf16, #tpu.memory_space<vmem>>, vector<128x256xbf16>,
    %162 = vector.extract_strided_slice %159 {offsets = [128, 0], sizes = [32, 256], strides = [1, 1]} : vector<160x256xbf16> to vector<32x256xbf16>
    %c1408 = arith.constant 1408 : index
    %c0_85 = arith.constant 0 : index
    %163 = vector.load %arg7[%c1408, %c0_85] : memref<1536x256xbf16, #tpu.memory_space<vmem>>, vector<32x256xbf16>
    tpu.vector_store %arg7[%c1408, %c0_85], %162 {strides = array<i32>} : memref<1536x256xbf16, #tpu.memory_space<vmem>>, vector<32x256xbf16>,
    %cst_86 = arith.constant 0.000000e+00 : bf16
    %164 = vector.broadcast %cst_86 : bf16 to vector<96x256xbf16>
    %c1440 = arith.constant 1440 : index
    %c0_87 = arith.constant 0 : index
    %165 = vector.load %arg7[%c1440, %c0_87] : memref<1536x256xbf16, #tpu.memory_space<vmem>>, vector<96x256xbf16>
    tpu.vector_store %arg7[%c1440, %c0_87], %164 {strides = array<i32>} : memref<1536x256xbf16, #tpu.memory_space<vmem>>, vector<96x256xbf16>,
    %c0_88 = arith.constant 0 : index
    %c0_89 = arith.constant 0 : index
    %166 = vector.load %arg4[%c0_88, %c0_89] : memref<384x1536xbf16, #tpu.memory_space<vmem>>, vector<192x1536xbf16>
    %c0_90 = arith.constant 0 : index
    %c0_91 = arith.constant 0 : index
    %167 = vector.load %arg7[%c0_90, %c0_91] : memref<1536x256xbf16, #tpu.memory_space<vmem>>, vector<1536x256xbf16>
    %cst_92 = arith.constant dense<0.000000e+00> : vector<192x256xf32>
    %168 = tpu.matmul %166, %167, %cst_92 {dimension_numbers = #tpu.dot_dimension_numbers<[1], [0], [0], [1], [0, 0, 1, 1], [], []>} : vector<192x1536xbf16>, vector<1536x256xbf16>, vector<192x256xf32> -> vector<192x256xf32>
    %c0_93 = arith.constant 0 : index
    %c0_94 = arith.constant 0 : index
    %169 = vector.load %arg5[%c0_93, %c0_94] : memref<384x256xf32, #tpu.memory_space<vmem>>, vector<192x256xf32>
    tpu.vector_store %arg5[%c0_93, %c0_94], %168 {strides = array<i32>} : memref<384x256xf32, #tpu.memory_space<vmem>>, vector<192x256xf32>,
    %c192 = arith.constant 192 : index
    %c0_95 = arith.constant 0 : index
    %170 = vector.load %arg4[%c192, %c0_95] : memref<384x1536xbf16, #tpu.memory_space<vmem>>, vector<192x1536xbf16>
    %c0_96 = arith.constant 0 : index
    %c0_97 = arith.constant 0 : index
    %171 = vector.load %arg7[%c0_96, %c0_97] : memref<1536x256xbf16, #tpu.memory_space<vmem>>, vector<1536x256xbf16>
    %cst_98 = arith.constant dense<0.000000e+00> : vector<192x256xf32>
    %172 = tpu.matmul %170, %171, %cst_98 {dimension_numbers = #tpu.dot_dimension_numbers<[1], [0], [0], [1], [0, 0, 1, 1], [], []>} : vector<192x1536xbf16>, vector<1536x256xbf16>, vector<192x256xf32> -> vector<192x256xf32>
    %c192_99 = arith.constant 192 : index
    %c0_100 = arith.constant 0 : index
    %173 = vector.load %arg5[%c192_99, %c0_100] : memref<384x256xf32, #tpu.memory_space<vmem>>, vector<192x256xf32>
    tpu.vector_store %arg5[%c192_99, %c0_100], %172 {strides = array<i32>} : memref<384x256xf32, #tpu.memory_space<vmem>>, vector<192x256xf32>,
    return
  }
  func.func @transform_0(%arg0: i32) -> (i32, i32) {
    %c0_i32 = arith.constant 0 : i32
    %c0_i32_0 = arith.constant 0 : i32
    %c0_i32_1 = arith.constant 0 : i32
    return %c0_i32, %c0_i32_0 : i32, i32
  }
  func.func @transform_1(%arg0: i32) -> (i32, i32) {
    %c0_i32 = arith.constant 0 : i32
    %c0_i32_0 = arith.constant 0 : i32
    %c0_i32_1 = arith.constant 0 : i32
    return %c0_i32, %c0_i32_0 : i32, i32
  }
  func.func @transform_2(%arg0: i32) -> (i32, i32) {
    %c0_i32 = arith.constant 0 : i32
    %c0_i32_0 = arith.constant 0 : i32
    %c0_i32_1 = arith.constant 0 : i32
    return %c0_i32, %c0_i32_0 : i32, i32
  }
  func.func @transform_3(%arg0: i32) -> (i32, i32) {
    %c0_i32 = arith.constant 0 : i32
    %c0_i32_0 = arith.constant 0 : i32
    %c0_i32_1 = arith.constant 0 : i32
    return %c0_i32, %c0_i32_0 : i32, i32
  }
  func.func @transform_4(%arg0: i32) -> (i32, i32) {
    %c0_i32 = arith.constant 0 : i32
    %c0_i32_0 = arith.constant 0 : i32
    %c0_i32_1 = arith.constant 0 : i32
    return %c0_i32, %c0_i32_0 : i32, i32
  }
}

</mosaic_0001>

<bundles_post_ra>
// kernel: model_forward.1
= control target key start
LH: loop header
LB: loop body
LE: loop exit
PB: predicated region body
PF: predicated region fallthrough
CT: control target
= control target key end

     0   :  { %vm58_vm0 = vcmask 556032   ;;  %s10766_s22 = smov 17   ;;  %s10767_s30 = smov 19   ;;  %vm899_vm1 = vcmask 253064   ;;  %vm1080_vm2 = vcmask 384264   ;;  %vm1261_vm3 = vcmask 515464   ;;  %s14933_s0 = inlined_call_operand.vmem [shape: f32[160,196], index: 0, kind: input, shape index: {}]   ;;  %s14934_s1 = inlined_call_operand.vmem [shape: f32[160,1], index: 1, kind: input, shape index: {}]   ;;  %s14935_s2 = inlined_call_operand.vmem [shape: f32[160,1], index: 2, kind: input, shape index: {}]   ;;  %s14936_s3 = inlined_call_operand.vmem [shape: bf16[384,1536], index: 3, kind: input, shape index: {}]   ;;  %s14937_s4 = inlined_call_operand.vmem [shape: f32[384,256], index: 4, kind: output, shape index: {}]  }
   0x1   :  { %v10816_v0 = vld [vmem:[%s14933_s0] sm:$0xff]  ;;  %v10821_v1 = vld [vmem:[%s14933_s0 + $0x8] sm:$0xff]  ;;  %v10838_v5 = vld [vmem:[%s14933_s0 + $0x10] sm:$0xff]  ;;  %s10769_s5 = smov 23   ;;  %s10770_s8 = smov 31   ;;  %vm1442_vm4 = vcmask 646664  }
   0x2   :  { %v10826_v2 = vld [vmem:[%s14933_s0 + $0x20] sm:$0xff]  ;;  %v59_v3 = vsel %vm58_vm0, %v10821_v1, 0.0  ;;  %v10833_v4 = vld [vmem:[%s14933_s0 + $0x28] sm:$0xff]  ;;  %v10843_v6 = vld [vmem:[%s14933_s0 + $0x18] sm:$0xff]  ;;  %s10771_s11 = smov 33   ;;  %s10772_s12 = smov 35  }
   0x3   :  { %v60_v7 = vadd.f32 %v59_v3, %v10816_v0  ;;  %v67_v8 = vsel %vm58_vm0, %v10833_v4, 0.0  ;;  %v63_v9 = vsel %vm58_vm0, %v10843_v6, 0.0  ;;  %v10853_v10 = vld [vmem:[%s14933_s0 + $0x30] sm:$0xff]  ;;  %v10858_v11 = vld [vmem:[%s14933_s0 + $0x38] sm:$0xff]  ;;  %v10866_v14 = vld [vmem:[%s14933_s0 + $0x48] sm:$0xff]  ;;  %s10773_s13 = smov 37  }
   0x4   :  { %v68_v12 = vadd.f32 %v67_v8, %v10826_v2  ;;  %v71_v13 = vsel %vm58_vm0, %v10858_v11, 0.0  ;;  %v10871_v15 = vld [vmem:[%s14933_s0 + $0x58] sm:$0xff]  ;;  %v64_v16 = vadd.f32 %v63_v9, %v10838_v5  ;;  %v10878_v18 = vld [vmem:[%s14933_s0 + $0x40] sm:$0xff]  ;;  %v75_v19 = vsel %vm58_vm0, %v10866_v14, 0.0  ;;  %v10885_v20 = vld [vmem:[%s14933_s0 + $0x50] sm:$0xff]  ;;  %s10775_s19 = smov 25  }
   0x5   :  { %61 = vadd.xlane.f32.xlu0 %v60_v7  ;;  %v72_v17 = vadd.f32 %v71_v13, %v10853_v10  ;;  %v79_v21 = vsel %vm58_vm0, %v10871_v15, 0.0  ;;  %v10892_v22 = vld [vmem:[%s14933_s0 + $0x68] sm:$0xff]  ;;  %v10897_v23 = vld [vmem:[%s14933_s0 + $0x78] sm:$0xff]  ;;  %v76_v24 = vadd.f32 %v75_v19, %v10878_v18  ;;  %v10904_v26 = vld [vmem:[%s14933_s0 + $0x60] sm:$0xff]  ;;  %s10776_s27 = smov 41   ;;  %s10777_s28 = smov 27  }
   0x6   :  { %69 = vadd.xlane.f32.xlu1 %v68_v12  ;;  %v80_v25 = vadd.f32 %v79_v21, %v10885_v20  ;;  %v83_v27 = vsel %vm58_vm0, %v10892_v22, 0.0  ;;  %v10911_v28 = vld [vmem:[%s14933_s0 + $0x70] sm:$0xff]  ;;  %v87_v29 = vsel %vm58_vm0, %v10897_v23, 0.0  ;;  %v10918_v30 = vld [vmem:[%s14933_s0 + $0x88] sm:$0xff]  ;;  %v10923_v31 = vld [vmem:[%s14933_s0 + $0x98] sm:$0xff]  ;;  %s10778_s29 = smov 43  }
   0x7   :  { %v84_v32 = vadd.f32 %v83_v27, %v10904_v26  ;;  %v88_v33 = vadd.f32 %v87_v29, %v10911_v28  ;;  %v10930_v34 = vld [vmem:[%s14933_s0 + $0x80] sm:$0xff]  ;;  %v91_v35 = vsel %vm58_vm0, %v10918_v30, 0.0  ;;  %v10937_v36 = vld [vmem:[%s14933_s0 + $0x90] sm:$0xff]  ;;  %v95_v37 = vsel %vm58_vm0, %v10923_v31, 0.0  ;;  %v10944_v38 = vld [vmem:[%s14933_s0 + $0xa8] sm:$0xff]  ;;  %s10779_s6 = smov 29  }
   0x8   :  { %v10949_v39 = vld [vmem:[%s14933_s0 + $0xb8] sm:$0xff]  ;;  %v92_v40 = vadd.f32 %v91_v35, %v10930_v34  ;;  %v96_v41 = vadd.f32 %v95_v37, %v10937_v36  ;;  %v10956_v42 = vld [vmem:[%s14933_s0 + $0xa0] sm:$0xff]  ;;  %v99_v43 = vsel %vm58_vm0, %v10944_v38, 0.0  ;;  %v10963_v44 = vld [vmem:[%s14933_s0 + $0xb0] sm:$0xff]  ;;  %vm2166_vm5 = vcmask 121864   ;;  %s10780_s24 = smov 127  }
   0x9   :  { %65 = vadd.xlane.f32.xlu0 %v64_v16  ;;  %v103_v45 = vsel %vm58_vm0, %v10949_v39, 0.0  ;;  %v10970_v46 = vld [vmem:[%s14933_s0 + $0xc8] sm:$0xff]  ;;  %v10975_v47 = vld [vmem:[%s14933_s0 + $0xd8] sm:$0xff]  ;;  %v100_v48 = vadd.f32 %v99_v43, %v10956_v42  ;;  %v10982_v50 = vld [vmem:[%s14933_s0 + $0xc0] sm:$0xff]  ;;  %vm2647_vm6 = vcmask 285696   ;;  %vm1623_vm7 = vcmask 777864  }
   0xa   :  { %73 = vadd.xlane.f32.xlu1 %v72_v17  ;;  %v104_v49 = vadd.f32 %v103_v45, %v10963_v44  ;;  %v107_v51 = vsel %vm58_vm0, %v10970_v46, 0.0  ;;  %v10989_v52 = vld [vmem:[%s14933_s0 + $0xd0] sm:$0xff]  ;;  %v111_v53 = vsel %vm58_vm0, %v10975_v47, 0.0  ;;  %v10996_v54 = vld [vmem:[%s14933_s0 + $0xe8] sm:$0xff]  ;;  %v11001_v55 = vld [vmem:[%s14933_s0 + $0xf8] sm:$0xff]  ;;  %vm1804_vm8 = vcmask 909064  }
   0xb   :  { %v108_v56 = vadd.f32 %v107_v51, %v10982_v50  ;;  %v112_v57 = vadd.f32 %v111_v53, %v10989_v52  ;;  %v11008_v58 = vld [vmem:[%s14933_s0 + $0xe0] sm:$0xff]  ;;  %v115_v59 = vsel %vm58_vm0, %v10996_v54, 0.0  ;;  %v11015_v60 = vld [vmem:[%s14933_s0 + $0xf0] sm:$0xff]  ;;  %v119_v61 = vsel %vm58_vm0, %v11001_v55, 0.0  ;;  %v11022_v62 = vld [vmem:[%s14933_s0 + $0x108] sm:$0xff]  ;;  %s10781_s25 = smov 126  }
   0xc   :  { %v11027_v63 = vld [vmem:[%s14933_s0 + $0x118] sm:$0xff]  ;;  %v116_v3 = vadd.f32 %v115_v59, %v11008_v58  ;;  %v120_v7 = vadd.f32 %v119_v61, %v11015_v60  ;;  %v11034_v8 = vld [vmem:[%s14933_s0 + $0x100] sm:$0xff]  ;;  %v123_v9 = vsel %vm58_vm0, %v11022_v62, 0.0  ;;  %v11041_v12 = vld [vmem:[%s14933_s0 + $0x110] sm:$0xff]  ;;  %vm1985_vm9 = vcmask 1040264   ;;  %s10782_s9 = smov 112  }
   0xd   :  { %77 = vadd.xlane.f32.xlu0 %v76_v24  ;;  %v127_v13 = vsel %vm58_vm0, %v11027_v63, 0.0  ;;  %v11048_v16 = vld [vmem:[%s14933_s0 + $0x128] sm:$0xff]  ;;  %v11053_v17 = vld [vmem:[%s14933_s0 + $0x138] sm:$0xff]  ;;  %v124_v19 = vadd.f32 %v123_v9, %v11034_v8  ;;  %v11060_v24 = vld [vmem:[%s14933_s0 + $0x120] sm:$0xff]  ;;  %vm3670_vm10 = vcmask 1039360   ;;  %s10783_s10 = smov 111  }
   0xe   :  { %81 = vadd.xlane.f32.xlu1 %v80_v25  ;;  %v128_v21 = vadd.f32 %v127_v13, %v11041_v12  ;;  %v131_v25 = vsel %vm58_vm0, %v11048_v16, 0.0  ;;  %v11067_v27 = vld [vmem:[%s14933_s0 + $0x130] sm:$0xff]  ;;  %v135_v29 = vsel %vm58_vm0, %v11053_v17, 0.0  ;;  %vm3911_vm11 = vcmask 1031168   ;;  %s10784_s17 = smov 110   ;;  %s10785_s18 = smov 96  }
   0xf   :  { %vm4152_vm12 = vcmask 916480   ;;  %vm4393_vm13 = vcmask 908288   ;;  %vm4634_vm14 = vcmask 900096   ;;  %vm4875_vm15 = vcmask 785408  }
  0x11   :  { %85 = vadd.xlane.f32.xlu0 %v84_v32  ;;  %v132_v32 = vadd.f32 %v131_v25, %v11060_v24 }
  0x12   :  { %89 = vadd.xlane.f32.xlu1 %v88_v33  ;;  %v136_v33 = vadd.f32 %v135_v29, %v11067_v27 }
  0x15   :  { %93 = vadd.xlane.f32.xlu0 %v92_v40 }
  0x16   :  { %97 = vadd.xlane.f32.xlu1 %v96_v41 }
  0x19   :  { %101 = vadd.xlane.f32.xlu0 %v100_v48 }
  0x1a   :  { %105 = vadd.xlane.f32.xlu1 %v104_v49 }
  0x1d   :  { %109 = vadd.xlane.f32.xlu0 %v108_v56 }
  0x1e   :  { %113 = vadd.xlane.f32.xlu1 %v112_v57 }
  0x21   :  { %117 = vadd.xlane.f32.xlu0 %v116_v3 }
  0x22   :  { %121 = vadd.xlane.f32.xlu1 %v120_v7 }
  0x25   :  { %125 = vadd.xlane.f32.xlu0 %v124_v19 }
  0x26   :  { %129 = vadd.xlane.f32.xlu1 %v128_v21 }
  0x29   :  { %133 = vadd.xlane.f32.xlu0 %v132_v32 }
  0x2a   :  { %137 = vadd.xlane.f32.xlu1 %v136_v33 }
  0x92   :  { %v62_v35 = vpop.xlane.xlu0 %61 }
  0x93   :  { %v11073_v37 = vmul.f32 0.0051020407, %v62_v35  ;;  %v70_v40 = vpop.xlane.xlu1 %69 }
  0x94   :  { %v11075_v41 = vmul.f32 0.0051020407, %v70_v40 }
  0x95   :  { %v159_v43 = vsub.f32 %v10816_v0, %v11073_v37  ;;  %v160_v45 = vsub.f32 %v10821_v1, %v11073_v37 }
  0x96   :  { %v66_v48 = vpop.xlane.xlu0 %65  ;;  %v163_v49 = vsub.f32 %v10826_v2, %v11075_v41  ;;  %v164_v51 = vsub.f32 %v10833_v4, %v11075_v41 }
  0x97   :  { %v11085_v53 = vmul.f32 0.0051020407, %v66_v48  ;;  %v74_v56 = vpop.xlane.xlu1 %73  ;;  %v199_v57 = vmul.f32 %v159_v43, %v159_v43  ;;  %v200_v59 = vmul.f32 %v160_v45, %v160_v45 }
  0x98   :  { %v11087_v61 = vmul.f32 0.0051020407, %v74_v56  ;;  %v203_v3 = vmul.f32 %v163_v49, %v163_v49  ;;  %v204_v7 = vmul.f32 %v164_v51, %v164_v51 }
  0x99   :  { %v239_v0 = vsel %vm58_vm0, %v200_v59, 0.0  ;;  %v161_v1 = vsub.f32 %v10838_v5, %v11085_v53  ;;  %v162_v2 = vsub.f32 %v10843_v6, %v11085_v53 }
  0x9a   :  { %v78_v9 = vpop.xlane.xlu0 %77  ;;  %v240_v13 = vadd.f32 %v239_v0, %v199_v57  ;;  %v247_v4 = vsel %vm58_vm0, %v204_v7, 0.0  ;;  %v165_v19 = vsub.f32 %v10853_v10, %v11087_v61  ;;  %v166_v21 = vsub.f32 %v10858_v11, %v11087_v61 }
  0x9b   :  { %v11099_v25 = vmul.f32 0.0051020407, %v78_v9  ;;  %v82_v29 = vpop.xlane.xlu1 %81  ;;  %v201_v32 = vmul.f32 %v161_v1, %v161_v1  ;;  %v202_v33 = vmul.f32 %v162_v2, %v162_v2  ;;  %v248_v35 = vadd.f32 %v247_v4, %v203_v3 }
  0x9c   :  { %241 = vadd.xlane.f32.xlu0 %v240_v13  ;;  %v11101_v5 = vmul.f32 0.0051020407, %v82_v29  ;;  %v205_v6 = vmul.f32 %v165_v19, %v165_v19  ;;  %v206_v40 = vmul.f32 %v166_v21, %v166_v21 }
  0x9d   :  { %v243_v43 = vsel %vm58_vm0, %v202_v33, 0.0  ;;  %v167_v45 = vsub.f32 %v10878_v18, %v11099_v25  ;;  %v168_v10 = vsub.f32 %v10866_v14, %v11099_v25 }
  0x9e   :  { %v86_v11 = vpop.xlane.xlu0 %85  ;;  %v244_v48 = vadd.f32 %v243_v43, %v201_v32  ;;  %v251_v49 = vsel %vm58_vm0, %v206_v40, 0.0  ;;  %v169_v51 = vsub.f32 %v10885_v20, %v11101_v5  ;;  %v170_v56 = vsub.f32 %v10871_v15, %v11101_v5 }
  0x9f   :  { %v11113_v57 = vmul.f32 0.0051020407, %v86_v11  ;;  %v90_v59 = vpop.xlane.xlu1 %89  ;;  %v207_v3 = vmul.f32 %v167_v45, %v167_v45  ;;  %v208_v7 = vmul.f32 %v168_v10, %v168_v10  ;;  %v252_v14 = vadd.f32 %v251_v49, %v205_v6 }
  0xa0   :  { %249 = vadd.xlane.f32.xlu0 %v248_v35  ;;  %245 = vadd.xlane.f32.xlu1 %v244_v48  ;;  %v11115_v18 = vmul.f32 0.0051020407, %v90_v59  ;;  %v209_v0 = vmul.f32 %v169_v51, %v169_v51  ;;  %v210_v1 = vmul.f32 %v170_v56, %v170_v56 }
  0xa1   :  { %v255_v2 = vsel %vm58_vm0, %v208_v7, 0.0  ;;  %v171_v20 = vsub.f32 %v10904_v26, %v11113_v57  ;;  %v172_v15 = vsub.f32 %v10892_v22, %v11113_v57 }
  0xa2   :  { %v94_v9 = vpop.xlane.xlu0 %93  ;;  %v256_v13 = vadd.f32 %v255_v2, %v207_v3  ;;  %v259_v4 = vsel %vm58_vm0, %v210_v1, 0.0  ;;  %v173_v19 = vsub.f32 %v10911_v28, %v11115_v18  ;;  %v174_v21 = vsub.f32 %v10897_v23, %v11115_v18 }
  0xa3   :  { %v11127_v29 = vmul.f32 0.0051020407, %v94_v9  ;;  %v98_v32 = vpop.xlane.xlu1 %97  ;;  %v211_v33 = vmul.f32 %v171_v20, %v171_v20  ;;  %v212_v35 = vmul.f32 %v172_v15, %v172_v15  ;;  %v260_v22 = vadd.f32 %v259_v4, %v209_v0 }
  0xa4   :  { %253 = vadd.xlane.f32.xlu1 %v252_v14  ;;  %257 = vadd.xlane.f32.xlu0 %v256_v13  ;;  %v11129_v26 = vmul.f32 0.0051020407, %v98_v32  ;;  %v213_v6 = vmul.f32 %v173_v19, %v173_v19  ;;  %v214_v40 = vmul.f32 %v174_v21, %v174_v21 }
  0xa5   :  { %v263_v43 = vsel %vm58_vm0, %v212_v35, 0.0  ;;  %v175_v28 = vsub.f32 %v10930_v34, %v11127_v29  ;;  %v176_v23 = vsub.f32 %v10918_v30, %v11127_v29 }
  0xa6   :  { %v102_v45 = vpop.xlane.xlu0 %101  ;;  %v264_v10 = vadd.f32 %v263_v43, %v211_v33  ;;  %v267_v11 = vsel %vm58_vm0, %v214_v40, 0.0  ;;  %v177_v48 = vsub.f32 %v10937_v36, %v11129_v26  ;;  %v178_v49 = vsub.f32 %v10923_v31, %v11129_v26 }
  0xa7   :  { %v11141_v51 = vmul.f32 0.0051020407, %v102_v45  ;;  %v106_v56 = vpop.xlane.xlu1 %105  ;;  %v215_v59 = vmul.f32 %v175_v28, %v175_v28  ;;  %v216_v3 = vmul.f32 %v176_v23, %v176_v23  ;;  %v268_v30 = vadd.f32 %v267_v11, %v213_v6 }
  0xa8   :  { %261 = vadd.xlane.f32.xlu1 %v260_v22  ;;  %265 = vadd.xlane.f32.xlu0 %v264_v10  ;;  %v11143_v34 = vmul.f32 0.0051020407, %v106_v56  ;;  %v217_v7 = vmul.f32 %v177_v48, %v177_v48  ;;  %v218_v14 = vmul.f32 %v178_v49, %v178_v49 }
  0xa9   :  { %v271_v0 = vsel %vm58_vm0, %v216_v3, 0.0  ;;  %v179_v36 = vsub.f32 %v10956_v42, %v11141_v51  ;;  %v180_v31 = vsub.f32 %v10944_v38, %v11141_v51 }
  0xaa   :  { %v110_v1 = vpop.xlane.xlu0 %109  ;;  %v272_v2 = vadd.f32 %v271_v0, %v215_v59  ;;  %v275_v20 = vsel %vm58_vm0, %v218_v14, 0.0  ;;  %v181_v15 = vsub.f32 %v10963_v44, %v11143_v34  ;;  %v182_v9 = vsub.f32 %v10949_v39, %v11143_v34 }
  0xab   :  { %v11155_v13 = vmul.f32 0.0051020407, %v110_v1  ;;  %v114_v4 = vpop.xlane.xlu1 %113  ;;  %v219_v19 = vmul.f32 %v179_v36, %v179_v36  ;;  %v220_v21 = vmul.f32 %v180_v31, %v180_v31  ;;  %v276_v38 = vadd.f32 %v275_v20, %v217_v7 }
  0xac   :  { %269 = vadd.xlane.f32.xlu1 %v268_v30  ;;  %273 = vadd.xlane.f32.xlu0 %v272_v2  ;;  %v11157_v42 = vmul.f32 0.0051020407, %v114_v4  ;;  %v221_v32 = vmul.f32 %v181_v15, %v181_v15  ;;  %v222_v33 = vmul.f32 %v182_v9, %v182_v9 }
  0xad   :  { %v279_v35 = vsel %vm58_vm0, %v220_v21, 0.0  ;;  %v183_v44 = vsub.f32 %v10982_v50, %v11155_v13  ;;  %v184_v39 = vsub.f32 %v10970_v46, %v11155_v13 }
  0xae   :  { %v118_v22 = vpop.xlane.xlu0 %117  ;;  %v280_v6 = vadd.f32 %v279_v35, %v219_v19  ;;  %v283_v40 = vsel %vm58_vm0, %v222_v33, 0.0  ;;  %v185_v43 = vsub.f32 %v10989_v52, %v11157_v42  ;;  %v186_v28 = vsub.f32 %v10975_v47, %v11157_v42 }
  0xaf   :  { %v11169_v23 = vmul.f32 0.0051020407, %v118_v22  ;;  %v122_v45 = vpop.xlane.xlu1 %121  ;;  %v223_v10 = vmul.f32 %v183_v44, %v183_v44  ;;  %v224_v11 = vmul.f32 %v184_v39, %v184_v39  ;;  %v284_v46 = vadd.f32 %v283_v40, %v221_v32 }
  0xb0   :  { %277 = vadd.xlane.f32.xlu1 %v276_v38  ;;  %281 = vadd.xlane.f32.xlu0 %v280_v6  ;;  %v11171_v50 = vmul.f32 0.0051020407, %v122_v45  ;;  %v225_v48 = vmul.f32 %v185_v43, %v185_v43  ;;  %v226_v49 = vmul.f32 %v186_v28, %v186_v28 }
  0xb1   :  { %v287_v56 = vsel %vm58_vm0, %v224_v11, 0.0  ;;  %v187_v52 = vsub.f32 %v11008_v58, %v11169_v23  ;;  %v188_v47 = vsub.f32 %v10996_v54, %v11169_v23 }
  0xb2   :  { %v126_v59 = vpop.xlane.xlu0 %125  ;;  %v288_v3 = vadd.f32 %v287_v56, %v223_v10  ;;  %v291_v30 = vsel %vm58_vm0, %v226_v49, 0.0  ;;  %v189_v7 = vsub.f32 %v11015_v60, %v11171_v50  ;;  %v190_v14 = vsub.f32 %v11001_v55, %v11171_v50 }
  0xb3   :  { %v11183_v0 = vmul.f32 0.0051020407, %v126_v59  ;;  %v130_v36 = vpop.xlane.xlu1 %129  ;;  %v227_v31 = vmul.f32 %v187_v52, %v187_v52  ;;  %v228_v1 = vmul.f32 %v188_v47, %v188_v47  ;;  %v292_v54 = vadd.f32 %v291_v30, %v225_v48 }
  0xb4   :  { %285 = vadd.xlane.f32.xlu1 %v284_v46  ;;  %289 = vadd.xlane.f32.xlu0 %v288_v3  ;;  %v11185_v58 = vmul.f32 0.0051020407, %v130_v36  ;;  %v229_v2 = vmul.f32 %v189_v7, %v189_v7  ;;  %v230_v20 = vmul.f32 %v190_v14, %v190_v14  ;;  %v10764_v56 = vmov 0  }
  0xb5   :  { %v295_v15 = vsel %vm58_vm0, %v228_v1, 0.0  ;;  %v191_v60 = vsub.f32 %v11034_v8, %v11183_v0  ;;  %v192_v55 = vsub.f32 %v11022_v62, %v11183_v0  ;;  %10288 = vset.pattern.permute.xlu0 %v10764_v56  ;;  %10289 = vset.pattern.permute.xlu1 %v10764_v56  ;;  %v342_v56 = vld [vmem:[%s14934_s1 + $0x18] sm:$0xff] }
  0xb6   :  { %v134_v9 = vpop.xlane.xlu0 %133  ;;  %v296_v4 = vadd.f32 %v295_v15, %v227_v31  ;;  %v299_v19 = vsel %vm58_vm0, %v230_v20, 0.0  ;;  %v193_v21 = vsub.f32 %v11041_v12, %v11185_v58  ;;  %v194_v38 = vsub.f32 %v11027_v63, %v11185_v58 }
  0xb7   :  { %v11197_v32 = vmul.f32 0.0051020407, %v134_v9  ;;  %v138_v33 = vpop.xlane.xlu1 %137  ;;  %v231_v35 = vmul.f32 %v191_v60, %v191_v60  ;;  %v232_v44 = vmul.f32 %v192_v55, %v192_v55  ;;  %v300_v62 = vadd.f32 %v299_v19, %v229_v2  ;;  %v339_v9 = vld [vmem:[%s14934_s1] sm:$0xff] }
  0xb8   :  { %293 = vadd.xlane.f32.xlu1 %v292_v54  ;;  %297 = vadd.xlane.f32.xlu0 %v296_v4  ;;  %v11199_v8 = vmul.f32 0.0051020407, %v138_v33  ;;  %v233_v39 = vmul.f32 %v193_v21, %v193_v21  ;;  %v234_v22 = vmul.f32 %v194_v38, %v194_v38 }
  0xb9   :  { %v303_v6 = vsel %vm58_vm0, %v232_v44, 0.0  ;;  %v195_v12 = vsub.f32 %v11060_v24, %v11197_v32  ;;  %v196_v63 = vsub.f32 %v11048_v16, %v11197_v32  ;;  %v340_v44 = vld [vmem:[%s14934_s1 + $0x8] sm:$0xff] }
  0xba   :  { %v304_v40 = vadd.f32 %v303_v6, %v231_v35  ;;  %v307_v43 = vsel %vm58_vm0, %v234_v22, 0.0  ;;  %v197_v28 = vsub.f32 %v11067_v27, %v11199_v8  ;;  %v198_v45 = vsub.f32 %v11053_v17, %v11199_v8 }
  0xbb   :  { %v235_v10 = vmul.f32 %v195_v12, %v195_v12  ;;  %v236_v11 = vmul.f32 %v196_v63, %v196_v63  ;;  %v308_v46 = vadd.f32 %v307_v43, %v233_v39 }
  0xbc   :  { %301 = vadd.xlane.f32.xlu1 %v300_v62  ;;  %305 = vadd.xlane.f32.xlu0 %v304_v40  ;;  %v237_v48 = vmul.f32 %v197_v28, %v197_v28  ;;  %v238_v49 = vmul.f32 %v198_v45, %v198_v45  ;;  %v341_v28 = vld [vmem:[%s14934_s1 + $0x10] sm:$0xff] }
  0xbd   :  { %v311_v24 = vsel %vm58_vm0, %v236_v11, 0.0 }
  0xbe   :  { %v312_v16 = vadd.f32 %v311_v24, %v235_v10  ;;  %v315_v52 = vsel %vm58_vm0, %v238_v49, 0.0  ;;  %vm5116_vm0 = vcmask 777216  }
  0xbf   :  { %v316_v27 = vadd.f32 %v315_v52, %v237_v48 }
  0xc0   :  { %309 = vadd.xlane.f32.xlu1 %v308_v46  ;;  %313 = vadd.xlane.f32.xlu0 %v312_v16 }
  0xc4   :  { %317 = vadd.xlane.f32.xlu1 %v316_v27 }
 0x129   :  { %v242_v17 = vpop.xlane.xlu0 %241 }
 0x12a   :  { %v319_v47 = vmul.f32 0.0051020407, %v242_v17 }
 0x12c   :  { %v359_v59 = vadd.f32 0.001, %v319_v47 }
 0x12d   :  { %v246_v3 = vpop.xlane.xlu1 %245  ;;  %v250_v30 = vpop.xlane.xlu0 %249 }
 0x12e   :  { %10721 = vrsqrt.f32 %v359_v59  ;;  %v320_v7 = vmul.f32 0.0051020407, %v246_v3  ;;  %v321_v14 = vmul.f32 0.0051020407, %v250_v30 }
 0x130   :  { %v360_v36 = vadd.f32 0.001, %v320_v7  ;;  %v361_v31 = vadd.f32 0.001, %v321_v14  ;;  %v343_v7 = vld [vmem:[%s14934_s1 + $0x20] sm:$0xff] }
 0x131   :  { %v254_v1 = vpop.xlane.xlu1 %253  ;;  %v258_v54 = vpop.xlane.xlu0 %257 }
 0x132   :  { %10723 = vrsqrt.f32 %v360_v36  ;;  %v322_v2 = vmul.f32 0.0051020407, %v254_v1  ;;  %v323_v15 = vmul.f32 0.0051020407, %v258_v54 }
 0x133   :  { %10725 = vrsqrt.f32 %v361_v31 }
 0x134   :  { %v362_v20 = vadd.f32 0.001, %v322_v2  ;;  %v363_v19 = vadd.f32 0.001, %v323_v15 }
 0x135   :  { %v262_v60 = vpop.xlane.xlu1 %261  ;;  %v266_v55 = vpop.xlane.xlu0 %265 }
 0x136   :  { %10727 = vrsqrt.f32 %v362_v20  ;;  %v324_v21 = vmul.f32 0.0051020407, %v262_v60  ;;  %v325_v22 = vmul.f32 0.0051020407, %v266_v55  ;;  %v348_v60 = vld [vmem:[%s14934_s1 + $0x48] sm:$0xff] }
 0x137   :  { %10729 = vrsqrt.f32 %v363_v19  ;;  %v344_v55 = vld [vmem:[%s14934_s1 + $0x28] sm:$0xff] }
 0x138   :  { %v10722_v4 = vpop.eup %10721  ;;  %v364_v39 = vadd.f32 0.001, %v324_v21  ;;  %v365_v45 = vadd.f32 0.001, %v325_v22  ;;  %v350_v22 = vld [vmem:[%s14934_s1 + $0x58] sm:$0xff] }
 0x139   :  { %v270_v38 = vpop.xlane.xlu1 %269  ;;  %v274_v33 = vpop.xlane.xlu0 %273  ;;  %v11216_v35 = vmul.f32 %v10722_v4, %v339_v9 }
 0x13a   :  { %10731 = vrsqrt.f32 %v364_v39  ;;  %v326_v10 = vmul.f32 0.0051020407, %v270_v38  ;;  %v327_v27 = vmul.f32 0.0051020407, %v274_v33 }
 0x13b   :  { %481 = vperm.xlu0 %10288, %v11216_v35  }
 0x13c   :  { %v10724_v62 = vpop.eup %10723  ;;  %v366_v52 = vadd.f32 0.001, %v326_v10  ;;  %v367_v14 = vadd.f32 0.001, %v327_v27 }
 0x13d   :  { %v278_v6 = vpop.xlane.xlu1 %277  ;;  %v282_v12 = vpop.xlane.xlu0 %281  ;;  %v11222_v63 = vmul.f32 %v10724_v62, %v340_v44 }
 0x13e   :  { %v10726_v40 = vpop.eup %10725  ;;  %v328_v43 = vmul.f32 0.0051020407, %v278_v6  ;;  %v329_v36 = vmul.f32 0.0051020407, %v282_v12  ;;  %v345_v6 = vld [vmem:[%s14934_s1 + $0x30] sm:$0xff] }
 0x13f   :  { %486 = vperm.xlu1 %10289, %v11222_v63   ;;  %v11228_v48 = vmul.f32 %v10726_v40, %v341_v28 }
 0x140   :  { %v368_v11 = vadd.f32 0.001, %v328_v43  ;;  %v10728_v49 = vpop.eup %10727  ;;  %v369_v4 = vadd.f32 0.001, %v329_v36  ;;  %v354_v36 = vld [vmem:[%s14934_s1 + $0x78] sm:$0xff] }
 0x141   :  { %v286_v46 = vpop.xlane.xlu1 %285  ;;  %v290_v16 = vpop.xlane.xlu0 %289  ;;  %v11234_v59 = vmul.f32 %v10728_v49, %v342_v56  ;;  %v352_v56 = vld [vmem:[%s14934_s1 + $0x68] sm:$0xff] }
 0x142   :  { %10733 = vrsqrt.f32 %v368_v11  ;;  %v330_v24 = vmul.f32 0.0051020407, %v286_v46  ;;  %v10730_v3 = vpop.eup %10729  ;;  %v331_v19 = vmul.f32 0.0051020407, %v290_v16  ;;  %v346_v16 = vld [vmem:[%s14934_s1 + $0x38] sm:$0xff] }
 0x143   :  { %491 = vperm.xlu1 %10289, %v11228_v48   ;;  %10735 = vrsqrt.f32 %v365_v45  ;;  %v11240_v2 = vmul.f32 %v10730_v3, %v343_v7 }
 0x144   :  { %v370_v17 = vadd.f32 0.001, %v330_v24  ;;  %v10732_v20 = vpop.eup %10731  ;;  %v371_v43 = vadd.f32 0.001, %v331_v19 }
 0x145   :  { %v294_v47 = vpop.xlane.xlu1 %293  ;;  %v298_v1 = vpop.xlane.xlu0 %297  ;;  %v11251_v44 = vmul.f32 %v10732_v20, %v344_v55 }
 0x146   :  { %10737 = vrsqrt.f32 %v370_v17  ;;  %v332_v30 = vmul.f32 0.0051020407, %v294_v47  ;;  %v333_v28 = vmul.f32 0.0051020407, %v298_v1 }
 0x147   :  { %496 = vperm.xlu1 %10289, %v11234_v59   ;;  %10739 = vrsqrt.f32 %v366_v52 }
 0x148   :  { %v372_v31 = vadd.f32 0.001, %v332_v30  ;;  %v373_v27 = vadd.f32 0.001, %v333_v28  ;;  %v440_v28 = vmul.f32 %v11222_v63, %v11085_v53  ;;  %v422_v63 = vld [vmem:[%s14935_s2 + $0x18] sm:$0xff] }
 0x149   :  { %v302_v54 = vpop.xlane.xlu1 %301  ;;  %v306_v12 = vpop.xlane.xlu0 %305 }
 0x14a   :  { %10741 = vrsqrt.f32 %v372_v31  ;;  %v334_v15 = vmul.f32 0.0051020407, %v302_v54  ;;  %v335_v17 = vmul.f32 0.0051020407, %v306_v12  ;;  %v347_v31 = vld [vmem:[%s14934_s1 + $0x40] sm:$0xff] }
 0x14b   :  { %501 = vperm.xlu1 %10289, %v11240_v2   ;;  %10743 = vrsqrt.f32 %v367_v14 }
 0x14c   :  { %v10734_v9 = vpop.eup %10733  ;;  %v374_v21 = vadd.f32 0.001, %v334_v15  ;;  %v375_v54 = vadd.f32 0.001, %v335_v17 }
 0x14d   :  { %v310_v38 = vpop.xlane.xlu1 %309  ;;  %v11249_v33 = vmul.f32 %v10734_v9, %v348_v60  ;;  %v10736_v62 = vpop.eup %10735  ;;  %v356_v9 = vld [vmem:[%s14934_s1 + $0x88] sm:$0xff] }
 0x14e   :  { %10745 = vrsqrt.f32 %v374_v21  ;;  %v336_v39 = vmul.f32 0.0051020407, %v310_v38  ;;  %v11263_v46 = vmul.f32 %v10736_v62, %v345_v6  ;;  %v314_v3 = vpop.xlane.xlu0 %313  ;;  %v351_v6 = vld [vmem:[%s14934_s1 + $0x60] sm:$0xff] }
 0x14f   :  { %526 = vperm.xlu0 %10288, %v11249_v33   ;;  %506 = vperm.xlu1 %10289, %v11251_v44   ;;  %10747 = vrsqrt.f32 %v369_v4  ;;  %v337_v20 = vmul.f32 0.0051020407, %v314_v3  ;;  %v349_v4 = vld [vmem:[%s14934_s1 + $0x50] sm:$0xff] }
 0x150   :  { %v10738_v40 = vpop.eup %10737  ;;  %v376_v45 = vadd.f32 0.001, %v336_v39 }
 0x151   :  { %v318_v10 = vpop.xlane.xlu1 %317  ;;  %v11261_v11 = vmul.f32 %v10738_v40, %v350_v22  ;;  %v10740_v49 = vpop.eup %10739  ;;  %v377_v21 = vadd.f32 0.001, %v337_v20  ;;  %v358_v22 = vld [vmem:[%s14934_s1 + $0x98] sm:$0xff] }
 0x152   :  { %10749 = vrsqrt.f32 %v376_v45  ;;  %v338_v24 = vmul.f32 0.0051020407, %v318_v10  ;;  %v406_v7 = vmul.f32 %v10740_v49, %v346_v16  ;;  %v420_v10 = vld [vmem:[%s14935_s2 + $0x8] sm:$0xff]  ;;  %v353_v49 = vld [vmem:[%s14934_s1 + $0x70] sm:$0xff]  ;;  %v442_v16 = vmul.f32 %v11234_v59, %v11087_v61 }
 0x153   :  { %536 = vperm.xlu0 %10288, %v11261_v11   ;;  %511 = vperm.xlu1 %10289, %v11263_v46   ;;  %10751 = vrsqrt.f32 %v371_v43  ;;  %v424_v61 = vld [vmem:[%s14935_s2 + $0x28] sm:$0xff]  ;;  %v357_v59 = vld [vmem:[%s14934_s1 + $0x90] sm:$0xff] }
 0x154   :  { %v10742_v52 = vpop.eup %10741  ;;  %v378_v47 = vadd.f32 0.001, %v338_v24  ;;  %v460_v24 = vsub.f32 %v420_v10, %v440_v28 }
 0x155   :  { %v11273_v30 = vmul.f32 %v10742_v52, %v352_v56  ;;  %v10744_v14 = vpop.eup %10743  ;;  %v355_v52 = vld [vmem:[%s14934_s1 + $0x80] sm:$0xff] }
 0x156   :  { %10753 = vrsqrt.f32 %v378_v47  ;;  %v11284_v60 = vmul.f32 %v10744_v14, %v347_v31  ;;  %v444_v47 = vmul.f32 %v11251_v44, %v11101_v5  ;;  %v446_v31 = vmul.f32 %v406_v7, %v11115_v18  ;;  %v426_v44 = vld [vmem:[%s14935_s2 + $0x38] sm:$0xff] }
 0x157   :  { %546 = vperm.xlu0 %10288, %v11273_v30   ;;  %516 = vperm.xlu1 %10289, %v406_v7   ;;  %10755 = vrsqrt.f32 %v373_v27  ;;  %v462_v27 = vsub.f32 %v422_v63, %v442_v16  ;;  %v439_v5 = vmul.f32 %v11216_v35, %v11073_v37  ;;  %v441_v18 = vmul.f32 %v11228_v48, %v11075_v41  ;;  %v428_v37 = vld [vmem:[%s14935_s2 + $0x48] sm:$0xff]  ;;  %v421_v35 = vld [vmem:[%s14935_s2 + $0x10] sm:$0xff]  ;;  %v430_v41 = vld [vmem:[%s14935_s2 + $0x58] sm:$0xff] }
 0x158   :  { %v10746_v1 = vpop.eup %10745  ;;  %10757 = vrsqrt.f32 %v375_v54  ;;  %v464_v14 = vsub.f32 %v424_v61, %v444_v47  ;;  %v466_v54 = vsub.f32 %v426_v44, %v446_v31  ;;  %v423_v48 = vld [vmem:[%s14935_s2 + $0x20] sm:$0xff]  ;;  %v10765_v31 = vmov 0.0  }
 0x159   :  { %v11282_v15 = vmul.f32 %v10746_v1, %v354_v36  ;;  %v10748_v55 = vpop.eup %10747  ;;  %10759 = vrsqrt.f32 %v377_v21  ;;  %v419_v1 = vld [vmem:[%s14935_s2] sm:$0xff]  ;;  %v452_v21 = vmul.f32 %v11273_v30, %v11157_v42  ;;  %v447_v42 = vmul.f32 %v11284_v60, %v11127_v29  ;;  %v436_v29 = vld [vmem:[%s14935_s2 + $0x88] sm:$0xff]  ;;  %682 = vst [vmem:[#allocation2 + $0x18] sm:$0xff] %v10765_v31  ;;  %679 = vst [vmem:[#allocation2] sm:$0xff] %v10765_v31 }
 0x15a   :  { %v11296_v62 = vmul.f32 %v10748_v55, %v349_v4  ;;  %v459_v20 = vsub.f32 %v419_v1, %v439_v5  ;;  %v448_v55 = vmul.f32 %v11249_v33, %v11129_v26  ;;  %v450_v4 = vmul.f32 %v11261_v11, %v11143_v34  ;;  %680 = vst [vmem:[#allocation2 + $0x8] sm:$0xff] %v10765_v31 }
 0x15b   :  { %556 = vperm.xlu0 %10288, %v11282_v15   ;;  %521 = vperm.xlu1 %10289, %v11284_v60   ;;  %v443_v26 = vmul.f32 %v11240_v2, %v11099_v25  ;;  %v445_v34 = vmul.f32 %v11263_v46, %v11113_v57  ;;  %v432_v25 = vld [vmem:[%s14935_s2 + $0x68] sm:$0xff]  ;;  %v425_v2 = vld [vmem:[%s14935_s2 + $0x30] sm:$0xff]  ;;  %v434_v57 = vld [vmem:[%s14935_s2 + $0x78] sm:$0xff]  ;;  %681 = vst [vmem:[#allocation2 + $0x10] sm:$0xff] %v10765_v31 }
 0x15c   :  { %v10750_v19 = vpop.eup %10749  ;;  %v468_v7 = vsub.f32 %v428_v37, %v448_v55  ;;  %v470_v33 = vsub.f32 %v430_v41, %v450_v4  ;;  %v472_v11 = vsub.f32 %v432_v25, %v452_v21  ;;  %v427_v46 = vld [vmem:[%s14935_s2 + $0x40] sm:$0xff]  ;;  %683 = vst [vmem:[#allocation2 + $0x20] sm:$0xff] %v10765_v31  ;;  %685 = vst [vmem:[#allocation2 + $0x30] sm:$0xff] %v10765_v31 }
 0x15d   :  { %v11294_v38 = vmul.f32 %v10750_v19, %v356_v9  ;;  %v10752_v39 = vpop.eup %10751  ;;  %v461_v9 = vsub.f32 %v421_v35, %v441_v18  ;;  %v463_v19 = vsub.f32 %v423_v48, %v443_v26  ;;  %686 = vst [vmem:[#allocation2 + $0x38] sm:$0xff] %v10765_v31  ;;  %688 = vst [vmem:[#allocation2 + $0x48] sm:$0xff] %v10765_v31  ;;  %v742_v35 = vld [vmem:[%s14933_s0 + $0x30] sm:$0xff] }
 0x15e   :  { %v11308_v43 = vmul.f32 %v10752_v39, %v351_v6  ;;  %v465_v39 = vsub.f32 %v425_v2, %v445_v34  ;;  %v467_v6 = vsub.f32 %v427_v46, %v447_v42  ;;  %689 = vst [vmem:[#allocation2 + $0x50] sm:$0xff] %v10765_v31  ;;  %691 = vst [vmem:[#allocation2 + $0x60] sm:$0xff] %v10765_v31  ;;  %v744_v48 = vld [vmem:[%s14933_s0 + $0x50] sm:$0xff]  ;;  %v739_v2 = vld [vmem:[%s14933_s0] sm:$0xff] }
 0x15f   :  { %566 = vperm.xlu0 %10288, %v11294_v38   ;;  %531 = vperm.xlu1 %10289, %v11296_v62   ;;  %692 = vst [vmem:[#allocation2 + $0x68] sm:$0xff] %v10765_v31  ;;  %694 = vst [vmem:[#allocation2 + $0x78] sm:$0xff] %v10765_v31 }
 0x160   :  { %v10754_v12 = vpop.eup %10753  ;;  %695 = vst [vmem:[#allocation2 + $0x80] sm:$0xff] %v10765_v31  ;;  %697 = vst [vmem:[#allocation2 + $0x90] sm:$0xff] %v10765_v31 }
 0x161   :  { %v11306_v40 = vmul.f32 %v10754_v12, %v358_v22  ;;  %v10756_v45 = vpop.eup %10755  ;;  %v454_v22 = vmul.f32 %v11282_v15, %v11171_v50  ;;  %v456_v12 = vmul.f32 %v11294_v38, %v11185_v58  ;;  %v449_v50 = vmul.f32 %v11296_v62, %v11141_v51  ;;  %v429_v15 = vld [vmem:[%s14935_s2 + $0x50] sm:$0xff]  ;;  %v438_v51 = vld [vmem:[%s14935_s2 + $0x98] sm:$0xff]  ;;  %v431_v38 = vld [vmem:[%s14935_s2 + $0x60] sm:$0xff]  ;;  %698 = vst [vmem:[#allocation2 + $0x98] sm:$0xff] %v10765_v31 }
 0x162   :  { %v11320_v56 = vmul.f32 %v10756_v45, %v353_v49  ;;  %v10758_v53 = vpop.eup %10757  ;;  %v451_v58 = vmul.f32 %v11308_v43, %v11155_v13  ;;  %700 = vst [vmem:[#allocation2 + $0xa8] sm:$0xff] %v10765_v31  ;;  %701 = vst [vmem:[#allocation2 + $0xb0] sm:$0xff] %v10765_v31 }
 0x163   :  { %576 = vperm.xlu0 %10288, %v11306_v40   ;;  %541 = vperm.xlu1 %10289, %v11308_v43   ;;  %v11331_v17 = vmul.f32 %v10758_v53, %v355_v52  ;;  %v10760_v3 = vpop.eup %10759  ;;  %v474_v30 = vsub.f32 %v434_v57, %v454_v22  ;;  %v476_v60 = vsub.f32 %v436_v29, %v456_v12  ;;  %v435_v43 = vld [vmem:[%s14935_s2 + $0x80] sm:$0xff]  ;;  %v748_v12 = vld [vmem:[%s14933_s0 + $0x90] sm:$0xff] }
 0x164   :  { %v11342_v36 = vmul.f32 %v10760_v3, %v357_v59  ;;  %v469_v28 = vsub.f32 %v429_v15, %v449_v50  ;;  %v458_v45 = vmul.f32 %v11306_v40, %v11199_v8  ;;  %v471_v10 = vsub.f32 %v431_v38, %v451_v58  ;;  %v433_v8 = vld [vmem:[%s14935_s2 + $0x70] sm:$0xff]  ;;  %703 = vst [vmem:[#allocation2 + $0xc0] sm:$0xff] %v10765_v31  ;;  %v743_v38 = vld [vmem:[%s14933_s0 + $0x40] sm:$0xff] }
 0x165   :  { %v453_v49 = vmul.f32 %v11320_v56, %v11169_v23  ;;  %v455_v40 = vmul.f32 %v11331_v17, %v11183_v0  ;;  %v437_v23 = vld [vmem:[%s14935_s2 + $0x90] sm:$0xff]  ;;  %704 = vst [vmem:[#allocation2 + $0xc8] sm:$0xff] %v10765_v31  ;;  %706 = vst [vmem:[#allocation2 + $0xd8] sm:$0xff] %v10765_v31  ;;  %s10774_s2 = smov 39  }
 0x166   :  { %v478_v62 = vsub.f32 %v438_v51, %v458_v45  ;;  %v457_v16 = vmul.f32 %v11342_v36, %v11197_v32  ;;  %707 = vst [vmem:[#allocation2 + $0xe0] sm:$0xff] %v10765_v31  ;;  %709 = vst [vmem:[#allocation2 + $0xf0] sm:$0xff] %v10765_v31 }
 0x167   :  { %586 = vperm.xlu0 %10288, %v460_v24   ;;  %551 = vperm.xlu1 %10289, %v11320_v56   ;;  %v473_v13 = vsub.f32 %v433_v8, %v453_v49  ;;  %v475_v24 = vsub.f32 %v435_v43, %v455_v40  ;;  %710 = vst [vmem:[#allocation2 + $0xf8] sm:$0xff] %v10765_v31  ;;  %712 = vst [vmem:[#allocation2 + $0x108] sm:$0xff] %v10765_v31 }
 0x168   :  { %v477_v56 = vsub.f32 %v437_v23, %v457_v16  ;;  %713 = vst [vmem:[#allocation2 + $0x110] sm:$0xff] %v10765_v31  ;;  %715 = vst [vmem:[#allocation2 + $0x120] sm:$0xff] %v10765_v31  ;;  %v745_v23 = vld [vmem:[%s14933_s0 + $0x60] sm:$0xff] }
 0x169   :  { %716 = vst [vmem:[#allocation2 + $0x128] sm:$0xff] %v10765_v31  ;;  %718 = vst [vmem:[#allocation2 + $0x138] sm:$0xff] %v10765_v31 }
 0x16a   :  { %719 = vst [vmem:[#allocation2 + $0x140] sm:$0xff] %v10765_v31  ;;  %721 = vst [vmem:[#allocation2 + $0x150] sm:$0xff] %v10765_v31 }
 0x16b   :  { %596 = vperm.xlu0 %10288, %v462_v27   ;;  %561 = vperm.xlu1 %10289, %v11331_v17   ;;  %722 = vst [vmem:[#allocation2 + $0x158] sm:$0xff] %v10765_v31  ;;  %724 = vst [vmem:[#allocation2 + $0x168] sm:$0xff] %v10765_v31 }
 0x16c   :  { %725 = vst [vmem:[#allocation2 + $0x170] sm:$0xff] %v10765_v31  ;;  %727 = vst [vmem:[#allocation2 + $0x180] sm:$0xff] %v10765_v31 }
 0x16d   :  { %728 = vst [vmem:[#allocation2 + $0x188] sm:$0xff] %v10765_v31  ;;  %730 = vst [vmem:[#allocation2 + $0x198] sm:$0xff] %v10765_v31 }
 0x16e   :  { %731 = vst [vmem:[#allocation2 + $0x1a0] sm:$0xff] %v10765_v31  ;;  %733 = vst [vmem:[#allocation2 + $0x1b0] sm:$0xff] %v10765_v31 }
 0x16f   :  { %606 = vperm.xlu0 %10288, %v464_v14   ;;  %571 = vperm.xlu1 %10289, %v11342_v36   ;;  %734 = vst [vmem:[#allocation2 + $0x1b8] sm:$0xff] %v10765_v31  ;;  %736 = vst [vmem:[#allocation2 + $0x1c8] sm:$0xff] %v10765_v31 }
 0x170   :  { %737 = vst [vmem:[#allocation2 + $0x1d0] sm:$0xff] %v10765_v31 }
 0x173   :  { %616 = vperm.xlu0 %10288, %v466_v54   ;;  %581 = vperm.xlu1 %10289, %v459_v20   ;;  %v740_v20 = vld [vmem:[%s14933_s0 + $0x10] sm:$0xff] }
 0x177   :  { %626 = vperm.xlu0 %10288, %v468_v7   ;;  %591 = vperm.xlu1 %10289, %v461_v9  }
 0x17b   :  { %636 = vperm.xlu0 %10288, %v470_v33   ;;  %601 = vperm.xlu1 %10289, %v463_v19  }
 0x17f   :  { %646 = vperm.xlu0 %10288, %v472_v11   ;;  %611 = vperm.xlu1 %10289, %v465_v39   ;;  %v746_v11 = vld [vmem:[%s14933_s0 + $0x70] sm:$0xff] }
 0x183   :  { %656 = vperm.xlu0 %10288, %v474_v30   ;;  %621 = vperm.xlu1 %10289, %v467_v6   ;;  %v741_v6 = vld [vmem:[%s14933_s0 + $0x20] sm:$0xff] }
 0x187   :  { %666 = vperm.xlu0 %10288, %v476_v60   ;;  %631 = vperm.xlu1 %10289, %v469_v28  }
 0x18b   :  { %676 = vperm.xlu0 %10288, %v478_v62   ;;  %641 = vperm.xlu1 %10289, %v471_v10   ;;  %v750_v62 = vld [vmem:[%s14933_s0 + $0xb0] sm:$0xff] }
 0x18f   :  { %651 = vperm.xlu1 %10289, %v473_v13  }
 0x193   :  { %661 = vperm.xlu1 %10289, %v475_v24  }
 0x197   :  { %671 = vperm.xlu1 %10289, %v477_v56   ;;  %v752_v56 = vld [vmem:[%s14933_s0 + $0xd0] sm:$0xff] }
 0x1ba   :  { %v11435_v52 = vpop.permute.xlu0 %481 }
 0x1bb   :  { %v759_v42 = vmul.f32 %v739_v2, %v11435_v52  ;;  %v754_v2 = vld [vmem:[%s14933_s0 + $0xf0] sm:$0xff] }
 0x1be   :  { %v11429_v53 = vpop.permute.xlu1 %486 }
 0x1bf   :  { %v760_v55 = vmul.f32 %v740_v20, %v11429_v53 }
 0x1c2   :  { %v11431_v63 = vpop.permute.xlu1 %491 }
 0x1c3   :  { %v761_v28 = vmul.f32 %v741_v6, %v11431_v63 }
 0x1c6   :  { %v11433_v0 = vpop.permute.xlu1 %496 }
 0x1c7   :  { %v762_v4 = vmul.f32 %v742_v35, %v11433_v0 }
 0x1ca   :  { %v11437_v27 = vpop.permute.xlu1 %501 }
 0x1cb   :  { %v763_v40 = vmul.f32 %v743_v38, %v11437_v27 }
 0x1ce   :  { %v11439_v17 = vpop.permute.xlu1 %506  ;;  %v11441_v32 = vpop.permute.xlu0 %526 }
 0x1cf   :  { %v764_v21 = vmul.f32 %v744_v48, %v11439_v17  ;;  %v768_v45 = vmul.f32 %v748_v12, %v11441_v32 }
 0x1d2   :  { %v11443_v47 = vpop.permute.xlu1 %511  ;;  %v11445_v3 = vpop.permute.xlu0 %536 }
 0x1d3   :  { %v770_v43 = vmul.f32 %v750_v62, %v11445_v3 }
 0x1d6   :  { %v11447_v61 = vpop.permute.xlu1 %516  ;;  %v11449_v59 = vpop.permute.xlu0 %546 }
 0x1d7   :  { %v766_v57 = vmul.f32 %v746_v11, %v11447_v61 }
 0x1da   :  { %v11451_v14 = vpop.permute.xlu1 %521  ;;  %v11453_v36 = vpop.permute.xlu0 %556 }
 0x1db   :  { %v774_v12 = vmul.f32 %v754_v2, %v11453_v36 }
 0x1de   :  { %v11455_v5 = vpop.permute.xlu1 %531  ;;  %v11457_v44 = vpop.permute.xlu0 %566 }
 0x1e2   :  { %v11459_v1 = vpop.permute.xlu1 %541  ;;  %v11461_v54 = vpop.permute.xlu0 %576 }
 0x1e6   :  { %v11467_v18 = vpop.permute.xlu1 %551  ;;  %v11469_v37 = vpop.permute.xlu0 %586 }
 0x1e7   :  { %v780_v7 = vadd.f32 %v760_v55, %v11469_v37 }
 0x1e9   :  { %v11475_v9 = vmax.f32 %v780_v7, 0.0  ;;  %v765_v7 = vmul.f32 %v745_v23, %v11443_v47 }
 0x1ea   :  { %v11478_v26 = vpop.permute.xlu1 %561  ;;  %v11480_v41 = vpop.permute.xlu0 %596 }
 0x1eb   :  { %841 = vrot.lane.b32.xlu0 %v11475_v9, %s10766_s22  ;;  %v782_v33 = vadd.f32 %v762_v4, %v11480_v41  ;;  %v772_v4 = vmul.f32 %v752_v56, %v11449_v59 }
 0x1ed   :  { %v11488_v19 = vmax.f32 %v782_v33, 0.0 }
 0x1ee   :  { %v11491_v34 = vpop.permute.xlu1 %571  ;;  %v11493_v25 = vpop.permute.xlu0 %606 }
 0x1ef   :  { %845 = vrot.lane.b32.xlu0 %v11488_v19, %s10766_s22  ;;  %v784_v39 = vadd.f32 %v764_v21, %v11493_v25  ;;  %v747_v21 = vld [vmem:[%s14933_s0 + $0x80] sm:$0xff] }
 0x1f0   :  { %v767_v6 = vmul.f32 %v747_v21, %v11451_v14 }
 0x1f1   :  { %v11504_v22 = vmax.f32 %v784_v39, 0.0 }
 0x1f2   :  { %v11508_v46 = vpop.permute.xlu1 %581  ;;  %v11510_v30 = vpop.permute.xlu0 %616 }
 0x1f3   :  { %849 = vrot.lane.b32.xlu0 %v11504_v22, %s10766_s22  ;;  %v779_v50 = vadd.f32 %v759_v42, %v11508_v46  ;;  %v786_v29 = vadd.f32 %v766_v57, %v11510_v30 }
 0x1f5   :  { %v11522_v15 = vmax.f32 %v779_v50, 0.0  ;;  %v11524_v60 = vmax.f32 %v786_v29, 0.0 }
 0x1f6   :  { %v11528_v58 = vpop.permute.xlu1 %591  ;;  %v11530_v51 = vpop.permute.xlu0 %626 }
 0x1f7   :  { %839 = vrot.lane.b32.xlu1 %v11522_v15, %s10766_s22  ;;  %853 = vrot.lane.b32.xlu0 %v11524_v60, %s10766_s22  ;;  %v781_v10 = vadd.f32 %v761_v28, %v11528_v58  ;;  %v788_v49 = vadd.f32 %v768_v45, %v11530_v51  ;;  %v749_v28 = vld [vmem:[%s14933_s0 + $0xa0] sm:$0xff]  ;;  %v756_v45 = vld [vmem:[%s14933_s0 + $0x110] sm:$0xff] }
 0x1f9   :  { %v11544_v8 = vmax.f32 %v781_v10, 0.0  ;;  %v11546_v13 = vmax.f32 %v788_v49, 0.0 }
 0x1fa   :  { %v11550_v24 = vpop.permute.xlu1 %601  ;;  %v11552_v16 = vpop.permute.xlu0 %636 }
 0x1fb   :  { %843 = vrot.lane.b32.xlu1 %v11544_v8, %s10766_s22  ;;  %857 = vrot.lane.b32.xlu0 %v11546_v13, %s10766_s22  ;;  %v783_v31 = vadd.f32 %v763_v40, %v11550_v24  ;;  %v790_v20 = vadd.f32 %v770_v43, %v11552_v16  ;;  %v769_v40 = vmul.f32 %v749_v28, %v11455_v5  ;;  %v753_v28 = vld [vmem:[%s14933_s0 + $0xe0] sm:$0xff] }
 0x1fc   :  { %v776_v43 = vmul.f32 %v756_v45, %v11457_v44 }
 0x1fd   :  { %v11566_v55 = vmax.f32 %v783_v31, 0.0  ;;  %v11568_v35 = vmax.f32 %v790_v20, 0.0  ;;  %v751_v31 = vld [vmem:[%s14933_s0 + $0xc0] sm:$0xff]  ;;  %v758_v20 = vld [vmem:[%s14933_s0 + $0x130] sm:$0xff] }
 0x1fe   :  { %v11572_v48 = vpop.permute.xlu1 %611  ;;  %v11574_v33 = vpop.permute.xlu0 %646 }
 0x1ff   :  { %847 = vrot.lane.b32.xlu1 %v11566_v55, %s10766_s22  ;;  %861 = vrot.lane.b32.xlu0 %v11568_v35, %s10766_s22  ;;  %v785_v11 = vadd.f32 %v765_v7, %v11572_v48  ;;  %v792_v39 = vadd.f32 %v772_v4, %v11574_v33 }
 0x201   :  { %v11588_v42 = vmax.f32 %v785_v11, 0.0  ;;  %v11590_v57 = vmax.f32 %v792_v39, 0.0  ;;  %v771_v11 = vmul.f32 %v751_v31, %v11459_v1  ;;  %v778_v39 = vmul.f32 %v758_v20, %v11461_v54  ;;  %v755_v20 = vld [vmem:[%s14933_s0 + $0x100] sm:$0xff] }
 0x202   :  { %v11594_v50 = vpop.permute.xlu1 %621  ;;  %v11596_v29 = vpop.permute.xlu0 %656 }
 0x203   :  { %851 = vrot.lane.b32.xlu1 %v11588_v42, %s10766_s22  ;;  %865 = vrot.lane.b32.xlu0 %v11590_v57, %s10766_s22  ;;  %v787_v38 = vadd.f32 %v767_v6, %v11594_v50  ;;  %v794_v62 = vadd.f32 %v774_v12, %v11596_v29 }
 0x205   :  { %v11610_v10 = vmax.f32 %v787_v38, 0.0  ;;  %v11612_v49 = vmax.f32 %v794_v62, 0.0 }
 0x206   :  { %v11616_v23 = vpop.permute.xlu1 %631  ;;  %v11618_v56 = vpop.permute.xlu0 %666 }
 0x207   :  { %855 = vrot.lane.b32.xlu1 %v11610_v10, %s10766_s22  ;;  %869 = vrot.lane.b32.xlu0 %v11612_v49, %s10766_s22  ;;  %v789_v7 = vadd.f32 %v769_v40, %v11616_v23  ;;  %v796_v4 = vadd.f32 %v776_v43, %v11618_v56  ;;  %v773_v43 = vmul.f32 %v753_v28, %v11467_v18  ;;  %v757_v28 = vld [vmem:[%s14933_s0 + $0x120] sm:$0xff] }
 0x209   :  { %v11632_v21 = vmax.f32 %v789_v7, 0.0  ;;  %v11634_v2 = vmax.f32 %v796_v4, 0.0 }
 0x20a   :  { %v11638_v6 = vpop.permute.xlu1 %641  ;;  %v11640_v12 = vpop.permute.xlu0 %676 }
 0x20b   :  { %14940 = vst [vmem:[#allocation4_spill] sm:$0xff] %v11640_v12  ;;  %859 = vrot.lane.b32.xlu1 %v11632_v21, %s10766_s22  ;;  %873 = vrot.lane.b32.xlu0 %v11634_v2, %s10766_s22  ;;  %v791_v45 = vadd.f32 %v771_v11, %v11638_v6  ;;  %v798_v38 = vadd.f32 %v778_v39, %v11640_v12 }
 0x20c   :  { %v775_v11 = vmul.f32 %v755_v20, %v11478_v26 }
 0x20d   :  { %v811_v62 = vmax.f32 %v791_v45, 0.0  ;;  %v818_v40 = vmax.f32 %v798_v38, 0.0 }
 0x20e   :  { %v11652_v31 = vpop.permute.xlu1 %651 }
 0x20f   :  { %863 = vrot.lane.b32.xlu1 %v811_v62, %s10766_s22  ;;  %877 = vrot.lane.b32.xlu0 %v818_v40, %s10766_s22  ;;  %v793_v7 = vadd.f32 %v773_v43, %v11652_v31  ;;  %v777_v43 = vmul.f32 %v757_v28, %v11491_v34 }
 0x211   :  { %v813_v4 = vmax.f32 %v793_v7, 0.0 }
 0x212   :  { %v11661_v39 = vpop.permute.xlu1 %661 }
 0x213   :  { %867 = vrot.lane.b32.xlu1 %v813_v4, %s10766_s22  ;;  %1022 = vrot.lane.b32.xlu0 %v11475_v9, %s10767_s30  ;;  %v795_v45 = vadd.f32 %v775_v11, %v11661_v39 }
 0x215   :  { %v815_v38 = vmax.f32 %v795_v45, 0.0 }
 0x216   :  { %v11671_v7 = vpop.permute.xlu1 %671 }
 0x217   :  { %871 = vrot.lane.b32.xlu1 %v815_v38, %s10766_s22  ;;  %1026 = vrot.lane.b32.xlu0 %v11488_v19, %s10767_s30  ;;  %v797_v20 = vadd.f32 %v777_v43, %v11671_v7 }
 0x219   :  { %v817_v12 = vmax.f32 %v797_v20, 0.0 }
 0x21b   :  { %875 = vrot.lane.b32.xlu1 %v817_v12, %s10766_s22  ;;  %1030 = vrot.lane.b32.xlu0 %v11504_v22, %s10767_s30  ;;  %s10768_s22 = smov 21  }
 0x21f   :  { %1020 = vrot.lane.b32.xlu1 %v11522_v15, %s10767_s30  ;;  %1034 = vrot.lane.b32.xlu0 %v11524_v60, %s10767_s30 }
 0x223   :  { %1024 = vrot.lane.b32.xlu1 %v11544_v8, %s10767_s30  ;;  %1038 = vrot.lane.b32.xlu0 %v11546_v13, %s10767_s30 }
 0x227   :  { %1028 = vrot.lane.b32.xlu1 %v11566_v55, %s10767_s30  ;;  %1042 = vrot.lane.b32.xlu0 %v11568_v35, %s10767_s30 }
 0x22b   :  { %1032 = vrot.lane.b32.xlu1 %v11588_v42, %s10767_s30  ;;  %1046 = vrot.lane.b32.xlu0 %v11590_v57, %s10767_s30 }
 0x22f   :  { %1036 = vrot.lane.b32.xlu1 %v11610_v10, %s10767_s30  ;;  %1050 = vrot.lane.b32.xlu0 %v11612_v49, %s10767_s30 }
 0x233   :  { %1040 = vrot.lane.b32.xlu1 %v11632_v21, %s10767_s30  ;;  %1054 = vrot.lane.b32.xlu0 %v11634_v2, %s10767_s30 }
 0x237   :  { %1044 = vrot.lane.b32.xlu1 %v811_v62, %s10767_s30  ;;  %1058 = vrot.lane.b32.xlu0 %v818_v40, %s10767_s30 }
 0x23b   :  { %1048 = vrot.lane.b32.xlu1 %v813_v4, %s10767_s30  ;;  %1203 = vrot.lane.b32.xlu0 %v11475_v9, %s10768_s22 }
 0x23f   :  { %1052 = vrot.lane.b32.xlu1 %v815_v38, %s10767_s30  ;;  %1207 = vrot.lane.b32.xlu0 %v11488_v19, %s10768_s22 }
 0x243   :  { %1056 = vrot.lane.b32.xlu1 %v817_v12, %s10767_s30  ;;  %1211 = vrot.lane.b32.xlu0 %v11504_v22, %s10768_s22  ;;  %s10786_s30 = smov 95  }
 0x247   :  { %1201 = vrot.lane.b32.xlu1 %v11522_v15, %s10768_s22  ;;  %1215 = vrot.lane.b32.xlu0 %v11524_v60, %s10768_s22 }
 0x24b   :  { %1205 = vrot.lane.b32.xlu1 %v11544_v8, %s10768_s22  ;;  %1219 = vrot.lane.b32.xlu0 %v11546_v13, %s10768_s22 }
 0x24f   :  { %1209 = vrot.lane.b32.xlu1 %v11566_v55, %s10768_s22  ;;  %1223 = vrot.lane.b32.xlu0 %v11568_v35, %s10768_s22 }
 0x253   :  { %1213 = vrot.lane.b32.xlu1 %v11588_v42, %s10768_s22  ;;  %1227 = vrot.lane.b32.xlu0 %v11590_v57, %s10768_s22 }
 0x257   :  { %1217 = vrot.lane.b32.xlu1 %v11610_v10, %s10768_s22  ;;  %1231 = vrot.lane.b32.xlu0 %v11612_v49, %s10768_s22  ;;  %v2368_v10 = vld [vmem:[%s14933_s0 + $0x8] sm:$0xff] }
 0x25b   :  { %1221 = vrot.lane.b32.xlu1 %v11632_v21, %s10768_s22  ;;  %1235 = vrot.lane.b32.xlu0 %v11634_v2, %s10768_s22  ;;  %v2408_v2 = vmul.f32 %v2368_v10, %v11435_v52 }
 0x25d   :  { %v842_v60 = vpop.permute.xlu0 %841 }
 0x25e   :  { %901 = vst.msk [vmem:[#allocation2 + $0x18] sm:$0xff] %vm899_vm1, %v842_v60 }
 0x25f   :  { %1225 = vrot.lane.b32.xlu1 %v811_v62, %s10768_s22  ;;  %1239 = vrot.lane.b32.xlu0 %v818_v40, %s10768_s22  ;;  %v2448_v40 = vadd.f32 %v2408_v2, %v11508_v46 }
 0x261   :  { %v846_v13 = vpop.permute.xlu0 %845  ;;  %v11776_v45 = vmax.f32 %v2448_v40, 0.0  ;;  %v1463_v40 = vld [vmem:[%s14933_s0] sm:$0xff] }
 0x262   :  { %903 = vst.msk [vmem:[#allocation2 + $0x48] sm:$0xff] %vm899_vm1, %v846_v13 }
 0x263   :  { %1229 = vrot.lane.b32.xlu1 %v813_v4, %s10768_s22  ;;  %1384 = vrot.lane.b32.xlu0 %v11475_v9, %s10769_s5 }
 0x265   :  { %v850_v35 = vpop.permute.xlu0 %849 }
 0x266   :  { %905 = vst.msk [vmem:[#allocation2 + $0x78] sm:$0xff] %vm899_vm1, %v850_v35  ;;  %v1464_v35 = vld [vmem:[%s14933_s0 + $0x10] sm:$0xff] }
 0x267   :  { %1233 = vrot.lane.b32.xlu1 %v815_v38, %s10768_s22  ;;  %1388 = vrot.lane.b32.xlu0 %v11488_v19, %s10769_s5  ;;  %v1484_v10 = vmul.f32 %v1464_v35, %v11429_v53 }
 0x269   :  { %v840_v42 = vpop.permute.xlu1 %839  ;;  %v854_v57 = vpop.permute.xlu0 %853 }
 0x26a   :  { %900 = vst.msk [vmem:[#allocation2] sm:$0xff] %vm899_vm1, %v840_v42  ;;  %907 = vst.msk [vmem:[#allocation2 + $0xa8] sm:$0xff] %vm899_vm1, %v854_v57 }
 0x26b   :  { %1237 = vrot.lane.b32.xlu1 %v817_v12, %s10768_s22  ;;  %1392 = vrot.lane.b32.xlu0 %v11504_v22, %s10769_s5  ;;  %v2370_v22 = vld [vmem:[%s14933_s0 + $0x18] sm:$0xff] }
 0x26c   :  { %v2410_v4 = vmul.f32 %v2370_v22, %v11429_v53  ;;  %v1504_v22 = vadd.f32 %v1484_v10, %v11469_v37 }
 0x26d   :  { %v844_v49 = vpop.permute.xlu1 %843  ;;  %v858_v21 = vpop.permute.xlu0 %857 }
 0x26e   :  { %902 = vst.msk [vmem:[#allocation2 + $0x30] sm:$0xff] %vm899_vm1, %v844_v49  ;;  %909 = vst.msk [vmem:[#allocation2 + $0xd8] sm:$0xff] %vm899_vm1, %v858_v21  ;;  %v2450_v38 = vadd.f32 %v2410_v4, %v11469_v37  ;;  %v2190_v49 = vld [vmem:[%s14933_s0 + $0x30] sm:$0xff]  ;;  %v11823_v37 = vmax.f32 %v1504_v22, 0.0  ;;  %v2374_v4 = vld [vmem:[%s14933_s0 + $0x38] sm:$0xff] }
 0x26f   :  { %1382 = vrot.lane.b32.xlu1 %v11522_v15, %s10769_s5  ;;  %2108 = vrot.lane.b32.xlu0 %v11475_v9, %s10770_s8  ;;  %v2210_v53 = vmul.f32 %v2190_v49, %v11433_v0 }
 0x270   :  { %v11785_v60 = vmax.f32 %v2450_v38, 0.0 }
 0x271   :  { %v848_v12 = vpop.permute.xlu1 %847  ;;  %v862_v62 = vpop.permute.xlu0 %861 }
 0x272   :  { %904 = vst.msk [vmem:[#allocation2 + $0x60] sm:$0xff] %vm899_vm1, %v848_v12  ;;  %911 = vst.msk [vmem:[#allocation2 + $0x108] sm:$0xff] %vm899_vm1, %v862_v62  ;;  %v2230_v62 = vadd.f32 %v2210_v53, %v11480_v41 }
 0x273   :  { %1386 = vrot.lane.b32.xlu1 %v11544_v8, %s10769_s5  ;;  %2289 = vrot.lane.b32.xlu0 %v11475_v9, %s10771_s11 }
 0x274   :  { %v11839_v38 = vmax.f32 %v2230_v62, 0.0 }
 0x275   :  { %v852_v11 = vpop.permute.xlu1 %851  ;;  %v866_v28 = vpop.permute.xlu0 %865 }
 0x276   :  { %906 = vst.msk [vmem:[#allocation2 + $0x90] sm:$0xff] %vm899_vm1, %v852_v11  ;;  %913 = vst.msk [vmem:[#allocation2 + $0x138] sm:$0xff] %vm899_vm1, %v866_v28 }
 0x277   :  { %1390 = vrot.lane.b32.xlu1 %v11566_v55, %s10769_s5  ;;  %2569 = vrot.lane.b32.xlu0 %v11776_v45, %s10772_s12 }
 0x279   :  { %v856_v43 = vpop.permute.xlu1 %855  ;;  %v870_v20 = vpop.permute.xlu0 %869 }
 0x27a   :  { %908 = vst.msk [vmem:[#allocation2 + $0xc0] sm:$0xff] %vm899_vm1, %v856_v43  ;;  %915 = vst.msk [vmem:[#allocation2 + $0x168] sm:$0xff] %vm899_vm1, %v870_v20  ;;  %v1483_v20 = vmul.f32 %v1463_v40, %v11435_v52 }
 0x27b   :  { %2106 = vrot.lane.b32.xlu1 %v11522_v15, %s10770_s8  ;;  %2573 = vrot.lane.b32.xlu0 %v11785_v60, %s10772_s12 }
 0x27c   :  { %v1503_v10 = vadd.f32 %v1483_v20, %v11508_v46 }
 0x27d   :  { %v860_v13 = vpop.permute.xlu1 %859  ;;  %v874_v55 = vpop.permute.xlu0 %873 }
 0x27e   :  { %910 = vst.msk [vmem:[#allocation2 + $0xf0] sm:$0xff] %vm899_vm1, %v860_v13  ;;  %917 = vst.msk [vmem:[#allocation2 + $0x198] sm:$0xff] %vm899_vm1, %v874_v55  ;;  %v2414_v13 = vmul.f32 %v2374_v4, %v11433_v0  ;;  %v2189_v55 = vld [vmem:[%s14933_s0 + $0x20] sm:$0xff] }
 0x27f   :  { %2287 = vrot.lane.b32.xlu1 %v11522_v15, %s10771_s11  ;;  %2810 = vrot.lane.b32.xlu0 %v11785_v60, %s10773_s13  ;;  %v2209_v0 = vmul.f32 %v2189_v55, %v11431_v63 }
 0x280   :  { %v2454_v49 = vadd.f32 %v2414_v13, %v11480_v41 }
 0x281   :  { %v864_v42 = vpop.permute.xlu1 %863  ;;  %v878_v57 = vpop.permute.xlu0 %877  ;;  %v2229_v46 = vadd.f32 %v2209_v0, %v11528_v58 }
 0x282   :  { %912 = vst.msk [vmem:[#allocation2 + $0x120] sm:$0xff] %vm899_vm1, %v864_v42  ;;  %919 = vst.msk [vmem:[#allocation2 + $0x1c8] sm:$0xff] %vm899_vm1, %v878_v57 }
 0x283   :  { %2567 = vrot.lane.b32.xlu1 %v11522_v15, %s10772_s12  ;;  %2112 = vrot.lane.b32.xlu0 %v11488_v19, %s10770_s8  ;;  %v2372_v19 = vld [vmem:[%s14933_s0 + $0x28] sm:$0xff]  ;;  %v11872_v53 = vmax.f32 %v2229_v46, 0.0 }
 0x285   :  { %v868_v21 = vpop.permute.xlu1 %867  ;;  %v1023_v2 = vpop.permute.xlu0 %1022 }
 0x286   :  { %914 = vst.msk [vmem:[#allocation2 + $0x150] sm:$0xff] %vm899_vm1, %v868_v21  ;;  %v1523_v21 = vmax.f32 %v1503_v10, 0.0 }
 0x287   :  { %1082 = vst.msk [vmem:[#allocation2 + $0x18] sm:$0xff] %vm1080_vm2, %v1023_v2  ;;  %2571 = vrot.lane.b32.xlu1 %v11475_v9, %s10772_s12  ;;  %2990 = vrot.lane.b32.xlu0 %v11785_v60, %s10774_s2  ;;  %v2412_v9 = vmul.f32 %v2372_v19, %v11431_v63  ;;  %v11864_v2 = vmax.f32 %v2454_v49, 0.0 }
 0x289   :  { %v872_v15 = vpop.permute.xlu1 %871  ;;  %v1027_v12 = vpop.permute.xlu0 %1026  ;;  %v2452_v43 = vadd.f32 %v2412_v9, %v11528_v58 }
 0x28a   :  { %916 = vst.msk [vmem:[#allocation2 + $0x180] sm:$0xff] %vm899_vm1, %v872_v15 }
 0x28b   :  { %1084 = vst.msk [vmem:[#allocation2 + $0x48] sm:$0xff] %vm1080_vm2, %v1027_v12  ;;  %2808 = vrot.lane.b32.xlu1 %v11776_v45, %s10773_s13  ;;  %1565 = vrot.lane.b32.xlu0 %v11823_v37, %s10775_s19  ;;  %v11853_v57 = vmax.f32 %v2452_v43, 0.0  ;;  %v2011_v12 = vld [vmem:[%s14933_s0 + $0x50] sm:$0xff] }
 0x28c   :  { %v2031_v40 = vmul.f32 %v2011_v12, %v11439_v17 }
 0x28d   :  { %v876_v11 = vpop.permute.xlu1 %875  ;;  %v1031_v28 = vpop.permute.xlu0 %1030 }
 0x28e   :  { %918 = vst.msk [vmem:[#allocation2 + $0x1b0] sm:$0xff] %vm899_vm1, %v876_v11  ;;  %v2051_v11 = vadd.f32 %v2031_v40, %v11493_v25 }
 0x28f   :  { %1086 = vst.msk [vmem:[#allocation2 + $0x78] sm:$0xff] %vm1080_vm2, %v1031_v28  ;;  %2110 = vrot.lane.b32.xlu1 %v11544_v8, %s10770_s8  ;;  %2293 = vrot.lane.b32.xlu0 %v11839_v38, %s10771_s11 }
 0x290   :  { %v11908_v20 = vmax.f32 %v2051_v11, 0.0 }
 0x291   :  { %v1021_v35 = vpop.permute.xlu1 %1020  ;;  %v1035_v42 = vpop.permute.xlu0 %1034 }
 0x292   :  { %1081 = vst.msk [vmem:[#allocation2] sm:$0xff] %vm1080_vm2, %v1021_v35  ;;  %1088 = vst.msk [vmem:[#allocation2 + $0xa8] sm:$0xff] %vm1080_vm2, %v1035_v42  ;;  %v2376_v35 = vld [vmem:[%s14933_s0 + $0x48] sm:$0xff] }
 0x293   :  { %2988 = vrot.lane.b32.xlu1 %v11776_v45, %s10774_s2  ;;  %2577 = vrot.lane.b32.xlu0 %v11853_v57, %s10772_s12  ;;  %v2416_v0 = vmul.f32 %v2376_v35, %v11437_v27  ;;  %v2012_v35 = vld [vmem:[%s14933_s0 + $0x60] sm:$0xff] }
 0x295   :  { %v1025_v52 = vpop.permute.xlu1 %1024  ;;  %v1039_v8 = vpop.permute.xlu0 %1038 }
 0x296   :  { %1083 = vst.msk [vmem:[#allocation2 + $0x30] sm:$0xff] %vm1080_vm2, %v1025_v52  ;;  %1090 = vst.msk [vmem:[#allocation2 + $0xd8] sm:$0xff] %vm1080_vm2, %v1039_v8  ;;  %v2378_v52 = vld [vmem:[%s14933_s0 + $0x58] sm:$0xff] }
 0x297   :  { %1563 = vrot.lane.b32.xlu1 %v1523_v21, %s10775_s19  ;;  %2581 = vrot.lane.b32.xlu0 %v11864_v2, %s10772_s12 }
 0x299   :  { %v1029_v41 = vpop.permute.xlu1 %1028  ;;  %v1043_v22 = vpop.permute.xlu0 %1042 }
 0x29a   :  { %1085 = vst.msk [vmem:[#allocation2 + $0x60] sm:$0xff] %vm1080_vm2, %v1029_v41  ;;  %1092 = vst.msk [vmem:[#allocation2 + $0x108] sm:$0xff] %vm1080_vm2, %v1043_v22  ;;  %v2456_v41 = vadd.f32 %v2416_v0, %v11550_v24 }
 0x29b   :  { %2291 = vrot.lane.b32.xlu1 %v11872_v53, %s10771_s11  ;;  %3170 = vrot.lane.b32.xlu0 %v11785_v60, %s10776_s27 }
 0x29d   :  { %v1033_v63 = vpop.permute.xlu1 %1032  ;;  %v1047_v58 = vpop.permute.xlu0 %1046 }
 0x29e   :  { %1087 = vst.msk [vmem:[#allocation2 + $0x90] sm:$0xff] %vm1080_vm2, %v1033_v63  ;;  %1094 = vst.msk [vmem:[#allocation2 + $0x138] sm:$0xff] %vm1080_vm2, %v1047_v58  ;;  %v11949_v58 = vmax.f32 %v2456_v41, 0.0 }
 0x29f   :  { %2575 = vrot.lane.b32.xlu1 %v11872_v53, %s10772_s12  ;;  %1746 = vrot.lane.b32.xlu0 %v11823_v37, %s10777_s28 }
 0x2a1   :  { %v1037_v19 = vpop.permute.xlu1 %1036  ;;  %v1051_v15 = vpop.permute.xlu0 %1050 }
 0x2a2   :  { %1089 = vst.msk [vmem:[#allocation2 + $0xc0] sm:$0xff] %vm1080_vm2, %v1037_v19  ;;  %1096 = vst.msk [vmem:[#allocation2 + $0x168] sm:$0xff] %vm1080_vm2, %v1051_v15 }
 0x2a3   :  { %2579 = vrot.lane.b32.xlu1 %v11839_v38, %s10772_s12  ;;  %3350 = vrot.lane.b32.xlu0 %v11785_v60, %s10778_s29 }
 0x2a5   :  { %v1041_v62 = vpop.permute.xlu1 %1040  ;;  %v1055_v9 = vpop.permute.xlu0 %1054 }
 0x2a6   :  { %1091 = vst.msk [vmem:[#allocation2 + $0xf0] sm:$0xff] %vm1080_vm2, %v1041_v62  ;;  %1098 = vst.msk [vmem:[#allocation2 + $0x198] sm:$0xff] %vm1080_vm2, %v1055_v9 }
 0x2a7   :  { %3168 = vrot.lane.b32.xlu1 %v11776_v45, %s10776_s27  ;;  %1927 = vrot.lane.b32.xlu0 %v11823_v37, %s10779_s6  ;;  %v2010_v37 = vld [vmem:[%s14933_s0 + $0x40] sm:$0xff] }
 0x2a9   :  { %v1045_v60 = vpop.permute.xlu1 %1044  ;;  %v1059_v4 = vpop.permute.xlu0 %1058 }
 0x2aa   :  { %1093 = vst.msk [vmem:[#allocation2 + $0x120] sm:$0xff] %vm1080_vm2, %v1045_v60  ;;  %1100 = vst.msk [vmem:[#allocation2 + $0x1c8] sm:$0xff] %vm1080_vm2, %v1059_v4  ;;  %v2013_v4 = vld [vmem:[%s14933_s0 + $0x70] sm:$0xff] }
 0x2ab   :  { %1744 = vrot.lane.b32.xlu1 %v1523_v21, %s10777_s28  ;;  %2814 = vrot.lane.b32.xlu0 %v11864_v2, %s10773_s13 }
 0x2ad   :  { %v1049_v28 = vpop.permute.xlu1 %1048  ;;  %v1204_v43 = vpop.permute.xlu0 %1203 }
 0x2ae   :  { %1095 = vst.msk [vmem:[#allocation2 + $0x150] sm:$0xff] %vm1080_vm2, %v1049_v28 }
 0x2af   :  { %1263 = vst.msk [vmem:[#allocation2 + $0x18] sm:$0xff] %vm1261_vm3, %v1204_v43  ;;  %3348 = vrot.lane.b32.xlu1 %v11776_v45, %s10778_s29  ;;  %2116 = vrot.lane.b32.xlu0 %v11908_v20, %s10770_s8  ;;  %v2030_v45 = vmul.f32 %v2010_v37, %v11437_v27  ;;  %v2418_v27 = vmul.f32 %v2378_v52, %v11439_v17 }
 0x2b0   :  { %v2033_v43 = vmul.f32 %v2013_v4, %v11447_v61 }
 0x2b1   :  { %v1053_v13 = vpop.permute.xlu1 %1052  ;;  %v1208_v55 = vpop.permute.xlu0 %1207  ;;  %v2050_v49 = vadd.f32 %v2030_v45, %v11550_v24  ;;  %v2458_v19 = vadd.f32 %v2418_v27, %v11493_v25 }
 0x2b2   :  { %1097 = vst.msk [vmem:[#allocation2 + $0x180] sm:$0xff] %vm1080_vm2, %v1053_v13  ;;  %v2053_v13 = vadd.f32 %v2033_v43, %v11510_v30 }
 0x2b3   :  { %1265 = vst.msk [vmem:[#allocation2 + $0x48] sm:$0xff] %vm1261_vm3, %v1208_v55  ;;  %1925 = vrot.lane.b32.xlu1 %v1523_v21, %s10779_s6  ;;  %2994 = vrot.lane.b32.xlu0 %v11864_v2, %s10774_s2  ;;  %v11939_v46 = vmax.f32 %v2050_v49, 0.0  ;;  %v11958_v12 = vmax.f32 %v2458_v19, 0.0  ;;  %v2380_v49 = vld [vmem:[%s14933_s0 + $0x68] sm:$0xff] }
 0x2b5   :  { %v1057_v42 = vpop.permute.xlu1 %1056  ;;  %v1212_v10 = vpop.permute.xlu0 %1211 }
 0x2b6   :  { %1099 = vst.msk [vmem:[#allocation2 + $0x1b0] sm:$0xff] %vm1080_vm2, %v1057_v42 }
 0x2b7   :  { %1267 = vst.msk [vmem:[#allocation2 + $0x78] sm:$0xff] %vm1261_vm3, %v1212_v10  ;;  %2812 = vrot.lane.b32.xlu1 %v11853_v57, %s10773_s13  ;;  %1569 = vrot.lane.b32.xlu0 %v11839_v38, %s10775_s19 }
 0x2b9   :  { %v1202_v8 = vpop.permute.xlu1 %1201  ;;  %v1216_v21 = vpop.permute.xlu0 %1215 }
 0x2ba   :  { %1262 = vst.msk [vmem:[#allocation2] sm:$0xff] %vm1261_vm3, %v1202_v8  ;;  %1269 = vst.msk [vmem:[#allocation2 + $0xa8] sm:$0xff] %vm1261_vm3, %v1216_v21  ;;  %v2382_v21 = vld [vmem:[%s14933_s0 + $0x78] sm:$0xff] }
 0x2bb   :  { %2114 = vrot.lane.b32.xlu1 %v11939_v46, %s10770_s8  ;;  %2297 = vrot.lane.b32.xlu0 %v11908_v20, %s10771_s11 }
 0x2bd   :  { %v1206_v22 = vpop.permute.xlu1 %1205  ;;  %v1220_v63 = vpop.permute.xlu0 %1219 }
 0x2be   :  { %1264 = vst.msk [vmem:[#allocation2 + $0x30] sm:$0xff] %vm1261_vm3, %v1206_v22  ;;  %1271 = vst.msk [vmem:[#allocation2 + $0xd8] sm:$0xff] %vm1261_vm3, %v1220_v63 }
 0x2bf   :  { %2992 = vrot.lane.b32.xlu1 %v11853_v57, %s10774_s2  ;;  %2585 = vrot.lane.b32.xlu0 %v11949_v58, %s10772_s12 }
 0x2c1   :  { %v1210_v24 = vpop.permute.xlu1 %1209  ;;  %v1224_v15 = vpop.permute.xlu0 %1223 }
 0x2c2   :  { %1266 = vst.msk [vmem:[#allocation2 + $0x60] sm:$0xff] %vm1261_vm3, %v1210_v24  ;;  %1273 = vst.msk [vmem:[#allocation2 + $0x108] sm:$0xff] %vm1261_vm3, %v1224_v15 }
 0x2c3   :  { %1567 = vrot.lane.b32.xlu1 %v11872_v53, %s10775_s19  ;;  %2589 = vrot.lane.b32.xlu0 %v11958_v12, %s10772_s12 }
 0x2c5   :  { %v1214_v17 = vpop.permute.xlu1 %1213  ;;  %v1228_v25 = vpop.permute.xlu0 %1227 }
 0x2c6   :  { %1268 = vst.msk [vmem:[#allocation2 + $0x90] sm:$0xff] %vm1261_vm3, %v1214_v17  ;;  %1275 = vst.msk [vmem:[#allocation2 + $0x138] sm:$0xff] %vm1261_vm3, %v1228_v25 }
 0x2c7   :  { %2295 = vrot.lane.b32.xlu1 %v11939_v46, %s10771_s11  ;;  %3174 = vrot.lane.b32.xlu0 %v11864_v2, %s10776_s27 }
 0x2c9   :  { %v1218_v62 = vpop.permute.xlu1 %1217  ;;  %v1232_v9 = vpop.permute.xlu0 %1231 }
 0x2ca   :  { %1270 = vst.msk [vmem:[#allocation2 + $0xc0] sm:$0xff] %vm1261_vm3, %v1218_v62  ;;  %1277 = vst.msk [vmem:[#allocation2 + $0x168] sm:$0xff] %vm1261_vm3, %v1232_v9 }
 0x2cb   :  { %2583 = vrot.lane.b32.xlu1 %v11939_v46, %s10772_s12  ;;  %1750 = vrot.lane.b32.xlu0 %v11839_v38, %s10777_s28 }
 0x2cd   :  { %v1222_v40 = vpop.permute.xlu1 %1221  ;;  %v1236_v60 = vpop.permute.xlu0 %1235 }
 0x2ce   :  { %1272 = vst.msk [vmem:[#allocation2 + $0xf0] sm:$0xff] %vm1261_vm3, %v1222_v40  ;;  %1279 = vst.msk [vmem:[#allocation2 + $0x198] sm:$0xff] %vm1261_vm3, %v1236_v60 }
 0x2cf   :  { %2587 = vrot.lane.b32.xlu1 %v11908_v20, %s10772_s12  ;;  %3354 = vrot.lane.b32.xlu0 %v11864_v2, %s10778_s29 }
 0x2d1   :  { %v1226_v11 = vpop.permute.xlu1 %1225  ;;  %v1240_v28 = vpop.permute.xlu0 %1239 }
 0x2d2   :  { %1274 = vst.msk [vmem:[#allocation2 + $0x120] sm:$0xff] %vm1261_vm3, %v1226_v11  ;;  %1281 = vst.msk [vmem:[#allocation2 + $0x1c8] sm:$0xff] %vm1261_vm3, %v1240_v28 }
 0x2d3   :  { %3172 = vrot.lane.b32.xlu1 %v11853_v57, %s10776_s27  ;;  %1931 = vrot.lane.b32.xlu0 %v11839_v38, %s10779_s6  ;;  %v12001_v38 = vmax.f32 %v2053_v13, 0.0 }
 0x2d5   :  { %v1230_v2 = vpop.permute.xlu1 %1229  ;;  %v1385_v37 = vpop.permute.xlu0 %1384 }
 0x2d6   :  { %1276 = vst.msk [vmem:[#allocation2 + $0x150] sm:$0xff] %vm1261_vm3, %v1230_v2 }
 0x2d7   :  { %1444 = vst.msk [vmem:[#allocation2 + $0x18] sm:$0xff] %vm1442_vm4, %v1385_v37  ;;  %1748 = vrot.lane.b32.xlu1 %v11872_v53, %s10777_s28  ;;  %2818 = vrot.lane.b32.xlu0 %v11958_v12, %s10773_s13 }
 0x2d9   :  { %v1234_v55 = vpop.permute.xlu1 %1233  ;;  %v1389_v45 = vpop.permute.xlu0 %1388 }
 0x2da   :  { %1278 = vst.msk [vmem:[#allocation2 + $0x180] sm:$0xff] %vm1261_vm3, %v1234_v55 }
 0x2db   :  { %1446 = vst.msk [vmem:[#allocation2 + $0x48] sm:$0xff] %vm1442_vm4, %v1389_v45  ;;  %3352 = vrot.lane.b32.xlu1 %v11853_v57, %s10778_s29  ;;  %2120 = vrot.lane.b32.xlu0 %v12001_v38, %s10770_s8  ;;  %v2032_v57 = vmul.f32 %v2012_v35, %v11443_v47 }
 0x2dd   :  { %v1238_v42 = vpop.permute.xlu1 %1237  ;;  %v1393_v10 = vpop.permute.xlu0 %1392  ;;  %v2052_v8 = vadd.f32 %v2032_v57, %v11572_v48 }
 0x2de   :  { %1280 = vst.msk [vmem:[#allocation2 + $0x1b0] sm:$0xff] %vm1261_vm3, %v1238_v42 }
 0x2df   :  { %1448 = vst.msk [vmem:[#allocation2 + $0x78] sm:$0xff] %vm1442_vm4, %v1393_v10  ;;  %1929 = vrot.lane.b32.xlu1 %v11872_v53, %s10779_s6  ;;  %2998 = vrot.lane.b32.xlu0 %v11958_v12, %s10774_s2  ;;  %v2420_v53 = vmul.f32 %v2380_v49, %v11443_v47  ;;  %v12033_v22 = vmax.f32 %v2052_v8, 0.0  ;;  %v2422_v47 = vmul.f32 %v2382_v21, %v11447_v61  ;;  %v2014_v49 = vld [vmem:[%s14933_s0 + $0x80] sm:$0xff] }
 0x2e1   :  { %v1383_v0 = vpop.permute.xlu1 %1382  ;;  %v2109_v52 = vpop.permute.xlu0 %2108  ;;  %v2460_v63 = vadd.f32 %v2420_v53, %v11572_v48  ;;  %v2462_v17 = vadd.f32 %v2422_v47, %v11510_v30 }
 0x2e2   :  { %1443 = vst.msk [vmem:[#allocation2] sm:$0xff] %vm1442_vm4, %v1383_v0 }
 0x2e3   :  { %2168 = vst.msk [vmem:[#allocation2 + $0x20] sm:$0xff] %vm2166_vm5, %v2109_v52  ;;  %2816 = vrot.lane.b32.xlu1 %v11949_v58, %s10773_s13  ;;  %1573 = vrot.lane.b32.xlu0 %v11908_v20, %s10775_s19  ;;  %v12043_v15 = vmax.f32 %v2460_v63, 0.0  ;;  %v12051_v62 = vmax.f32 %v2462_v17, 0.0  ;;  %v2384_v52 = vld [vmem:[%s14933_s0 + $0x88] sm:$0xff]  ;;  %v2386_v63 = vld [vmem:[%s14933_s0 + $0x98] sm:$0xff] }
 0x2e5   :  { %v1387_v41 = vpop.permute.xlu1 %1386  ;;  %v2290_v27 = vpop.permute.xlu0 %2289 }
 0x2e6   :  { %1445 = vst.msk [vmem:[#allocation2 + $0x30] sm:$0xff] %vm1442_vm4, %v1387_v41 }
 0x2e7   :  { %2348 = vst.msk [vmem:[#allocation2 + $0x20] sm:$0xff] %vm899_vm1, %v2290_v27  ;;  %2118 = vrot.lane.b32.xlu1 %v12033_v22, %s10770_s8  ;;  %2301 = vrot.lane.b32.xlu0 %v12001_v38, %s10771_s11  ;;  %v2424_v27 = vmul.f32 %v2384_v52, %v11451_v14 }
 0x2e9   :  { %v1391_v19 = vpop.permute.xlu1 %1390  ;;  %v2570_v24 = vpop.permute.xlu0 %2569  ;;  %v2464_v17 = vadd.f32 %v2424_v27, %v11594_v50  ;;  %v2388_v27 = vld [vmem:[%s14933_s0 + $0xa8] sm:$0xff] }
 0x2ea   :  { %1447 = vst.msk [vmem:[#allocation2 + $0x60] sm:$0xff] %vm1442_vm4, %v1391_v19 }
 0x2eb   :  { %2996 = vrot.lane.b32.xlu1 %v11949_v58, %s10774_s2  ;;  %2593 = vrot.lane.b32.xlu0 %v12043_v15, %s10772_s12 }
 0x2ed   :  { %v2107_v48 = vpop.permute.xlu1 %2106  ;;  %v2574_v25 = vpop.permute.xlu0 %2573 }
 0x2ee   :  { %2167 = vst.msk [vmem:[#allocation2 + $0x8] sm:$0xff] %vm2166_vm5, %v2107_v48 }
 0x2ef   :  { %1571 = vrot.lane.b32.xlu1 %v11939_v46, %s10775_s19  ;;  %2597 = vrot.lane.b32.xlu0 %v12051_v62, %s10772_s12 }
 0x2f1   :  { %v2288_v61 = vpop.permute.xlu1 %2287  ;;  %v2811_v30 = vpop.permute.xlu0 %2810 }
 0x2f2   :  { %2347 = vst.msk [vmem:[#allocation2 + $0x8] sm:$0xff] %vm899_vm1, %v2288_v61 }
 0x2f3   :  { %2299 = vrot.lane.b32.xlu1 %v12033_v22, %s10771_s11  ;;  %3178 = vrot.lane.b32.xlu0 %v11958_v12, %s10776_s27 }
 0x2f5   :  { %v2568_v9 = vpop.permute.xlu1 %2567  ;;  %v2113_v40 = vpop.permute.xlu0 %2112 }
 0x2f6   :  { %v2648_v60 = vsel %vm2647_vm6, %v2568_v9, %v2570_v24  ;;  %2170 = vst.msk [vmem:[#allocation2 + $0x50] sm:$0xff] %vm2166_vm5, %v2113_v40 }
 0x2f7   :  { %2688 = vst.msk [vmem:[#allocation2 + $0x8] sm:$0xff] %vm1080_vm2, %v2648_v60  ;;  %2591 = vrot.lane.b32.xlu1 %v12033_v22, %s10772_s12  ;;  %1754 = vrot.lane.b32.xlu0 %v11908_v20, %s10777_s28 }
 0x2f9   :  { %v2572_v4 = vpop.permute.xlu1 %2571  ;;  %v2991_v11 = vpop.permute.xlu0 %2990 }
 0x2fa   :  { %v2649_v28 = vsel %vm2647_vm6, %v2572_v4, %v2574_v25 }
 0x2fb   :  { %2689 = vst.msk [vmem:[#allocation2 + $0x20] sm:$0xff] %vm1080_vm2, %v2649_v28  ;;  %2595 = vrot.lane.b32.xlu1 %v12001_v38, %s10772_s12  ;;  %3358 = vrot.lane.b32.xlu0 %v11958_v12, %s10778_s29  ;;  %v2015_v12 = vld [vmem:[%s14933_s0 + $0x90] sm:$0xff] }
 0x2fc   :  { %2869 = vst.msk [vmem:[#allocation2 + $0x20] sm:$0xff] %vm1261_vm3, %v2811_v30  ;;  %v2035_v55 = vmul.f32 %v2015_v12, %v11441_v32  ;;  %v12143_v30 = vmax.f32 %v2464_v17, 0.0 }
 0x2fd   :  { %3049 = vst.msk [vmem:[#allocation2 + $0x20] sm:$0xff] %vm1442_vm4, %v2991_v11  ;;  %v2809_v43 = vpop.permute.xlu1 %2808  ;;  %v1566_v2 = vpop.permute.xlu0 %1565 }
 0x2fe   :  { %2868 = vst.msk [vmem:[#allocation2 + $0x8] sm:$0xff] %vm1261_vm3, %v2809_v43  ;;  %v2055_v35 = vadd.f32 %v2035_v55, %v11530_v51 }
 0x2ff   :  { %1625 = vst.msk [vmem:[#allocation2 + $0x18] sm:$0xff] %vm1623_vm7, %v1566_v2  ;;  %3176 = vrot.lane.b32.xlu1 %v11949_v58, %s10776_s27  ;;  %1935 = vrot.lane.b32.xlu0 %v11908_v20, %s10779_s6 }
 0x300   :  { %v12100_v57 = vmax.f32 %v2055_v35, 0.0 }
 0x301   :  { %v2111_v37 = vpop.permute.xlu1 %2110  ;;  %v2294_v13 = vpop.permute.xlu0 %2293 }
 0x302   :  { %2169 = vst.msk [vmem:[#allocation2 + $0x38] sm:$0xff] %vm2166_vm5, %v2111_v37 }
 0x303   :  { %2350 = vst.msk [vmem:[#allocation2 + $0x50] sm:$0xff] %vm899_vm1, %v2294_v13  ;;  %1752 = vrot.lane.b32.xlu1 %v11939_v46, %s10777_s28  ;;  %2822 = vrot.lane.b32.xlu0 %v12051_v62, %s10773_s13 }
 0x305   :  { %v2989_v45 = vpop.permute.xlu1 %2988  ;;  %v2578_v20 = vpop.permute.xlu0 %2577 }
 0x306   :  { %3048 = vst.msk [vmem:[#allocation2 + $0x8] sm:$0xff] %vm1442_vm4, %v2989_v45 }
 0x307   :  { %3356 = vrot.lane.b32.xlu1 %v11949_v58, %s10778_s29  ;;  %1396 = vrot.lane.b32.xlu0 %v12001_v38, %s10769_s5 }
 0x309   :  { %v1564_v42 = vpop.permute.xlu1 %1563  ;;  %v2582_v10 = vpop.permute.xlu0 %2581 }
 0x30a   :  { %1624 = vst.msk [vmem:[#allocation2] sm:$0xff] %vm1623_vm7, %v1564_v42 }
 0x30b   :  { %1933 = vrot.lane.b32.xlu1 %v11939_v46, %s10779_s6  ;;  %2124 = vrot.lane.b32.xlu0 %v12100_v57, %s10770_s8  ;;  %v2034_v46 = vmul.f32 %v2014_v49, %v11451_v14  ;;  %v2426_v14 = vmul.f32 %v2386_v63, %v11441_v32 }
 0x30d   :  { %v2292_v58 = vpop.permute.xlu1 %2291  ;;  %v3171_v0 = vpop.permute.xlu0 %3170  ;;  %v2054_v21 = vadd.f32 %v2034_v46, %v11594_v50  ;;  %v2466_v50 = vadd.f32 %v2426_v14, %v11530_v51  ;;  %v2390_v14 = vld [vmem:[%s14933_s0 + $0xb8] sm:$0xff] }
 0x30e   :  { %2349 = vst.msk [vmem:[#allocation2 + $0x38] sm:$0xff] %vm899_vm1, %v2292_v58 }
 0x30f   :  { %3229 = vst.msk [vmem:[#allocation2 + $0x20] sm:$0xff] %vm1623_vm7, %v3171_v0  ;;  %2820 = vrot.lane.b32.xlu1 %v12043_v15, %s10773_s13  ;;  %3002 = vrot.lane.b32.xlu0 %v12051_v62, %s10774_s2  ;;  %v12132_v24 = vmax.f32 %v2054_v21, 0.0  ;;  %v12152_v60 = vmax.f32 %v2466_v50, 0.0 }
 0x311   :  { %v2576_v8 = vpop.permute.xlu1 %2575  ;;  %v1747_v53 = vpop.permute.xlu0 %1746 }
 0x312   :  { %v2650_v41 = vsel %vm2647_vm6, %v2576_v8, %v2578_v20  ;;  %1806 = vst.msk [vmem:[#allocation2 + $0x18] sm:$0xff] %vm1804_vm8, %v1747_v53 }
 0x313   :  { %2690 = vst.msk [vmem:[#allocation2 + $0x38] sm:$0xff] %vm1080_vm2, %v2650_v41  ;;  %1394 = vrot.lane.b32.xlu1 %v12033_v22, %s10769_s5  ;;  %1577 = vrot.lane.b32.xlu0 %v12001_v38, %s10775_s19 }
 0x315   :  { %v2580_v47 = vpop.permute.xlu1 %2579  ;;  %v3351_v19 = vpop.permute.xlu0 %3350 }
 0x316   :  { %v2651_v48 = vsel %vm2647_vm6, %v2580_v47, %v2582_v10  ;;  %3409 = vst.msk [vmem:[#allocation2 + $0x20] sm:$0xff] %vm1804_vm8, %v3351_v19 }
 0x317   :  { %2691 = vst.msk [vmem:[#allocation2 + $0x50] sm:$0xff] %vm1080_vm2, %v2651_v48  ;;  %2122 = vrot.lane.b32.xlu1 %v12132_v24, %s10770_s8  ;;  %2305 = vrot.lane.b32.xlu0 %v12100_v57, %s10771_s11  ;;  %v2428_v48 = vmul.f32 %v2388_v27, %v11455_v5 }
 0x319   :  { %v3169_v25 = vpop.permute.xlu1 %3168  ;;  %v1928_v61 = vpop.permute.xlu0 %1927 }
 0x31a   :  { %3228 = vst.msk [vmem:[#allocation2 + $0x8] sm:$0xff] %vm1623_vm7, %v3169_v25 }
 0x31b   :  { %1987 = vst.msk [vmem:[#allocation2 + $0x18] sm:$0xff] %vm1985_vm9, %v1928_v61  ;;  %3000 = vrot.lane.b32.xlu1 %v12043_v15, %s10774_s2  ;;  %2601 = vrot.lane.b32.xlu0 %v12143_v30, %s10772_s12 }
 0x31d   :  { %v1745_v9 = vpop.permute.xlu1 %1744  ;;  %v2815_v40 = vpop.permute.xlu0 %2814  ;;  %v3431_v12 = vld [vmem:[#allocation2 + $0x20] sm:$0xff] }
 0x31e   :  { %1805 = vst.msk [vmem:[#allocation2] sm:$0xff] %vm1804_vm8, %v1745_v9  ;;  %v2468_v9 = vadd.f32 %v2428_v48, %v11616_v23 }
 0x31f   :  { %2871 = vst.msk [vmem:[#allocation2 + $0x50] sm:$0xff] %vm1261_vm3, %v2815_v40  ;;  %1575 = vrot.lane.b32.xlu1 %v12033_v22, %s10775_s19  ;;  %2605 = vrot.lane.b32.xlu0 %v12152_v60, %s10772_s12 }
 0x321   :  { %v3349_v32 = vpop.permute.xlu1 %3348  ;;  %v2117_v51 = vpop.permute.xlu0 %2116 }
 0x322   :  { %3408 = vst.msk [vmem:[#allocation2 + $0x8] sm:$0xff] %vm1804_vm8, %v3349_v32  ;;  %v3430_v20 = vld [vmem:[#allocation2 + $0x18] sm:$0xff] }
 0x323   :  { %2172 = vst.msk [vmem:[#allocation2 + $0x80] sm:$0xff] %vm2166_vm5, %v2117_v51  ;;  %2303 = vrot.lane.b32.xlu1 %v12132_v24, %s10771_s11  ;;  %3182 = vrot.lane.b32.xlu0 %v12051_v62, %s10776_s27  ;;  %v12243_v51 = vmax.f32 %v2468_v9, 0.0 }
 0x325   :  { %v1926_v4 = vpop.permute.xlu1 %1925  ;;  %v2995_v11 = vpop.permute.xlu0 %2994 }
 0x326   :  { %1986 = vst.msk [vmem:[#allocation2] sm:$0xff] %vm1985_vm9, %v1926_v4 }
 0x327   :  { %3051 = vst.msk [vmem:[#allocation2 + $0x50] sm:$0xff] %vm1442_vm4, %v2995_v11  ;;  %2599 = vrot.lane.b32.xlu1 %v12132_v24, %s10772_s12  ;;  %1758 = vrot.lane.b32.xlu0 %v12001_v38, %s10777_s28 }
 0x329   :  { %v2813_v28 = vpop.permute.xlu1 %2812  ;;  %v1570_v43 = vpop.permute.xlu0 %1569  ;;  %v3429_v2 = vld [vmem:[#allocation2 + $0x8] sm:$0xff] }
 0x32a   :  { %2870 = vst.msk [vmem:[#allocation2 + $0x38] sm:$0xff] %vm1261_vm3, %v2813_v28  ;;  %v3469_v37 = vpack.c.bf16 %v3431_v12, %v3429_v2 }
 0x32b   :  { %1627 = vst.msk [vmem:[#allocation2 + $0x48] sm:$0xff] %vm1623_vm7, %v1570_v43  ;;  %2603 = vrot.lane.b32.xlu1 %v12100_v57, %s10772_s12  ;;  %3362 = vrot.lane.b32.xlu0 %v12051_v62, %s10778_s29  ;;  %v2017_v62 = vld [vmem:[%s14933_s0 + $0xb0] sm:$0xff] }
 0x32c   :  { %6504 = vmatprep.subr.bf16.mxu0 %v3469_v37  ;;  %8526 = vmatprep.subr.bf16.mxu1 %v3469_v37  ;;  %v2037_v49 = vmul.f32 %v2017_v62, %v11445_v3 }
 0x32d   :  { %v2115_v13 = vpop.permute.xlu1 %2114  ;;  %v2298_v55 = vpop.permute.xlu0 %2297  ;;  %v3428_v45 = vld [vmem:[#allocation2] sm:$0xff] }
 0x32e   :  { %2171 = vst.msk [vmem:[#allocation2 + $0x68] sm:$0xff] %vm2166_vm5, %v2115_v13  ;;  %v3468_v35 = vpack.c.bf16 %v3430_v20, %v3428_v45  ;;  %v2057_v0 = vadd.f32 %v2037_v49, %v11552_v16  ;;  %v2019_v49 = vld [vmem:[%s14933_s0 + $0xd0] sm:$0xff] }
 0x32f   :  { %2352 = vst.msk [vmem:[#allocation2 + $0x80] sm:$0xff] %vm899_vm1, %v2298_v55  ;;  %3180 = vrot.lane.b32.xlu1 %v12043_v15, %s10776_s27  ;;  %1939 = vrot.lane.b32.xlu0 %v12001_v38, %s10779_s6 }
 0x330   :  { %6505 = vmatpush1.bf16.msra.mxu0 %v3468_v35  ;;  %8527 = vmatpush1.bf16.msra.mxu1 %v3468_v35  ;;  %v12199_v8 = vmax.f32 %v2057_v0, 0.0 }
 0x331   :  { %v2993_v42 = vpop.permute.xlu1 %2992  ;;  %v2586_v10 = vpop.permute.xlu0 %2585 }
 0x332   :  { %3050 = vst.msk [vmem:[#allocation2 + $0x38] sm:$0xff] %vm1442_vm4, %v2993_v42 }
 0x333   :  { %1756 = vrot.lane.b32.xlu1 %v12033_v22, %s10777_s28  ;;  %2826 = vrot.lane.b32.xlu0 %v12152_v60, %s10773_s13 }
 0x335   :  { %v1568_v58 = vpop.permute.xlu1 %1567  ;;  %v2590_v38 = vpop.permute.xlu0 %2589 }
 0x336   :  { %1626 = vst.msk [vmem:[#allocation2 + $0x30] sm:$0xff] %vm1623_vm7, %v1568_v58 }
 0x337   :  { %3360 = vrot.lane.b32.xlu1 %v12043_v15, %s10778_s29  ;;  %1400 = vrot.lane.b32.xlu0 %v12100_v57, %s10769_s5  ;;  %v2016_v15 = vld [vmem:[%s14933_s0 + $0xa0] sm:$0xff] }
 0x339   :  { %v2296_v46 = vpop.permute.xlu1 %2295  ;;  %v3175_v52 = vpop.permute.xlu0 %3174 }
 0x33a   :  { %2351 = vst.msk [vmem:[#allocation2 + $0x68] sm:$0xff] %vm899_vm1, %v2296_v46 }
 0x33b   :  { %3231 = vst.msk [vmem:[#allocation2 + $0x50] sm:$0xff] %vm1623_vm7, %v3175_v52  ;;  %1937 = vrot.lane.b32.xlu1 %v12033_v22, %s10779_s6  ;;  %2128 = vrot.lane.b32.xlu0 %v12199_v8, %s10770_s8  ;;  %v2036_v22 = vmul.f32 %v2016_v15, %v11455_v5  ;;  %v2430_v5 = vmul.f32 %v2390_v14, %v11445_v3  ;;  %v2394_v14 = vld [vmem:[%s14933_s0 + $0xd8] sm:$0xff] }
 0x33d   :  { %v2584_v53 = vpop.permute.xlu1 %2583  ;;  %v1751_v21 = vpop.permute.xlu0 %1750  ;;  %v2056_v19 = vadd.f32 %v2036_v22, %v11616_v23  ;;  %v2470_v4 = vadd.f32 %v2430_v5, %v11552_v16 }
 0x33e   :  { %v2652_v41 = vsel %vm2647_vm6, %v2584_v53, %v2586_v10  ;;  %1808 = vst.msk [vmem:[#allocation2 + $0x48] sm:$0xff] %vm1804_vm8, %v1751_v21 }
 0x33f   :  { %2692 = vst.msk [vmem:[#allocation2 + $0x68] sm:$0xff] %vm1080_vm2, %v2652_v41  ;;  %2824 = vrot.lane.b32.xlu1 %v12143_v30, %s10773_s13  ;;  %3006 = vrot.lane.b32.xlu0 %v12152_v60, %s10774_s2  ;;  %v12233_v50 = vmax.f32 %v2056_v19, 0.0  ;;  %v12252_v28 = vmax.f32 %v2470_v4, 0.0 }
 0x341   :  { %v2588_v63 = vpop.permute.xlu1 %2587  ;;  %v3355_v47 = vpop.permute.xlu0 %3354 }
 0x342   :  { %v2653_v17 = vsel %vm2647_vm6, %v2588_v63, %v2590_v38  ;;  %3411 = vst.msk [vmem:[#allocation2 + $0x50] sm:$0xff] %vm1804_vm8, %v3355_v47  ;;  %v2392_v63 = vld [vmem:[%s14933_s0 + $0xc8] sm:$0xff] }
 0x343   :  { %2693 = vst.msk [vmem:[#allocation2 + $0x80] sm:$0xff] %vm1080_vm2, %v2653_v17  ;;  %1398 = vrot.lane.b32.xlu1 %v12132_v24, %s10769_s5  ;;  %1581 = vrot.lane.b32.xlu0 %v12100_v57, %s10775_s19  ;;  %v2432_v48 = vmul.f32 %v2392_v63, %v11459_v1 }
 0x345   :  { %v3173_v25 = vpop.permute.xlu1 %3172  ;;  %v1932_v61 = vpop.permute.xlu0 %1931  ;;  %v2472_v5 = vadd.f32 %v2432_v48, %v11638_v6 }
 0x346   :  { %3230 = vst.msk [vmem:[#allocation2 + $0x38] sm:$0xff] %vm1623_vm7, %v3173_v25 }
 0x347   :  { %1989 = vst.msk [vmem:[#allocation2 + $0x48] sm:$0xff] %vm1985_vm9, %v1932_v61  ;;  %2126 = vrot.lane.b32.xlu1 %v12233_v50, %s10770_s8  ;;  %2309 = vrot.lane.b32.xlu0 %v12199_v8, %s10771_s11  ;;  %v12343_v4 = vmax.f32 %v2472_v5, 0.0 }
 0x349   :  { %v1749_v40 = vpop.permute.xlu1 %1748  ;;  %v2819_v32 = vpop.permute.xlu0 %2818  ;;  %v3435_v37 = vld [vmem:[#allocation2 + $0x50] sm:$0xff] }
 0x34a   :  { %1807 = vst.msk [vmem:[#allocation2 + $0x30] sm:$0xff] %vm1804_vm8, %v1749_v40 }
 0x34b   :  { %2873 = vst.msk [vmem:[#allocation2 + $0x80] sm:$0xff] %vm1261_vm3, %v2819_v32  ;;  %3004 = vrot.lane.b32.xlu1 %v12143_v30, %s10774_s2  ;;  %2609 = vrot.lane.b32.xlu0 %v12243_v51, %s10772_s12 }
 0x34d   :  { %v3353_v23 = vpop.permute.xlu1 %3352  ;;  %v2121_v11 = vpop.permute.xlu0 %2120 }
 0x34e   :  { %3410 = vst.msk [vmem:[#allocation2 + $0x38] sm:$0xff] %vm1804_vm8, %v3353_v23  ;;  %v3434_v35 = vld [vmem:[#allocation2 + $0x48] sm:$0xff] }
 0x34f   :  { %2174 = vst.msk [vmem:[#allocation2 + $0xb0] sm:$0xff] %vm2166_vm5, %v2121_v11  ;;  %1579 = vrot.lane.b32.xlu1 %v12132_v24, %s10775_s19  ;;  %2613 = vrot.lane.b32.xlu0 %v12252_v28, %s10772_s12 }
 0x351   :  { %v1930_v3 = vpop.permute.xlu1 %1929  ;;  %v2999_v16 = vpop.permute.xlu0 %2998 }
 0x352   :  { %1988 = vst.msk [vmem:[#allocation2 + $0x30] sm:$0xff] %vm1985_vm9, %v1930_v3 }
 0x353   :  { %3053 = vst.msk [vmem:[#allocation2 + $0x80] sm:$0xff] %vm1442_vm4, %v2999_v16  ;;  %2307 = vrot.lane.b32.xlu1 %v12233_v50, %s10771_s11  ;;  %3186 = vrot.lane.b32.xlu0 %v12152_v60, %s10776_s27 }
 0x355   :  { %v2817_v43 = vpop.permute.xlu1 %2816  ;;  %v1574_v2 = vpop.permute.xlu0 %1573  ;;  %v3433_v12 = vld [vmem:[#allocation2 + $0x38] sm:$0xff] }
 0x356   :  { %2872 = vst.msk [vmem:[#allocation2 + $0x68] sm:$0xff] %vm1261_vm3, %v2817_v43  ;;  %v3471_v13 = vpack.c.bf16 %v3435_v37, %v3433_v12 }
 0x357   :  { %1629 = vst.msk [vmem:[#allocation2 + $0x78] sm:$0xff] %vm1623_vm7, %v1574_v2  ;;  %2607 = vrot.lane.b32.xlu1 %v12233_v50, %s10772_s12  ;;  %1762 = vrot.lane.b32.xlu0 %v12100_v57, %s10777_s28 }
 0x358   :  { %6506 = vmatprep.subr.bf16.mxu0 %v3471_v13  ;;  %8528 = vmatprep.subr.bf16.mxu1 %v3471_v13 }
 0x359   :  { %v2119_v55 = vpop.permute.xlu1 %2118  ;;  %v2302_v45 = vpop.permute.xlu0 %2301  ;;  %v3432_v20 = vld [vmem:[#allocation2 + $0x30] sm:$0xff] }
 0x35a   :  { %2173 = vst.msk [vmem:[#allocation2 + $0x98] sm:$0xff] %vm2166_vm5, %v2119_v55  ;;  %v3470_v62 = vpack.c.bf16 %v3434_v35, %v3432_v20 }
 0x35b   :  { %2354 = vst.msk [vmem:[#allocation2 + $0xb0] sm:$0xff] %vm899_vm1, %v2302_v45  ;;  %2611 = vrot.lane.b32.xlu1 %v12199_v8, %s10772_s12  ;;  %3366 = vrot.lane.b32.xlu0 %v12152_v60, %s10778_s29  ;;  %v2039_v60 = vmul.f32 %v2019_v49, %v11449_v59 }
 0x35c   :  { %6507 = vmatpush1.bf16.msra.mxu0 %v3470_v62  ;;  %8529 = vmatpush1.bf16.msra.mxu1 %v3470_v62 }
 0x35d   :  { %v2997_v42 = vpop.permute.xlu1 %2996  ;;  %v2594_v10 = vpop.permute.xlu0 %2593 }
 0x35e   :  { %3052 = vst.msk [vmem:[#allocation2 + $0x68] sm:$0xff] %vm1442_vm4, %v2997_v42 }
 0x35f   :  { %3184 = vrot.lane.b32.xlu1 %v12143_v30, %s10776_s27  ;;  %1943 = vrot.lane.b32.xlu0 %v12100_v57, %s10779_s6  ;;  %v2059_v57 = vadd.f32 %v2039_v60, %v11574_v33 }
 0x361   :  { %v1572_v58 = vpop.permute.xlu1 %1571  ;;  %v2598_v38 = vpop.permute.xlu0 %2597  ;;  %v12299_v53 = vmax.f32 %v2059_v57, 0.0 }
 0x362   :  { %1628 = vst.msk [vmem:[#allocation2 + $0x60] sm:$0xff] %vm1623_vm7, %v1572_v58 }
 0x363   :  { %1760 = vrot.lane.b32.xlu1 %v12132_v24, %s10777_s28  ;;  %2830 = vrot.lane.b32.xlu0 %v12252_v28, %s10773_s13 }
 0x365   :  { %v2300_v0 = vpop.permute.xlu1 %2299  ;;  %v3179_v46 = vpop.permute.xlu0 %3178 }
 0x366   :  { %2353 = vst.msk [vmem:[#allocation2 + $0x98] sm:$0xff] %vm899_vm1, %v2300_v0 }
 0x367   :  { %3233 = vst.msk [vmem:[#allocation2 + $0x80] sm:$0xff] %vm1623_vm7, %v3179_v46  ;;  %3364 = vrot.lane.b32.xlu1 %v12143_v30, %s10778_s29  ;;  %1404 = vrot.lane.b32.xlu0 %v12199_v8, %s10769_s5  ;;  %v2018_v30 = vld [vmem:[%s14933_s0 + $0xc0] sm:$0xff] }
 0x369   :  { %v2592_v52 = vpop.permute.xlu1 %2591  ;;  %v1755_v15 = vpop.permute.xlu0 %1754 }
 0x36a   :  { %v2654_v21 = vsel %vm2647_vm6, %v2592_v52, %v2594_v10  ;;  %1810 = vst.msk [vmem:[#allocation2 + $0x78] sm:$0xff] %vm1804_vm8, %v1755_v15  ;;  %v2021_v10 = vld [vmem:[%s14933_s0 + $0xf0] sm:$0xff] }
 0x36b   :  { %2694 = vst.msk [vmem:[#allocation2 + $0x98] sm:$0xff] %vm1080_vm2, %v2654_v21  ;;  %1941 = vrot.lane.b32.xlu1 %v12132_v24, %s10779_s6  ;;  %2132 = vrot.lane.b32.xlu0 %v12299_v53, %s10770_s8  ;;  %v2038_v24 = vmul.f32 %v2018_v30, %v11459_v1  ;;  %v2434_v1 = vmul.f32 %v2394_v14, %v11449_v59 }
 0x36d   :  { %v2596_v41 = vpop.permute.xlu1 %2595  ;;  %v3359_v22 = vpop.permute.xlu0 %3358  ;;  %v2058_v17 = vadd.f32 %v2038_v24, %v11638_v6  ;;  %v2474_v23 = vadd.f32 %v2434_v1, %v11574_v33 }
 0x36e   :  { %v2655_v27 = vsel %vm2647_vm6, %v2596_v41, %v2598_v38  ;;  %3413 = vst.msk [vmem:[#allocation2 + $0x80] sm:$0xff] %vm1804_vm8, %v3359_v22  ;;  %v2396_v41 = vld [vmem:[%s14933_s0 + $0xe8] sm:$0xff] }
 0x36f   :  { %2695 = vst.msk [vmem:[#allocation2 + $0xb0] sm:$0xff] %vm1080_vm2, %v2655_v27  ;;  %2828 = vrot.lane.b32.xlu1 %v12243_v51, %s10773_s13  ;;  %3010 = vrot.lane.b32.xlu0 %v12252_v28, %s10774_s2  ;;  %v12333_v9 = vmax.f32 %v2058_v17, 0.0  ;;  %v12352_v3 = vmax.f32 %v2474_v23, 0.0  ;;  %v2436_v63 = vmul.f32 %v2396_v41, %v11467_v18 }
 0x371   :  { %v3177_v47 = vpop.permute.xlu1 %3176  ;;  %v1936_v19 = vpop.permute.xlu0 %1935  ;;  %v2476_v14 = vadd.f32 %v2436_v63, %v11652_v31 }
 0x372   :  { %3232 = vst.msk [vmem:[#allocation2 + $0x68] sm:$0xff] %vm1623_vm7, %v3177_v47  ;;  %v2398_v47 = vld [vmem:[%s14933_s0 + $0xf8] sm:$0xff] }
 0x373   :  { %1991 = vst.msk [vmem:[#allocation2 + $0x78] sm:$0xff] %vm1985_vm9, %v1936_v19  ;;  %1402 = vrot.lane.b32.xlu1 %v12233_v50, %s10769_s5  ;;  %1585 = vrot.lane.b32.xlu0 %v12199_v8, %s10775_s19  ;;  %v12451_v5 = vmax.f32 %v2476_v14, 0.0 }
 0x375   :  { %v1753_v25 = vpop.permute.xlu1 %1752  ;;  %v2823_v61 = vpop.permute.xlu0 %2822  ;;  %v3439_v43 = vld [vmem:[#allocation2 + $0x80] sm:$0xff] }
 0x376   :  { %1809 = vst.msk [vmem:[#allocation2 + $0x60] sm:$0xff] %vm1804_vm8, %v1753_v25 }
 0x377   :  { %2875 = vst.msk [vmem:[#allocation2 + $0xb0] sm:$0xff] %vm1261_vm3, %v2823_v61  ;;  %2130 = vrot.lane.b32.xlu1 %v12333_v9, %s10770_s8  ;;  %2313 = vrot.lane.b32.xlu0 %v12299_v53, %s10771_s11 }
 0x379   :  { %v3357_v40 = vpop.permute.xlu1 %3356  ;;  %v1397_v32 = vpop.permute.xlu0 %1396 }
 0x37a   :  { %3412 = vst.msk [vmem:[#allocation2 + $0x68] sm:$0xff] %vm1804_vm8, %v3357_v40  ;;  %v3438_v55 = vld [vmem:[#allocation2 + $0x78] sm:$0xff] }
 0x37b   :  { %1450 = vst.msk [vmem:[#allocation2 + $0xa8] sm:$0xff] %vm1442_vm4, %v1397_v32  ;;  %3008 = vrot.lane.b32.xlu1 %v12243_v51, %s10774_s2  ;;  %2617 = vrot.lane.b32.xlu0 %v12343_v4, %s10772_s12 }
 0x37d   :  { %v1934_v6 = vpop.permute.xlu1 %1933  ;;  %v2125_v11 = vpop.permute.xlu0 %2124 }
 0x37e   :  { %1990 = vst.msk [vmem:[#allocation2 + $0x60] sm:$0xff] %vm1985_vm9, %v1934_v6 }
 0x37f   :  { %2176 = vst.msk [vmem:[#allocation2 + $0xe0] sm:$0xff] %vm2166_vm5, %v2125_v11  ;;  %1583 = vrot.lane.b32.xlu1 %v12233_v50, %s10775_s19  ;;  %2621 = vrot.lane.b32.xlu0 %v12352_v3, %s10772_s12 }
 0x381   :  { %v2821_v59 = vpop.permute.xlu1 %2820  ;;  %v3003_v33 = vpop.permute.xlu0 %3002  ;;  %v3437_v16 = vld [vmem:[#allocation2 + $0x68] sm:$0xff] }
 0x382   :  { %2874 = vst.msk [vmem:[#allocation2 + $0x98] sm:$0xff] %vm1261_vm3, %v2821_v59  ;;  %v12362_v2 = vpack.c.bf16 %v3439_v43, %v3437_v16 }
 0x383   :  { %3055 = vst.msk [vmem:[#allocation2 + $0xb0] sm:$0xff] %vm1442_vm4, %v3003_v33  ;;  %2311 = vrot.lane.b32.xlu1 %v12333_v9, %s10771_s11  ;;  %3190 = vrot.lane.b32.xlu0 %v12252_v28, %s10776_s27 }
 0x384   :  { %6508 = vmatprep.subr.bf16.mxu0 %v12362_v2  ;;  %8530 = vmatprep.subr.bf16.mxu1 %v12362_v2 }
 0x385   :  { %v1395_v12 = vpop.permute.xlu1 %1394  ;;  %v1578_v37 = vpop.permute.xlu0 %1577  ;;  %v3436_v13 = vld [vmem:[#allocation2 + $0x60] sm:$0xff] }
 0x386   :  { %1449 = vst.msk [vmem:[#allocation2 + $0x90] sm:$0xff] %vm1442_vm4, %v1395_v12  ;;  %v12372_v45 = vpack.c.bf16 %v3438_v55, %v3436_v13 }
 0x387   :  { %1631 = vst.msk [vmem:[#allocation2 + $0xa8] sm:$0xff] %vm1623_vm7, %v1578_v37  ;;  %2615 = vrot.lane.b32.xlu1 %v12333_v9, %s10772_s12  ;;  %1766 = vrot.lane.b32.xlu0 %v12199_v8, %s10777_s28 }
 0x388   :  { %6509 = vmatpush1.bf16.msra.mxu0 %v12372_v45  ;;  %8531 = vmatpush1.bf16.msra.mxu1 %v12372_v45 }
 0x389   :  { %v2123_v20 = vpop.permute.xlu1 %2122  ;;  %v2306_v35 = vpop.permute.xlu0 %2305 }
 0x38a   :  { %2175 = vst.msk [vmem:[#allocation2 + $0xc8] sm:$0xff] %vm2166_vm5, %v2123_v20 }
 0x38b   :  { %2356 = vst.msk [vmem:[#allocation2 + $0xe0] sm:$0xff] %vm899_vm1, %v2306_v35  ;;  %2619 = vrot.lane.b32.xlu1 %v12299_v53, %s10772_s12  ;;  %3370 = vrot.lane.b32.xlu0 %v12252_v28, %s10778_s29  ;;  %v2041_v28 = vmul.f32 %v2021_v10, %v11453_v36 }
 0x38d   :  { %v3001_v62 = vpop.permute.xlu1 %3000  ;;  %v2602_v42 = vpop.permute.xlu0 %2601 }
 0x38e   :  { %3054 = vst.msk [vmem:[#allocation2 + $0x98] sm:$0xff] %vm1442_vm4, %v3001_v62 }
 0x38f   :  { %3188 = vrot.lane.b32.xlu1 %v12243_v51, %s10776_s27  ;;  %1947 = vrot.lane.b32.xlu0 %v12199_v8, %s10779_s6  ;;  %v2061_v8 = vadd.f32 %v2041_v28, %v11596_v29 }
 0x391   :  { %v1576_v49 = vpop.permute.xlu1 %1575  ;;  %v2606_v58 = vpop.permute.xlu0 %2605  ;;  %v12407_v57 = vmax.f32 %v2061_v8, 0.0 }
 0x392   :  { %1630 = vst.msk [vmem:[#allocation2 + $0x90] sm:$0xff] %vm1623_vm7, %v1576_v49 }
 0x393   :  { %1764 = vrot.lane.b32.xlu1 %v12233_v50, %s10777_s28  ;;  %2834 = vrot.lane.b32.xlu0 %v12352_v3, %s10773_s13 }
 0x395   :  { %v2304_v38 = vpop.permute.xlu1 %2303  ;;  %v3183_v60 = vpop.permute.xlu0 %3182 }
 0x396   :  { %2355 = vst.msk [vmem:[#allocation2 + $0xc8] sm:$0xff] %vm899_vm1, %v2304_v38 }
 0x397   :  { %3235 = vst.msk [vmem:[#allocation2 + $0xb0] sm:$0xff] %vm1623_vm7, %v3183_v60  ;;  %3368 = vrot.lane.b32.xlu1 %v12243_v51, %s10778_s29  ;;  %1408 = vrot.lane.b32.xlu0 %v12299_v53, %s10769_s5  ;;  %v2020_v51 = vld [vmem:[%s14933_s0 + $0xe0] sm:$0xff] }
 0x399   :  { %v2600_v0 = vpop.permute.xlu1 %2599  ;;  %v1759_v46 = vpop.permute.xlu0 %1758 }
 0x39a   :  { %v2656_v52 = vsel %vm2647_vm6, %v2600_v0, %v2602_v42  ;;  %1812 = vst.msk [vmem:[#allocation2 + $0xa8] sm:$0xff] %vm1804_vm8, %v1759_v46 }
 0x39b   :  { %2696 = vst.msk [vmem:[#allocation2 + $0xc8] sm:$0xff] %vm1080_vm2, %v2656_v52  ;;  %1945 = vrot.lane.b32.xlu1 %v12233_v50, %s10779_s6  ;;  %2136 = vrot.lane.b32.xlu0 %v12407_v57, %s10770_s8  ;;  %v2040_v50 = vmul.f32 %v2020_v51, %v11467_v18  ;;  %v2438_v18 = vmul.f32 %v2398_v47, %v11453_v36 }
 0x39d   :  { %v2604_v15 = vpop.permute.xlu1 %2603  ;;  %v3363_v21 = vpop.permute.xlu0 %3362  ;;  %v2060_v24 = vadd.f32 %v2040_v50, %v11652_v31  ;;  %v2478_v1 = vadd.f32 %v2438_v18, %v11596_v29 }
 0x39e   :  { %v2657_v30 = vsel %vm2647_vm6, %v2604_v15, %v2606_v58  ;;  %3415 = vst.msk [vmem:[#allocation2 + $0xb0] sm:$0xff] %vm1804_vm8, %v3363_v21  ;;  %v10761_v15 = vld [vmem:[#allocation2 + $0x10] sm:$0xff] }
 0x39f   :  { %2697 = vst.msk [vmem:[#allocation2 + $0xe0] sm:$0xff] %vm1080_vm2, %v2657_v30  ;;  %2832 = vrot.lane.b32.xlu1 %v12343_v4, %s10773_s13  ;;  %3014 = vrot.lane.b32.xlu0 %v12352_v3, %s10774_s2  ;;  %v12441_v48 = vmax.f32 %v2060_v24, 0.0  ;;  %v12460_v32 = vmax.f32 %v2478_v1, 0.0  ;;  %v12548_v21 = vpack.c.bf16 %v10761_v15, %v10761_v15  ;;  %v3515_v24 = vld [vmem:[#allocation2 + $0x38] sm:$0xff] }
 0x3a1   :  { %v3181_v22 = vpop.permute.xlu1 %3180  ;;  %v1940_v27 = vpop.permute.xlu0 %1939 }
 0x3a2   :  { %3234 = vst.msk [vmem:[#allocation2 + $0x98] sm:$0xff] %vm1623_vm7, %v3181_v22 }
 0x3a3   :  { %1993 = vst.msk [vmem:[#allocation2 + $0xa8] sm:$0xff] %vm1985_vm9, %v1940_v27  ;;  %1406 = vrot.lane.b32.xlu1 %v12333_v9, %s10769_s5  ;;  %1589 = vrot.lane.b32.xlu0 %v12299_v53, %s10775_s19 }
 0x3a5   :  { %v1757_v19 = vpop.permute.xlu1 %1756  ;;  %v2827_v17 = vpop.permute.xlu0 %2826  ;;  %v3443_v6 = vld [vmem:[#allocation2 + $0xb0] sm:$0xff] }
 0x3a6   :  { %1811 = vst.msk [vmem:[#allocation2 + $0x90] sm:$0xff] %vm1804_vm8, %v1757_v19 }
 0x3a7   :  { %2877 = vst.msk [vmem:[#allocation2 + $0xe0] sm:$0xff] %vm1261_vm3, %v2827_v17  ;;  %2134 = vrot.lane.b32.xlu1 %v12441_v48, %s10770_s8  ;;  %2317 = vrot.lane.b32.xlu0 %v12407_v57, %s10771_s11 }
 0x3a9   :  { %v3361_v25 = vpop.permute.xlu1 %3360  ;;  %v1401_v61 = vpop.permute.xlu0 %1400 }
 0x3aa   :  { %3414 = vst.msk [vmem:[#allocation2 + $0x98] sm:$0xff] %vm1804_vm8, %v3361_v25  ;;  %v3442_v43 = vld [vmem:[#allocation2 + $0xa8] sm:$0xff]  ;;  %v3514_v25 = vld [vmem:[#allocation2 + $0x30] sm:$0xff] }
 0x3ab   :  { %1452 = vst.msk [vmem:[#allocation2 + $0xd8] sm:$0xff] %vm1442_vm4, %v1401_v61  ;;  %3012 = vrot.lane.b32.xlu1 %v12343_v4, %s10774_s2  ;;  %2625 = vrot.lane.b32.xlu0 %v12451_v5, %s10772_s12  ;;  %v3517_v61 = vld [vmem:[#allocation2 + $0x48] sm:$0xff] }
 0x3ad   :  { %v1938_v31 = vpop.permute.xlu1 %1937  ;;  %v2129_v40 = vpop.permute.xlu0 %2128 }
 0x3ae   :  { %1992 = vst.msk [vmem:[#allocation2 + $0x90] sm:$0xff] %vm1985_vm9, %v1938_v31 }
 0x3af   :  { %2178 = vst.msk [vmem:[#allocation2 + $0x110] sm:$0xff] %vm2166_vm5, %v2129_v40  ;;  %1587 = vrot.lane.b32.xlu1 %v12333_v9, %s10775_s19  ;;  %2629 = vrot.lane.b32.xlu0 %v12460_v32, %s10772_s12  ;;  %v12572_v40 = vpack.c.bf16 %v3517_v61, %v3514_v25 }
 0x3b1   :  { %v2825_v36 = vpop.permute.xlu1 %2824  ;;  %v3007_v29 = vpop.permute.xlu0 %3006  ;;  %v3441_v23 = vld [vmem:[#allocation2 + $0x98] sm:$0xff] }
 0x3b2   :  { %2876 = vst.msk [vmem:[#allocation2 + $0xc8] sm:$0xff] %vm1261_vm3, %v2825_v36  ;;  %v12470_v11 = vpack.c.bf16 %v3443_v6, %v3441_v23  ;;  %v3508_v6 = vld [vmem:[#allocation2] sm:$0xff] }
 0x3b3   :  { %3057 = vst.msk [vmem:[#allocation2 + $0xe0] sm:$0xff] %vm1442_vm4, %v3007_v29  ;;  %2315 = vrot.lane.b32.xlu1 %v12441_v48, %s10771_s11  ;;  %3194 = vrot.lane.b32.xlu0 %v12352_v3, %s10776_s27 }
 0x3b4   :  { %6510 = vmatprep.subr.bf16.mxu0 %v12470_v11  ;;  %8532 = vmatprep.subr.bf16.mxu1 %v12470_v11 }
 0x3b5   :  { %v1399_v59 = vpop.permute.xlu1 %1398  ;;  %v1582_v33 = vpop.permute.xlu0 %1581  ;;  %v3440_v16 = vld [vmem:[#allocation2 + $0x90] sm:$0xff] }
 0x3b6   :  { %1451 = vst.msk [vmem:[#allocation2 + $0xc0] sm:$0xff] %vm1442_vm4, %v1399_v59  ;;  %v12480_v12 = vpack.c.bf16 %v3442_v43, %v3440_v16  ;;  %v3511_v59 = vld [vmem:[#allocation2 + $0x18] sm:$0xff] }
 0x3b7   :  { %1633 = vst.msk [vmem:[#allocation2 + $0xd8] sm:$0xff] %vm1623_vm7, %v1582_v33  ;;  %2623 = vrot.lane.b32.xlu1 %v12441_v48, %s10772_s12  ;;  %1770 = vrot.lane.b32.xlu0 %v12299_v53, %s10777_s28  ;;  %v12587_v16 = vpack.c.bf16 %v3511_v59, %v3508_v6 }
 0x3b8   :  { %6511 = vmatpush1.bf16.msra.mxu0 %v12480_v12  ;;  %8533 = vmatpush1.bf16.msra.mxu1 %v12480_v12 }
 0x3b9   :  { %v2127_v37 = vpop.permute.xlu1 %2126  ;;  %v2310_v13 = vpop.permute.xlu0 %2309 }
 0x3ba   :  { %2177 = vst.msk [vmem:[#allocation2 + $0xf8] sm:$0xff] %vm2166_vm5, %v2127_v37 }
 0x3bb   :  { %2358 = vst.msk [vmem:[#allocation2 + $0x110] sm:$0xff] %vm899_vm1, %v2310_v13  ;;  %2627 = vrot.lane.b32.xlu1 %v12407_v57, %s10772_s12  ;;  %3374 = vrot.lane.b32.xlu0 %v12352_v3, %s10778_s29 }
 0x3bd   :  { %v3005_v55 = vpop.permute.xlu1 %3004  ;;  %v2610_v20 = vpop.permute.xlu0 %2609 }
 0x3be   :  { %3056 = vst.msk [vmem:[#allocation2 + $0xc8] sm:$0xff] %vm1442_vm4, %v3005_v55 }
 0x3bf   :  { %3192 = vrot.lane.b32.xlu1 %v12343_v4, %s10776_s27  ;;  %1951 = vrot.lane.b32.xlu0 %v12299_v53, %s10779_s6 }
 0x3c1   :  { %v1580_v35 = vpop.permute.xlu1 %1579  ;;  %v2614_v62 = vpop.permute.xlu0 %2613 }
 0x3c2   :  { %1632 = vst.msk [vmem:[#allocation2 + $0xc0] sm:$0xff] %vm1623_vm7, %v1580_v35 }
 0x3c3   :  { %1768 = vrot.lane.b32.xlu1 %v12333_v9, %s10777_s28  ;;  %2838 = vrot.lane.b32.xlu0 %v12460_v32, %s10773_s13 }
 0x3c5   :  { %v2308_v3 = vpop.permute.xlu1 %2307  ;;  %v3187_v42 = vpop.permute.xlu0 %3186 }
 0x3c6   :  { %2357 = vst.msk [vmem:[#allocation2 + $0xf8] sm:$0xff] %vm899_vm1, %v2308_v3 }
 0x3c7   :  { %3237 = vst.msk [vmem:[#allocation2 + $0xe0] sm:$0xff] %vm1623_vm7, %v3187_v42  ;;  %3372 = vrot.lane.b32.xlu1 %v12343_v4, %s10778_s29  ;;  %1412 = vrot.lane.b32.xlu0 %v12407_v57, %s10769_s5 }
 0x3c9   :  { %v2608_v53 = vpop.permute.xlu1 %2607  ;;  %v1763_v10 = vpop.permute.xlu0 %1762 }
 0x3ca   :  { %v2658_v49 = vsel %vm2647_vm6, %v2608_v53, %v2610_v20  ;;  %1814 = vst.msk [vmem:[#allocation2 + $0xd8] sm:$0xff] %vm1804_vm8, %v1763_v10 }
 0x3cb   :  { %2698 = vst.msk [vmem:[#allocation2 + $0xf8] sm:$0xff] %vm1080_vm2, %v2658_v49  ;;  %1949 = vrot.lane.b32.xlu1 %v12333_v9, %s10779_s6  ;;  %3018 = vrot.lane.b32.xlu0 %v12460_v32, %s10774_s2 }
 0x3cd   :  { %v2612_v58 = vpop.permute.xlu1 %2611  ;;  %v3367_v28 = vpop.permute.xlu0 %3366 }
 0x3ce   :  { %v2659_v4 = vsel %vm2647_vm6, %v2612_v58, %v2614_v62  ;;  %3417 = vst.msk [vmem:[#allocation2 + $0xe0] sm:$0xff] %vm1804_vm8, %v3367_v28 }
 0x3cf   :  { %2699 = vst.msk [vmem:[#allocation2 + $0x110] sm:$0xff] %vm1080_vm2, %v2659_v4  ;;  %2836 = vrot.lane.b32.xlu1 %v12451_v5, %s10773_s13  ;;  %1593 = vrot.lane.b32.xlu0 %v12407_v57, %s10775_s19 }
 0x3d1   :  { %v3185_v38 = vpop.permute.xlu1 %3184  ;;  %v1944_v60 = vpop.permute.xlu0 %1943 }
 0x3d2   :  { %3236 = vst.msk [vmem:[#allocation2 + $0xc8] sm:$0xff] %vm1623_vm7, %v3185_v38 }
 0x3d3   :  { %1995 = vst.msk [vmem:[#allocation2 + $0xd8] sm:$0xff] %vm1985_vm9, %v1944_v60  ;;  %1410 = vrot.lane.b32.xlu1 %v12441_v48, %s10769_s5  ;;  %3198 = vrot.lane.b32.xlu0 %v12460_v32, %s10776_s27 }
 0x3d5   :  { %v1761_v9 = vpop.permute.xlu1 %1760  ;;  %v2831_v8 = vpop.permute.xlu0 %2830  ;;  %v3447_v22 = vld [vmem:[#allocation2 + $0xe0] sm:$0xff] }
 0x3d6   :  { %1813 = vst.msk [vmem:[#allocation2 + $0xc0] sm:$0xff] %vm1804_vm8, %v1761_v9 }
 0x3d7   :  { %2879 = vst.msk [vmem:[#allocation2 + $0x110] sm:$0xff] %vm1261_vm3, %v2831_v8  ;;  %3016 = vrot.lane.b32.xlu1 %v12451_v5, %s10774_s2  ;;  %1774 = vrot.lane.b32.xlu0 %v12407_v57, %s10777_s28 }
 0x3d9   :  { %v3365_v0 = vpop.permute.xlu1 %3364  ;;  %v1405_v46 = vpop.permute.xlu0 %1404 }
 0x3da   :  { %3416 = vst.msk [vmem:[#allocation2 + $0xc8] sm:$0xff] %vm1804_vm8, %v3365_v0  ;;  %v3446_v14 = vld [vmem:[#allocation2 + $0xd8] sm:$0xff] }
 0x3db   :  { %1454 = vst.msk [vmem:[#allocation2 + $0x108] sm:$0xff] %vm1442_vm4, %v1405_v46  ;;  %1591 = vrot.lane.b32.xlu1 %v12441_v48, %s10775_s19  ;;  %3378 = vrot.lane.b32.xlu0 %v12460_v32, %s10778_s29  ;;  %v3509_v32 = vld [vmem:[#allocation2 + $0x8] sm:$0xff] }
 0x3dd   :  { %v1942_v52 = vpop.permute.xlu1 %1941  ;;  %v2133_v51 = vpop.permute.xlu0 %2132 }
 0x3de   :  { %1994 = vst.msk [vmem:[#allocation2 + $0xc0] sm:$0xff] %vm1985_vm9, %v1942_v52 }
 0x3df   :  { %2180 = vst.msk [vmem:[#allocation2 + $0x140] sm:$0xff] %vm2166_vm5, %v2133_v51  ;;  %3196 = vrot.lane.b32.xlu1 %v12451_v5, %s10776_s27  ;;  %1955 = vrot.lane.b32.xlu0 %v12407_v57, %s10779_s6  ;;  %v3518_v57 = vld [vmem:[#allocation2 + $0x50] sm:$0xff] }
 0x3e0   :  { %v12560_v19 = vpack.c.bf16 %v3518_v57, %v3515_v24 }
 0x3e1   :  { %v2829_v30 = vpop.permute.xlu1 %2828  ;;  %v3011_v50 = vpop.permute.xlu0 %3010  ;;  %v3445_v41 = vld [vmem:[#allocation2 + $0xc8] sm:$0xff] }
 0x3e2   :  { %2878 = vst.msk [vmem:[#allocation2 + $0xf8] sm:$0xff] %vm1261_vm3, %v2829_v30  ;;  %v12552_v27 = vpack.c.bf16 %v3447_v22, %v3445_v41 }
 0x3e3   :  { %3059 = vst.msk [vmem:[#allocation2 + $0x110] sm:$0xff] %vm1442_vm4, %v3011_v50  ;;  %1772 = vrot.lane.b32.xlu1 %v12441_v48, %s10777_s28  ;;  %3626 = vrot.lane.b32.xlu0 %v12548_v21, %s10780_s24 }
 0x3e4   :  { %6512 = vmatprep.subr.bf16.mxu0 %v12552_v27  ;;  %8534 = vmatprep.subr.bf16.mxu1 %v12552_v27 }
 0x3e5   :  { %v1403_v63 = vpop.permute.xlu1 %1402  ;;  %v1586_v47 = vpop.permute.xlu0 %1585  ;;  %v3444_v17 = vld [vmem:[#allocation2 + $0xc0] sm:$0xff] }
 0x3e6   :  { %1453 = vst.msk [vmem:[#allocation2 + $0xf0] sm:$0xff] %vm1442_vm4, %v1403_v63  ;;  %v12564_v18 = vpack.c.bf16 %v3446_v14, %v3444_v17 }
 0x3e7   :  { %1635 = vst.msk [vmem:[#allocation2 + $0x108] sm:$0xff] %vm1623_vm7, %v1586_v47  ;;  %3376 = vrot.lane.b32.xlu1 %v12451_v5, %s10778_s29  ;;  %3630 = vrot.lane.b32.xlu0 %v12560_v19, %s10780_s24  ;;  %v3512_v5 = vld [vmem:[#allocation2 + $0x20] sm:$0xff] }
 0x3e8   :  { %6513 = vmatpush1.bf16.msra.mxu0 %v12564_v18  ;;  %8535 = vmatpush1.bf16.msra.mxu1 %v12564_v18  ;;  %v12580_v23 = vpack.c.bf16 %v3512_v5, %v3509_v32 }
 0x3e9   :  { %v2131_v1 = vpop.permute.xlu1 %2130  ;;  %v2314_v31 = vpop.permute.xlu0 %2313 }
 0x3ea   :  { %2179 = vst.msk [vmem:[#allocation2 + $0x128] sm:$0xff] %vm2166_vm5, %v2131_v1 }
 0x3eb   :  { %2360 = vst.msk [vmem:[#allocation2 + $0x140] sm:$0xff] %vm899_vm1, %v2314_v31  ;;  %1953 = vrot.lane.b32.xlu1 %v12441_v48, %s10779_s6  ;;  %3628 = vrot.lane.b32.xlu0 %v12572_v40, %s10780_s24 }
 0x3ed   :  { %v3009_v36 = vpop.permute.xlu1 %3008  ;;  %v2618_v29 = vpop.permute.xlu0 %2617 }
 0x3ee   :  { %3058 = vst.msk [vmem:[#allocation2 + $0xf8] sm:$0xff] %vm1442_vm4, %v3009_v36 }
 0x3ef   :  { %3624 = vrot.lane.b32.xlu1 %v12580_v23, %s10780_s24  ;;  %3638 = vrot.lane.b32.xlu0 %v12548_v21, %s10780_s24 }
 0x3f1   :  { %v1584_v33 = vpop.permute.xlu1 %1583  ;;  %v2622_v48 = vpop.permute.xlu0 %2621 }
 0x3f2   :  { %1634 = vst.msk [vmem:[#allocation2 + $0xf0] sm:$0xff] %vm1623_vm7, %v1584_v33 }
 0x3f3   :  { %3622 = vrot.lane.b32.xlu1 %v12587_v16, %s10780_s24  ;;  %3642 = vrot.lane.b32.xlu0 %v12470_v11, %s10780_s24 }
 0x3f5   :  { %v2312_v43 = vpop.permute.xlu1 %2311  ;;  %v3191_v37 = vpop.permute.xlu0 %3190 }
 0x3f6   :  { %2359 = vst.msk [vmem:[#allocation2 + $0x128] sm:$0xff] %vm899_vm1, %v2312_v43 }
 0x3f7   :  { %3239 = vst.msk [vmem:[#allocation2 + $0x110] sm:$0xff] %vm1623_vm7, %v3191_v37  ;;  %3632 = vrot.lane.b32.xlu1 %v12548_v21, %s10780_s24  ;;  %3640 = vrot.lane.b32.xlu0 %v12480_v12, %s10780_s24 }
 0x3f9   :  { %v2616_v13 = vpop.permute.xlu1 %2615  ;;  %v1767_v55 = vpop.permute.xlu0 %1766 }
 0x3fa   :  { %v2660_v20 = vsel %vm2647_vm6, %v2616_v13, %v2618_v29  ;;  %1816 = vst.msk [vmem:[#allocation2 + $0x108] sm:$0xff] %vm1804_vm8, %v1767_v55 }
 0x3fb   :  { %2700 = vst.msk [vmem:[#allocation2 + $0x128] sm:$0xff] %vm1080_vm2, %v2660_v20  ;;  %3636 = vrot.lane.b32.xlu1 %v12362_v2, %s10780_s24  ;;  %3650 = vrot.lane.b32.xlu0 %v12548_v21, %s10780_s24 }
 0x3fd   :  { %v2620_v11 = vpop.permute.xlu1 %2619  ;;  %v3371_v35 = vpop.permute.xlu0 %3370 }
 0x3fe   :  { %v2661_v62 = vsel %vm2647_vm6, %v2620_v11, %v2622_v48  ;;  %3419 = vst.msk [vmem:[#allocation2 + $0x110] sm:$0xff] %vm1804_vm8, %v3371_v35 }
 0x3ff   :  { %2701 = vst.msk [vmem:[#allocation2 + $0x140] sm:$0xff] %vm1080_vm2, %v2661_v62  ;;  %3634 = vrot.lane.b32.xlu1 %v12372_v45, %s10780_s24 }
 0x401   :  { %v3189_v12 = vpop.permute.xlu1 %3188  ;;  %v1948_v3 = vpop.permute.xlu0 %1947 }
 0x402   :  { %3238 = vst.msk [vmem:[#allocation2 + $0xf8] sm:$0xff] %vm1623_vm7, %v3189_v12 }
 0x403   :  { %1997 = vst.msk [vmem:[#allocation2 + $0x108] sm:$0xff] %vm1985_vm9, %v1948_v3  ;;  %3644 = vrot.lane.b32.xlu1 %v12548_v21, %s10780_s24 }
 0x405   :  { %v1765_v2 = vpop.permute.xlu1 %1764  ;;  %v2835_v42 = vpop.permute.xlu0 %2834  ;;  %v3542_v38 = vld [vmem:[#allocation2 + $0x110] sm:$0xff] }
 0x406   :  { %1815 = vst.msk [vmem:[#allocation2 + $0xf0] sm:$0xff] %vm1804_vm8, %v1765_v2 }
 0x407   :  { %2881 = vst.msk [vmem:[#allocation2 + $0x140] sm:$0xff] %vm1261_vm3, %v2835_v42  ;;  %3648 = vrot.lane.b32.xlu1 %v12552_v27, %s10780_s24 }
 0x409   :  { %v3369_v53 = vpop.permute.xlu1 %3368  ;;  %v1409_v45 = vpop.permute.xlu0 %1408 }
 0x40a   :  { %3418 = vst.msk [vmem:[#allocation2 + $0xf8] sm:$0xff] %vm1804_vm8, %v3369_v53  ;;  %v3541_v46 = vld [vmem:[#allocation2 + $0x108] sm:$0xff] }
 0x40b   :  { %1456 = vst.msk [vmem:[#allocation2 + $0x138] sm:$0xff] %vm1442_vm4, %v1409_v45  ;;  %3646 = vrot.lane.b32.xlu1 %v12564_v18, %s10780_s24 }
 0x40d   :  { %v1946_v10 = vpop.permute.xlu1 %1945  ;;  %v2137_v49 = vpop.permute.xlu0 %2136 }
 0x40e   :  { %1996 = vst.msk [vmem:[#allocation2 + $0xf0] sm:$0xff] %vm1985_vm9, %v1946_v10 }
 0x40f   :  { %2182 = vst.msk [vmem:[#allocation2 + $0x170] sm:$0xff] %vm2166_vm5, %v2137_v49  ;;  %3656 = vrot.lane.b32.xlu1 %v12548_v21, %s10780_s24 }
 0x411   :  { %v2833_v58 = vpop.permute.xlu1 %2832  ;;  %v3015_v28 = vpop.permute.xlu0 %3014  ;;  %v3539_v4 = vld [vmem:[#allocation2 + $0xf8] sm:$0xff] }
 0x412   :  { %2880 = vst.msk [vmem:[#allocation2 + $0x128] sm:$0xff] %vm1261_vm3, %v2833_v58  ;;  %v12630_v60 = vpack.c.bf16 %v3542_v38, %v3539_v4  ;;  %v3762_v58 = vld [vmem:[#allocation2 + $0x68] sm:$0xff]  ;;  %v3765_v4 = vld [vmem:[#allocation2 + $0x80] sm:$0xff] }
 0x413   :  { %3061 = vst.msk [vmem:[#allocation2 + $0x140] sm:$0xff] %vm1442_vm4, %v3015_v28  ;;  %v12698_v38 = vpack.c.bf16 %v3765_v4, %v3762_v58 }
 0x414   :  { %3654 = vrot.lane.b32.xlu0 %v12630_v60, %s10780_s24  ;;  %6514 = vmatprep.subr.bf16.mxu0 %v12630_v60 }
 0x415   :  { %8536 = vmatprep.subr.bf16.mxu1 %v12630_v60  ;;  %v1407_v9 = vpop.permute.xlu1 %1406  ;;  %v1590_v8 = vpop.permute.xlu0 %1589  ;;  %v3538_v0 = vld [vmem:[#allocation2 + $0xf0] sm:$0xff] }
 0x416   :  { %1455 = vst.msk [vmem:[#allocation2 + $0x120] sm:$0xff] %vm1442_vm4, %v1407_v9  ;;  %v12638_v52 = vpack.c.bf16 %v3541_v46, %v3538_v0  ;;  %v3764_v46 = vld [vmem:[#allocation2 + $0x78] sm:$0xff] }
 0x417   :  { %1637 = vst.msk [vmem:[#allocation2 + $0x138] sm:$0xff] %vm1623_vm7, %v1590_v8  ;;  %v3761_v8 = vld [vmem:[#allocation2 + $0x60] sm:$0xff] }
 0x418   :  { %3652 = vrot.lane.b32.xlu0 %v12638_v52, %s10780_s24  ;;  %6515 = vmatpush1.bf16.msra.mxu0 %v12638_v52 }
 0x419   :  { %8537 = vmatpush1.bf16.msra.mxu1 %v12638_v52  ;;  %v2135_v51 = vpop.permute.xlu1 %2134  ;;  %v2318_v15 = vpop.permute.xlu0 %2317 }
 0x41a   :  { %2181 = vst.msk [vmem:[#allocation2 + $0x158] sm:$0xff] %vm2166_vm5, %v2135_v51  ;;  %v12703_v51 = vpack.c.bf16 %v3764_v46, %v3761_v8 }
 0x41b   :  { %2362 = vst.msk [vmem:[#allocation2 + $0x170] sm:$0xff] %vm899_vm1, %v2318_v15 }
 0x41c   :  { %3662 = vrot.lane.b32.xlu0 %v12548_v21, %s10780_s24 }
 0x41d   :  { %v3013_v30 = vpop.permute.xlu1 %3012  ;;  %v2626_v50 = vpop.permute.xlu0 %2625 }
 0x41e   :  { %3060 = vst.msk [vmem:[#allocation2 + $0x128] sm:$0xff] %vm1442_vm4, %v3013_v30 }
 0x421   :  { %v1588_v41 = vpop.permute.xlu1 %1587  ;;  %v2630_v22 = vpop.permute.xlu0 %2629 }
 0x422   :  { %1636 = vst.msk [vmem:[#allocation2 + $0x120] sm:$0xff] %vm1623_vm7, %v1588_v41 }
 0x425   :  { %v2316_v24 = vpop.permute.xlu1 %2315  ;;  %v3195_v57 = vpop.permute.xlu0 %3194 }
 0x426   :  { %2361 = vst.msk [vmem:[#allocation2 + $0x158] sm:$0xff] %vm899_vm1, %v2316_v24 }
 0x427   :  { %3241 = vst.msk [vmem:[#allocation2 + $0x140] sm:$0xff] %vm1623_vm7, %v3195_v57  ;;  %v10295_v57 = vld [vmem:[%s14936_s3 + $0x484] ss:$48 sps:$4 sm:$0xff]  }
 0x428   :  { %8558 = vmatprep.mubr.bf16.mxu1 %v10295_v57 }
 0x429   :  { %v2624_v63 = vpop.permute.xlu1 %2623  ;;  %v1771_v47 = vpop.permute.xlu0 %1770 }
 0x42a   :  { %v2662_v17 = vsel %vm2647_vm6, %v2624_v63, %v2626_v50  ;;  %1818 = vst.msk [vmem:[#allocation2 + $0x138] sm:$0xff] %vm1804_vm8, %v1771_v47 }
 0x42b   :  { %2702 = vst.msk [vmem:[#allocation2 + $0x158] sm:$0xff] %vm1080_vm2, %v2662_v17 }
 0x42d   :  { %v2628_v14 = vpop.permute.xlu1 %2627  ;;  %v3375_v25 = vpop.permute.xlu0 %3374 }
 0x42e   :  { %v2663_v61 = vsel %vm2647_vm6, %v2628_v14, %v2630_v22  ;;  %3421 = vst.msk [vmem:[#allocation2 + $0x140] sm:$0xff] %vm1804_vm8, %v3375_v25  ;;  %v10292_v22 = vld [vmem:[%s14936_s3 + $0x4] ss:$48 sps:$4 sm:$0xff]  }
 0x42f   :  { %2703 = vst.msk [vmem:[#allocation2 + $0x170] sm:$0xff] %vm1080_vm2, %v2663_v61  ;;  %6536 = vmatprep.mubr.bf16.mxu0 %v10292_v22 }
 0x431   :  { %v3193_v1 = vpop.permute.xlu1 %3192  ;;  %v1952_v31 = vpop.permute.xlu0 %1951 }
 0x432   :  { %3240 = vst.msk [vmem:[#allocation2 + $0x128] sm:$0xff] %vm1623_vm7, %v3193_v1 }
 0x433   :  { %1999 = vst.msk [vmem:[#allocation2 + $0x138] sm:$0xff] %vm1985_vm9, %v1952_v31 }
 0x435   :  { %v1769_v32 = vpop.permute.xlu1 %1768  ;;  %v2839_v5 = vpop.permute.xlu0 %2838  ;;  %v3548_v37 = vld [vmem:[#allocation2 + $0x140] sm:$0xff] }
 0x436   :  { %1817 = vst.msk [vmem:[#allocation2 + $0x120] sm:$0xff] %vm1804_vm8, %v1769_v32 }
 0x437   :  { %2883 = vst.msk [vmem:[#allocation2 + $0x170] sm:$0xff] %vm1261_vm3, %v2839_v5 }
 0x439   :  { %v3373_v36 = vpop.permute.xlu1 %3372  ;;  %v1413_v29 = vpop.permute.xlu0 %1412 }
 0x43a   :  { %3420 = vst.msk [vmem:[#allocation2 + $0x128] sm:$0xff] %vm1804_vm8, %v3373_v36  ;;  %v3547_v35 = vld [vmem:[#allocation2 + $0x138] sm:$0xff] }
 0x43b   :  { %1458 = vst.msk [vmem:[#allocation2 + $0x168] sm:$0xff] %vm1442_vm4, %v1413_v29 }
 0x43d   :  { %v1950_v6 = vpop.permute.xlu1 %1949  ;;  %v3019_v59 = vpop.permute.xlu0 %3018 }
 0x43e   :  { %1998 = vst.msk [vmem:[#allocation2 + $0x120] sm:$0xff] %vm1985_vm9, %v1950_v6 }
 0x43f   :  { %3063 = vst.msk [vmem:[#allocation2 + $0x170] sm:$0xff] %vm1442_vm4, %v3019_v59 }
 0x441   :  { %v2837_v33 = vpop.permute.xlu1 %2836  ;;  %v1594_v48 = vpop.permute.xlu0 %1593  ;;  %v3545_v43 = vld [vmem:[#allocation2 + $0x128] sm:$0xff] }
 0x442   :  { %2882 = vst.msk [vmem:[#allocation2 + $0x158] sm:$0xff] %vm1261_vm3, %v2837_v33  ;;  %v12668_v13 = vpack.c.bf16 %v3548_v37, %v3545_v43  ;;  %v3768_v37 = vld [vmem:[#allocation2 + $0x98] sm:$0xff] }
 0x443   :  { %1639 = vst.msk [vmem:[#allocation2 + $0x168] sm:$0xff] %vm1623_vm7, %v1594_v48 }
 0x444   :  { %3660 = vrot.lane.b32.xlu1 %v12668_v13, %s10780_s24  ;;  %6516 = vmatprep.subr.bf16.mxu0 %v12668_v13 }
 0x445   :  { %8538 = vmatprep.subr.bf16.mxu1 %v12668_v13  ;;  %v1411_v55 = vpop.permute.xlu1 %1410  ;;  %v3199_v20 = vpop.permute.xlu0 %3198  ;;  %v3544_v11 = vld [vmem:[#allocation2 + $0x120] sm:$0xff] }
 0x446   :  { %1457 = vst.msk [vmem:[#allocation2 + $0x150] sm:$0xff] %vm1442_vm4, %v1411_v55  ;;  %v12676_v62 = vpack.c.bf16 %v3547_v35, %v3544_v11 }
 0x447   :  { %3243 = vst.msk [vmem:[#allocation2 + $0x170] sm:$0xff] %vm1623_vm7, %v3199_v20 }
 0x448   :  { %3658 = vrot.lane.b32.xlu1 %v12676_v62, %s10780_s24  ;;  %6517 = vmatpush1.bf16.msra.mxu0 %v12676_v62 }
 0x449   :  { %8539 = vmatpush1.bf16.msra.mxu1 %v12676_v62  ;;  %v3017_v12 = vpop.permute.xlu1 %3016  ;;  %v1775_v3 = vpop.permute.xlu0 %1774 }
 0x44a   :  { %3062 = vst.msk [vmem:[#allocation2 + $0x158] sm:$0xff] %vm1442_vm4, %v3017_v12  ;;  %v3771_v12 = vld [vmem:[#allocation2 + $0xb0] sm:$0xff] }
 0x44b   :  { %1820 = vst.msk [vmem:[#allocation2 + $0x168] sm:$0xff] %vm1804_vm8, %v1775_v3  ;;  %v3767_v3 = vld [vmem:[#allocation2 + $0x90] sm:$0xff] }
 0x44c   :  { %3668 = vrot.lane.b32.xlu1 %v12548_v21, %s10780_s24 }
 0x44d   :  { %v1592_v2 = vpop.permute.xlu1 %1591  ;;  %v3379_v42 = vpop.permute.xlu0 %3378 }
 0x44e   :  { %1638 = vst.msk [vmem:[#allocation2 + $0x150] sm:$0xff] %vm1623_vm7, %v1592_v2 }
 0x44f   :  { %3423 = vst.msk [vmem:[#allocation2 + $0x170] sm:$0xff] %vm1804_vm8, %v3379_v42  ;;  %v12754_v42 = vpack.c.bf16 %v3771_v12, %v3768_v37  ;;  %v4475_v12 = vld [vmem:[#allocation2 + $0x18] sm:$0xff] }
 0x450   :  { %3865 = vrot.lane.b32.xlu1 %v12580_v23, %s10781_s25 }
 0x451   :  { %v3197_v53 = vpop.permute.xlu1 %3196  ;;  %v1956_v45 = vpop.permute.xlu0 %1955 }
 0x452   :  { %3242 = vst.msk [vmem:[#allocation2 + $0x158] sm:$0xff] %vm1623_vm7, %v3197_v53  ;;  %v3770_v53 = vld [vmem:[#allocation2 + $0xa8] sm:$0xff] }
 0x453   :  { %2001 = vst.msk [vmem:[#allocation2 + $0x168] sm:$0xff] %vm1985_vm9, %v1956_v45 }
 0x454   :  { %3863 = vrot.lane.b32.xlu1 %v12587_v16, %s10781_s25 }
 0x455   :  { %v1773_v10 = vpop.permute.xlu1 %1772  ;;  %v3627_v49 = vpop.permute.xlu0 %3626 }
 0x456   :  { %1819 = vst.msk [vmem:[#allocation2 + $0x150] sm:$0xff] %vm1804_vm8, %v1773_v10  ;;  %v3554_v15 = vld [vmem:[#allocation2 + $0x170] sm:$0xff] }
 0x458   :  { %3873 = vrot.lane.b32.xlu1 %v12548_v21, %s10781_s25 }
 0x459   :  { %v3377_v28 = vpop.permute.xlu1 %3376  ;;  %v3631_v9 = vpop.permute.xlu0 %3630 }
 0x45a   :  { %3422 = vst.msk [vmem:[#allocation2 + $0x158] sm:$0xff] %vm1804_vm8, %v3377_v28  ;;  %v3553_v63 = vld [vmem:[#allocation2 + $0x168] sm:$0xff] }
 0x45c   :  { %3877 = vrot.lane.b32.xlu1 %v12698_v38, %s10781_s25 }
 0x45d   :  { %v1954_v0 = vpop.permute.xlu1 %1953  ;;  %v3629_v30 = vpop.permute.xlu0 %3628 }
 0x45e   :  { %2000 = vst.msk [vmem:[#allocation2 + $0x150] sm:$0xff] %vm1985_vm9, %v1954_v0  ;;  %v3673_v29 = vsel %vm3670_vm10, %v3629_v30, %v3631_v9 }
 0x460   :  { %3875 = vrot.lane.b32.xlu1 %v12703_v51, %s10781_s25 }
 0x461   :  { %v3625_v50 = vpop.permute.xlu1 %3624  ;;  %v3551_v41 = vld [vmem:[#allocation2 + $0x158] sm:$0xff]  ;;  %v3639_v25 = vpop.permute.xlu0 %3638 }
 0x462   :  { %v12710_v24 = vpack.c.bf16 %v3554_v15, %v3551_v41  ;;  %v3672_v1 = vsel %vm3670_vm10, %v3625_v50, %v3627_v49  ;;  %v12761_v49 = vpack.c.bf16 %v3770_v53, %v3767_v3  ;;  %v4255_v15 = vld [vmem:[#allocation2 + $0xc0] sm:$0xff]  ;;  %v4258_v41 = vld [vmem:[#allocation2 + $0xd8] sm:$0xff] }
 0x463   :  { %v12847_v57 = vpack.c.bf16 %v4258_v41, %v4255_v15 }
 0x464   :  { %3885 = vrot.lane.b32.xlu1 %v12548_v21, %s10781_s25  ;;  %3666 = vrot.lane.b32.xlu0 %v12710_v24, %s10780_s24 }
 0x465   :  { %6518 = vmatprep.subr.bf16.mxu0 %v12710_v24  ;;  %8540 = vmatprep.subr.bf16.mxu1 %v12710_v24  ;;  %v3623_v47 = vpop.permute.xlu1 %3622  ;;  %v3550_v17 = vld [vmem:[#allocation2 + $0x150] sm:$0xff]  ;;  %v3643_v32 = vpop.permute.xlu0 %3642 }
 0x466   :  { %v12721_v14 = vpack.c.bf16 %v3553_v63, %v3550_v17  ;;  %v3671_v31 = vsel %vm3670_vm10, %v3623_v47, %v3625_v50  ;;  %v4238_v63 = vld [vmem:[#allocation2 + $0x38] sm:$0xff]  ;;  %v4241_v47 = vld [vmem:[#allocation2 + $0x50] sm:$0xff] }
 0x467   :  { %v4237_v17 = vld [vmem:[#allocation2 + $0x30] sm:$0xff] }
 0x468   :  { %3889 = vrot.lane.b32.xlu1 %v12552_v27, %s10781_s25  ;;  %3664 = vrot.lane.b32.xlu0 %v12721_v14, %s10780_s24 }
 0x469   :  { %6519 = vmatpush1.bf16.msra.mxu0 %v12721_v14  ;;  %8541 = vmatpush1.bf16.msra.mxu1 %v12721_v14  ;;  %v3633_v61 = vpop.permute.xlu1 %3632  ;;  %v3641_v48 = vpop.permute.xlu0 %3640 }
 0x46a   :  { %6520 = vmatprep.subr.bf16.mxu0 %v3672_v1  ;;  %8542 = vmatprep.subr.bf16.mxu1 %v3672_v1  ;;  %v3674_v36 = vsel %vm3670_vm10, %v3631_v9, %v3633_v61  ;;  %v3677_v11 = vsel %vm3670_vm10, %v3641_v48, %v3643_v32  ;;  %v12855_v61 = vpack.c.bf16 %v4241_v47, %v4238_v63  ;;  %v4240_v1 = vld [vmem:[#allocation2 + $0x48] sm:$0xff]  ;;  %v10293_v48 = vld [vmem:[%s14936_s3 + $0x480] ss:$48 sps:$4 sm:$0xff]  }
 0x46c   :  { %3887 = vrot.lane.b32.xlu1 %v12564_v18, %s10781_s25  ;;  %3867 = vrot.lane.b32.xlu0 %v12548_v21, %s10781_s25 }
 0x46d   :  { %6521 = vmatpush1.bf16.msra.mxu0 %v3671_v31  ;;  %8543 = vmatpush1.bf16.msra.mxu1 %v3671_v31  ;;  %v3637_v5 = vpop.permute.xlu1 %3636  ;;  %v3651_v20 = vpop.permute.xlu0 %3650 }
 0x46e   :  { %6522 = vmatprep.subr.bf16.mxu0 %v3674_v36  ;;  %8544 = vmatprep.subr.bf16.mxu1 %v3674_v36  ;;  %v3676_v59 = vsel %vm3670_vm10, %v3637_v5, %v3639_v25 }
 0x470   :  { %3897 = vrot.lane.b32.xlu1 %v12548_v21, %s10781_s25  ;;  %3871 = vrot.lane.b32.xlu0 %v12560_v19, %s10781_s25 }
 0x471   :  { %6523 = vmatpush1.bf16.msra.mxu0 %v3673_v29  ;;  %8545 = vmatpush1.bf16.msra.mxu1 %v3673_v29  ;;  %v3635_v6 = vpop.permute.xlu1 %3634 }
 0x472   :  { %6524 = vmatprep.subr.bf16.mxu0 %v3676_v59  ;;  %8546 = vmatprep.subr.bf16.mxu1 %v3676_v59  ;;  %v3675_v33 = vsel %vm3670_vm10, %v3635_v6, %v3637_v5 }
 0x474   :  { %3901 = vrot.lane.b32.xlu1 %v12668_v13, %s10781_s25  ;;  %3869 = vrot.lane.b32.xlu0 %v12572_v40, %s10781_s25 }
 0x475   :  { %6525 = vmatpush1.bf16.msra.mxu0 %v3675_v33  ;;  %8547 = vmatpush1.bf16.msra.mxu1 %v3675_v33  ;;  %v3645_v43 = vpop.permute.xlu1 %3644 }
 0x476   :  { %v3678_v55 = vsel %vm3670_vm10, %v3643_v32, %v3645_v43  ;;  %v12863_v32 = vpack.c.bf16 %v4240_v1, %v4237_v17  ;;  %v4476_v43 = vld [vmem:[#allocation2 + $0x20] sm:$0xff] }
 0x477   :  { %6526 = vmatprep.subr.bf16.mxu0 %v3678_v55  ;;  %8548 = vmatprep.subr.bf16.mxu1 %v3678_v55  ;;  %v10306_v17 = vld [vmem:[%s14936_s3 + $0xc0] ss:$48 sps:$4 sm:$0xff]  }
 0x478   :  { %3899 = vrot.lane.b32.xlu1 %v12676_v62, %s10781_s25  ;;  %3879 = vrot.lane.b32.xlu0 %v12548_v21, %s10781_s25 }
 0x479   :  { %6527 = vmatpush1.bf16.msra.mxu0 %v3677_v11  ;;  %8549 = vmatpush1.bf16.msra.mxu1 %v3677_v11  ;;  %v3649_v35 = vpop.permute.xlu1 %3648 }
 0x47a   :  { %v3680_v2 = vsel %vm3670_vm10, %v3649_v35, %v3651_v20 }
 0x47b   :  { %6528 = vmatprep.subr.bf16.mxu0 %v3680_v2  ;;  %8550 = vmatprep.subr.bf16.mxu1 %v3680_v2 }
 0x47c   :  { %3909 = vrot.lane.b32.xlu1 %v12548_v21, %s10781_s25  ;;  %3883 = vrot.lane.b32.xlu0 %v12754_v42, %s10781_s25 }
 0x47d   :  { %v3647_v45 = vpop.permute.xlu1 %3646 }
 0x47e   :  { %v3679_v10 = vsel %vm3670_vm10, %v3647_v45, %v3649_v35  ;;  %v4472_v35 = vld [vmem:[#allocation2] sm:$0xff] }
 0x47f   :  { %6529 = vmatpush1.bf16.msra.mxu0 %v3679_v10  ;;  %8551 = vmatpush1.bf16.msra.mxu1 %v3679_v10  ;;  %v12901_v45 = vpack.c.bf16 %v4475_v12, %v4472_v35  ;;  %v10296_v10 = vld [vmem:[%s14936_s3 + $0x64] ss:$48 sps:$4 sm:$0xff]   ;;  %v10318_v35 = vld [vmem:[%s14936_s3 + $0x180] ss:$48 sps:$4 sm:$0xff]  }
 0x480   :  { %4106 = vrot.lane.b32.xlu1 %v12580_v23, %s10782_s9  ;;  %3881 = vrot.lane.b32.xlu0 %v12761_v49, %s10781_s25  ;;  %v10319_v12 = vld [vmem:[%s14936_s3 + $0x600] ss:$48 sps:$4 sm:$0xff]  }
 0x481   :  { %v3657_v58 = vpop.permute.xlu1 %3656 }
 0x484   :  { %4104 = vrot.lane.b32.xlu1 %v12587_v16, %s10782_s9  ;;  %3891 = vrot.lane.b32.xlu0 %v12548_v21, %s10781_s25 }
 0x486   :  { %v3655_v28 = vpop.permute.xlu0 %3654 }
 0x487   :  { %v3682_v4 = vsel %vm3670_vm10, %v3655_v28, %v3657_v58  ;;  %v10298_v58 = vld [vmem:[%s14936_s3 + $0x4e4] ss:$48 sps:$4 sm:$0xff]  }
 0x488   :  { %4114 = vrot.lane.b32.xlu1 %v12548_v21, %s10782_s9  ;;  %3895 = vrot.lane.b32.xlu0 %v12630_v60, %s10781_s25 }
 0x489   :  { %6530 = vmatprep.subr.bf16.mxu0 %v3682_v4  ;;  %8552 = vmatprep.subr.bf16.mxu1 %v3682_v4  ;;  %v4262_v4 = vld [vmem:[#allocation2 + $0xf8] sm:$0xff] }
 0x48a   :  { %v3653_v9 = vpop.permute.xlu0 %3652 }
 0x48b   :  { %v3681_v8 = vsel %vm3670_vm10, %v3653_v9, %v3655_v28  ;;  %v4265_v9 = vld [vmem:[#allocation2 + $0x110] sm:$0xff] }
 0x48c   :  { %4118 = vrot.lane.b32.xlu1 %v12698_v38, %s10782_s9  ;;  %3893 = vrot.lane.b32.xlu0 %v12638_v52, %s10781_s25 }
 0x48d   :  { %6531 = vmatpush1.bf16.msra.mxu0 %v3681_v8  ;;  %8553 = vmatpush1.bf16.msra.mxu1 %v3681_v8 }
 0x490   :  { %4116 = vrot.lane.b32.xlu1 %v12703_v51, %s10782_s9  ;;  %3903 = vrot.lane.b32.xlu0 %v12548_v21, %s10781_s25 }
 0x494   :  { %4126 = vrot.lane.b32.xlu1 %v12548_v21, %s10782_s9  ;;  %3907 = vrot.lane.b32.xlu0 %v12710_v24, %s10781_s25 }
 0x498   :  { %4130 = vrot.lane.b32.xlu1 %v12552_v27, %s10782_s9  ;;  %3905 = vrot.lane.b32.xlu0 %v12721_v14, %s10781_s25  ;;  %v3663_v27 = vpop.permute.xlu0 %3662 }
 0x49c   :  { %4128 = vrot.lane.b32.xlu1 %v12564_v18, %s10782_s9  ;;  %4108 = vrot.lane.b32.xlu0 %v12548_v21, %s10782_s9 }
 0x4a0   :  { %4138 = vrot.lane.b32.xlu1 %v12548_v21, %s10782_s9  ;;  %4112 = vrot.lane.b32.xlu0 %v12560_v19, %s10782_s9 }
 0x4a4   :  { %4142 = vrot.lane.b32.xlu1 %v12668_v13, %s10782_s9  ;;  %4110 = vrot.lane.b32.xlu0 %v12572_v40, %s10782_s9 }
 0x4a8   :  { %4140 = vrot.lane.b32.xlu1 %v12676_v62, %s10782_s9  ;;  %4120 = vrot.lane.b32.xlu0 %v12548_v21, %s10782_s9 }
 0x4ac   :  { %4150 = vrot.lane.b32.xlu1 %v12548_v21, %s10782_s9  ;;  %4124 = vrot.lane.b32.xlu0 %v12754_v42, %s10782_s9 }
 0x4b0   :  { %4347 = vrot.lane.b32.xlu1 %v12580_v23, %s10783_s10  ;;  %4122 = vrot.lane.b32.xlu0 %v12761_v49, %s10782_s9 }
 0x4b4   :  { %4345 = vrot.lane.b32.xlu1 %v12587_v16, %s10783_s10  ;;  %4132 = vrot.lane.b32.xlu0 %v12548_v21, %s10782_s9  ;;  %v10762_v16 = vld [vmem:[#allocation2 + $0x10] sm:$0xff] }
 0x4b5   :  { %v12831_v0 = vpack.c.bf16 %v10762_v16, %v10762_v16  ;;  %v4261_v16 = vld [vmem:[#allocation2 + $0xf0] sm:$0xff] }
 0x4b6   :  { %v3661_v19 = vpop.permute.xlu1 %3660 }
 0x4b7   :  { %v3684_v18 = vsel %vm3670_vm10, %v3661_v19, %v3663_v27 }
 0x4b8   :  { %4355 = vrot.lane.b32.xlu1 %v12548_v21, %s10783_s10  ;;  %4136 = vrot.lane.b32.xlu0 %v12630_v60, %s10782_s9  ;;  %v4256_v60 = vld [vmem:[#allocation2 + $0xc8] sm:$0xff] }
 0x4b9   :  { %6532 = vmatprep.subr.bf16.mxu0 %v3684_v18  ;;  %8554 = vmatprep.subr.bf16.mxu1 %v3684_v18  ;;  %v10300_v18 = vld [vmem:[%s14936_s3 + $0x60] ss:$48 sps:$4 sm:$0xff]  }
 0x4ba   :  { %v3659_v40 = vpop.permute.xlu1 %3658 }
 0x4bb   :  { %v3683_v23 = vsel %vm3670_vm10, %v3659_v40, %v3661_v19  ;;  %v12916_v19 = vpack.c.bf16 %v4265_v9, %v4262_v4  ;;  %v10301_v40 = vld [vmem:[%s14936_s3 + $0x4e0] ss:$48 sps:$4 sm:$0xff]  }
 0x4bc   :  { %4359 = vrot.lane.b32.xlu1 %v12698_v38, %s10783_s10  ;;  %4134 = vrot.lane.b32.xlu0 %v12638_v52, %s10782_s9  ;;  %v4259_v52 = vld [vmem:[#allocation2 + $0xe0] sm:$0xff] }
 0x4bd   :  { %6533 = vmatpush1.bf16.msra.mxu0 %v3683_v23  ;;  %8555 = vmatpush1.bf16.msra.mxu1 %v3683_v23  ;;  %v12841_v50 = vpack.c.bf16 %v4259_v52, %v4256_v60  ;;  %v10304_v60 = vld [vmem:[%s14936_s3 + $0x544] ss:$48 sps:$4 sm:$0xff]  }
 0x4be   :  { %v3669_v21 = vpop.permute.xlu1 %3668 }
 0x4c0   :  { %4357 = vrot.lane.b32.xlu1 %v12703_v51, %s10783_s10  ;;  %4144 = vrot.lane.b32.xlu0 %v12831_v0, %s10782_s9 }
 0x4c2   :  { %v3866_v46 = vpop.permute.xlu1 %3865 }
 0x4c4   :  { %4367 = vrot.lane.b32.xlu1 %v12831_v0, %s10783_s10  ;;  %4148 = vrot.lane.b32.xlu0 %v12710_v24, %s10782_s9 }
 0x4c6   :  { %v3864_v30 = vpop.permute.xlu1 %3863 }
 0x4c7   :  { %v3912_v3 = vsel %vm3911_vm11, %v3864_v30, %v3866_v46 }
 0x4c8   :  { %4371 = vrot.lane.b32.xlu1 %v12841_v50, %s10783_s10  ;;  %4146 = vrot.lane.b32.xlu0 %v12721_v14, %s10782_s9 }
 0x4ca   :  { %v3874_v22 = vpop.permute.xlu1 %3873 }
 0x4cc   :  { %4369 = vrot.lane.b32.xlu1 %v12847_v57, %s10783_s10  ;;  %4349 = vrot.lane.b32.xlu0 %v12831_v0, %s10783_s10 }
 0x4ce   :  { %v12853_v25 = vpop.permute.xlu1 %3877 }
 0x4d0   :  { %4379 = vrot.lane.b32.xlu1 %v12831_v0, %s10783_s10  ;;  %4353 = vrot.lane.b32.xlu0 %v12855_v61, %s10783_s10 }
 0x4d2   :  { %v12861_v31 = vpop.permute.xlu1 %3875 }
 0x4d4   :  { %4383 = vrot.lane.b32.xlu1 %v12668_v13, %s10783_s10  ;;  %4351 = vrot.lane.b32.xlu0 %v12863_v32, %s10783_s10  ;;  %v4473_v13 = vld [vmem:[#allocation2 + $0x8] sm:$0xff] }
 0x4d5   :  { %v12891_v20 = vpack.c.bf16 %v4476_v43, %v4473_v13  ;;  %v10312_v13 = vld [vmem:[%s14936_s3 + $0x120] ss:$48 sps:$4 sm:$0xff]  }
 0x4d6   :  { %v12869_v5 = vpop.permute.xlu1 %3885  ;;  %v3667_v36 = vpop.permute.xlu0 %3666 }
 0x4d7   :  { %v3686_v29 = vsel %vm3670_vm10, %v3667_v36, %v3669_v21  ;;  %v10302_v21 = vld [vmem:[%s14936_s3 + $0xc4] ss:$48 sps:$4 sm:$0xff]  }
 0x4d8   :  { %4381 = vrot.lane.b32.xlu1 %v12676_v62, %s10783_s10  ;;  %4361 = vrot.lane.b32.xlu0 %v12831_v0, %s10783_s10  ;;  %v10290_v62 = vld [vmem:[%s14936_s3] ss:$48 sps:$4 sm:$0xff]  }
 0x4d9   :  { %6534 = vmatprep.subr.bf16.mxu0 %v3686_v29  ;;  %8556 = vmatprep.subr.bf16.mxu1 %v3686_v29 }
 0x4da   :  { %v12876_v6 = vpop.permute.xlu1 %3889  ;;  %v3665_v59 = vpop.permute.xlu0 %3664 }
 0x4db   :  { %v3685_v33 = vsel %vm3670_vm10, %v3665_v59, %v3667_v36 }
 0x4dc   :  { %4391 = vrot.lane.b32.xlu1 %v12831_v0, %s10783_s10  ;;  %4365 = vrot.lane.b32.xlu0 %v12754_v42, %s10783_s10 }
 0x4dd   :  { %6535 = vmatpush1.bf16.msra.mxu0 %v3685_v33  ;;  %8557 = vmatpush1.bf16.msra.mxu1 %v3685_v33  ;;  %v10313_v33 = vld [vmem:[%s14936_s3 + $0x5a0] ss:$48 sps:$4 sm:$0xff]  }
 0x4de   :  { %v12889_v37 = vpop.permute.xlu1 %3887  ;;  %v3868_v55 = vpop.permute.xlu0 %3867 }
 0x4df   :  { %v3913_v11 = vsel %vm3911_vm11, %v3866_v46, %v3868_v55  ;;  %v4264_v46 = vld [vmem:[#allocation2 + $0x108] sm:$0xff]  ;;  %v10314_v55 = vld [vmem:[%s14936_s3 + $0x184] ss:$48 sps:$4 sm:$0xff]  }
 0x4e0   :  { %4588 = vrot.lane.b32.xlu1 %v12891_v20, %s10784_s17  ;;  %4363 = vrot.lane.b32.xlu0 %v12761_v49, %s10783_s10  ;;  %v12937_v30 = vpack.c.bf16 %v4264_v46, %v4261_v16  ;;  %v10324_v46 = vld [vmem:[%s14936_s3 + $0x1e0] ss:$48 sps:$4 sm:$0xff]  }
 0x4e1   :  { %6657 = vmatprep.subr.bf16.mxu0 %v3913_v11  ;;  %8679 = vmatprep.subr.bf16.mxu1 %v3913_v11  ;;  %v10316_v11 = vld [vmem:[%s14936_s3 + $0x604] ss:$48 sps:$4 sm:$0xff]  }
 0x4e2   :  { %6537 = vmatmul.mubr.bf16.vlgmr.msra.gmra.mrb[0].mxu0 %v10290_v62  ;;  %8559 = vmatmul.mubr.bf16.vlgmr.msra.gmra.mrb[0].mxu1 %v10293_v48  ;;  %v12899_v2 = vpop.permute.xlu1 %3897  ;;  %v3872_v53 = vpop.permute.xlu0 %3871 }
 0x4e3   :  { %6658 = vmatpush1.bf16.msra.mxu0 %v3912_v3  ;;  %8680 = vmatpush1.bf16.msra.mxu1 %v3912_v3  ;;  %v3915_v28 = vsel %vm3911_vm11, %v3872_v53, %v3874_v22  ;;  %v3916_v22 = vsel %vm3911_vm11, %v12861_v31, %v12853_v25  ;;  %v10310_v31 = vld [vmem:[%s14936_s3 + $0x5a4] ss:$48 sps:$4 sm:$0xff]  }
 0x4e4   :  { %4586 = vrot.lane.b32.xlu1 %v12901_v45, %s10784_s17  ;;  %4373 = vrot.lane.b32.xlu0 %v12831_v0, %s10783_s10 }
 0x4e5   :  { %6659 = vmatprep.subr.bf16.mxu0 %v3915_v28  ;;  %8681 = vmatprep.subr.bf16.mxu1 %v3915_v28 }
 0x4e6   :  { %v12914_v8 = vpop.permute.xlu1 %3901  ;;  %v3870_v27 = vpop.permute.xlu0 %3869  ;;  %6546 = vmatprep.mubr.bf16.mxu0 %v10296_v10  ;;  %8568 = vmatprep.mubr.bf16.mxu1 %v10298_v58  ;;  %v10322_v10 = vld [vmem:[%s14936_s3 + $0x664] ss:$48 sps:$4 sm:$0xff]  }
 0x4e7   :  { %v3914_v23 = vsel %vm3911_vm11, %v3870_v27, %v3872_v53  ;;  %v10320_v53 = vld [vmem:[%s14936_s3 + $0x1e4] ss:$48 sps:$4 sm:$0xff]  }
 0x4e8   :  { %4596 = vrot.lane.b32.xlu1 %v12831_v0, %s10784_s17  ;;  %4377 = vrot.lane.b32.xlu0 %v12916_v19, %s10783_s10  ;;  %v4512_v58 = vld [vmem:[#allocation2 + $0x140] sm:$0xff] }
 0x4e9   :  { %6660 = vmatpush1.bf16.msra.mxu0 %v3914_v23  ;;  %8682 = vmatpush1.bf16.msra.mxu1 %v3914_v23  ;;  %v4511_v23 = vld [vmem:[#allocation2 + $0x138] sm:$0xff] }
 0x4ea   :  { %6547 = vmatmul.mubr.bf16.gmra.mrb[4].mxu0 %v10300_v18  ;;  %8569 = vmatmul.mubr.bf16.gmra.mrb[4].mxu1 %v10301_v40  ;;  %v12935_v52 = vpop.permute.xlu1 %3899  ;;  %v3880_v15 = vpop.permute.xlu0 %3879  ;;  %v4508_v18 = vld [vmem:[#allocation2 + $0x120] sm:$0xff] }
 0x4eb   :  { %v3917_v41 = vsel %vm3911_vm11, %v12853_v25, %v3880_v15  ;;  %6556 = vmatprep.mubr.bf16.mxu0 %v10302_v21  ;;  %8578 = vmatprep.mubr.bf16.mxu1 %v10304_v60  ;;  %v10308_v25 = vld [vmem:[%s14936_s3 + $0x124] ss:$48 sps:$4 sm:$0xff]   ;;  %v3924_v40 = vsel %vm3911_vm11, %v12935_v52, %v12914_v8  ;;  %v13040_v60 = vpack.c.bf16 %v4511_v23, %v4508_v18  ;;  %v10325_v15 = vld [vmem:[%s14936_s3 + $0x660] ss:$48 sps:$4 sm:$0xff]  }
 0x4ec   :  { %4600 = vrot.lane.b32.xlu1 %v12698_v38, %s10784_s17  ;;  %4375 = vrot.lane.b32.xlu0 %v12937_v30, %s10783_s10  ;;  %v10307_v38 = vld [vmem:[%s14936_s3 + $0x540] ss:$48 sps:$4 sm:$0xff]   ;;  %v10326_v52 = vld [vmem:[%s14936_s3 + $0x244] ss:$48 sps:$4 sm:$0xff]  }
 0x4ed   :  { %6661 = vmatprep.subr.bf16.mxu0 %v3917_v41  ;;  %8683 = vmatprep.subr.bf16.mxu1 %v3917_v41  ;;  %v10328_v41 = vld [vmem:[%s14936_s3 + $0x6c4] ss:$48 sps:$4 sm:$0xff]   ;;  %v10343_v18 = vld [vmem:[%s14936_s3 + $0x780] ss:$48 sps:$4 sm:$0xff]  }
 0x4ee   :  { %6662 = vmatpush1.bf16.msra.mxu0 %v3916_v22  ;;  %8684 = vmatpush1.bf16.msra.mxu1 %v3916_v22  ;;  %v12948_v63 = vpop.permute.xlu1 %3909  ;;  %v3884_v47 = vpop.permute.xlu0 %3883  ;;  %v10346_v23 = vld [vmem:[%s14936_s3 + $0x7e4] ss:$48 sps:$4 sm:$0xff]  }
 0x4ef   :  { %v3919_v1 = vsel %vm3911_vm11, %v3884_v47, %v12869_v5 }
 0x4f0   :  { %4598 = vrot.lane.b32.xlu1 %v12703_v51, %s10784_s17  ;;  %4385 = vrot.lane.b32.xlu0 %v12831_v0, %s10783_s10 }
 0x4f1   :  { %6663 = vmatprep.subr.bf16.mxu0 %v3919_v1  ;;  %8685 = vmatprep.subr.bf16.mxu1 %v3919_v1  ;;  %v10330_v1 = vld [vmem:[%s14936_s3 + $0x240] ss:$48 sps:$4 sm:$0xff]  }
 0x4f2   :  { %6557 = vmatmul.mubr.bf16.gmra.mrb[8].mxu0 %v10306_v17  ;;  %8579 = vmatmul.mubr.bf16.gmra.mrb[8].mxu1 %v10307_v38  ;;  %v12968_v36 = vpop.permute.xlu1 %4106  ;;  %v3882_v5 = vpop.permute.xlu0 %3881 }
 0x4f3   :  { %v3918_v29 = vsel %vm3911_vm11, %v3882_v5, %v3884_v47  ;;  %6566 = vmatprep.mubr.bf16.mxu0 %v10308_v25  ;;  %8588 = vmatprep.mubr.bf16.mxu1 %v10310_v31  ;;  %v10331_v25 = vld [vmem:[%s14936_s3 + $0x6c0] ss:$48 sps:$4 sm:$0xff]  }
 0x4f4   :  { %4608 = vrot.lane.b32.xlu1 %v12831_v0, %s10784_s17  ;;  %4389 = vrot.lane.b32.xlu0 %v12710_v24, %s10783_s10  ;;  %v3920_v24 = vsel %vm3911_vm11, %v12889_v37, %v12876_v6 }
 0x4f5   :  { %6664 = vmatpush1.bf16.msra.mxu0 %v3918_v29  ;;  %8686 = vmatpush1.bf16.msra.mxu1 %v3918_v29 }
 0x4f6   :  { %v12975_v51 = vpop.permute.xlu1 %4104  ;;  %v3892_v59 = vpop.permute.xlu0 %3891 }
 0x4f7   :  { %v3921_v62 = vsel %vm3911_vm11, %v12876_v6, %v3892_v59  ;;  %v10332_v59 = vld [vmem:[%s14936_s3 + $0x2a4] ss:$48 sps:$4 sm:$0xff]  }
 0x4f8   :  { %4612 = vrot.lane.b32.xlu1 %v12841_v50, %s10784_s17  ;;  %4387 = vrot.lane.b32.xlu0 %v12721_v14, %s10783_s10 }
 0x4f9   :  { %6665 = vmatprep.subr.bf16.mxu0 %v3921_v62  ;;  %8687 = vmatprep.subr.bf16.mxu1 %v3921_v62  ;;  %v10337_v62 = vld [vmem:[%s14936_s3 + $0x720] ss:$48 sps:$4 sm:$0xff]  }
 0x4fa   :  { %6567 = vmatmul.mubr.bf16.gmra.mrb[12].mxu0 %v10312_v13  ;;  %8589 = vmatmul.mubr.bf16.gmra.mrb[12].mxu1 %v10313_v33  ;;  %v12992_v48 = vpop.permute.xlu1 %4114  ;;  %v3896_v43 = vpop.permute.xlu0 %3895  ;;  %v10334_v13 = vld [vmem:[%s14936_s3 + $0x724] ss:$48 sps:$4 sm:$0xff]   ;;  %v10336_v33 = vld [vmem:[%s14936_s3 + $0x2a0] ss:$48 sps:$4 sm:$0xff]  }
 0x4fb   :  { %6666 = vmatpush1.bf16.msra.mxu0 %v3920_v24  ;;  %8688 = vmatpush1.bf16.msra.mxu1 %v3920_v24  ;;  %v3923_v14 = vsel %vm3911_vm11, %v3896_v43, %v12899_v2  ;;  %v4509_v2 = vld [vmem:[#allocation2 + $0x128] sm:$0xff] }
 0x4fc   :  { %4610 = vrot.lane.b32.xlu1 %v12847_v57, %s10784_s17  ;;  %4590 = vrot.lane.b32.xlu0 %v12831_v0, %s10784_s17  ;;  %v13027_v9 = vpack.c.bf16 %v4512_v58, %v4509_v2 }
 0x4fd   :  { %6667 = vmatprep.subr.bf16.mxu0 %v3923_v14  ;;  %8689 = vmatprep.subr.bf16.mxu1 %v3923_v14 }
 0x4fe   :  { %v13006_v6 = vpop.permute.xlu1 %4118  ;;  %v3894_v37 = vpop.permute.xlu0 %3893  ;;  %6576 = vmatprep.mubr.bf16.mxu0 %v10314_v55  ;;  %8598 = vmatprep.mubr.bf16.mxu1 %v10316_v11  ;;  %v10340_v55 = vld [vmem:[%s14936_s3 + $0x784] ss:$48 sps:$4 sm:$0xff]  }
 0x4ff   :  { %v3922_v3 = vsel %vm3911_vm11, %v3894_v37, %v3896_v43  ;;  %v10338_v43 = vld [vmem:[%s14936_s3 + $0x304] ss:$48 sps:$4 sm:$0xff]  }
 0x500   :  { %4620 = vrot.lane.b32.xlu1 %v12831_v0, %s10784_s17  ;;  %4594 = vrot.lane.b32.xlu0 %v12855_v61, %s10784_s17  ;;  %v4729_v11 = vld [vmem:[#allocation2 + $0x80] sm:$0xff] }
 0x501   :  { %6668 = vmatpush1.bf16.msra.mxu0 %v3922_v3  ;;  %8690 = vmatpush1.bf16.msra.mxu1 %v3922_v3  ;;  %v4725_v3 = vld [vmem:[#allocation2 + $0x60] sm:$0xff] }
 0x502   :  { %6577 = vmatmul.mubr.bf16.gmra.mrb[16].mxu0 %v10318_v35  ;;  %8599 = vmatmul.mubr.bf16.gmra.mrb[16].mxu1 %v10319_v12  ;;  %v13025_v28 = vpop.permute.xlu1 %4116  ;;  %v3904_v4 = vpop.permute.xlu0 %3903 }
 0x503   :  { %v3925_v27 = vsel %vm3911_vm11, %v12914_v8, %v3904_v4  ;;  %6586 = vmatprep.mubr.bf16.mxu0 %v10320_v53  ;;  %8608 = vmatprep.mubr.bf16.mxu1 %v10322_v10  ;;  %v4157_v2 = vsel %vm4152_vm12, %v13025_v28, %v13006_v6  ;;  %v4728_v53 = vld [vmem:[#allocation2 + $0x78] sm:$0xff] }
 0x504   :  { %4624 = vrot.lane.b32.xlu1 %v13027_v9, %s10784_s17  ;;  %4592 = vrot.lane.b32.xlu0 %v12863_v32, %s10784_s17  ;;  %v13132_v4 = vpack.c.bf16 %v4728_v53, %v4725_v3  ;;  %v4515_v28 = vld [vmem:[#allocation2 + $0x158] sm:$0xff] }
 0x505   :  { %6669 = vmatprep.subr.bf16.mxu0 %v3925_v27  ;;  %8691 = vmatprep.subr.bf16.mxu1 %v3925_v27  ;;  %v10342_v27 = vld [vmem:[%s14936_s3 + $0x300] ss:$48 sps:$4 sm:$0xff]   ;;  %v4732_v3 = vld [vmem:[#allocation2 + $0x98] sm:$0xff] }
 0x506   :  { %6670 = vmatpush1.bf16.msra.mxu0 %v3924_v40  ;;  %8692 = vmatpush1.bf16.msra.mxu1 %v3924_v40  ;;  %v13038_v16 = vpop.permute.xlu1 %4126  ;;  %v3908_v21 = vpop.permute.xlu0 %3907  ;;  %v10344_v40 = vld [vmem:[%s14936_s3 + $0x364] ss:$48 sps:$4 sm:$0xff]  }
 0x507   :  { %v3927_v8 = vsel %vm3911_vm11, %v3908_v21, %v12948_v63 }
 0x508   :  { %4622 = vrot.lane.b32.xlu1 %v13040_v60, %s10784_s17  ;;  %4602 = vrot.lane.b32.xlu0 %v12831_v0, %s10784_s17 }
 0x509   :  { %6671 = vmatprep.subr.bf16.mxu0 %v3927_v8  ;;  %8693 = vmatprep.subr.bf16.mxu1 %v3927_v8 }
 0x50a   :  { %6587 = vmatmul.mubr.bf16.gmra.mrb[20].mxu0 %v10324_v46  ;;  %8609 = vmatmul.mubr.bf16.gmra.mrb[20].mxu1 %v10325_v15  ;;  %v13060_v22 = vpop.permute.xlu1 %4130  ;;  %v3906_v63 = vpop.permute.xlu0 %3905 }
 0x50b   :  { %v3926_v47 = vsel %vm3911_vm11, %v3906_v63, %v3908_v21  ;;  %6596 = vmatprep.mubr.bf16.mxu0 %v10326_v52  ;;  %8618 = vmatprep.mubr.bf16.mxu1 %v10328_v41  ;;  %v4518_v21 = vld [vmem:[#allocation2 + $0x170] sm:$0xff]  ;;  %v4517_v41 = vld [vmem:[#allocation2 + $0x168] sm:$0xff] }
 0x50c   :  { %4632 = vrot.lane.b32.xlu1 %v12831_v0, %s10784_s17  ;;  %4606 = vrot.lane.b32.xlu0 %v12754_v42, %s10784_s17  ;;  %v4153_v42 = vsel %vm4152_vm12, %v12975_v51, %v12968_v36  ;;  %v13154_v15 = vpack.c.bf16 %v4518_v21, %v4515_v28  ;;  %v4514_v52 = vld [vmem:[#allocation2 + $0x150] sm:$0xff]  ;;  %v10365_v21 = vld [vmem:[%s14936_s3 + $0x488] ss:$48 sps:$4 sm:$0xff]  }
 0x50d   :  { %6672 = vmatpush1.bf16.msra.mxu0 %v3926_v47  ;;  %8694 = vmatpush1.bf16.msra.mxu1 %v3926_v47 }
 0x50e   :  { %v13067_v17 = vpop.permute.xlu1 %4128  ;;  %v4109_v38 = vpop.permute.xlu0 %4108 }
 0x50f   :  { %v4154_v31 = vsel %vm4152_vm12, %v12968_v36, %v4109_v38  ;;  %v13163_v38 = vpack.c.bf16 %v4517_v41, %v4514_v52 }
 0x510   :  { %4829 = vrot.lane.b32.xlu1 %v12891_v20, %s10785_s18  ;;  %4604 = vrot.lane.b32.xlu0 %v12761_v49, %s10784_s17 }
 0x511   :  { %6673 = vmatprep.subr.bf16.mxu0 %v4154_v31  ;;  %8695 = vmatprep.subr.bf16.mxu1 %v4154_v31 }
 0x512   :  { %6597 = vmatmul.mubr.bf16.gmra.mrb[24].mxu0 %v10330_v1  ;;  %8619 = vmatmul.mubr.bf16.gmra.mrb[24].mxu1 %v10331_v25  ;;  %v13084_v5 = vpop.permute.xlu1 %4138  ;;  %v4113_v29 = vpop.permute.xlu0 %4112  ;;  %v10348_v1 = vld [vmem:[%s14936_s3 + $0x360] ss:$48 sps:$4 sm:$0xff]  }
 0x513   :  { %6674 = vmatpush1.bf16.msra.mxu0 %v4153_v42  ;;  %8696 = vmatpush1.bf16.msra.mxu1 %v4153_v42  ;;  %v4156_v49 = vsel %vm4152_vm12, %v4113_v29, %v12992_v48  ;;  %v4726_v48 = vld [vmem:[#allocation2 + $0x68] sm:$0xff]  ;;  %v10349_v25 = vld [vmem:[%s14936_s3 + $0x7e0] ss:$48 sps:$4 sm:$0xff]   ;;  %v4161_v42 = vsel %vm4152_vm12, %v13067_v17, %v13060_v22 }
 0x514   :  { %4827 = vrot.lane.b32.xlu1 %v12901_v45, %s10785_s18  ;;  %4614 = vrot.lane.b32.xlu0 %v12831_v0, %s10784_s17  ;;  %v13119_v35 = vpack.c.bf16 %v4729_v11, %v4726_v48 }
 0x515   :  { %6675 = vmatprep.subr.bf16.mxu0 %v4156_v49  ;;  %8697 = vmatprep.subr.bf16.mxu1 %v4156_v49 }
 0x516   :  { %v13098_v36 = vpop.permute.xlu1 %4142  ;;  %v4111_v51 = vpop.permute.xlu0 %4110  ;;  %6606 = vmatprep.mubr.bf16.mxu0 %v10332_v59  ;;  %8628 = vmatprep.mubr.bf16.mxu1 %v10334_v13  ;;  %v10350_v13 = vld [vmem:[%s14936_s3 + $0x3c4] ss:$48 sps:$4 sm:$0xff]  }
 0x517   :  { %v4155_v24 = vsel %vm4152_vm12, %v4111_v51, %v4113_v29  ;;  %v10354_v51 = vld [vmem:[%s14936_s3 + $0x3c0] ss:$48 sps:$4 sm:$0xff]  }
 0x518   :  { %4837 = vrot.lane.b32.xlu1 %v12831_v0, %s10785_s18  ;;  %4618 = vrot.lane.b32.xlu0 %v12916_v19, %s10784_s17 }
 0x519   :  { %6676 = vmatpush1.bf16.msra.mxu0 %v4155_v24  ;;  %8698 = vmatpush1.bf16.msra.mxu1 %v4155_v24 }
 0x51a   :  { %6607 = vmatmul.mubr.bf16.gmra.mrb[28].mxu0 %v10336_v33  ;;  %8629 = vmatmul.mubr.bf16.gmra.mrb[28].mxu1 %v10337_v62  ;;  %v13117_v14 = vpop.permute.xlu1 %4140  ;;  %v4121_v37 = vpop.permute.xlu0 %4120  ;;  %v10356_v33 = vld [vmem:[%s14936_s3 + $0x424] ss:$48 sps:$4 sm:$0xff]  }
 0x51b   :  { %v4158_v12 = vsel %vm4152_vm12, %v13006_v6, %v4121_v37  ;;  %6616 = vmatprep.mubr.bf16.mxu0 %v10338_v43  ;;  %8638 = vmatprep.mubr.bf16.mxu1 %v10340_v55  ;;  %v10358_v62 = vld [vmem:[%s14936_s3 + $0x8a4] ss:$48 sps:$4 sm:$0xff]   ;;  %v10360_v37 = vld [vmem:[%s14936_s3 + $0x420] ss:$48 sps:$4 sm:$0xff]  }
 0x51c   :  { %4841 = vrot.lane.b32.xlu1 %v13119_v35, %s10785_s18  ;;  %4616 = vrot.lane.b32.xlu0 %v12937_v30, %s10784_s17 }
 0x51d   :  { %6677 = vmatprep.subr.bf16.mxu0 %v4158_v12  ;;  %8699 = vmatprep.subr.bf16.mxu1 %v4158_v12  ;;  %v10361_v12 = vld [vmem:[%s14936_s3 + $0x8a0] ss:$48 sps:$4 sm:$0xff]  }
 0x51e   :  { %6678 = vmatpush1.bf16.msra.mxu0 %v4157_v2  ;;  %8700 = vmatpush1.bf16.msra.mxu1 %v4157_v2  ;;  %v13130_v10 = vpop.permute.xlu1 %4150  ;;  %v4125_v58 = vpop.permute.xlu0 %4124  ;;  %v4735_v2 = vld [vmem:[#allocation2 + $0xb0] sm:$0xff] }
 0x51f   :  { %v4160_v6 = vsel %vm4152_vm12, %v4125_v58, %v13038_v16 }
 0x520   :  { %4839 = vrot.lane.b32.xlu1 %v13132_v4, %s10785_s18  ;;  %4626 = vrot.lane.b32.xlu0 %v12831_v0, %s10784_s17 }
 0x521   :  { %6679 = vmatprep.subr.bf16.mxu0 %v4160_v6  ;;  %8701 = vmatprep.subr.bf16.mxu1 %v4160_v6  ;;  %v4734_v6 = vld [vmem:[#allocation2 + $0xa8] sm:$0xff] }
 0x522   :  { %6617 = vmatmul.mubr.bf16.gmra.mrb[32].mxu0 %v10342_v27  ;;  %8639 = vmatmul.mubr.bf16.gmra.mrb[32].mxu1 %v10343_v18  ;;  %v13152_v16 = vpop.permute.xlu1 %4347  ;;  %v4123_v46 = vpop.permute.xlu0 %4122  ;;  %v4731_v18 = vld [vmem:[#allocation2 + $0x90] sm:$0xff] }
 0x523   :  { %v4159_v8 = vsel %vm4152_vm12, %v4123_v46, %v4125_v58  ;;  %6626 = vmatprep.mubr.bf16.mxu0 %v10344_v40  ;;  %8648 = vmatprep.mubr.bf16.mxu1 %v10346_v23  ;;  %v13246_v58 = vpack.c.bf16 %v4735_v2, %v4732_v3  ;;  %v10362_v23 = vld [vmem:[%s14936_s3 + $0x8] ss:$48 sps:$4 sm:$0xff]   ;;  %v13261_v46 = vpack.c.bf16 %v4734_v6, %v4731_v18  ;;  %v10388_v18 = vld [vmem:[%s14936_s3 + $0x60c] ss:$48 sps:$4 sm:$0xff]  }
 0x524   :  { %4849 = vrot.lane.b32.xlu1 %v12831_v0, %s10785_s18  ;;  %4630 = vrot.lane.b32.xlu0 %v13154_v15, %s10784_s17  ;;  %v4981_v3 = vld [vmem:[#allocation2 + $0xd8] sm:$0xff] }
 0x525   :  { %6680 = vmatpush1.bf16.msra.mxu0 %v4159_v8  ;;  %8702 = vmatpush1.bf16.msra.mxu1 %v4159_v8 }
 0x526   :  { %v13161_v63 = vpop.permute.xlu1 %4345  ;;  %v4133_v47 = vpop.permute.xlu0 %4132 }
 0x527   :  { %v4162_v31 = vsel %vm4152_vm12, %v13060_v22, %v4133_v47  ;;  %v4394_v52 = vsel %vm4393_vm13, %v13161_v63, %v13152_v16 }
 0x528   :  { %4853 = vrot.lane.b32.xlu1 %v12841_v50, %s10785_s18  ;;  %4628 = vrot.lane.b32.xlu0 %v13163_v38, %s10784_s17  ;;  %v10352_v50 = vld [vmem:[%s14936_s3 + $0x844] ss:$48 sps:$4 sm:$0xff]  }
 0x529   :  { %6681 = vmatprep.subr.bf16.mxu0 %v4162_v31  ;;  %8703 = vmatprep.subr.bf16.mxu1 %v4162_v31  ;;  %v10372_v31 = vld [vmem:[%s14936_s3 + $0x68] ss:$48 sps:$4 sm:$0xff]  }
 0x52a   :  { %6627 = vmatmul.mubr.bf16.gmra.mrb[36].mxu0 %v10348_v1  ;;  %8649 = vmatmul.mubr.bf16.gmra.mrb[36].mxu1 %v10349_v25  ;;  %v13180_v29 = vpop.permute.xlu1 %4355  ;;  %v4137_v59 = vpop.permute.xlu0 %4136  ;;  %v10368_v1 = vld [vmem:[%s14936_s3 + $0x6c] ss:$48 sps:$4 sm:$0xff]  }
 0x52b   :  { %6682 = vmatpush1.bf16.msra.mxu0 %v4161_v42  ;;  %8704 = vmatpush1.bf16.msra.mxu1 %v4161_v42  ;;  %v4164_v49 = vsel %vm4152_vm12, %v4137_v59, %v13084_v5  ;;  %v10355_v5 = vld [vmem:[%s14936_s3 + $0x840] ss:$48 sps:$4 sm:$0xff]   ;;  %v10373_v42 = vld [vmem:[%s14936_s3 + $0x4e8] ss:$48 sps:$4 sm:$0xff]  }
 0x52c   :  { %4851 = vrot.lane.b32.xlu1 %v12847_v57, %s10785_s18  ;;  %4831 = vrot.lane.b32.xlu0 %v12831_v0, %s10785_s18 }
 0x52d   :  { %6683 = vmatprep.subr.bf16.mxu0 %v4164_v49  ;;  %8705 = vmatprep.subr.bf16.mxu1 %v4164_v49 }
 0x52e   :  { %v13194_v22 = vpop.permute.xlu1 %4359  ;;  %v4135_v17 = vpop.permute.xlu0 %4134  ;;  %6636 = vmatprep.mubr.bf16.mxu0 %v10350_v13  ;;  %8658 = vmatprep.mubr.bf16.mxu1 %v10352_v50 }
 0x52f   :  { %v4163_v57 = vsel %vm4152_vm12, %v4135_v17, %v4137_v59  ;;  %v10376_v59 = vld [vmem:[%s14936_s3 + $0x54c] ss:$48 sps:$4 sm:$0xff]  }
 0x530   :  { %4861 = vrot.lane.b32.xlu1 %v12831_v0, %s10785_s18  ;;  %4835 = vrot.lane.b32.xlu0 %v12855_v61, %s10785_s18  ;;  %v4165_v61 = vsel %vm4152_vm12, %v13117_v14, %v13098_v36  ;;  %v10367_v14 = vld [vmem:[%s14936_s3 + $0x48c] ss:$48 sps:$4 sm:$0xff]  }
 0x531   :  { %6684 = vmatpush1.bf16.msra.mxu0 %v4163_v57  ;;  %8706 = vmatpush1.bf16.msra.mxu1 %v4163_v57  ;;  %v10382_v57 = vld [vmem:[%s14936_s3 + $0x5ac] ss:$48 sps:$4 sm:$0xff]  }
 0x532   :  { %6637 = vmatmul.mubr.bf16.gmra.mrb[40].mxu0 %v10354_v51  ;;  %8659 = vmatmul.mubr.bf16.gmra.mrb[40].mxu1 %v10355_v5  ;;  %v13213_v24 = vpop.permute.xlu1 %4357  ;;  %v4145_v48 = vpop.permute.xlu0 %4144  ;;  %v10378_v5 = vld [vmem:[%s14936_s3 + $0xc8] ss:$48 sps:$4 sm:$0xff]  }
 0x533   :  { %v4166_v43 = vsel %vm4152_vm12, %v13098_v36, %v4145_v48  ;;  %6646 = vmatprep.mubr.bf16.mxu0 %v10356_v33  ;;  %8668 = vmatprep.mubr.bf16.mxu1 %v10358_v62  ;;  %v10364_v36 = vld [vmem:[%s14936_s3 + $0xc] ss:$48 sps:$4 sm:$0xff]  }
 0x534   :  { %4865 = vrot.lane.b32.xlu1 %v13027_v9, %s10785_s18  ;;  %4833 = vrot.lane.b32.xlu0 %v12863_v32, %s10785_s18  ;;  %v4979_v48 = vld [vmem:[#allocation2 + $0xc8] sm:$0xff] }
 0x535   :  { %6685 = vmatprep.subr.bf16.mxu0 %v4166_v43  ;;  %8707 = vmatprep.subr.bf16.mxu1 %v4166_v43 }
 0x536   :  { %6686 = vmatpush1.bf16.msra.mxu0 %v4165_v61  ;;  %8708 = vmatpush1.bf16.msra.mxu1 %v4165_v61  ;;  %v13224_v55 = vpop.permute.xlu1 %4367  ;;  %v4149_v11 = vpop.permute.xlu0 %4148 }
 0x537   :  { %v4168_v32 = vsel %vm4152_vm12, %v4149_v11, %v13130_v10 }
 0x538   :  { %4863 = vrot.lane.b32.xlu1 %v13040_v60, %s10785_s18  ;;  %4843 = vrot.lane.b32.xlu0 %v12831_v0, %s10785_s18 }
 0x539   :  { %6687 = vmatprep.subr.bf16.mxu0 %v4168_v32  ;;  %8709 = vmatprep.subr.bf16.mxu1 %v4168_v32  ;;  %v4978_v32 = vld [vmem:[#allocation2 + $0xc0] sm:$0xff] }
 0x53a   :  { %6647 = vmatmul.mubr.bf16.gmra.mrb[44].mxu0 %v10360_v37  ;;  %8669 = vmatmul.mubr.bf16.gmra.mrb[44].mxu1 %v10361_v12  ;;  %v13244_v53 = vpop.permute.xlu1 %4371  ;;  %v4147_v10 = vpop.permute.xlu0 %4146  ;;  %v10385_v37 = vld [vmem:[%s14936_s3 + $0x5a8] ss:$48 sps:$4 sm:$0xff]  }
 0x53b   :  { %v4167_v27 = vsel %vm4152_vm12, %v4147_v10, %v4149_v11  ;;  %6689 = vmatprep.mubr.bf16.mxu0 %v10364_v36  ;;  %8711 = vmatprep.mubr.bf16.mxu1 %v10367_v14  ;;  %v10384_v11 = vld [vmem:[%s14936_s3 + $0x128] ss:$48 sps:$4 sm:$0xff]   ;;  %v5026_v10 = vpack.c.bf16 %v4981_v3, %v4978_v32 }
 0x53c   :  { %4873 = vrot.lane.b32.xlu1 %v12831_v0, %s10785_s18  ;;  %4847 = vrot.lane.b32.xlu0 %v13246_v58, %s10785_s18  ;;  %v4985_v32 = vld [vmem:[#allocation2 + $0xf8] sm:$0xff]  ;;  %v2724_v3 = vld [vmem:[%s14933_s0 + $0x108] sm:$0xff] }
 0x53d   :  { %6688 = vmatpush1.bf16.msra.mxu0 %v4167_v27  ;;  %8710 = vmatpush1.bf16.msra.mxu1 %v4167_v27  ;;  %v10386_v27 = vld [vmem:[%s14936_s3 + $0x18c] ss:$48 sps:$4 sm:$0xff]  }
 0x53e   :  { %v13253_v28 = vpop.permute.xlu1 %4369  ;;  %v4350_v40 = vpop.permute.xlu0 %4349 }
 0x53f   :  { %v4395_v8 = vsel %vm4393_vm13, %v13152_v16, %v4350_v40  ;;  %v4402_v36 = vsel %vm4393_vm13, %v13253_v28, %v13244_v53  ;;  %v4964_v28 = vld [vmem:[#allocation2 + $0x50] sm:$0xff] }
 0x540   :  { %5070 = vrot.lane.b32.xlu1 %v12891_v20, %s10786_s30  ;;  %4845 = vrot.lane.b32.xlu0 %v13261_v46, %s10785_s18  ;;  %v10370_v20 = vld [vmem:[%s14936_s3 + $0x4ec] ss:$48 sps:$4 sm:$0xff]  }
 0x541   :  { %6810 = vmatprep.subr.bf16.mxu0 %v4395_v8  ;;  %8832 = vmatprep.subr.bf16.mxu1 %v4395_v8  ;;  %v10390_v8 = vld [vmem:[%s14936_s3 + $0x188] ss:$48 sps:$4 sm:$0xff]  }
 0x542   :  { %6690 = vmatmul.mubr.bf16.vlgmr.msra.gmra.mrb[0].mxu0 %v10362_v23  ;;  %8712 = vmatmul.mubr.bf16.vlgmr.msra.gmra.mrb[0].mxu1 %v10365_v21  ;;  %v13272_v41 = vpop.permute.xlu1 %4379  ;;  %v4354_v47 = vpop.permute.xlu0 %4353 }
 0x543   :  { %6811 = vmatpush1.bf16.msra.mxu0 %v4394_v52  ;;  %8833 = vmatpush1.bf16.msra.mxu1 %v4394_v52  ;;  %v4397_v25 = vsel %vm4393_vm13, %v4354_v47, %v13180_v29  ;;  %v10374_v29 = vld [vmem:[%s14936_s3 + $0xcc] ss:$48 sps:$4 sm:$0xff]   ;;  %v10391_v52 = vld [vmem:[%s14936_s3 + $0x608] ss:$48 sps:$4 sm:$0xff]  }
 0x544   :  { %5068 = vrot.lane.b32.xlu1 %v12901_v45, %s10786_s30  ;;  %4855 = vrot.lane.b32.xlu0 %v12831_v0, %s10785_s18 }
 0x545   :  { %6812 = vmatprep.subr.bf16.mxu0 %v4397_v25  ;;  %8834 = vmatprep.subr.bf16.mxu1 %v4397_v25  ;;  %v4963_v25 = vld [vmem:[#allocation2 + $0x48] sm:$0xff] }
 0x546   :  { %v13286_v16 = vpop.permute.xlu1 %4383  ;;  %v4352_v63 = vpop.permute.xlu0 %4351  ;;  %6699 = vmatprep.mubr.bf16.mxu0 %v10368_v1  ;;  %8721 = vmatprep.mubr.bf16.mxu1 %v10370_v20  ;;  %v10392_v1 = vld [vmem:[%s14936_s3 + $0x1ec] ss:$48 sps:$4 sm:$0xff]  }
 0x547   :  { %v4396_v45 = vsel %vm4393_vm13, %v4352_v63, %v4354_v47  ;;  %v4960_v47 = vld [vmem:[#allocation2 + $0x30] sm:$0xff]  ;;  %v10394_v20 = vld [vmem:[%s14936_s3 + $0x66c] ss:$48 sps:$4 sm:$0xff]  }
 0x548   :  { %5078 = vrot.lane.b32.xlu1 %v12831_v0, %s10786_s30  ;;  %4859 = vrot.lane.b32.xlu0 %v12916_v19, %s10785_s18  ;;  %v4398_v19 = vsel %vm4393_vm13, %v13213_v24, %v13194_v22 }
 0x549   :  { %6813 = vmatpush1.bf16.msra.mxu0 %v4396_v45  ;;  %8835 = vmatpush1.bf16.msra.mxu1 %v4396_v45 }
 0x54a   :  { %6700 = vmatmul.mubr.bf16.gmra.mrb[4].mxu0 %v10372_v31  ;;  %8722 = vmatmul.mubr.bf16.gmra.mrb[4].mxu1 %v10373_v42  ;;  %v13305_v13 = vpop.permute.xlu1 %4381  ;;  %v4362_v50 = vpop.permute.xlu0 %4361  ;;  %v5017_v42 = vpack.c.bf16 %v4963_v25, %v4960_v47 }
 0x54b   :  { %v4399_v49 = vsel %vm4393_vm13, %v13194_v22, %v4362_v50  ;;  %6709 = vmatprep.mubr.bf16.mxu0 %v10374_v29  ;;  %8731 = vmatprep.mubr.bf16.mxu1 %v10376_v59  ;;  %v10380_v22 = vld [vmem:[%s14936_s3 + $0x12c] ss:$48 sps:$4 sm:$0xff]   ;;  %v4406_v29 = vsel %vm4393_vm13, %v13305_v13, %v13286_v16  ;;  %v2022_v59 = vld [vmem:[%s14933_s0 + $0x100] sm:$0xff] }
 0x54c   :  { %5082 = vrot.lane.b32.xlu1 %v13119_v35, %s10786_s30  ;;  %4857 = vrot.lane.b32.xlu0 %v12937_v30, %s10785_s18  ;;  %v10379_v35 = vld [vmem:[%s14936_s3 + $0x548] ss:$48 sps:$4 sm:$0xff]   ;;  %v10398_v13 = vld [vmem:[%s14936_s3 + $0x24c] ss:$48 sps:$4 sm:$0xff]  }
 0x54d   :  { %6814 = vmatprep.subr.bf16.mxu0 %v4399_v49  ;;  %8836 = vmatprep.subr.bf16.mxu1 %v4399_v49 }
 0x54e   :  { %6815 = vmatpush1.bf16.msra.mxu0 %v4398_v19  ;;  %8837 = vmatpush1.bf16.msra.mxu1 %v4398_v19  ;;  %v13316_v17 = vpop.permute.xlu1 %4391  ;;  %v4366_v51 = vpop.permute.xlu0 %4365  ;;  %v10397_v19 = vld [vmem:[%s14936_s3 + $0x668] ss:$48 sps:$4 sm:$0xff]  }
 0x54f   :  { %v4401_v30 = vsel %vm4393_vm13, %v4366_v51, %v13224_v55 }
 0x550   :  { %5080 = vrot.lane.b32.xlu1 %v13132_v4, %s10786_s30  ;;  %4867 = vrot.lane.b32.xlu0 %v12831_v0, %s10785_s18  ;;  %v4982_v4 = vld [vmem:[#allocation2 + $0xe0] sm:$0xff] }
 0x551   :  { %6816 = vmatprep.subr.bf16.mxu0 %v4401_v30  ;;  %8838 = vmatprep.subr.bf16.mxu1 %v4401_v30  ;;  %v5027_v55 = vpack.c.bf16 %v4982_v4, %v4979_v48  ;;  %v10403_v48 = vld [vmem:[%s14936_s3 + $0x6c8] ss:$48 sps:$4 sm:$0xff]  }
 0x552   :  { %6710 = vmatmul.mubr.bf16.gmra.mrb[8].mxu0 %v10378_v5  ;;  %8732 = vmatmul.mubr.bf16.gmra.mrb[8].mxu1 %v10379_v35  ;;  %v13336_v33 = vpop.permute.xlu1 %4588  ;;  %v4364_v62 = vpop.permute.xlu0 %4363  ;;  %v2042_v5 = vmul.f32 %v2022_v59, %v11478_v26  ;;  %v10416_v59 = vld [vmem:[%s14936_s3 + $0x36c] ss:$48 sps:$4 sm:$0xff]  }
 0x553   :  { %v4400_v24 = vsel %vm4393_vm13, %v4364_v62, %v4366_v51  ;;  %6719 = vmatprep.mubr.bf16.mxu0 %v10380_v22  ;;  %8741 = vmatprep.mubr.bf16.mxu1 %v10382_v57  ;;  %v10400_v51 = vld [vmem:[%s14936_s3 + $0x6cc] ss:$48 sps:$4 sm:$0xff]  }
 0x554   :  { %5090 = vrot.lane.b32.xlu1 %v12831_v0, %s10786_s30  ;;  %4871 = vrot.lane.b32.xlu0 %v13154_v15, %s10785_s18  ;;  %v2062_v30 = vadd.f32 %v2042_v5, %v11661_v39 }
 0x555   :  { %6817 = vmatpush1.bf16.msra.mxu0 %v4400_v24  ;;  %8839 = vmatpush1.bf16.msra.mxu1 %v4400_v24  ;;  %v10402_v24 = vld [vmem:[%s14936_s3 + $0x248] ss:$48 sps:$4 sm:$0xff]  }
 0x556   :  { %v13343_v43 = vpop.permute.xlu1 %4586  ;;  %v4374_v61 = vpop.permute.xlu0 %4373  ;;  %v13434_v62 = vmax.f32 %v2062_v30, 0.0  ;;  %v10421_v30 = vld [vmem:[%s14936_s3 + $0x7e8] ss:$48 sps:$4 sm:$0xff]  }
 0x557   :  { %v4403_v12 = vsel %vm4393_vm13, %v13244_v53, %v4374_v61  ;;  %v4961_v53 = vld [vmem:[#allocation2 + $0x38] sm:$0xff]  ;;  %v4635_v61 = vsel %vm4634_vm14, %v13343_v43, %v13336_v33  ;;  %v4988_v43 = vld [vmem:[#allocation2 + $0x110] sm:$0xff] }
 0x558   :  { %5094 = vrot.lane.b32.xlu1 %v5027_v55, %s10786_s30  ;;  %4869 = vrot.lane.b32.xlu0 %v13163_v38, %s10785_s18  ;;  %v5018_v21 = vpack.c.bf16 %v4964_v28, %v4961_v53  ;;  %v4984_v53 = vld [vmem:[#allocation2 + $0xf0] sm:$0xff]  ;;  %v10410_v28 = vld [vmem:[%s14936_s3 + $0x30c] ss:$48 sps:$4 sm:$0xff]  }
 0x559   :  { %6818 = vmatprep.subr.bf16.mxu0 %v4403_v12  ;;  %8840 = vmatprep.subr.bf16.mxu1 %v4403_v12 }
 0x55a   :  { %6720 = vmatmul.mubr.bf16.gmra.mrb[12].mxu0 %v10384_v11  ;;  %8742 = vmatmul.mubr.bf16.gmra.mrb[12].mxu1 %v10385_v37  ;;  %v13359_v14 = vpop.permute.xlu1 %4596  ;;  %v4378_v2 = vpop.permute.xlu0 %4377  ;;  %v10404_v37 = vld [vmem:[%s14936_s3 + $0x2ac] ss:$48 sps:$4 sm:$0xff]  }
 0x55b   :  { %6819 = vmatpush1.bf16.msra.mxu0 %v4402_v36  ;;  %8841 = vmatpush1.bf16.msra.mxu1 %v4402_v36  ;;  %v4405_v6 = vsel %vm4393_vm13, %v4378_v2, %v13272_v41 }
 0x55c   :  { %5092 = vrot.lane.b32.xlu1 %v5026_v10, %s10786_s30  ;;  %5072 = vrot.lane.b32.xlu0 %v12831_v0, %s10786_s30  ;;  %v10408_v10 = vld [vmem:[%s14936_s3 + $0x2a8] ss:$48 sps:$4 sm:$0xff]  }
 0x55d   :  { %6820 = vmatprep.subr.bf16.mxu0 %v4405_v6  ;;  %8842 = vmatprep.subr.bf16.mxu1 %v4405_v6 }
 0x55e   :  { %v13372_v40 = vpop.permute.xlu1 %4600  ;;  %v4376_v23 = vpop.permute.xlu0 %4375  ;;  %6729 = vmatprep.mubr.bf16.mxu0 %v10386_v27  ;;  %8751 = vmatprep.mubr.bf16.mxu1 %v10388_v18  ;;  %v10409_v27 = vld [vmem:[%s14936_s3 + $0x728] ss:$48 sps:$4 sm:$0xff]  }
 0x55f   :  { %v4404_v41 = vsel %vm4393_vm13, %v4376_v23, %v4378_v2  ;;  %v10412_v23 = vld [vmem:[%s14936_s3 + $0x78c] ss:$48 sps:$4 sm:$0xff]  }
 0x560   :  { %5102 = vrot.lane.b32.xlu1 %v12831_v0, %s10786_s30  ;;  %5076 = vrot.lane.b32.xlu0 %v5018_v21, %s10786_s30  ;;  %v2744_v21 = vmul.f32 %v2724_v3, %v11478_v26 }
 0x561   :  { %6821 = vmatpush1.bf16.msra.mxu0 %v4404_v41  ;;  %8843 = vmatpush1.bf16.msra.mxu1 %v4404_v41 }
 0x562   :  { %6730 = vmatmul.mubr.bf16.gmra.mrb[16].mxu0 %v10390_v8  ;;  %8752 = vmatmul.mubr.bf16.gmra.mrb[16].mxu1 %v10391_v52  ;;  %v13390_v63 = vpop.permute.xlu1 %4598  ;;  %v4386_v31 = vpop.permute.xlu0 %4385  ;;  %v4987_v8 = vld [vmem:[#allocation2 + $0x108] sm:$0xff] }
 0x563   :  { %v4407_v45 = vsel %vm4393_vm13, %v13286_v16, %v4386_v31  ;;  %6739 = vmatprep.mubr.bf16.mxu0 %v10392_v1  ;;  %8761 = vmatprep.mubr.bf16.mxu1 %v10394_v20  ;;  %v5029_v1 = vpack.c.bf16 %v4987_v8, %v4984_v53  ;;  %v2764_v20 = vadd.f32 %v2744_v21, %v11661_v39  ;;  %v2024_v39 = vld [vmem:[%s14933_s0 + $0x120] sm:$0xff] }
 0x564   :  { %5106 = vrot.lane.b32.xlu1 %v13027_v9, %s10786_s30  ;;  %5074 = vrot.lane.b32.xlu0 %v5017_v42, %s10786_s30  ;;  %v10396_v9 = vld [vmem:[%s14936_s3 + $0x1e8] ss:$48 sps:$4 sm:$0xff]   ;;  %v4639_v26 = vsel %vm4634_vm14, %v13390_v63, %v13372_v40  ;;  %v14941_v53 = vld [vmem:[#allocation4_spill] sm:$0xff] }
 0x565   :  { %6822 = vmatprep.subr.bf16.mxu0 %v4407_v45  ;;  %8844 = vmatprep.subr.bf16.mxu1 %v4407_v45  ;;  %v13510_v45 = vmax.f32 %v2764_v20, 0.0  ;;  %v10439_v21 = vld [vmem:[%s14936_s3 + $0x494] ss:$48 sps:$4 sm:$0xff]  }
 0x566   :  { %6823 = vmatpush1.bf16.msra.mxu0 %v4406_v29  ;;  %8845 = vmatpush1.bf16.msra.mxu1 %v4406_v29  ;;  %v13403_v50 = vpop.permute.xlu1 %4608  ;;  %v4390_v49 = vpop.permute.xlu0 %4389  ;;  %v10414_v29 = vld [vmem:[%s14936_s3 + $0x308] ss:$48 sps:$4 sm:$0xff]  }
 0x567   :  { %v4409_v16 = vsel %vm4393_vm13, %v4390_v49, %v13316_v17 }
 0x568   :  { %5104 = vrot.lane.b32.xlu1 %v13040_v60, %s10786_s30  ;;  %5084 = vrot.lane.b32.xlu0 %v12831_v0, %s10786_s30 }
 0x569   :  { %6824 = vmatprep.subr.bf16.mxu0 %v4409_v16  ;;  %8846 = vmatprep.subr.bf16.mxu1 %v4409_v16 }
 0x56a   :  { %6740 = vmatmul.mubr.bf16.gmra.mrb[20].mxu0 %v10396_v9  ;;  %8762 = vmatmul.mubr.bf16.gmra.mrb[20].mxu1 %v10397_v19  ;;  %v13424_v17 = vpop.permute.xlu1 %4612  ;;  %v4388_v35 = vpop.permute.xlu0 %4387  ;;  %v2044_v9 = vmul.f32 %v2024_v39, %v11491_v34  ;;  %v10437_v39 = vld [vmem:[%s14936_s3 + $0x490] ss:$48 sps:$4 sm:$0xff]  }
 0x56b   :  { %v4408_v22 = vsel %vm4393_vm13, %v4388_v35, %v4390_v49  ;;  %6749 = vmatprep.mubr.bf16.mxu0 %v10398_v13  ;;  %8771 = vmatprep.mubr.bf16.mxu1 %v10400_v51  ;;  %v10418_v49 = vld [vmem:[%s14936_s3 + $0x7ec] ss:$48 sps:$4 sm:$0xff]   ;;  %v10420_v35 = vld [vmem:[%s14936_s3 + $0x368] ss:$48 sps:$4 sm:$0xff]  }
 0x56c   :  { %5114 = vrot.lane.b32.xlu1 %v12831_v0, %s10786_s30  ;;  %5088 = vrot.lane.b32.xlu0 %v13246_v58, %s10786_s30  ;;  %v2401_v58 = vld [vmem:[%s14933_s0 + $0x110] sm:$0xff]  ;;  %v2064_v16 = vadd.f32 %v2044_v9, %v11671_v7 }
 0x56d   :  { %6825 = vmatpush1.bf16.msra.mxu0 %v4408_v22  ;;  %8847 = vmatpush1.bf16.msra.mxu1 %v4408_v22  ;;  %v5462_v9 = vld [vmem:[%s14936_s3 + $0x70] sm:$0xff] }
 0x56e   :  { %v13432_v60 = vpop.permute.xlu1 %4610  ;;  %v4591_v57 = vpop.permute.xlu0 %4590  ;;  %v13541_v5 = vmax.f32 %v2064_v16, 0.0 }
 0x56f   :  { %v4636_v4 = vsel %vm4634_vm14, %v13336_v33, %v4591_v57  ;;  %v2441_v33 = vmul.f32 %v2401_v58, %v11457_v44 }
 0x570   :  { %2138 = vrot.lane.b32.xlu1 %v13434_v62, %s10770_s8  ;;  %5086 = vrot.lane.b32.xlu0 %v13261_v46, %s10786_s30  ;;  %v10406_v46 = vld [vmem:[%s14936_s3 + $0x72c] ss:$48 sps:$4 sm:$0xff]  }
 0x571   :  { %6826 = vmatprep.subr.bf16.mxu0 %v4636_v4  ;;  %8848 = vmatprep.subr.bf16.mxu1 %v4636_v4  ;;  %v2481_v18 = vadd.f32 %v2441_v33, %v11618_v56  ;;  %v10424_v4 = vld [vmem:[%s14936_s3 + $0x84c] ss:$48 sps:$4 sm:$0xff]  }
 0x572   :  { %6750 = vmatmul.mubr.bf16.gmra.mrb[24].mxu0 %v10402_v24  ;;  %8772 = vmatmul.mubr.bf16.gmra.mrb[24].mxu1 %v10403_v48  ;;  %v13454_v55 = vpop.permute.xlu1 %4620  ;;  %v4595_v11 = vpop.permute.xlu0 %4594  ;;  %v10422_v48 = vld [vmem:[%s14936_s3 + $0x3cc] ss:$48 sps:$4 sm:$0xff]  }
 0x573   :  { %6827 = vmatpush1.bf16.msra.mxu0 %v4635_v61  ;;  %8849 = vmatpush1.bf16.msra.mxu1 %v4635_v61  ;;  %v4638_v12 = vsel %vm4634_vm14, %v4595_v11, %v13359_v14  ;;  %v5030_v14 = vpack.c.bf16 %v4988_v43, %v4985_v32  ;;  %v13494_v47 = vmax.f32 %v2481_v18, 0.0  ;;  %v10426_v61 = vld [vmem:[%s14936_s3 + $0x3c8] ss:$48 sps:$4 sm:$0xff]   ;;  %v2405_v32 = vld [vmem:[%s14933_s0 + $0x130] sm:$0xff] }
 0x574   :  { %2319 = vrot.lane.b32.xlu1 %v13434_v62, %s10771_s11  ;;  %5096 = vrot.lane.b32.xlu0 %v12831_v0, %s10786_s30  ;;  %v10432_v18 = vld [vmem:[%s14936_s3 + $0x428] ss:$48 sps:$4 sm:$0xff]  }
 0x575   :  { %6828 = vmatprep.subr.bf16.mxu0 %v4638_v12  ;;  %8850 = vmatprep.subr.bf16.mxu1 %v4638_v12 }
 0x576   :  { %v13472_v36 = vpop.permute.xlu1 %4624  ;;  %v4593_v2 = vpop.permute.xlu0 %4592  ;;  %6759 = vmatprep.mubr.bf16.mxu0 %v10404_v37  ;;  %8781 = vmatprep.mubr.bf16.mxu1 %v10406_v46  ;;  %v10428_v37 = vld [vmem:[%s14936_s3 + $0x42c] ss:$48 sps:$4 sm:$0xff]  }
 0x577   :  { %v4637_v6 = vsel %vm4634_vm14, %v4593_v2, %v4595_v11  ;;  %v10430_v46 = vld [vmem:[%s14936_s3 + $0x8ac] ss:$48 sps:$4 sm:$0xff]  }
 0x578   :  { %2631 = vrot.lane.b32.xlu1 %v13434_v62, %s10772_s12  ;;  %5100 = vrot.lane.b32.xlu0 %v5030_v14, %s10786_s30 }
 0x579   :  { %6829 = vmatpush1.bf16.msra.mxu0 %v4637_v6  ;;  %8851 = vmatpush1.bf16.msra.mxu1 %v4637_v6  ;;  %v10433_v6 = vld [vmem:[%s14936_s3 + $0x8a8] ss:$48 sps:$4 sm:$0xff]  }
 0x57a   :  { %6760 = vmatmul.mubr.bf16.gmra.mrb[28].mxu0 %v10408_v10  ;;  %8782 = vmatmul.mubr.bf16.gmra.mrb[28].mxu1 %v10409_v27  ;;  %v13492_v52 = vpop.permute.xlu1 %4622  ;;  %v4603_v41 = vpop.permute.xlu0 %4602 }
 0x57b   :  { %v4640_v25 = vsel %vm4634_vm14, %v13372_v40, %v4603_v41  ;;  %6769 = vmatprep.mubr.bf16.mxu0 %v10410_v28  ;;  %8791 = vmatprep.mubr.bf16.mxu1 %v10412_v23  ;;  %v10415_v40 = vld [vmem:[%s14936_s3 + $0x788] ss:$48 sps:$4 sm:$0xff]   ;;  %v4647_v14 = vsel %vm4634_vm14, %v13492_v52, %v13472_v36  ;;  %v10436_v23 = vld [vmem:[%s14936_s3 + $0x14] ss:$48 sps:$4 sm:$0xff]  }
 0x57c   :  { %2635 = vrot.lane.b32.xlu1 %v13494_v47, %s10772_s12  ;;  %5098 = vrot.lane.b32.xlu0 %v5029_v1, %s10786_s30 }
 0x57d   :  { %6830 = vmatprep.subr.bf16.mxu0 %v4640_v25  ;;  %8852 = vmatprep.subr.bf16.mxu1 %v4640_v25 }
 0x57e   :  { %6831 = vmatpush1.bf16.msra.mxu0 %v4639_v26  ;;  %8853 = vmatpush1.bf16.msra.mxu1 %v4639_v26  ;;  %v13508_v31 = vpop.permute.xlu1 %4632  ;;  %v4607_v42 = vpop.permute.xlu0 %4606  ;;  %v10434_v26 = vld [vmem:[%s14936_s3 + $0x10] ss:$48 sps:$4 sm:$0xff]  }
 0x57f   :  { %v4642_v63 = vsel %vm4634_vm14, %v4607_v42, %v13403_v50 }
 0x580   :  { %2840 = vrot.lane.b32.xlu1 %v13510_v45, %s10773_s13  ;;  %5108 = vrot.lane.b32.xlu0 %v12831_v0, %s10786_s30 }
 0x581   :  { %6832 = vmatprep.subr.bf16.mxu0 %v4642_v63  ;;  %8854 = vmatprep.subr.bf16.mxu1 %v4642_v63  ;;  %v10440_v63 = vld [vmem:[%s14936_s3 + $0x74] ss:$48 sps:$4 sm:$0xff]  }
 0x582   :  { %6770 = vmatmul.mubr.bf16.gmra.mrb[32].mxu0 %v10414_v29  ;;  %8792 = vmatmul.mubr.bf16.gmra.mrb[32].mxu1 %v10415_v40  ;;  %v13531_v50 = vpop.permute.xlu1 %4829  ;;  %v4605_v19 = vpop.permute.xlu0 %4604 }
 0x583   :  { %v4641_v13 = vsel %vm4634_vm14, %v4605_v19, %v4607_v42  ;;  %6779 = vmatprep.mubr.bf16.mxu0 %v10416_v59  ;;  %8801 = vmatprep.mubr.bf16.mxu1 %v10418_v49  ;;  %v10442_v59 = vld [vmem:[%s14936_s3 + $0x4f4] ss:$48 sps:$4 sm:$0xff]   ;;  %v2726_v19 = vld [vmem:[%s14933_s0 + $0x128] sm:$0xff] }
 0x584   :  { %1414 = vrot.lane.b32.xlu1 %v13434_v62, %s10769_s5  ;;  %5112 = vrot.lane.b32.xlu0 %v13154_v15, %s10786_s30  ;;  %v4643_v15 = vsel %vm4634_vm14, %v13432_v60, %v13424_v17 }
 0x585   :  { %6833 = vmatpush1.bf16.msra.mxu0 %v4641_v13  ;;  %8855 = vmatpush1.bf16.msra.mxu1 %v4641_v13 }
 0x586   :  { %v13539_v0 = vpop.permute.xlu1 %4827  ;;  %v4615_v51 = vpop.permute.xlu0 %4614 }
 0x587   :  { %v4644_v22 = vsel %vm4634_vm14, %v13424_v17, %v4615_v51  ;;  %v2402_v17 = vld [vmem:[%s14933_s0 + $0x118] sm:$0xff]  ;;  %v4876_v42 = vsel %vm4875_vm15, %v13539_v0, %v13531_v50  ;;  %v10444_v51 = vld [vmem:[%s14936_s3 + $0x4f0] ss:$48 sps:$4 sm:$0xff]  }
 0x588   :  { %2142 = vrot.lane.b32.xlu1 %v13541_v5, %s10770_s8  ;;  %5110 = vrot.lane.b32.xlu0 %v13163_v38, %s10786_s30  ;;  %v2442_v12 = vmul.f32 %v2402_v17, %v11457_v44  ;;  %v2445_v44 = vmul.f32 %v2405_v32, %v11461_v54 }
 0x589   :  { %6834 = vmatprep.subr.bf16.mxu0 %v4644_v22  ;;  %8856 = vmatprep.subr.bf16.mxu1 %v4644_v22  ;;  %v10447_v22 = vld [vmem:[%s14936_s3 + $0x554] ss:$48 sps:$4 sm:$0xff]  }
 0x58a   :  { %6780 = vmatmul.mubr.bf16.gmra.mrb[36].mxu0 %v10420_v35  ;;  %8802 = vmatmul.mubr.bf16.gmra.mrb[36].mxu1 %v10421_v30  ;;  %v13558_v57 = vpop.permute.xlu1 %4837  ;;  %v4619_v24 = vpop.permute.xlu0 %4618  ;;  %v2482_v3 = vadd.f32 %v2442_v12, %v11618_v56  ;;  %v2485_v28 = vadd.f32 %v2445_v44, %v14941_v53  ;;  %v10445_v30 = vld [vmem:[%s14936_s3 + $0xd4] ss:$48 sps:$4 sm:$0xff]   ;;  %v10456_v44 = vld [vmem:[%s14936_s3 + $0x5b0] ss:$48 sps:$4 sm:$0xff]  }
 0x58b   :  { %6835 = vmatpush1.bf16.msra.mxu0 %v4643_v15  ;;  %8857 = vmatpush1.bf16.msra.mxu1 %v4643_v15  ;;  %v4646_v38 = vsel %vm4634_vm14, %v4619_v24, %v13454_v55  ;;  %v10427_v55 = vld [vmem:[%s14936_s3 + $0x848] ss:$48 sps:$4 sm:$0xff]   ;;  %v2746_v15 = vmul.f32 %v2726_v19, %v11491_v34 }
 0x58c   :  { %3020 = vrot.lane.b32.xlu1 %v13510_v45, %s10774_s2  ;;  %2140 = vrot.lane.b32.xlu0 %v13494_v47, %s10770_s8  ;;  %v13613_v27 = vmax.f32 %v2482_v3, 0.0  ;;  %v13636_v41 = vmax.f32 %v2485_v28, 0.0  ;;  %v5196_v19 = vld [vmem:[#allocation2 + $0x8] sm:$0xff] }
 0x58d   :  { %6836 = vmatprep.subr.bf16.mxu0 %v4646_v38  ;;  %8858 = vmatprep.subr.bf16.mxu1 %v4646_v38 }
 0x58e   :  { %v13575_v60 = vpop.permute.xlu1 %4841  ;;  %v4617_v58 = vpop.permute.xlu0 %4616  ;;  %6789 = vmatprep.mubr.bf16.mxu0 %v10422_v48  ;;  %8811 = vmatprep.mubr.bf16.mxu1 %v10424_v4  ;;  %v2766_v48 = vadd.f32 %v2746_v15, %v11671_v7  ;;  %v2406_v7 = vld [vmem:[%s14933_s0 + $0x138] sm:$0xff] }
 0x58f   :  { %v4645_v11 = vsel %vm4634_vm14, %v4617_v58, %v4619_v24  ;;  %v5198_v15 = vld [vmem:[#allocation2 + $0x18] sm:$0xff] }
 0x590   :  { %1595 = vrot.lane.b32.xlu1 %v13434_v62, %s10775_s19  ;;  %2321 = vrot.lane.b32.xlu0 %v13494_v47, %s10771_s11  ;;  %v13717_v17 = vmax.f32 %v2766_v48, 0.0 }
 0x591   :  { %6837 = vmatpush1.bf16.msra.mxu0 %v4645_v11  ;;  %8859 = vmatpush1.bf16.msra.mxu1 %v4645_v11  ;;  %v2446_v11 = vmul.f32 %v2406_v7, %v11461_v54 }
 0x592   :  { %6790 = vmatmul.mubr.bf16.gmra.mrb[40].mxu0 %v10426_v61  ;;  %8812 = vmatmul.mubr.bf16.gmra.mrb[40].mxu1 %v10427_v55  ;;  %v13598_v33 = vpop.permute.xlu1 %4839  ;;  %v4627_v43 = vpop.permute.xlu0 %4626  ;;  %v10451_v61 = vld [vmem:[%s14936_s3 + $0x134] ss:$48 sps:$4 sm:$0xff]  }
 0x593   :  { %v4648_v2 = vsel %vm4634_vm14, %v13472_v36, %v4627_v43  ;;  %6799 = vmatprep.mubr.bf16.mxu0 %v10428_v37  ;;  %8821 = vmatprep.mubr.bf16.mxu1 %v10430_v46  ;;  %v4880_v34 = vsel %vm4875_vm15, %v13598_v33, %v13575_v60  ;;  %v10453_v55 = vld [vmem:[%s14936_s3 + $0x5b4] ss:$48 sps:$4 sm:$0xff]   ;;  %v2486_v12 = vadd.f32 %v2446_v11, %v14941_v53 }
 0x594   :  { %2323 = vrot.lane.b32.xlu1 %v13541_v5, %s10771_s11  ;;  %2633 = vrot.lane.b32.xlu0 %v13510_v45, %s10772_s12  ;;  %v5211_v11 = vld [vmem:[#allocation2 + $0x80] sm:$0xff] }
 0x595   :  { %6838 = vmatprep.subr.bf16.mxu0 %v4648_v2  ;;  %8860 = vmatprep.subr.bf16.mxu1 %v4648_v2  ;;  %v13748_v43 = vmax.f32 %v2486_v12, 0.0  ;;  %v10455_v2 = vld [vmem:[%s14936_s3 + $0x130] ss:$48 sps:$4 sm:$0xff]  }
 0x596   :  { %6839 = vmatpush1.bf16.msra.mxu0 %v4647_v14  ;;  %8861 = vmatpush1.bf16.msra.mxu1 %v4647_v14  ;;  %v13611_v56 = vpop.permute.xlu1 %4849  ;;  %v4631_v10 = vpop.permute.xlu0 %4630 }
 0x597   :  { %v4650_v36 = vsel %vm4634_vm14, %v4631_v10, %v13508_v31 }
 0x598   :  { %2639 = vrot.lane.b32.xlu1 %v13541_v5, %s10772_s12  ;;  %2637 = vrot.lane.b32.xlu0 %v13613_v27, %s10772_s12 }
 0x599   :  { %6840 = vmatprep.subr.bf16.mxu0 %v4650_v36  ;;  %8862 = vmatprep.subr.bf16.mxu1 %v4650_v36 }
 0x59a   :  { %6800 = vmatmul.mubr.bf16.gmra.mrb[44].mxu0 %v10432_v18  ;;  %8822 = vmatmul.mubr.bf16.gmra.mrb[44].mxu1 %v10433_v6  ;;  %v13634_v8 = vpop.permute.xlu1 %4853  ;;  %v4629_v52 = vpop.permute.xlu0 %4628  ;;  %v10457_v18 = vld [vmem:[%s14936_s3 + $0x194] ss:$48 sps:$4 sm:$0xff]  }
 0x59b   :  { %v4649_v1 = vsel %vm4634_vm14, %v4629_v52, %v4631_v10  ;;  %6842 = vmatprep.mubr.bf16.mxu0 %v10436_v23  ;;  %8864 = vmatprep.mubr.bf16.mxu1 %v10439_v21  ;;  %v10459_v6 = vld [vmem:[%s14936_s3 + $0x614] ss:$48 sps:$4 sm:$0xff]   ;;  %v10461_v21 = vld [vmem:[%s14936_s3 + $0x190] ss:$48 sps:$4 sm:$0xff]  }
 0x59c   :  { %2643 = vrot.lane.b32.xlu1 %v13636_v41, %s10772_s12  ;;  %2842 = vrot.lane.b32.xlu0 %v13613_v27, %s10773_s13 }
 0x59d   :  { %6841 = vmatpush1.bf16.msra.mxu0 %v4649_v1  ;;  %8863 = vmatpush1.bf16.msra.mxu1 %v4649_v1 }
 0x59e   :  { %v13643_v20 = vpop.permute.xlu1 %4851  ;;  %v4832_v25 = vpop.permute.xlu0 %4831 }
 0x59f   :  { %v4877_v31 = vsel %vm4875_vm15, %v13531_v50, %v4832_v25  ;;  %v5468_v50 = vld [vmem:[%s14936_s3 + $0xa0] sm:$0xff]  ;;  %v4884_v14 = vsel %vm4875_vm15, %v13643_v20, %v13634_v8 }
 0x5a0   :  { %3200 = vrot.lane.b32.xlu1 %v13510_v45, %s10776_s27  ;;  %1416 = vrot.lane.b32.xlu0 %v13494_v47, %s10769_s5  ;;  %v9512_v0 = vcombine.low %v5462_v9, %v5468_v50  ;;  %v10463_v25 = vld [vmem:[%s14936_s3 + $0x1f4] ss:$48 sps:$4 sm:$0xff]  }
 0x5a1   :  { %6963 = vmatprep.subr.bf16.mxu0 %v4877_v31  ;;  %8985 = vmatprep.subr.bf16.mxu1 %v4877_v31  ;;  %v10471_v9 = vld [vmem:[%s14936_s3 + $0x6d4] ss:$48 sps:$4 sm:$0xff]  }
 0x5a2   :  { %6843 = vmatmul.mubr.bf16.vlgmr.msra.gmra.mrb[0].mxu0 %v10434_v26  ;;  %8865 = vmatmul.mubr.bf16.vlgmr.msra.gmra.mrb[0].mxu1 %v10437_v39  ;;  %v13660_v29 = vpop.permute.xlu1 %4861  ;;  %v4836_v40 = vpop.permute.xlu0 %4835  ;;  %v10465_v26 = vld [vmem:[%s14936_s3 + $0x674] ss:$48 sps:$4 sm:$0xff]  }
 0x5a3   :  { %6964 = vmatpush1.bf16.msra.mxu0 %v4876_v42  ;;  %8986 = vmatpush1.bf16.msra.mxu1 %v4876_v42  ;;  %v4879_v49 = vsel %vm4875_vm15, %v4836_v40, %v13558_v57 }
 0x5a4   :  { %1776 = vrot.lane.b32.xlu1 %v13434_v62, %s10777_s28  ;;  %2144 = vrot.lane.b32.xlu0 %v13636_v41, %s10770_s8  ;;  %s10787_s8 = smov 94  }
 0x5a5   :  { %6965 = vmatprep.subr.bf16.mxu0 %v4879_v49  ;;  %8987 = vmatprep.subr.bf16.mxu1 %v4879_v49  ;;  %v10469_v49 = vld [vmem:[%s14936_s3 + $0x254] ss:$48 sps:$4 sm:$0xff]  }
 0x5a6   :  { %v13683_v16 = vpop.permute.xlu1 %4865  ;;  %v4834_v13 = vpop.permute.xlu0 %4833  ;;  %6852 = vmatprep.mubr.bf16.mxu0 %v10440_v63  ;;  %8874 = vmatprep.mubr.bf16.mxu1 %v10442_v59 }
 0x5a7   :  { %v4878_v35 = vsel %vm4875_vm15, %v4834_v13, %v4836_v40  ;;  %v10468_v40 = vld [vmem:[%s14936_s3 + $0x670] ss:$48 sps:$4 sm:$0xff]  }
 0x5a8   :  { %3380 = vrot.lane.b32.xlu1 %v13510_v45, %s10778_s29  ;;  %3022 = vrot.lane.b32.xlu0 %v13613_v27, %s10774_s2 }
 0x5a9   :  { %6966 = vmatpush1.bf16.msra.mxu0 %v4878_v35  ;;  %8988 = vmatpush1.bf16.msra.mxu1 %v4878_v35  ;;  %v5195_v35 = vld [vmem:[#allocation2] sm:$0xff] }
 0x5aa   :  { %v13700_v57 = vpop.permute.xlu1 %4863  ;;  %v4844_v24 = vpop.permute.xlu0 %4843  ;;  %6853 = vmatmul.mubr.bf16.gmra.mrb[4].mxu0 %v9512_v0  ;;  %8875 = vmatmul.mubr.bf16.gmra.mrb[4].mxu1 %v10444_v51  ;;  %v5255_v48 = vpack.c.bf16 %v5198_v15, %v5195_v35  ;;  %v5232_v35 = vld [vmem:[#allocation2 + $0x128] sm:$0xff] }
 0x5ab   :  { %v4881_v4 = vsel %vm4875_vm15, %v13575_v60, %v4844_v24  ;;  %6862 = vmatprep.mubr.bf16.mxu0 %v10445_v30  ;;  %8884 = vmatprep.mubr.bf16.mxu1 %v10447_v22  ;;  %v10450_v60 = vld [vmem:[%s14936_s3 + $0x550] ss:$48 sps:$4 sm:$0xff]   ;;  %v4888_v39 = vsel %vm4875_vm15, %v13700_v57, %v13683_v16  ;;  %v5204_v15 = vld [vmem:[#allocation2 + $0x48] sm:$0xff] }
 0x5ac   :  { %1957 = vrot.lane.b32.xlu1 %v13434_v62, %s10779_s6  ;;  %1597 = vrot.lane.b32.xlu0 %v13494_v47, %s10775_s19  ;;  %v10449_v62 = vld [vmem:[%s14936_s3 + $0xd0] ss:$48 sps:$4 sm:$0xff]  }
 0x5ad   :  { %6967 = vmatprep.subr.bf16.mxu0 %v4881_v4  ;;  %8989 = vmatprep.subr.bf16.mxu1 %v4881_v4  ;;  %v10474_v30 = vld [vmem:[%s14936_s3 + $0x6d0] ss:$48 sps:$4 sm:$0xff]   ;;  %v10475_v4 = vld [vmem:[%s14936_s3 + $0x2b4] ss:$48 sps:$4 sm:$0xff]  }
 0x5ae   :  { %6968 = vmatpush1.bf16.msra.mxu0 %v4880_v34  ;;  %8990 = vmatpush1.bf16.msra.mxu1 %v4880_v34  ;;  %v13715_v45 = vpop.permute.xlu1 %4873  ;;  %v4848_v38 = vpop.permute.xlu0 %4847  ;;  %v10477_v34 = vld [vmem:[%s14936_s3 + $0x734] ss:$48 sps:$4 sm:$0xff]  }
 0x5af   :  { %v4883_v58 = vsel %vm4875_vm15, %v4848_v38, %v13611_v56 }
 0x5b0   :  { %2844 = vrot.lane.b32.xlu1 %v13717_v17, %s10773_s13  ;;  %2325 = vrot.lane.b32.xlu0 %v13636_v41, %s10771_s11 }
 0x5b1   :  { %6969 = vmatprep.subr.bf16.mxu0 %v4883_v58  ;;  %8991 = vmatprep.subr.bf16.mxu1 %v4883_v58  ;;  %v5208_v58 = vld [vmem:[#allocation2 + $0x68] sm:$0xff] }
 0x5b2   :  { %v13738_v37 = vpop.permute.xlu1 %5070  ;;  %v4846_v46 = vpop.permute.xlu0 %4845  ;;  %6863 = vmatmul.mubr.bf16.gmra.mrb[8].mxu0 %v10449_v62  ;;  %8885 = vmatmul.mubr.bf16.gmra.mrb[8].mxu1 %v10450_v60  ;;  %v5262_v12 = vpack.c.bf16 %v5211_v11, %v5208_v58  ;;  %v5234_v58 = vld [vmem:[#allocation2 + $0x138] sm:$0xff] }
 0x5b3   :  { %v4882_v32 = vsel %vm4875_vm15, %v4846_v46, %v4848_v38  ;;  %6872 = vmatprep.mubr.bf16.mxu0 %v10451_v61  ;;  %8894 = vmatprep.mubr.bf16.mxu1 %v10453_v55  ;;  %v10479_v61 = vld [vmem:[%s14936_s3 + $0x2b0] ss:$48 sps:$4 sm:$0xff]  }
 0x5b4   :  { %1418 = vrot.lane.b32.xlu1 %v13541_v5, %s10769_s5  ;;  %2641 = vrot.lane.b32.xlu0 %v13717_v17, %s10772_s12  ;;  %v10480_v55 = vld [vmem:[%s14936_s3 + $0x730] ss:$48 sps:$4 sm:$0xff]  }
 0x5b5   :  { %6970 = vmatpush1.bf16.msra.mxu0 %v4882_v32  ;;  %8992 = vmatpush1.bf16.msra.mxu1 %v4882_v32 }
 0x5b6   :  { %v13746_v54 = vpop.permute.xlu1 %5068  ;;  %v4856_v33 = vpop.permute.xlu0 %4855 }
 0x5b7   :  { %v4885_v3 = vsel %vm4875_vm15, %v13634_v8, %v4856_v33  ;;  %v10462_v8 = vld [vmem:[%s14936_s3 + $0x610] ss:$48 sps:$4 sm:$0xff]   ;;  %v5117_v22 = vsel %vm5116_vm0, %v13746_v54, %v13738_v37  ;;  %v10481_v33 = vld [vmem:[%s14936_s3 + $0x314] ss:$48 sps:$4 sm:$0xff]  }
 0x5b8   :  { %3024 = vrot.lane.b32.xlu1 %v13717_v17, %s10774_s2  ;;  %2645 = vrot.lane.b32.xlu0 %v13748_v43, %s10772_s12  ;;  %v5207_v54 = vld [vmem:[#allocation2 + $0x60] sm:$0xff] }
 0x5b9   :  { %6971 = vmatprep.subr.bf16.mxu0 %v4885_v3  ;;  %8993 = vmatprep.subr.bf16.mxu1 %v4885_v3  ;;  %v10483_v3 = vld [vmem:[%s14936_s3 + $0x794] ss:$48 sps:$4 sm:$0xff]  }
 0x5ba   :  { %6972 = vmatpush1.bf16.msra.mxu0 %v4884_v14  ;;  %8994 = vmatpush1.bf16.msra.mxu1 %v4884_v14  ;;  %v13765_v56 = vpop.permute.xlu1 %5078  ;;  %v4860_v10 = vpop.permute.xlu0 %4859 }
 0x5bb   :  { %v4887_v53 = vsel %vm4875_vm15, %v4860_v10, %v13660_v29  ;;  %6873 = vmatmul.mubr.bf16.gmra.mrb[12].mxu0 %v10455_v2  ;;  %8895 = vmatmul.mubr.bf16.gmra.mrb[12].mxu1 %v10456_v44  ;;  %v5210_v44 = vld [vmem:[#allocation2 + $0x78] sm:$0xff] }
 0x5bc   :  { %1599 = vrot.lane.b32.xlu1 %v13541_v5, %s10775_s19  ;;  %3202 = vrot.lane.b32.xlu0 %v13613_v27, %s10776_s27 }
 0x5bd   :  { %6973 = vmatprep.subr.bf16.mxu0 %v4887_v53  ;;  %8995 = vmatprep.subr.bf16.mxu1 %v4887_v53  ;;  %v10486_v53 = vld [vmem:[%s14936_s3 + $0x790] ss:$48 sps:$4 sm:$0xff]  }
 0x5be   :  { %v13779_v28 = vpop.permute.xlu1 %5082  ;;  %v4858_v36 = vpop.permute.xlu0 %4857  ;;  %6882 = vmatprep.mubr.bf16.mxu0 %v10457_v18  ;;  %8904 = vmatprep.mubr.bf16.mxu1 %v10459_v6  ;;  %v10485_v6 = vld [vmem:[%s14936_s3 + $0x310] ss:$48 sps:$4 sm:$0xff]  }
 0x5bf   :  { %v4886_v23 = vsel %vm4875_vm15, %v4858_v36, %v4860_v10  ;;  %v5261_v10 = vpack.c.bf16 %v5210_v44, %v5207_v54  ;;  %v10510_v44 = vld [vmem:[%s14936_s3 + $0x49c] ss:$48 sps:$4 sm:$0xff]  }
 0x5c0   :  { %3204 = vrot.lane.b32.xlu1 %v13717_v17, %s10776_s27  ;;  %1778 = vrot.lane.b32.xlu0 %v13494_v47, %s10777_s28 }
 0x5c1   :  { %6974 = vmatpush1.bf16.msra.mxu0 %v4886_v23  ;;  %8996 = vmatpush1.bf16.msra.mxu1 %v4886_v23  ;;  %v10487_v23 = vld [vmem:[%s14936_s3 + $0x374] ss:$48 sps:$4 sm:$0xff]  }
 0x5c2   :  { %v13792_v52 = vpop.permute.xlu1 %5080  ;;  %v4868_v1 = vpop.permute.xlu0 %4867 }
 0x5c3   :  { %v4889_v20 = vsel %vm4875_vm15, %v13683_v16, %v4868_v1  ;;  %6883 = vmatmul.mubr.bf16.gmra.mrb[16].mxu0 %v10461_v21  ;;  %8905 = vmatmul.mubr.bf16.gmra.mrb[16].mxu1 %v10462_v8  ;;  %v5121_v2 = vsel %vm5116_vm0, %v13792_v52, %v13779_v28  ;;  %v10489_v21 = vld [vmem:[%s14936_s3 + $0x7f4] ss:$48 sps:$4 sm:$0xff]   ;;  %v5220_v52 = vld [vmem:[#allocation2 + $0xc8] sm:$0xff] }
 0x5c4   :  { %1780 = vrot.lane.b32.xlu1 %v13541_v5, %s10777_s28  ;;  %3382 = vrot.lane.b32.xlu0 %v13613_v27, %s10778_s29  ;;  %v10467_v27 = vld [vmem:[%s14936_s3 + $0x1f0] ss:$48 sps:$4 sm:$0xff]  }
 0x5c5   :  { %6975 = vmatprep.subr.bf16.mxu0 %v4889_v20  ;;  %8997 = vmatprep.subr.bf16.mxu1 %v4889_v20  ;;  %v5223_v1 = vld [vmem:[#allocation2 + $0xe0] sm:$0xff] }
 0x5c6   :  { %6976 = vmatpush1.bf16.msra.mxu0 %v4888_v39  ;;  %8998 = vmatpush1.bf16.msra.mxu1 %v4888_v39  ;;  %v13809_v31 = vpop.permute.xlu1 %5090  ;;  %v4872_v42 = vpop.permute.xlu0 %4871 }
 0x5c7   :  { %v4891_v29 = vsel %vm4875_vm15, %v4872_v42, %v13715_v45  ;;  %6892 = vmatprep.mubr.bf16.mxu0 %v10463_v25  ;;  %8914 = vmatprep.mubr.bf16.mxu1 %v10465_v26  ;;  %v10763_v45 = vld [vmem:[#allocation2 + $0x10] sm:$0xff]  ;;  %v5268_v26 = vpack.c.bf16 %v5223_v1, %v5220_v52 }
 0x5c8   :  { %3384 = vrot.lane.b32.xlu1 %v13717_v17, %s10778_s29  ;;  %1959 = vrot.lane.b32.xlu0 %v13494_v47, %s10779_s6  ;;  %v5199_v47 = vld [vmem:[#allocation2 + $0x20] sm:$0xff]  ;;  %v13865_v38 = vpack.c.bf16 %v10763_v45, %v10763_v45  ;;  %v5229_v52 = vld [vmem:[#allocation2 + $0x110] sm:$0xff] }
 0x5c9   :  { %6977 = vmatprep.subr.bf16.mxu0 %v4891_v29  ;;  %8999 = vmatprep.subr.bf16.mxu1 %v4891_v29  ;;  %v5256_v0 = vpack.c.bf16 %v5199_v47, %v5196_v19  ;;  %v5205_v19 = vld [vmem:[#allocation2 + $0x50] sm:$0xff] }
 0x5ca   :  { %v13823_v63 = vpop.permute.xlu1 %5094  ;;  %v4870_v59 = vpop.permute.xlu0 %4869  ;;  %v10499_v45 = vld [vmem:[%s14936_s3 + $0x434] ss:$48 sps:$4 sm:$0xff]  }
 0x5cb   :  { %v4890_v50 = vsel %vm4875_vm15, %v4870_v59, %v4872_v42  ;;  %6893 = vmatmul.mubr.bf16.gmra.mrb[20].mxu0 %v10467_v27  ;;  %8915 = vmatmul.mubr.bf16.gmra.mrb[20].mxu1 %v10468_v40  ;;  %v10491_v42 = vld [vmem:[%s14936_s3 + $0x370] ss:$48 sps:$4 sm:$0xff]   ;;  %v5222_v27 = vld [vmem:[#allocation2 + $0xd8] sm:$0xff] }
 0x5cc   :  { %1961 = vrot.lane.b32.xlu1 %v13541_v5, %s10779_s6  ;;  %2846 = vrot.lane.b32.xlu0 %v13748_v43, %s10773_s13  ;;  %v10473_v5 = vld [vmem:[%s14936_s3 + $0x250] ss:$48 sps:$4 sm:$0xff]  }
 0x5cd   :  { %6978 = vmatpush1.bf16.msra.mxu0 %v4890_v50  ;;  %9000 = vmatpush1.bf16.msra.mxu1 %v4890_v50  ;;  %v5202_v50 = vld [vmem:[#allocation2 + $0x38] sm:$0xff] }
 0x5ce   :  { %v13836_v16 = vpop.permute.xlu1 %5092  ;;  %v5073_v13 = vpop.permute.xlu0 %5072  ;;  %6902 = vmatprep.mubr.bf16.mxu0 %v10469_v49  ;;  %8924 = vmatprep.mubr.bf16.mxu1 %v10471_v9  ;;  %v10493_v9 = vld [vmem:[%s14936_s3 + $0x3d4] ss:$48 sps:$4 sm:$0xff]  }
 0x5cf   :  { %v5118_v51 = vsel %vm5116_vm0, %v13738_v37, %v5073_v13  ;;  %v5125_v29 = vsel %vm5116_vm0, %v13836_v16, %v13823_v63  ;;  %v5259_v13 = vpack.c.bf16 %v5205_v19, %v5202_v50  ;;  %v5237_v19 = vld [vmem:[#allocation2 + $0x150] sm:$0xff] }
 0x5d0   :  { %5311 = vrot.lane.b32.xlu1 %v5256_v0, %s10787_s8  ;;  %1420 = vrot.lane.b32.xlu0 %v13636_v41, %s10769_s5  ;;  %v5201_v0 = vld [vmem:[#allocation2 + $0x30] sm:$0xff] }
 0x5d1   :  { %6979 = vmatprep.subr.bf16.mxu0 %v5118_v51  ;;  %9001 = vmatprep.subr.bf16.mxu1 %v5118_v51 }
 0x5d2   :  { %6980 = vmatpush1.bf16.msra.mxu0 %v5117_v22  ;;  %9002 = vmatpush1.bf16.msra.mxu1 %v5117_v22  ;;  %v13852_v57 = vpop.permute.xlu1 %5102  ;;  %v5077_v24 = vpop.permute.xlu0 %5076  ;;  %v5235_v22 = vld [vmem:[#allocation2 + $0x140] sm:$0xff] }
 0x5d3   :  { %v5120_v7 = vsel %vm5116_vm0, %v5077_v24, %v13765_v56  ;;  %6903 = vmatmul.mubr.bf16.gmra.mrb[24].mxu0 %v10473_v5  ;;  %8925 = vmatmul.mubr.bf16.gmra.mrb[24].mxu1 %v10474_v30  ;;  %v10497_v5 = vld [vmem:[%s14936_s3 + $0x3d0] ss:$48 sps:$4 sm:$0xff]  }
 0x5d4   :  { %5309 = vrot.lane.b32.xlu1 %v5255_v48, %s10787_s8  ;;  %3026 = vrot.lane.b32.xlu0 %v13748_v43, %s10774_s2  ;;  %v10498_v30 = vld [vmem:[%s14936_s3 + $0x850] ss:$48 sps:$4 sm:$0xff]   ;;  %v5274_v48 = vpack.c.bf16 %v5235_v22, %v5232_v35  ;;  %v10513_v35 = vld [vmem:[%s14936_s3 + $0x4fc] ss:$48 sps:$4 sm:$0xff]  }
 0x5d5   :  { %6981 = vmatprep.subr.bf16.mxu0 %v5120_v7  ;;  %9003 = vmatprep.subr.bf16.mxu1 %v5120_v7  ;;  %v5231_v7 = vld [vmem:[#allocation2 + $0x120] sm:$0xff] }
 0x5d6   :  { %v13867_v17 = vpop.permute.xlu1 %5106  ;;  %v5075_v62 = vpop.permute.xlu0 %5074  ;;  %6912 = vmatprep.mubr.bf16.mxu0 %v10475_v4  ;;  %8934 = vmatprep.mubr.bf16.mxu1 %v10477_v34  ;;  %v5258_v4 = vpack.c.bf16 %v5204_v15, %v5201_v0  ;;  %v5273_v11 = vpack.c.bf16 %v5234_v58, %v5231_v7  ;;  %v10516_v15 = vld [vmem:[%s14936_s3 + $0x4f8] ss:$48 sps:$4 sm:$0xff]  }
 0x5d7   :  { %v5119_v60 = vsel %vm5116_vm0, %v5075_v62, %v5077_v24  ;;  %v10501_v62 = vld [vmem:[%s14936_s3 + $0x8b4] ss:$48 sps:$4 sm:$0xff]  }
 0x5d8   :  { %5319 = vrot.lane.b32.xlu1 %v13865_v38, %s10787_s8  ;;  %1601 = vrot.lane.b32.xlu0 %v13636_v41, %s10775_s19 }
 0x5d9   :  { %6982 = vmatpush1.bf16.msra.mxu0 %v5119_v60  ;;  %9004 = vmatpush1.bf16.msra.mxu1 %v5119_v60 }
 0x5da   :  { %v13880_v37 = vpop.permute.xlu1 %5104  ;;  %v5085_v46 = vpop.permute.xlu0 %5084 }
 0x5db   :  { %v5122_v32 = vsel %vm5116_vm0, %v13779_v28, %v5085_v46  ;;  %6913 = vmatmul.mubr.bf16.gmra.mrb[28].mxu0 %v10479_v61  ;;  %8935 = vmatmul.mubr.bf16.gmra.mrb[28].mxu1 %v10480_v55  ;;  %v5129_v60 = vsel %vm5116_vm0, %v13880_v37, %v13867_v17  ;;  %v10504_v37 = vld [vmem:[%s14936_s3 + $0x8b0] ss:$48 sps:$4 sm:$0xff]  }
 0x5dc   :  { %5323 = vrot.lane.b32.xlu1 %v5262_v12, %s10787_s8  ;;  %3206 = vrot.lane.b32.xlu0 %v13748_v43, %s10776_s27  ;;  %v5214_v12 = vld [vmem:[#allocation2 + $0x98] sm:$0xff] }
 0x5dd   :  { %6983 = vmatprep.subr.bf16.mxu0 %v5122_v32  ;;  %9005 = vmatprep.subr.bf16.mxu1 %v5122_v32  ;;  %v5217_v32 = vld [vmem:[#allocation2 + $0xb0] sm:$0xff] }
 0x5de   :  { %6984 = vmatpush1.bf16.msra.mxu0 %v5121_v2  ;;  %9006 = vmatpush1.bf16.msra.mxu1 %v5121_v2  ;;  %v13896_v14 = vpop.permute.xlu1 %5114  ;;  %v5089_v56 = vpop.permute.xlu0 %5088  ;;  %v10507_v2 = vld [vmem:[%s14936_s3 + $0x1c] ss:$48 sps:$4 sm:$0xff]  }
 0x5df   :  { %v5124_v18 = vsel %vm5116_vm0, %v5089_v56, %v13809_v31  ;;  %6922 = vmatprep.mubr.bf16.mxu0 %v10481_v33  ;;  %8944 = vmatprep.mubr.bf16.mxu1 %v10483_v3  ;;  %v5219_v31 = vld [vmem:[#allocation2 + $0xc0] sm:$0xff]  ;;  %v5265_v3 = vpack.c.bf16 %v5217_v32, %v5214_v12 }
 0x5e0   :  { %5321 = vrot.lane.b32.xlu1 %v5261_v10, %s10787_s8  ;;  %1782 = vrot.lane.b32.xlu0 %v13636_v41, %s10777_s28  ;;  %v5267_v49 = vpack.c.bf16 %v5222_v27, %v5219_v31  ;;  %v5216_v10 = vld [vmem:[#allocation2 + $0xa8] sm:$0xff] }
 0x5e1   :  { %6985 = vmatprep.subr.bf16.mxu0 %v5124_v18  ;;  %9007 = vmatprep.subr.bf16.mxu1 %v5124_v18  ;;  %v5228_v31 = vld [vmem:[#allocation2 + $0x108] sm:$0xff] }
 0x5e2   :  { %v2139_v28 = vpop.permute.xlu1 %2138  ;;  %v5087_v36 = vpop.permute.xlu0 %5086 }
 0x5e3   :  { %2183 = vst.msk [vmem:[#allocation2 + $0x188] sm:$0xff] %vm2166_vm5, %v2139_v28  ;;  %v5123_v8 = vsel %vm5116_vm0, %v5087_v36, %v5089_v56  ;;  %6923 = vmatmul.mubr.bf16.gmra.mrb[32].mxu0 %v10485_v6  ;;  %8945 = vmatmul.mubr.bf16.gmra.mrb[32].mxu1 %v10486_v53  ;;  %v5213_v56 = vld [vmem:[#allocation2 + $0x90] sm:$0xff]  ;;  %v10505_v28 = vld [vmem:[%s14936_s3 + $0x18] ss:$48 sps:$4 sm:$0xff]  }
 0x5e4   :  { %5331 = vrot.lane.b32.xlu1 %v13865_v38, %s10787_s8  ;;  %3386 = vrot.lane.b32.xlu0 %v13748_v43, %s10778_s29  ;;  %v10492_v43 = vld [vmem:[%s14936_s3 + $0x7f0] ss:$48 sps:$4 sm:$0xff]   ;;  %v5264_v53 = vpack.c.bf16 %v5216_v10, %v5213_v56  ;;  %v10508_v36 = vld [vmem:[%s14936_s3 + $0x498] ss:$48 sps:$4 sm:$0xff]  }
 0x5e5   :  { %6986 = vmatpush1.bf16.msra.mxu0 %v5123_v8  ;;  %9008 = vmatpush1.bf16.msra.mxu1 %v5123_v8  ;;  %v5226_v8 = vld [vmem:[#allocation2 + $0xf8] sm:$0xff] }
 0x5e6   :  { %v2320_v20 = vpop.permute.xlu1 %2319  ;;  %v5097_v25 = vpop.permute.xlu0 %5096  ;;  %6932 = vmatprep.mubr.bf16.mxu0 %v10487_v23  ;;  %8954 = vmatprep.mubr.bf16.mxu1 %v10489_v21  ;;  %v10533_v56 = vld [vmem:[%s14936_s3 + $0x198] ss:$48 sps:$4 sm:$0xff]  }
 0x5e7   :  { %2363 = vst.msk [vmem:[#allocation2 + $0x188] sm:$0xff] %vm899_vm1, %v2320_v20  ;;  %v5126_v39 = vsel %vm5116_vm0, %v13823_v63, %v5097_v25  ;;  %v5271_v25 = vpack.c.bf16 %v5229_v52, %v5226_v8  ;;  %v10534_v10 = vld [vmem:[%s14936_s3 + $0x618] ss:$48 sps:$4 sm:$0xff]  }
 0x5e8   :  { %5335 = vrot.lane.b32.xlu1 %v5268_v26, %s10787_s8  ;;  %1963 = vrot.lane.b32.xlu0 %v13636_v41, %s10779_s6  ;;  %v10495_v41 = vld [vmem:[%s14936_s3 + $0x854] ss:$48 sps:$4 sm:$0xff]   ;;  %v10540_v8 = vld [vmem:[%s14936_s3 + $0x678] ss:$48 sps:$4 sm:$0xff]  }
 0x5e9   :  { %6987 = vmatprep.subr.bf16.mxu0 %v5126_v39  ;;  %9009 = vmatprep.subr.bf16.mxu1 %v5126_v39  ;;  %v5225_v39 = vld [vmem:[#allocation2 + $0xf0] sm:$0xff] }
 0x5ea   :  { %6988 = vmatpush1.bf16.msra.mxu0 %v5125_v29  ;;  %9010 = vmatpush1.bf16.msra.mxu1 %v5125_v29  ;;  %v13936_v40 = vpop.permute.xlu1 %2631  ;;  %v5101_v59 = vpop.permute.xlu0 %5100  ;;  %v5270_v29 = vpack.c.bf16 %v5228_v31, %v5225_v39  ;;  %v10541_v39 = vld [vmem:[%s14936_s3 + $0x25c] ss:$48 sps:$4 sm:$0xff]  }
 0x5eb   :  { %v5128_v63 = vsel %vm5116_vm0, %v5101_v59, %v13852_v57  ;;  %6933 = vmatmul.mubr.bf16.gmra.mrb[36].mxu0 %v10491_v42  ;;  %8955 = vmatmul.mubr.bf16.gmra.mrb[36].mxu1 %v10492_v43  ;;  %v10543_v31 = vld [vmem:[%s14936_s3 + $0x6dc] ss:$48 sps:$4 sm:$0xff]  }
 0x5ec   :  { %5333 = vrot.lane.b32.xlu1 %v5267_v49, %s10787_s8  ;;  %5313 = vrot.lane.b32.xlu0 %v13865_v38, %s10787_s8  ;;  %v5238_v49 = vld [vmem:[#allocation2 + $0x158] sm:$0xff] }
 0x5ed   :  { %6989 = vmatprep.subr.bf16.mxu0 %v5128_v63  ;;  %9011 = vmatprep.subr.bf16.mxu1 %v5128_v63 }
 0x5ee   :  { %v13949_v47 = vpop.permute.xlu1 %2635  ;;  %v5099_v16 = vpop.permute.xlu0 %5098  ;;  %6942 = vmatprep.mubr.bf16.mxu0 %v10493_v9  ;;  %8964 = vmatprep.mubr.bf16.mxu1 %v10495_v41  ;;  %v5241_v9 = vld [vmem:[#allocation2 + $0x170] sm:$0xff] }
 0x5ef   :  { %v5127_v51 = vsel %vm5116_vm0, %v5099_v16, %v5101_v59  ;;  %v5277_v50 = vpack.c.bf16 %v5241_v9, %v5238_v49  ;;  %v10546_v49 = vld [vmem:[%s14936_s3 + $0x6d8] ss:$48 sps:$4 sm:$0xff]  }
 0x5f0   :  { %5343 = vrot.lane.b32.xlu1 %v13865_v38, %s10787_s8  ;;  %5317 = vrot.lane.b32.xlu0 %v5259_v13, %s10787_s8 }
 0x5f1   :  { %6990 = vmatpush1.bf16.msra.mxu0 %v5127_v51  ;;  %9012 = vmatpush1.bf16.msra.mxu1 %v5127_v51  ;;  %v10511_v51 = vld [vmem:[%s14936_s3 + $0x7c] ss:$48 sps:$4 sm:$0xff]  }
 0x5f2   :  { %v13961_v57 = vpop.permute.xlu1 %2840  ;;  %v5109_v24 = vpop.permute.xlu0 %5108 }
 0x5f3   :  { %v5130_v34 = vsel %vm5116_vm0, %v13867_v17, %v5109_v24  ;;  %6943 = vmatmul.mubr.bf16.gmra.mrb[40].mxu0 %v10497_v5  ;;  %8965 = vmatmul.mubr.bf16.gmra.mrb[40].mxu1 %v10498_v30  ;;  %v10503_v17 = vld [vmem:[%s14936_s3 + $0x430] ss:$48 sps:$4 sm:$0xff]   ;;  %v10515_v5 = vld [vmem:[%s14936_s3 + $0x78] ss:$48 sps:$4 sm:$0xff]  }
 0x5f4   :  { %5347 = vrot.lane.b32.xlu1 %v5274_v48, %s10787_s8  ;;  %5315 = vrot.lane.b32.xlu0 %v5258_v4, %s10787_s8  ;;  %v10517_v48 = vld [vmem:[%s14936_s3 + $0xdc] ss:$48 sps:$4 sm:$0xff]  }
 0x5f5   :  { %6991 = vmatprep.subr.bf16.mxu0 %v5130_v34  ;;  %9013 = vmatprep.subr.bf16.mxu1 %v5130_v34  ;;  %v10519_v4 = vld [vmem:[%s14936_s3 + $0x55c] ss:$48 sps:$4 sm:$0xff]   ;;  %v10521_v34 = vld [vmem:[%s14936_s3 + $0xd8] ss:$48 sps:$4 sm:$0xff]  }
 0x5f6   :  { %6992 = vmatpush1.bf16.msra.mxu0 %v5129_v60  ;;  %9014 = vmatpush1.bf16.msra.mxu1 %v5129_v60  ;;  %v1415_v61 = vpop.permute.xlu1 %1414  ;;  %v5113_v55 = vpop.permute.xlu0 %5112 }
 0x5f7   :  { %1459 = vst.msk [vmem:[#allocation2 + $0x180] sm:$0xff] %vm1442_vm4, %v1415_v61  ;;  %v5132_v46 = vsel %vm5116_vm0, %v5113_v55, %v13896_v14  ;;  %6952 = vmatprep.mubr.bf16.mxu0 %v10499_v45  ;;  %8974 = vmatprep.mubr.bf16.mxu1 %v10501_v62  ;;  %v10522_v62 = vld [vmem:[%s14936_s3 + $0x558] ss:$48 sps:$4 sm:$0xff]  }
 0x5f8   :  { %5345 = vrot.lane.b32.xlu1 %v5273_v11, %s10787_s8  ;;  %5325 = vrot.lane.b32.xlu0 %v13865_v38, %s10787_s8  ;;  %v10525_v11 = vld [vmem:[%s14936_s3 + $0x5bc] ss:$48 sps:$4 sm:$0xff]  }
 0x5f9   :  { %6993 = vmatprep.subr.bf16.mxu0 %v5132_v46  ;;  %9015 = vmatprep.subr.bf16.mxu1 %v5132_v46  ;;  %v10527_v46 = vld [vmem:[%s14936_s3 + $0x138] ss:$48 sps:$4 sm:$0xff]  }
 0x5fa   :  { %v2143_v54 = vpop.permute.xlu1 %2142  ;;  %v5111_v33 = vpop.permute.xlu0 %5110 }
 0x5fb   :  { %2185 = vst.msk [vmem:[#allocation2 + $0x1b8] sm:$0xff] %vm2166_vm5, %v2143_v54  ;;  %v5131_v14 = vsel %vm5116_vm0, %v5111_v33, %v5113_v55  ;;  %6953 = vmatmul.mubr.bf16.gmra.mrb[44].mxu0 %v10503_v17  ;;  %8975 = vmatmul.mubr.bf16.gmra.mrb[44].mxu1 %v10504_v37  ;;  %v10523_v55 = vld [vmem:[%s14936_s3 + $0x13c] ss:$48 sps:$4 sm:$0xff]   ;;  %v10528_v37 = vld [vmem:[%s14936_s3 + $0x5b8] ss:$48 sps:$4 sm:$0xff]  }
 0x5fc   :  { %5329 = vrot.lane.b32.xlu0 %v5265_v3, %s10787_s8  ;;  %6994 = vmatpush1.bf16.msra.mxu0 %v5131_v14  ;;  %v10529_v3 = vld [vmem:[%s14936_s3 + $0x19c] ss:$48 sps:$4 sm:$0xff]  }
 0x5fd   :  { %9016 = vmatpush1.bf16.msra.mxu1 %v5131_v14  ;;  %5355 = vrot.lane.b32.xlu1 %v13865_v38, %s10787_s8 }
 0x5fe   :  { %v3021_v18 = vpop.permute.xlu1 %3020  ;;  %v2141_v6 = vpop.permute.xlu0 %2140  ;;  %6995 = vmatprep.mubr.bf16.mxu0 %v10507_v2  ;;  %9017 = vmatprep.mubr.bf16.mxu1 %v10510_v44  ;;  %v10531_v2 = vld [vmem:[%s14936_s3 + $0x61c] ss:$48 sps:$4 sm:$0xff]  }
 0x5ff   :  { %2184 = vst.msk [vmem:[#allocation2 + $0x1a0] sm:$0xff] %vm2166_vm5, %v2141_v6 }
 0x600   :  { %5327 = vrot.lane.b32.xlu0 %v5264_v53, %s10787_s8 }
 0x602   :  { %v1596_v23 = vpop.permute.xlu1 %1595  ;;  %v2322_v21 = vpop.permute.xlu0 %2321 }
 0x603   :  { %1640 = vst.msk [vmem:[#allocation2 + $0x180] sm:$0xff] %vm1623_vm7, %v1596_v23  ;;  %6996 = vmatmul.mubr.bf16.vlgmr.msra.gmra.mrb[0].mxu0 %v10505_v28  ;;  %9018 = vmatmul.mubr.bf16.vlgmr.msra.gmra.mrb[0].mxu1 %v10508_v36  ;;  %v10535_v36 = vld [vmem:[%s14936_s3 + $0x1fc] ss:$48 sps:$4 sm:$0xff]  }
 0x604   :  { %2364 = vst.msk [vmem:[#allocation2 + $0x1a0] sm:$0xff] %vm899_vm1, %v2322_v21  ;;  %5337 = vrot.lane.b32.xlu0 %v13865_v38, %s10787_s8  ;;  %7005 = vmatprep.mubr.bf16.mxu0 %v10511_v51  ;;  %v10537_v23 = vld [vmem:[%s14936_s3 + $0x67c] ss:$48 sps:$4 sm:$0xff]   ;;  %v10539_v21 = vld [vmem:[%s14936_s3 + $0x1f8] ss:$48 sps:$4 sm:$0xff]  }
 0x605   :  { %9027 = vmatprep.mubr.bf16.mxu1 %v10513_v35  ;;  %v10553_v51 = vld [vmem:[%s14936_s3 + $0x31c] ss:$48 sps:$4 sm:$0xff]  }
 0x606   :  { %v2324_v1 = vpop.permute.xlu1 %2323  ;;  %v2634_v20 = vpop.permute.xlu0 %2633  ;;  %v10555_v35 = vld [vmem:[%s14936_s3 + $0x79c] ss:$48 sps:$4 sm:$0xff]  }
 0x607   :  { %2365 = vst.msk [vmem:[#allocation2 + $0x1b8] sm:$0xff] %vm899_vm1, %v2324_v1  ;;  %v2664_v26 = vsel %vm2647_vm6, %v13936_v40, %v2634_v20 }
 0x608   :  { %2704 = vst.msk [vmem:[#allocation2 + $0x188] sm:$0xff] %vm1080_vm2, %v2664_v26  ;;  %5341 = vrot.lane.b32.xlu0 %v5271_v25, %s10787_s8 }
 0x609   :  { %2884 = vst.msk [vmem:[#allocation2 + $0x188] sm:$0xff] %vm1261_vm3, %v13961_v57 }
 0x60a   :  { %3064 = vst.msk [vmem:[#allocation2 + $0x188] sm:$0xff] %vm1442_vm4, %v3021_v18  ;;  %v2640_v42 = vpop.permute.xlu1 %2639  ;;  %v2638_v43 = vpop.permute.xlu0 %2637 }
 0x60b   :  { %v2665_v27 = vsel %vm2647_vm6, %v13949_v47, %v2638_v43  ;;  %v5240_v47 = vld [vmem:[#allocation2 + $0x168] sm:$0xff]  ;;  %7006 = vmatmul.mubr.bf16.gmra.mrb[4].mxu0 %v10515_v5  ;;  %9028 = vmatmul.mubr.bf16.gmra.mrb[4].mxu1 %v10516_v15 }
 0x60c   :  { %2705 = vst.msk [vmem:[#allocation2 + $0x1a0] sm:$0xff] %vm1080_vm2, %v2665_v27  ;;  %5339 = vrot.lane.b32.xlu0 %v5270_v29, %s10787_s8  ;;  %v5276_v0 = vpack.c.bf16 %v5240_v47, %v5237_v19  ;;  %7015 = vmatprep.mubr.bf16.mxu0 %v10517_v48  ;;  %v10551_v47 = vld [vmem:[%s14936_s3 + $0x2b8] ss:$48 sps:$4 sm:$0xff]   ;;  %v10561_v48 = vld [vmem:[%s14936_s3 + $0x7fc] ss:$48 sps:$4 sm:$0xff]  }
 0x60d   :  { %9037 = vmatprep.mubr.bf16.mxu1 %v10519_v4 }
 0x60e   :  { %v2644_v40 = vpop.permute.xlu1 %2643  ;;  %v2843_v59 = vpop.permute.xlu0 %2842 }
 0x60f   :  { %2885 = vst.msk [vmem:[#allocation2 + $0x1a0] sm:$0xff] %vm1261_vm3, %v2843_v59  ;;  %v10545_v59 = vld [vmem:[%s14936_s3 + $0x258] ss:$48 sps:$4 sm:$0xff]  }
 0x610   :  { %5349 = vrot.lane.b32.xlu0 %v13865_v38, %s10787_s8 }
 0x612   :  { %v3201_v41 = vpop.permute.xlu1 %3200  ;;  %v1417_v63 = vpop.permute.xlu0 %1416 }
 0x613   :  { %3244 = vst.msk [vmem:[#allocation2 + $0x188] sm:$0xff] %vm1623_vm7, %v3201_v41  ;;  %7016 = vmatmul.mubr.bf16.gmra.mrb[8].mxu0 %v10521_v34  ;;  %9038 = vmatmul.mubr.bf16.gmra.mrb[8].mxu1 %v10522_v62  ;;  %v10547_v41 = vld [vmem:[%s14936_s3 + $0x2bc] ss:$48 sps:$4 sm:$0xff]  }
 0x614   :  { %1460 = vst.msk [vmem:[#allocation2 + $0x198] sm:$0xff] %vm1442_vm4, %v1417_v63  ;;  %5353 = vrot.lane.b32.xlu0 %v5277_v50, %s10787_s8  ;;  %7025 = vmatprep.mubr.bf16.mxu0 %v10523_v55  ;;  %v10549_v63 = vld [vmem:[%s14936_s3 + $0x73c] ss:$48 sps:$4 sm:$0xff]  }
 0x615   :  { %9047 = vmatprep.mubr.bf16.mxu1 %v10525_v11 }
 0x616   :  { %v1777_v16 = vpop.permute.xlu1 %1776  ;;  %v2145_v13 = vpop.permute.xlu0 %2144 }
 0x617   :  { %1821 = vst.msk [vmem:[#allocation2 + $0x180] sm:$0xff] %vm1804_vm8, %v1777_v16  ;;  %v10552_v16 = vld [vmem:[%s14936_s3 + $0x738] ss:$48 sps:$4 sm:$0xff]  }
 0x618   :  { %2186 = vst.msk [vmem:[#allocation2 + $0x1d0] sm:$0xff] %vm2166_vm5, %v2145_v13  ;;  %5351 = vrot.lane.b32.xlu0 %v5276_v0, %s10787_s8 }
 0x61a   :  { %v3381_v30 = vpop.permute.xlu1 %3380  ;;  %v3023_v22 = vpop.permute.xlu0 %3022 }
 0x61b   :  { %3424 = vst.msk [vmem:[#allocation2 + $0x188] sm:$0xff] %vm1804_vm8, %v3381_v30  ;;  %7026 = vmatmul.mubr.bf16.gmra.mrb[12].mxu0 %v10527_v46  ;;  %9048 = vmatmul.mubr.bf16.gmra.mrb[12].mxu1 %v10528_v37  ;;  %v10557_v30 = vld [vmem:[%s14936_s3 + $0x318] ss:$48 sps:$4 sm:$0xff]   ;;  %v10565_v46 = vld [vmem:[%s14936_s3 + $0x3dc] ss:$48 sps:$4 sm:$0xff]  }
 0x61c   :  { %3065 = vst.msk [vmem:[#allocation2 + $0x1a0] sm:$0xff] %vm1442_vm4, %v3023_v22  ;;  %3729 = vrot.lane.b32.xlu0 %v13865_v38, %s10780_s24  ;;  %7035 = vmatprep.mubr.bf16.mxu0 %v10529_v3  ;;  %v10558_v22 = vld [vmem:[%s14936_s3 + $0x798] ss:$48 sps:$4 sm:$0xff]  }
 0x61d   :  { %9057 = vmatprep.mubr.bf16.mxu1 %v10531_v2  ;;  %v10569_v2 = vld [vmem:[%s14936_s3 + $0x3d8] ss:$48 sps:$4 sm:$0xff]  }
 0x61e   :  { %v1958_v57 = vpop.permute.xlu1 %1957  ;;  %v1598_v24 = vpop.permute.xlu0 %1597 }
 0x61f   :  { %2002 = vst.msk [vmem:[#allocation2 + $0x180] sm:$0xff] %vm1985_vm9, %v1958_v57 }
 0x620   :  { %1641 = vst.msk [vmem:[#allocation2 + $0x198] sm:$0xff] %vm1623_vm7, %v1598_v24  ;;  %v10559_v24 = vld [vmem:[%s14936_s3 + $0x37c] ss:$48 sps:$4 sm:$0xff]  }
 0x622   :  { %v2845_v7 = vpop.permute.xlu1 %2844  ;;  %v2326_v45 = vpop.permute.xlu0 %2325  ;;  %v3557_v20 = vld [vmem:[#allocation2 + $0x188] sm:$0xff] }
 0x623   :  { %2366 = vst.msk [vmem:[#allocation2 + $0x1d0] sm:$0xff] %vm899_vm1, %v2326_v45  ;;  %7036 = vmatmul.mubr.bf16.gmra.mrb[16].mxu0 %v10533_v56  ;;  %9058 = vmatmul.mubr.bf16.gmra.mrb[16].mxu1 %v10534_v10  ;;  %v10564_v45 = vld [vmem:[%s14936_s3 + $0x7f8] ss:$48 sps:$4 sm:$0xff]   ;;  %vm5357_vm1 = vcmask 769024  }
 0x624   :  { %7045 = vmatprep.mubr.bf16.mxu0 %v10535_v36  ;;  %9067 = vmatprep.mubr.bf16.mxu1 %v10537_v23 }
 0x626   :  { %v1419_v60 = vpop.permute.xlu1 %1418  ;;  %v2642_v58 = vpop.permute.xlu0 %2641  ;;  %v3556_v43 = vld [vmem:[#allocation2 + $0x180] sm:$0xff] }
 0x627   :  { %1461 = vst.msk [vmem:[#allocation2 + $0x1b0] sm:$0xff] %vm1442_vm4, %v1419_v60  ;;  %v2666_v61 = vsel %vm2647_vm6, %v2640_v42, %v2642_v58 }
 0x628   :  { %2706 = vst.msk [vmem:[#allocation2 + $0x1b8] sm:$0xff] %vm1080_vm2, %v2666_v61 }
 0x629   :  { %2886 = vst.msk [vmem:[#allocation2 + $0x1b8] sm:$0xff] %vm1261_vm3, %v2845_v7  ;;  %v10563_v7 = vld [vmem:[%s14936_s3 + $0x378] ss:$48 sps:$4 sm:$0xff]  }
 0x62a   :  { %v3025_v12 = vpop.permute.xlu1 %3024  ;;  %v2646_v17 = vpop.permute.xlu0 %2645 }
 0x62b   :  { %3066 = vst.msk [vmem:[#allocation2 + $0x1b8] sm:$0xff] %vm1442_vm4, %v3025_v12  ;;  %v2667_v32 = vsel %vm2647_vm6, %v2644_v40, %v2646_v17  ;;  %7046 = vmatmul.mubr.bf16.gmra.mrb[20].mxu0 %v10539_v21  ;;  %9068 = vmatmul.mubr.bf16.gmra.mrb[20].mxu1 %v10540_v8  ;;  %v10567_v12 = vld [vmem:[%s14936_s3 + $0x85c] ss:$48 sps:$4 sm:$0xff]   ;;  %v10575_v8 = vld [vmem:[%s14936_s3 + $0x438] ss:$48 sps:$4 sm:$0xff]  }
 0x62c   :  { %2707 = vst.msk [vmem:[#allocation2 + $0x1d0] sm:$0xff] %vm1080_vm2, %v2667_v32  ;;  %7055 = vmatprep.mubr.bf16.mxu0 %v10541_v39  ;;  %9077 = vmatprep.mubr.bf16.mxu1 %v10543_v31  ;;  %v10582_v39 = vld [vmem:[%s14936_s3 + $0x4a4] ss:$48 sps:$4 sm:$0xff]  }
 0x62e   :  { %v1600_v54 = vpop.permute.xlu1 %1599  ;;  %v3203_v33 = vpop.permute.xlu0 %3202 }
 0x62f   :  { %1642 = vst.msk [vmem:[#allocation2 + $0x1b0] sm:$0xff] %vm1623_vm7, %v1600_v54  ;;  %3245 = vst.msk [vmem:[#allocation2 + $0x1a0] sm:$0xff] %vm1623_vm7, %v3203_v33 }
 0x632   :  { %v3205_v44 = vpop.permute.xlu1 %3204  ;;  %v1779_v14 = vpop.permute.xlu0 %1778 }
 0x633   :  { %3246 = vst.msk [vmem:[#allocation2 + $0x1b8] sm:$0xff] %vm1623_vm7, %v3205_v44  ;;  %7056 = vmatmul.mubr.bf16.gmra.mrb[24].mxu0 %v10545_v59  ;;  %9078 = vmatmul.mubr.bf16.gmra.mrb[24].mxu1 %v10546_v49  ;;  %v10570_v44 = vld [vmem:[%s14936_s3 + $0x858] ss:$48 sps:$4 sm:$0xff]  }
 0x634   :  { %1822 = vst.msk [vmem:[#allocation2 + $0x198] sm:$0xff] %vm1804_vm8, %v1779_v14  ;;  %7065 = vmatprep.mubr.bf16.mxu0 %v10547_v41  ;;  %9087 = vmatprep.mubr.bf16.mxu1 %v10549_v63 }
 0x636   :  { %v1781_v18 = vpop.permute.xlu1 %1780  ;;  %v3383_v6 = vpop.permute.xlu0 %3382 }
 0x637   :  { %1823 = vst.msk [vmem:[#allocation2 + $0x1b0] sm:$0xff] %vm1804_vm8, %v1781_v18  ;;  %3425 = vst.msk [vmem:[#allocation2 + $0x1a0] sm:$0xff] %vm1804_vm8, %v3383_v6 }
 0x63a   :  { %v3385_v53 = vpop.permute.xlu1 %3384  ;;  %v1960_v28 = vpop.permute.xlu0 %1959 }
 0x63b   :  { %3426 = vst.msk [vmem:[#allocation2 + $0x1b8] sm:$0xff] %vm1804_vm8, %v3385_v53  ;;  %7066 = vmatmul.mubr.bf16.gmra.mrb[28].mxu0 %v10551_v47  ;;  %9088 = vmatmul.mubr.bf16.gmra.mrb[28].mxu1 %v10552_v16  ;;  %v10571_v53 = vld [vmem:[%s14936_s3 + $0x43c] ss:$48 sps:$4 sm:$0xff]  }
 0x63c   :  { %2003 = vst.msk [vmem:[#allocation2 + $0x198] sm:$0xff] %vm1985_vm9, %v1960_v28  ;;  %7075 = vmatprep.mubr.bf16.mxu0 %v10553_v51  ;;  %9097 = vmatprep.mubr.bf16.mxu1 %v10555_v35  ;;  %v10573_v28 = vld [vmem:[%s14936_s3 + $0x8bc] ss:$48 sps:$4 sm:$0xff]  }
 0x63e   :  { %v1962_v52 = vpop.permute.xlu1 %1961  ;;  %v2847_v1 = vpop.permute.xlu0 %2846  ;;  %v3560_v25 = vld [vmem:[#allocation2 + $0x1a0] sm:$0xff] }
 0x63f   :  { %2004 = vst.msk [vmem:[#allocation2 + $0x1b0] sm:$0xff] %vm1985_vm9, %v1962_v52  ;;  %v14116_v26 = vpack.c.bf16 %v3560_v25, %v3557_v20  ;;  %v10576_v52 = vld [vmem:[%s14936_s3 + $0x8b8] ss:$48 sps:$4 sm:$0xff]   ;;  %v10579_v20 = vld [vmem:[%s14936_s3 + $0x24] ss:$48 sps:$4 sm:$0xff]  }
 0x640   :  { %2887 = vst.msk [vmem:[#allocation2 + $0x1d0] sm:$0xff] %vm1261_vm3, %v2847_v1 }
 0x641   :  { %3727 = vrot.lane.b32.xlu1 %v14116_v26, %s10780_s24 }
 0x642   :  { %v1421_v42 = vpop.permute.xlu0 %1420  ;;  %v5312_v40 = vpop.permute.xlu1 %5311  ;;  %v3563_v60 = vld [vmem:[#allocation2 + $0x1b8] sm:$0xff] }
 0x643   :  { %v3559_v29 = vld [vmem:[#allocation2 + $0x198] sm:$0xff]  ;;  %1462 = vst.msk [vmem:[#allocation2 + $0x1c8] sm:$0xff] %vm1442_vm4, %v1421_v42  ;;  %7076 = vmatmul.mubr.bf16.gmra.mrb[32].mxu0 %v10557_v30  ;;  %9098 = vmatmul.mubr.bf16.gmra.mrb[32].mxu1 %v10558_v22 }
 0x644   :  { %v14127_v27 = vpack.c.bf16 %v3559_v29, %v3556_v43  ;;  %7085 = vmatprep.mubr.bf16.mxu0 %v10559_v24  ;;  %9107 = vmatprep.mubr.bf16.mxu1 %v10561_v48 }
 0x646   :  { %3725 = vrot.lane.b32.xlu1 %v14127_v27, %s10780_s24  ;;  %v3027_v9 = vpop.permute.xlu0 %3026  ;;  %v5310_v50 = vpop.permute.xlu1 %5309  ;;  %v3562_v32 = vld [vmem:[#allocation2 + $0x1b0] sm:$0xff] }
 0x647   :  { %3067 = vst.msk [vmem:[#allocation2 + $0x1d0] sm:$0xff] %vm1442_vm4, %v3027_v9  ;;  %v5358_v11 = vsel %vm5357_vm1, %v5310_v50, %v5312_v40 }
 0x64a   :  { %3735 = vrot.lane.b32.xlu1 %v13865_v38, %s10780_s24  ;;  %v1602_v19 = vpop.permute.xlu0 %1601  ;;  %v5320_v0 = vpop.permute.xlu1 %5319 }
 0x64b   :  { %1643 = vst.msk [vmem:[#allocation2 + $0x1c8] sm:$0xff] %vm1623_vm7, %v1602_v19  ;;  %7086 = vmatmul.mubr.bf16.gmra.mrb[36].mxu0 %v10563_v7  ;;  %9108 = vmatmul.mubr.bf16.gmra.mrb[36].mxu1 %v10564_v45 }
 0x64c   :  { %7095 = vmatprep.mubr.bf16.mxu0 %v10565_v46  ;;  %9117 = vmatprep.mubr.bf16.mxu1 %v10567_v12 }
 0x64e   :  { %3968 = vrot.lane.b32.xlu1 %v14116_v26, %s10781_s25  ;;  %v3207_v13 = vpop.permute.xlu0 %3206  ;;  %v14173_v15 = vpop.permute.xlu1 %5323 }
 0x64f   :  { %3247 = vst.msk [vmem:[#allocation2 + $0x1d0] sm:$0xff] %vm1623_vm7, %v3207_v13 }
 0x652   :  { %3966 = vrot.lane.b32.xlu1 %v14127_v27, %s10781_s25  ;;  %v1783_v5 = vpop.permute.xlu0 %1782  ;;  %v5322_v34 = vpop.permute.xlu1 %5321 }
 0x653   :  { %1824 = vst.msk [vmem:[#allocation2 + $0x1c8] sm:$0xff] %vm1804_vm8, %v1783_v5  ;;  %7096 = vmatmul.mubr.bf16.gmra.mrb[40].mxu0 %v10569_v2  ;;  %9118 = vmatmul.mubr.bf16.gmra.mrb[40].mxu1 %v10570_v44  ;;  %v5362_v36 = vsel %vm5357_vm1, %v5322_v34, %v14173_v15 }
 0x654   :  { %7105 = vmatprep.mubr.bf16.mxu0 %v10571_v53  ;;  %9127 = vmatprep.mubr.bf16.mxu1 %v10573_v28  ;;  %v10577_v28 = vld [vmem:[%s14936_s3 + $0x20] ss:$48 sps:$4 sm:$0xff]  }
 0x656   :  { %3976 = vrot.lane.b32.xlu1 %v13865_v38, %s10781_s25  ;;  %v3387_v57 = vpop.permute.xlu0 %3386  ;;  %v5332_v17 = vpop.permute.xlu1 %5331 }
 0x657   :  { %3427 = vst.msk [vmem:[#allocation2 + $0x1d0] sm:$0xff] %vm1804_vm8, %v3387_v57 }
 0x65a   :  { %4209 = vrot.lane.b32.xlu1 %v14116_v26, %s10782_s9  ;;  %v1964_v4 = vpop.permute.xlu0 %1963  ;;  %v5336_v10 = vpop.permute.xlu1 %5335 }
 0x65b   :  { %2005 = vst.msk [vmem:[#allocation2 + $0x1c8] sm:$0xff] %vm1985_vm9, %v1964_v4  ;;  %7106 = vmatmul.mubr.bf16.gmra.mrb[44].mxu0 %v10575_v8  ;;  %9128 = vmatmul.mubr.bf16.gmra.mrb[44].mxu1 %v10576_v52  ;;  %v10583_v8 = vld [vmem:[%s14936_s3 + $0x84] ss:$48 sps:$4 sm:$0xff]  }
 0x65c   :  { %7148 = vmatprep.mubr.bf16.mxu0 %v10579_v20  ;;  %9170 = vmatprep.mubr.bf16.mxu1 %v10582_v39  ;;  %v10585_v52 = vld [vmem:[%s14936_s3 + $0x504] ss:$48 sps:$4 sm:$0xff]  }
 0x65e   :  { %4207 = vrot.lane.b32.xlu1 %v14127_v27, %s10782_s9  ;;  %v5314_v62 = vpop.permute.xlu0 %5313  ;;  %v3566_v58 = vld [vmem:[#allocation2 + $0x1d0] sm:$0xff]  ;;  %v5334_v23 = vpop.permute.xlu1 %5333 }
 0x65f   :  { %v5359_v61 = vsel %vm5357_vm1, %v5312_v40, %v5314_v62  ;;  %v14194_v55 = vpack.c.bf16 %v3566_v58, %v3563_v60  ;;  %v5366_v40 = vsel %vm5357_vm1, %v5334_v23, %v5336_v10 }
 0x660   :  { %7116 = vmatprep.subr.bf16.mxu0 %v5359_v61  ;;  %9138 = vmatprep.subr.bf16.mxu1 %v5359_v61 }
 0x661   :  { %3733 = vrot.lane.b32.xlu0 %v14194_v55, %s10780_s24  ;;  %7117 = vmatpush1.bf16.msra.mxu0 %v5358_v11 }
 0x662   :  { %4217 = vrot.lane.b32.xlu1 %v13865_v38, %s10782_s9  ;;  %9139 = vmatpush1.bf16.msra.mxu1 %v5358_v11  ;;  %v5318_v37 = vpop.permute.xlu0 %5317  ;;  %v3565_v54 = vld [vmem:[#allocation2 + $0x1c8] sm:$0xff]  ;;  %v5344_v42 = vpop.permute.xlu1 %5343 }
 0x663   :  { %v5361_v33 = vsel %vm5357_vm1, %v5318_v37, %v5320_v0  ;;  %v14208_v3 = vpack.c.bf16 %v3565_v54, %v3562_v32 }
 0x664   :  { %7118 = vmatprep.subr.bf16.mxu0 %v5361_v33  ;;  %9140 = vmatprep.subr.bf16.mxu1 %v5361_v33 }
 0x665   :  { %3731 = vrot.lane.b32.xlu0 %v14208_v3, %s10780_s24 }
 0x666   :  { %4450 = vrot.lane.b32.xlu1 %v14116_v26, %s10783_s10  ;;  %v5316_v14 = vpop.permute.xlu0 %5315  ;;  %v5348_v59 = vpop.permute.xlu1 %5347 }
 0x667   :  { %v5360_v56 = vsel %vm5357_vm1, %v5316_v14, %v5318_v37 }
 0x668   :  { %7119 = vmatpush1.bf16.msra.mxu0 %v5360_v56  ;;  %9141 = vmatpush1.bf16.msra.mxu1 %v5360_v56 }
 0x669   :  { %3970 = vrot.lane.b32.xlu0 %v13865_v38, %s10781_s25 }
 0x66a   :  { %4448 = vrot.lane.b32.xlu1 %v14127_v27, %s10783_s10  ;;  %v5326_v18 = vpop.permute.xlu0 %5325  ;;  %v5346_v50 = vpop.permute.xlu1 %5345 }
 0x66b   :  { %v5363_v6 = vsel %vm5357_vm1, %v14173_v15, %v5326_v18  ;;  %v5370_v13 = vsel %vm5357_vm1, %v5346_v50, %v5348_v59  ;;  %v10593_v50 = vld [vmem:[%s14936_s3 + $0xe0] ss:$48 sps:$4 sm:$0xff]  }
 0x66c   :  { %7120 = vmatprep.subr.bf16.mxu0 %v5363_v6  ;;  %9142 = vmatprep.subr.bf16.mxu1 %v5363_v6 }
 0x66d   :  { %3974 = vrot.lane.b32.xlu0 %v14194_v55, %s10781_s25  ;;  %7121 = vmatpush1.bf16.msra.mxu0 %v5362_v36 }
 0x66e   :  { %4458 = vrot.lane.b32.xlu1 %v13865_v38, %s10783_s10  ;;  %9143 = vmatpush1.bf16.msra.mxu1 %v5362_v36  ;;  %v5330_v21 = vpop.permute.xlu0 %5329  ;;  %v10580_v36 = vld [vmem:[%s14936_s3 + $0x4a0] ss:$48 sps:$4 sm:$0xff]  }
 0x66f   :  { %v5365_v1 = vsel %vm5357_vm1, %v5330_v21, %v5332_v17  ;;  %v5356_v16 = vpop.permute.xlu1 %5355 }
 0x670   :  { %7122 = vmatprep.subr.bf16.mxu0 %v5365_v1  ;;  %9144 = vmatprep.subr.bf16.mxu1 %v5365_v1 }
 0x671   :  { %3972 = vrot.lane.b32.xlu0 %v14208_v3, %s10781_s25 }
 0x672   :  { %4691 = vrot.lane.b32.xlu1 %v14116_v26, %s10784_s17  ;;  %v5328_v25 = vpop.permute.xlu0 %5327 }
 0x673   :  { %v5364_v31 = vsel %vm5357_vm1, %v5328_v25, %v5330_v21 }
 0x674   :  { %7123 = vmatpush1.bf16.msra.mxu0 %v5364_v31  ;;  %9145 = vmatpush1.bf16.msra.mxu1 %v5364_v31 }
 0x675   :  { %4211 = vrot.lane.b32.xlu0 %v13865_v38, %s10782_s9 }
 0x676   :  { %4689 = vrot.lane.b32.xlu1 %v14127_v27, %s10784_s17  ;;  %v5338_v43 = vpop.permute.xlu0 %5337 }
 0x677   :  { %v5367_v29 = vsel %vm5357_vm1, %v5336_v10, %v5338_v43  ;;  %v10588_v43 = vld [vmem:[%s14936_s3 + $0x500] ss:$48 sps:$4 sm:$0xff]  }
 0x678   :  { %7124 = vmatprep.subr.bf16.mxu0 %v5367_v29  ;;  %9146 = vmatprep.subr.bf16.mxu1 %v5367_v29  ;;  %v10589_v29 = vld [vmem:[%s14936_s3 + $0xe4] ss:$48 sps:$4 sm:$0xff]  }
 0x679   :  { %4215 = vrot.lane.b32.xlu0 %v14194_v55, %s10782_s9  ;;  %7125 = vmatpush1.bf16.msra.mxu0 %v5366_v40 }
 0x67a   :  { %4699 = vrot.lane.b32.xlu1 %v13865_v38, %s10784_s17  ;;  %9147 = vmatpush1.bf16.msra.mxu1 %v5366_v40  ;;  %v5342_v49 = vpop.permute.xlu0 %5341  ;;  %v10591_v40 = vld [vmem:[%s14936_s3 + $0x564] ss:$48 sps:$4 sm:$0xff]  }
 0x67b   :  { %v5369_v9 = vsel %vm5357_vm1, %v5342_v49, %v5344_v42  ;;  %v10587_v42 = vld [vmem:[%s14936_s3 + $0x80] ss:$48 sps:$4 sm:$0xff]  }
 0x67c   :  { %7126 = vmatprep.subr.bf16.mxu0 %v5369_v9  ;;  %9148 = vmatprep.subr.bf16.mxu1 %v5369_v9 }
 0x67d   :  { %4213 = vrot.lane.b32.xlu0 %v14208_v3, %s10782_s9 }
 0x67e   :  { %4932 = vrot.lane.b32.xlu1 %v14116_v26, %s10785_s18  ;;  %v5340_v41 = vpop.permute.xlu0 %5339 }
 0x67f   :  { %v5368_v63 = vsel %vm5357_vm1, %v5340_v41, %v5342_v49 }
 0x680   :  { %7127 = vmatpush1.bf16.msra.mxu0 %v5368_v63  ;;  %9149 = vmatpush1.bf16.msra.mxu1 %v5368_v63 }
 0x681   :  { %4452 = vrot.lane.b32.xlu0 %v13865_v38, %s10783_s10 }
 0x682   :  { %4930 = vrot.lane.b32.xlu1 %v14127_v27, %s10785_s18  ;;  %v5350_v19 = vpop.permute.xlu0 %5349 }
 0x683   :  { %v5371_v47 = vsel %vm5357_vm1, %v5348_v59, %v5350_v19  ;;  %v10594_v19 = vld [vmem:[%s14936_s3 + $0x560] ss:$48 sps:$4 sm:$0xff]  }
 0x684   :  { %7128 = vmatprep.subr.bf16.mxu0 %v5371_v47  ;;  %9150 = vmatprep.subr.bf16.mxu1 %v5371_v47 }
 0x685   :  { %4456 = vrot.lane.b32.xlu0 %v14194_v55, %s10783_s10  ;;  %7129 = vmatpush1.bf16.msra.mxu0 %v5370_v13 }
 0x686   :  { %4940 = vrot.lane.b32.xlu1 %v13865_v38, %s10785_s18  ;;  %9151 = vmatpush1.bf16.msra.mxu1 %v5370_v13  ;;  %v5354_v0 = vpop.permute.xlu0 %5353  ;;  %v10597_v13 = vld [vmem:[%s14936_s3 + $0x5c4] ss:$48 sps:$4 sm:$0xff]  }
 0x687   :  { %v5373_v51 = vsel %vm5357_vm1, %v5354_v0, %v5356_v16  ;;  %v10595_v16 = vld [vmem:[%s14936_s3 + $0x144] ss:$48 sps:$4 sm:$0xff]  }
 0x688   :  { %7130 = vmatprep.subr.bf16.mxu0 %v5373_v51  ;;  %9152 = vmatprep.subr.bf16.mxu1 %v5373_v51 }
 0x689   :  { %4454 = vrot.lane.b32.xlu0 %v14208_v3, %s10783_s10 }
 0x68a   :  { %5173 = vrot.lane.b32.xlu1 %v14116_v26, %s10786_s30  ;;  %v5352_v35 = vpop.permute.xlu0 %5351 }
 0x68b   :  { %v5372_v5 = vsel %vm5357_vm1, %v5352_v35, %v5354_v0 }
 0x68c   :  { %7131 = vmatpush1.bf16.msra.mxu0 %v5372_v5  ;;  %9153 = vmatpush1.bf16.msra.mxu1 %v5372_v5 }
 0x68d   :  { %4693 = vrot.lane.b32.xlu0 %v13865_v38, %s10784_s17  ;;  %7132 = vmatprep.subr.bf16.mxu0 %v14116_v26 }
 0x68e   :  { %5171 = vrot.lane.b32.xlu1 %v14127_v27, %s10786_s30  ;;  %9154 = vmatprep.subr.bf16.mxu1 %v14116_v26 }
 0x690   :  { %7133 = vmatpush1.bf16.msra.mxu0 %v14127_v27  ;;  %9155 = vmatpush1.bf16.msra.mxu1 %v14127_v27 }
 0x691   :  { %4697 = vrot.lane.b32.xlu0 %v14194_v55, %s10784_s17  ;;  %7134 = vmatprep.subr.bf16.mxu0 %v14194_v55 }
 0x692   :  { %5181 = vrot.lane.b32.xlu1 %v13865_v38, %s10786_s30  ;;  %9156 = vmatprep.subr.bf16.mxu1 %v14194_v55 }
 0x694   :  { %7135 = vmatpush1.bf16.msra.mxu0 %v14208_v3  ;;  %9157 = vmatpush1.bf16.msra.mxu1 %v14208_v3 }
 0x695   :  { %4695 = vrot.lane.b32.xlu0 %v14208_v3, %s10784_s17 }
 0x696   :  { %5414 = vrot.lane.b32.xlu1 %v14116_v26, %s10787_s8  ;;  %v3730_v26 = vpop.permute.xlu0 %3729 }
 0x699   :  { %4934 = vrot.lane.b32.xlu0 %v13865_v38, %s10785_s18 }
 0x69a   :  { %5412 = vrot.lane.b32.xlu1 %v14127_v27, %s10787_s8 }
 0x69d   :  { %4938 = vrot.lane.b32.xlu0 %v14194_v55, %s10785_s18 }
 0x69e   :  { %5422 = vrot.lane.b32.xlu1 %v13865_v38, %s10787_s8 }
 0x6a1   :  { %4936 = vrot.lane.b32.xlu0 %v14208_v3, %s10785_s18 }
 0x6a5   :  { %5175 = vrot.lane.b32.xlu0 %v13865_v38, %s10786_s30 }
 0x6a9   :  { %5179 = vrot.lane.b32.xlu0 %v14194_v55, %s10786_s30 }
 0x6ad   :  { %5177 = vrot.lane.b32.xlu0 %v14208_v3, %s10786_s30 }
 0x6b1   :  { %5416 = vrot.lane.b32.xlu0 %v13865_v38, %s10787_s8 }
 0x6b3   :  { %v3728_v27 = vpop.permute.xlu1 %3727 }
 0x6b4   :  { %v3738_v30 = vsel %vm3670_vm10, %v3728_v27, %v3730_v26 }
 0x6b5   :  { %5420 = vrot.lane.b32.xlu0 %v14194_v55, %s10787_s8  ;;  %7136 = vmatprep.subr.bf16.mxu0 %v3738_v30 }
 0x6b6   :  { %9158 = vmatprep.subr.bf16.mxu1 %v3738_v30  ;;  %v10600_v30 = vld [vmem:[%s14936_s3 + $0x5c0] ss:$48 sps:$4 sm:$0xff]  }
 0x6b8   :  { %v3726_v22 = vpop.permute.xlu1 %3725 }
 0x6b9   :  { %v3737_v15 = vsel %vm3670_vm10, %v3726_v22, %v3728_v27  ;;  %5418 = vrot.lane.b32.xlu0 %v14208_v3, %s10787_s8  ;;  %v10599_v27 = vld [vmem:[%s14936_s3 + $0x140] ss:$48 sps:$4 sm:$0xff]  }
 0x6ba   :  { %7137 = vmatpush1.bf16.msra.mxu0 %v3737_v15  ;;  %9159 = vmatpush1.bf16.msra.mxu1 %v3737_v15 }
 0x6bc   :  { %v3736_v57 = vpop.permute.xlu1 %3735 }
 0x6c0   :  { %v3969_v24 = vpop.permute.xlu1 %3968 }
 0x6c4   :  { %v3967_v38 = vpop.permute.xlu1 %3966 }
 0x6c5   :  { %v3978_v12 = vsel %vm3911_vm11, %v3967_v38, %v3969_v24 }
 0x6c8   :  { %v3977_v48 = vpop.permute.xlu1 %3976 }
 0x6cc   :  { %v4210_v4 = vpop.permute.xlu1 %4209 }
 0x6d0   :  { %v4208_v34 = vpop.permute.xlu1 %4207 }
 0x6d1   :  { %v4219_v14 = vsel %vm4152_vm12, %v4208_v34, %v4210_v4 }
 0x6d3   :  { %v3734_v45 = vpop.permute.xlu0 %3733 }
 0x6d4   :  { %v4218_v7 = vpop.permute.xlu1 %4217  ;;  %v3740_v62 = vsel %vm3670_vm10, %v3734_v45, %v3736_v57  ;;  %v10601_v57 = vld [vmem:[%s14936_s3 + $0x1a4] ss:$48 sps:$4 sm:$0xff]  }
 0x6d5   :  { %7138 = vmatprep.subr.bf16.mxu0 %v3740_v62  ;;  %9160 = vmatprep.subr.bf16.mxu1 %v3740_v62  ;;  %v10606_v62 = vld [vmem:[%s14936_s3 + $0x620] ss:$48 sps:$4 sm:$0xff]  }
 0x6d7   :  { %v3732_v58 = vpop.permute.xlu0 %3731 }
 0x6d8   :  { %v4451_v60 = vpop.permute.xlu1 %4450  ;;  %v3739_v61 = vsel %vm3670_vm10, %v3732_v58, %v3734_v45  ;;  %v10605_v45 = vld [vmem:[%s14936_s3 + $0x1a0] ss:$48 sps:$4 sm:$0xff]   ;;  %v10609_v58 = vld [vmem:[%s14936_s3 + $0x684] ss:$48 sps:$4 sm:$0xff]  }
 0x6d9   :  { %7139 = vmatpush1.bf16.msra.mxu0 %v3739_v61  ;;  %9161 = vmatpush1.bf16.msra.mxu1 %v3739_v61 }
 0x6db   :  { %v3971_v11 = vpop.permute.xlu0 %3970 }
 0x6dc   :  { %v4449_v55 = vpop.permute.xlu1 %4448  ;;  %v3979_v46 = vsel %vm3911_vm11, %v3969_v24, %v3971_v11  ;;  %v10603_v24 = vld [vmem:[%s14936_s3 + $0x624] ss:$48 sps:$4 sm:$0xff]  }
 0x6dd   :  { %7140 = vmatprep.subr.bf16.mxu0 %v3979_v46  ;;  %9162 = vmatprep.subr.bf16.mxu1 %v3979_v46  ;;  %v4460_v20 = vsel %vm4393_vm13, %v4449_v55, %v4451_v60 }
 0x6de   :  { %7141 = vmatpush1.bf16.msra.mxu0 %v3978_v12  ;;  %9163 = vmatpush1.bf16.msra.mxu1 %v3978_v12 }
 0x6df   :  { %v3975_v37 = vpop.permute.xlu0 %3974 }
 0x6e0   :  { %v4459_v17 = vpop.permute.xlu1 %4458  ;;  %v3981_v32 = vsel %vm3911_vm11, %v3975_v37, %v3977_v48 }
 0x6e1   :  { %7142 = vmatprep.subr.bf16.mxu0 %v3981_v32  ;;  %9164 = vmatprep.subr.bf16.mxu1 %v3981_v32 }
 0x6e3   :  { %v3973_v54 = vpop.permute.xlu0 %3972 }
 0x6e4   :  { %v3980_v33 = vsel %vm3911_vm11, %v3973_v54, %v3975_v37  ;;  %v4692_v3 = vpop.permute.xlu1 %4691  ;;  %v10612_v37 = vld [vmem:[%s14936_s3 + $0x680] ss:$48 sps:$4 sm:$0xff]   ;;  %v10613_v54 = vld [vmem:[%s14936_s3 + $0x264] ss:$48 sps:$4 sm:$0xff]  }
 0x6e5   :  { %7143 = vmatpush1.bf16.msra.mxu0 %v3980_v33  ;;  %9165 = vmatpush1.bf16.msra.mxu1 %v3980_v33  ;;  %v10615_v33 = vld [vmem:[%s14936_s3 + $0x6e4] ss:$48 sps:$4 sm:$0xff]  }
 0x6e7   :  { %v4212_v2 = vpop.permute.xlu0 %4211 }
 0x6e8   :  { %v4220_v44 = vsel %vm4152_vm12, %v4210_v4, %v4212_v2  ;;  %v4690_v56 = vpop.permute.xlu1 %4689 }
 0x6e9   :  { %7144 = vmatprep.subr.bf16.mxu0 %v4220_v44  ;;  %9166 = vmatprep.subr.bf16.mxu1 %v4220_v44  ;;  %v4701_v47 = vsel %vm4634_vm14, %v4690_v56, %v4692_v3 }
 0x6ea   :  { %7145 = vmatpush1.bf16.msra.mxu0 %v4219_v14  ;;  %9167 = vmatpush1.bf16.msra.mxu1 %v4219_v14 }
 0x6eb   :  { %v4216_v10 = vpop.permute.xlu0 %4215 }
 0x6ec   :  { %v4222_v18 = vsel %vm4152_vm12, %v4216_v10, %v4218_v7  ;;  %v4700_v23 = vpop.permute.xlu1 %4699 }
 0x6ed   :  { %7146 = vmatprep.subr.bf16.mxu0 %v4222_v18  ;;  %9168 = vmatprep.subr.bf16.mxu1 %v4222_v18  ;;  %v10618_v18 = vld [vmem:[%s14936_s3 + $0x6e0] ss:$48 sps:$4 sm:$0xff]  }
 0x6ef   :  { %v4214_v6 = vpop.permute.xlu0 %4213 }
 0x6f0   :  { %v4221_v53 = vsel %vm4152_vm12, %v4214_v6, %v4216_v10  ;;  %v4933_v25 = vpop.permute.xlu1 %4932  ;;  %v10617_v10 = vld [vmem:[%s14936_s3 + $0x260] ss:$48 sps:$4 sm:$0xff]  }
 0x6f1   :  { %7147 = vmatpush1.bf16.msra.mxu0 %v4221_v53  ;;  %9169 = vmatpush1.bf16.msra.mxu1 %v4221_v53 }
 0x6f3   :  { %v4453_v21 = vpop.permute.xlu0 %4452 }
 0x6f4   :  { %7149 = vmatmul.mubr.bf16.vlgmr.msra.gmra.mrb[0].mxu0 %v10577_v28  ;;  %9171 = vmatmul.mubr.bf16.vlgmr.msra.gmra.mrb[0].mxu1 %v10580_v36  ;;  %v4461_v1 = vsel %vm4393_vm13, %v4451_v60, %v4453_v21  ;;  %v4931_v9 = vpop.permute.xlu1 %4930  ;;  %v10607_v60 = vld [vmem:[%s14936_s3 + $0x204] ss:$48 sps:$4 sm:$0xff]  }
 0x6f5   :  { %7269 = vmatprep.subr.bf16.mxu0 %v4461_v1  ;;  %9291 = vmatprep.subr.bf16.mxu1 %v4461_v1  ;;  %v4942_v48 = vsel %vm4875_vm15, %v4931_v9, %v4933_v25  ;;  %v10619_v28 = vld [vmem:[%s14936_s3 + $0x2c4] ss:$48 sps:$4 sm:$0xff]   ;;  %v10635_v9 = vld [vmem:[%s14936_s3 + $0x380] ss:$48 sps:$4 sm:$0xff]  }
 0x6f6   :  { %7270 = vmatpush1.bf16.msra.mxu0 %v4460_v20  ;;  %9292 = vmatpush1.bf16.msra.mxu1 %v4460_v20  ;;  %v10621_v36 = vld [vmem:[%s14936_s3 + $0x744] ss:$48 sps:$4 sm:$0xff]   ;;  %v10623_v20 = vld [vmem:[%s14936_s3 + $0x2c0] ss:$48 sps:$4 sm:$0xff]  }
 0x6f7   :  { %v4457_v39 = vpop.permute.xlu0 %4456  ;;  %7158 = vmatprep.mubr.bf16.mxu0 %v10583_v8  ;;  %9180 = vmatprep.mubr.bf16.mxu1 %v10585_v52 }
 0x6f8   :  { %v4463_v31 = vsel %vm4393_vm13, %v4457_v39, %v4459_v17  ;;  %v4941_v0 = vpop.permute.xlu1 %4940  ;;  %v10611_v17 = vld [vmem:[%s14936_s3 + $0x200] ss:$48 sps:$4 sm:$0xff]  }
 0x6f9   :  { %7271 = vmatprep.subr.bf16.mxu0 %v4463_v31  ;;  %9293 = vmatprep.subr.bf16.mxu1 %v4463_v31  ;;  %v10627_v31 = vld [vmem:[%s14936_s3 + $0x7a4] ss:$48 sps:$4 sm:$0xff]  }
 0x6fb   :  { %v4455_v59 = vpop.permute.xlu0 %4454 }
 0x6fc   :  { %v4462_v49 = vsel %vm4393_vm13, %v4455_v59, %v4457_v39  ;;  %7159 = vmatmul.mubr.bf16.gmra.mrb[4].mxu0 %v10587_v42  ;;  %9181 = vmatmul.mubr.bf16.gmra.mrb[4].mxu1 %v10588_v43  ;;  %v5174_v22 = vpop.permute.xlu1 %5173  ;;  %v10625_v39 = vld [vmem:[%s14936_s3 + $0x324] ss:$48 sps:$4 sm:$0xff]  }
 0x6fd   :  { %7272 = vmatpush1.bf16.msra.mxu0 %v4462_v49  ;;  %9294 = vmatpush1.bf16.msra.mxu1 %v4462_v49  ;;  %v10631_v59 = vld [vmem:[%s14936_s3 + $0x384] ss:$48 sps:$4 sm:$0xff]  }
 0x6fe   :  { %7168 = vmatprep.mubr.bf16.mxu0 %v10589_v29  ;;  %9190 = vmatprep.mubr.bf16.mxu1 %v10591_v40  ;;  %v10629_v29 = vld [vmem:[%s14936_s3 + $0x320] ss:$48 sps:$4 sm:$0xff]   ;;  %v10633_v49 = vld [vmem:[%s14936_s3 + $0x804] ss:$48 sps:$4 sm:$0xff]  }
 0x6ff   :  { %v4694_v41 = vpop.permute.xlu0 %4693  ;;  %v10630_v40 = vld [vmem:[%s14936_s3 + $0x7a0] ss:$48 sps:$4 sm:$0xff]  }
 0x700   :  { %v4702_v63 = vsel %vm4634_vm14, %v4692_v3, %v4694_v41  ;;  %v5172_v4 = vpop.permute.xlu1 %5171  ;;  %v10636_v41 = vld [vmem:[%s14936_s3 + $0x800] ss:$48 sps:$4 sm:$0xff]  }
 0x701   :  { %7273 = vmatprep.subr.bf16.mxu0 %v4702_v63  ;;  %9295 = vmatprep.subr.bf16.mxu1 %v4702_v63  ;;  %v5183_v32 = vsel %vm5116_vm0, %v5172_v4, %v5174_v22  ;;  %v10637_v63 = vld [vmem:[%s14936_s3 + $0x3e4] ss:$48 sps:$4 sm:$0xff]   ;;  %v10666_v4 = vld [vmem:[%s14936_s3 + $0x568] ss:$48 sps:$4 sm:$0xff]  }
 0x702   :  { %7274 = vmatpush1.bf16.msra.mxu0 %v4701_v47  ;;  %9296 = vmatpush1.bf16.msra.mxu1 %v4701_v47  ;;  %v10642_v47 = vld [vmem:[%s14936_s3 + $0x860] ss:$48 sps:$4 sm:$0xff]  }
 0x703   :  { %v4698_v51 = vpop.permute.xlu0 %4697 }
 0x704   :  { %7169 = vmatmul.mubr.bf16.gmra.mrb[8].mxu0 %v10593_v50  ;;  %9191 = vmatmul.mubr.bf16.gmra.mrb[8].mxu1 %v10594_v19  ;;  %v4704_v35 = vsel %vm4634_vm14, %v4698_v51, %v4700_v23  ;;  %v5182_v11 = vpop.permute.xlu1 %5181  ;;  %v10639_v50 = vld [vmem:[%s14936_s3 + $0x864] ss:$48 sps:$4 sm:$0xff]   ;;  %v10641_v19 = vld [vmem:[%s14936_s3 + $0x3e0] ss:$48 sps:$4 sm:$0xff]  }
 0x705   :  { %7275 = vmatprep.subr.bf16.mxu0 %v4704_v35  ;;  %9297 = vmatprep.subr.bf16.mxu1 %v4704_v35  ;;  %v10651_v35 = vld [vmem:[%s14936_s3 + $0x2c] ss:$48 sps:$4 sm:$0xff]  }
 0x706   :  { %7178 = vmatprep.mubr.bf16.mxu0 %v10595_v16  ;;  %9200 = vmatprep.mubr.bf16.mxu1 %v10597_v13  ;;  %v10643_v16 = vld [vmem:[%s14936_s3 + $0x444] ss:$48 sps:$4 sm:$0xff]  }
 0x707   :  { %v4696_v5 = vpop.permute.xlu0 %4695  ;;  %v10645_v13 = vld [vmem:[%s14936_s3 + $0x8c4] ss:$48 sps:$4 sm:$0xff]  }
 0x708   :  { %v4703_v26 = vsel %vm4634_vm14, %v4696_v5, %v4698_v51  ;;  %v5415_v3 = vpop.permute.xlu1 %5414  ;;  %v10648_v51 = vld [vmem:[%s14936_s3 + $0x8c0] ss:$48 sps:$4 sm:$0xff]   ;;  %v10654_v5 = vld [vmem:[%s14936_s3 + $0x4ac] ss:$48 sps:$4 sm:$0xff]  }
 0x709   :  { %7276 = vmatpush1.bf16.msra.mxu0 %v4703_v26  ;;  %9298 = vmatpush1.bf16.msra.mxu1 %v4703_v26  ;;  %v10649_v26 = vld [vmem:[%s14936_s3 + $0x28] ss:$48 sps:$4 sm:$0xff]  }
 0x70b   :  { %v4935_v15 = vpop.permute.xlu0 %4934 }
 0x70c   :  { %7179 = vmatmul.mubr.bf16.gmra.mrb[12].mxu0 %v10599_v27  ;;  %9201 = vmatmul.mubr.bf16.gmra.mrb[12].mxu1 %v10600_v30  ;;  %v4943_v38 = vsel %vm4875_vm15, %v4933_v25, %v4935_v15  ;;  %v5413_v6 = vpop.permute.xlu1 %5412  ;;  %v10624_v25 = vld [vmem:[%s14936_s3 + $0x740] ss:$48 sps:$4 sm:$0xff]   ;;  %v10652_v27 = vld [vmem:[%s14936_s3 + $0x4a8] ss:$48 sps:$4 sm:$0xff]   ;;  %v10655_v30 = vld [vmem:[%s14936_s3 + $0x8c] ss:$48 sps:$4 sm:$0xff]  }
 0x70d   :  { %7277 = vmatprep.subr.bf16.mxu0 %v4943_v38  ;;  %9299 = vmatprep.subr.bf16.mxu1 %v4943_v38  ;;  %v5424_v21 = vsel %vm5357_vm1, %v5413_v6, %v5415_v3  ;;  %v10659_v15 = vld [vmem:[%s14936_s3 + $0x88] ss:$48 sps:$4 sm:$0xff]   ;;  %v10663_v38 = vld [vmem:[%s14936_s3 + $0x56c] ss:$48 sps:$4 sm:$0xff]  }
 0x70e   :  { %7278 = vmatpush1.bf16.msra.mxu0 %v4942_v48  ;;  %9300 = vmatpush1.bf16.msra.mxu1 %v4942_v48  ;;  %v10665_v48 = vld [vmem:[%s14936_s3 + $0xe8] ss:$48 sps:$4 sm:$0xff]  }
 0x70f   :  { %v4939_v34 = vpop.permute.xlu0 %4938  ;;  %7188 = vmatprep.mubr.bf16.mxu0 %v10601_v57  ;;  %9210 = vmatprep.mubr.bf16.mxu1 %v10603_v24  ;;  %v10660_v57 = vld [vmem:[%s14936_s3 + $0x508] ss:$48 sps:$4 sm:$0xff]   ;;  %v10661_v24 = vld [vmem:[%s14936_s3 + $0xec] ss:$48 sps:$4 sm:$0xff]  }
 0x710   :  { %v4945_v7 = vsel %vm4875_vm15, %v4939_v34, %v4941_v0  ;;  %v5423_v8 = vpop.permute.xlu1 %5422  ;;  %v10647_v0 = vld [vmem:[%s14936_s3 + $0x440] ss:$48 sps:$4 sm:$0xff]   ;;  %v10702_v6 = vld [vmem:[%s14936_s3 + $0x7a8] ss:$48 sps:$4 sm:$0xff]  }
 0x711   :  { %7279 = vmatprep.subr.bf16.mxu0 %v4945_v7  ;;  %9301 = vmatprep.subr.bf16.mxu1 %v4945_v7  ;;  %v10669_v7 = vld [vmem:[%s14936_s3 + $0x5cc] ss:$48 sps:$4 sm:$0xff]  }
 0x713   :  { %v4937_v61 = vpop.permute.xlu0 %4936 }
 0x714   :  { %v4944_v55 = vsel %vm4875_vm15, %v4937_v61, %v4939_v34  ;;  %7189 = vmatmul.mubr.bf16.gmra.mrb[16].mxu0 %v10605_v45  ;;  %9211 = vmatmul.mubr.bf16.gmra.mrb[16].mxu1 %v10606_v62  ;;  %v10667_v34 = vld [vmem:[%s14936_s3 + $0x14c] ss:$48 sps:$4 sm:$0xff]   ;;  %v10671_v45 = vld [vmem:[%s14936_s3 + $0x148] ss:$48 sps:$4 sm:$0xff]  }
 0x715   :  { %7280 = vmatpush1.bf16.msra.mxu0 %v4944_v55  ;;  %9302 = vmatpush1.bf16.msra.mxu1 %v4944_v55  ;;  %v10672_v62 = vld [vmem:[%s14936_s3 + $0x5c8] ss:$48 sps:$4 sm:$0xff]  }
 0x716   :  { %7198 = vmatprep.mubr.bf16.mxu0 %v10607_v60  ;;  %9220 = vmatprep.mubr.bf16.mxu1 %v10609_v58  ;;  %v10673_v60 = vld [vmem:[%s14936_s3 + $0x1ac] ss:$48 sps:$4 sm:$0xff]   ;;  %v10677_v61 = vld [vmem:[%s14936_s3 + $0x1a8] ss:$48 sps:$4 sm:$0xff]  }
 0x717   :  { %v5176_v46 = vpop.permute.xlu0 %5175  ;;  %v10675_v58 = vld [vmem:[%s14936_s3 + $0x62c] ss:$48 sps:$4 sm:$0xff]   ;;  %v10678_v55 = vld [vmem:[%s14936_s3 + $0x628] ss:$48 sps:$4 sm:$0xff]  }
 0x718   :  { %v5184_v12 = vsel %vm5116_vm0, %v5174_v22, %v5176_v46  ;;  %v10657_v22 = vld [vmem:[%s14936_s3 + $0x50c] ss:$48 sps:$4 sm:$0xff]  }
 0x719   :  { %7281 = vmatprep.subr.bf16.mxu0 %v5184_v12  ;;  %9303 = vmatprep.subr.bf16.mxu1 %v5184_v12  ;;  %v10681_v46 = vld [vmem:[%s14936_s3 + $0x68c] ss:$48 sps:$4 sm:$0xff]   ;;  %v10683_v12 = vld [vmem:[%s14936_s3 + $0x208] ss:$48 sps:$4 sm:$0xff]  }
 0x71a   :  { %7282 = vmatpush1.bf16.msra.mxu0 %v5183_v32  ;;  %9304 = vmatpush1.bf16.msra.mxu1 %v5183_v32  ;;  %v10687_v32 = vld [vmem:[%s14936_s3 + $0x6ec] ss:$48 sps:$4 sm:$0xff]  }
 0x71b   :  { %v5180_v2 = vpop.permute.xlu0 %5179 }
 0x71c   :  { %7199 = vmatmul.mubr.bf16.gmra.mrb[20].mxu0 %v10611_v17  ;;  %9221 = vmatmul.mubr.bf16.gmra.mrb[20].mxu1 %v10612_v37  ;;  %v5186_v44 = vsel %vm5116_vm0, %v5180_v2, %v5182_v11  ;;  %v10679_v11 = vld [vmem:[%s14936_s3 + $0x20c] ss:$48 sps:$4 sm:$0xff]   ;;  %v10684_v17 = vld [vmem:[%s14936_s3 + $0x688] ss:$48 sps:$4 sm:$0xff]  }
 0x71d   :  { %7283 = vmatprep.subr.bf16.mxu0 %v5186_v44  ;;  %9305 = vmatprep.subr.bf16.mxu1 %v5186_v44  ;;  %v10685_v37 = vld [vmem:[%s14936_s3 + $0x26c] ss:$48 sps:$4 sm:$0xff]   ;;  %v10695_v44 = vld [vmem:[%s14936_s3 + $0x2c8] ss:$48 sps:$4 sm:$0xff]  }
 0x71e   :  { %7208 = vmatprep.mubr.bf16.mxu0 %v10613_v54  ;;  %9230 = vmatprep.mubr.bf16.mxu1 %v10615_v33  ;;  %v10689_v54 = vld [vmem:[%s14936_s3 + $0x268] ss:$48 sps:$4 sm:$0xff]  }
 0x71f   :  { %v5178_v14 = vpop.permute.xlu0 %5177  ;;  %v10690_v33 = vld [vmem:[%s14936_s3 + $0x6e8] ss:$48 sps:$4 sm:$0xff]  }
 0x720   :  { %v5185_v56 = vsel %vm5116_vm0, %v5178_v14, %v5180_v2  ;;  %v10693_v2 = vld [vmem:[%s14936_s3 + $0x74c] ss:$48 sps:$4 sm:$0xff]   ;;  %v10696_v14 = vld [vmem:[%s14936_s3 + $0x748] ss:$48 sps:$4 sm:$0xff]  }
 0x721   :  { %7284 = vmatpush1.bf16.msra.mxu0 %v5185_v56  ;;  %9306 = vmatpush1.bf16.msra.mxu1 %v5185_v56  ;;  %v10697_v56 = vld [vmem:[%s14936_s3 + $0x32c] ss:$48 sps:$4 sm:$0xff]  }
 0x723   :  { %v5417_v53 = vpop.permute.xlu0 %5416 }
 0x724   :  { %7209 = vmatmul.mubr.bf16.gmra.mrb[24].mxu0 %v10617_v10  ;;  %9231 = vmatmul.mubr.bf16.gmra.mrb[24].mxu1 %v10618_v18  ;;  %v5425_v23 = vsel %vm5357_vm1, %v5415_v3, %v5417_v53  ;;  %v10691_v3 = vld [vmem:[%s14936_s3 + $0x2cc] ss:$48 sps:$4 sm:$0xff]   ;;  %v10701_v18 = vld [vmem:[%s14936_s3 + $0x328] ss:$48 sps:$4 sm:$0xff]  }
 0x725   :  { %7285 = vmatprep.subr.bf16.mxu0 %v5425_v23  ;;  %9307 = vmatprep.subr.bf16.mxu1 %v5425_v23  ;;  %v10699_v10 = vld [vmem:[%s14936_s3 + $0x7ac] ss:$48 sps:$4 sm:$0xff]   ;;  %v10708_v23 = vld [vmem:[%s14936_s3 + $0x808] ss:$48 sps:$4 sm:$0xff]  }
 0x726   :  { %7286 = vmatpush1.bf16.msra.mxu0 %v5424_v21  ;;  %9308 = vmatpush1.bf16.msra.mxu1 %v5424_v21  ;;  %v10703_v53 = vld [vmem:[%s14936_s3 + $0x38c] ss:$48 sps:$4 sm:$0xff]  }
 0x727   :  { %v5421_v52 = vpop.permute.xlu0 %5420  ;;  %7218 = vmatprep.mubr.bf16.mxu0 %v10619_v28  ;;  %9240 = vmatprep.mubr.bf16.mxu1 %v10621_v36  ;;  %v10705_v28 = vld [vmem:[%s14936_s3 + $0x80c] ss:$48 sps:$4 sm:$0xff]   ;;  %v10707_v36 = vld [vmem:[%s14936_s3 + $0x388] ss:$48 sps:$4 sm:$0xff]  }
 0x728   :  { %v5427_v1 = vsel %vm5357_vm1, %v5421_v52, %v5423_v8  ;;  %v10709_v21 = vld [vmem:[%s14936_s3 + $0x3ec] ss:$48 sps:$4 sm:$0xff]  }
 0x729   :  { %7287 = vmatprep.subr.bf16.mxu0 %v5427_v1  ;;  %9309 = vmatprep.subr.bf16.mxu1 %v5427_v1  ;;  %v10711_v8 = vld [vmem:[%s14936_s3 + $0x86c] ss:$48 sps:$4 sm:$0xff]   ;;  %v10714_v1 = vld [vmem:[%s14936_s3 + $0x868] ss:$48 sps:$4 sm:$0xff]  }
 0x72b   :  { %v5419_v42 = vpop.permute.xlu0 %5418 }
 0x72c   :  { %v5426_v43 = vsel %vm5357_vm1, %v5419_v42, %v5421_v52  ;;  %7219 = vmatmul.mubr.bf16.gmra.mrb[28].mxu0 %v10623_v20  ;;  %9241 = vmatmul.mubr.bf16.gmra.mrb[28].mxu1 %v10624_v25  ;;  %v10713_v52 = vld [vmem:[%s14936_s3 + $0x3e8] ss:$48 sps:$4 sm:$0xff]   ;;  %v10715_v20 = vld [vmem:[%s14936_s3 + $0x44c] ss:$48 sps:$4 sm:$0xff]  }
 0x72d   :  { %7288 = vmatpush1.bf16.msra.mxu0 %v5426_v43  ;;  %9310 = vmatpush1.bf16.msra.mxu1 %v5426_v43  ;;  %v10717_v25 = vld [vmem:[%s14936_s3 + $0x8cc] ss:$48 sps:$4 sm:$0xff]  }
 0x72e   :  { %7228 = vmatprep.mubr.bf16.mxu0 %v10625_v39  ;;  %9250 = vmatprep.mubr.bf16.mxu1 %v10627_v31  ;;  %v10719_v39 = vld [vmem:[%s14936_s3 + $0x448] ss:$48 sps:$4 sm:$0xff]  }
 0x72f   :  { %v10720_v31 = vld [vmem:[%s14936_s3 + $0x8c8] ss:$48 sps:$4 sm:$0xff]  }
 0x734   :  { %7229 = vmatmul.mubr.bf16.gmra.mrb[32].mxu0 %v10629_v29  ;;  %9251 = vmatmul.mubr.bf16.gmra.mrb[32].mxu1 %v10630_v40 }
 0x735   :  { %7238 = vmatprep.mubr.bf16.mxu0 %v10631_v59  ;;  %9260 = vmatprep.mubr.bf16.mxu1 %v10633_v49 }
 0x73c   :  { %7239 = vmatmul.mubr.bf16.gmra.mrb[36].mxu0 %v10635_v9  ;;  %9261 = vmatmul.mubr.bf16.gmra.mrb[36].mxu1 %v10636_v41 }
 0x73d   :  { %7248 = vmatprep.mubr.bf16.mxu0 %v10637_v63  ;;  %9270 = vmatprep.mubr.bf16.mxu1 %v10639_v50 }
 0x744   :  { %7249 = vmatmul.mubr.bf16.gmra.mrb[40].mxu0 %v10641_v19  ;;  %9271 = vmatmul.mubr.bf16.gmra.mrb[40].mxu1 %v10642_v47 }
 0x745   :  { %7258 = vmatprep.mubr.bf16.mxu0 %v10643_v16  ;;  %9280 = vmatprep.mubr.bf16.mxu1 %v10645_v13 }
 0x74c   :  { %7259 = vmatmul.mubr.bf16.gmra.mrb[44].mxu0 %v10647_v0  ;;  %9281 = vmatmul.mubr.bf16.gmra.mrb[44].mxu1 %v10648_v51 }
 0x74d   :  { %7301 = vmatprep.mubr.bf16.mxu0 %v10651_v35  ;;  %9323 = vmatprep.mubr.bf16.mxu1 %v10654_v5 }
 0x754   :  { %7302 = vmatmul.mubr.bf16.vlgmr.msra.gmra.mrb[0].mxu0 %v10649_v26  ;;  %9324 = vmatmul.mubr.bf16.vlgmr.msra.gmra.mrb[0].mxu1 %v10652_v27 }
 0x755   :  { %7311 = vmatprep.mubr.bf16.mxu0 %v10655_v30  ;;  %9333 = vmatprep.mubr.bf16.mxu1 %v10657_v22 }
 0x75c   :  { %7312 = vmatmul.mubr.bf16.gmra.mrb[4].mxu0 %v10659_v15  ;;  %9334 = vmatmul.mubr.bf16.gmra.mrb[4].mxu1 %v10660_v57 }
 0x75d   :  { %7321 = vmatprep.mubr.bf16.mxu0 %v10661_v24  ;;  %9343 = vmatprep.mubr.bf16.mxu1 %v10663_v38 }
 0x764   :  { %7322 = vmatmul.mubr.bf16.gmra.mrb[8].mxu0 %v10665_v48  ;;  %9344 = vmatmul.mubr.bf16.gmra.mrb[8].mxu1 %v10666_v4 }
 0x765   :  { %7331 = vmatprep.mubr.bf16.mxu0 %v10667_v34  ;;  %9353 = vmatprep.mubr.bf16.mxu1 %v10669_v7 }
 0x76c   :  { %7332 = vmatmul.mubr.bf16.gmra.mrb[12].mxu0 %v10671_v45  ;;  %9354 = vmatmul.mubr.bf16.gmra.mrb[12].mxu1 %v10672_v62 }
 0x76d   :  { %7341 = vmatprep.mubr.bf16.mxu0 %v10673_v60  ;;  %9363 = vmatprep.mubr.bf16.mxu1 %v10675_v58 }
 0x774   :  { %7342 = vmatmul.mubr.bf16.gmra.mrb[16].mxu0 %v10677_v61  ;;  %9364 = vmatmul.mubr.bf16.gmra.mrb[16].mxu1 %v10678_v55 }
 0x775   :  { %7351 = vmatprep.mubr.bf16.mxu0 %v10679_v11  ;;  %9373 = vmatprep.mubr.bf16.mxu1 %v10681_v46 }
 0x77c   :  { %7352 = vmatmul.mubr.bf16.gmra.mrb[20].mxu0 %v10683_v12  ;;  %9374 = vmatmul.mubr.bf16.gmra.mrb[20].mxu1 %v10684_v17 }
 0x77d   :  { %7361 = vmatprep.mubr.bf16.mxu0 %v10685_v37  ;;  %9383 = vmatprep.mubr.bf16.mxu1 %v10687_v32 }
 0x784   :  { %7362 = vmatmul.mubr.bf16.gmra.mrb[24].mxu0 %v10689_v54  ;;  %9384 = vmatmul.mubr.bf16.gmra.mrb[24].mxu1 %v10690_v33 }
 0x785   :  { %7371 = vmatprep.mubr.bf16.mxu0 %v10691_v3  ;;  %9393 = vmatprep.mubr.bf16.mxu1 %v10693_v2 }
 0x78c   :  { %7372 = vmatmul.mubr.bf16.gmra.mrb[28].mxu0 %v10695_v44  ;;  %9394 = vmatmul.mubr.bf16.gmra.mrb[28].mxu1 %v10696_v14 }
 0x78d   :  { %7381 = vmatprep.mubr.bf16.mxu0 %v10697_v56  ;;  %9403 = vmatprep.mubr.bf16.mxu1 %v10699_v10 }
 0x794   :  { %7382 = vmatmul.mubr.bf16.gmra.mrb[32].mxu0 %v10701_v18  ;;  %9404 = vmatmul.mubr.bf16.gmra.mrb[32].mxu1 %v10702_v6 }
 0x795   :  { %7391 = vmatprep.mubr.bf16.mxu0 %v10703_v53  ;;  %9413 = vmatprep.mubr.bf16.mxu1 %v10705_v28 }
 0x79c   :  { %7392 = vmatmul.mubr.bf16.gmra.mrb[36].mxu0 %v10707_v36  ;;  %9414 = vmatmul.mubr.bf16.gmra.mrb[36].mxu1 %v10708_v23 }
 0x79d   :  { %7401 = vmatprep.mubr.bf16.mxu0 %v10709_v21  ;;  %9423 = vmatprep.mubr.bf16.mxu1 %v10711_v8 }
 0x7a4   :  { %7402 = vmatmul.mubr.bf16.gmra.mrb[40].mxu0 %v10713_v52  ;;  %9424 = vmatmul.mubr.bf16.gmra.mrb[40].mxu1 %v10714_v1 }
 0x7a5   :  { %7411 = vmatprep.mubr.bf16.mxu0 %v10715_v20  ;;  %9433 = vmatprep.mubr.bf16.mxu1 %v10717_v25 }
 0x7ac   :  { %7412 = vmatmul.mubr.bf16.gmra.mrb[44].mxu0 %v10719_v39  ;;  %9434 = vmatmul.mubr.bf16.gmra.mrb[44].mxu1 %v10720_v31 }
 0x827   :  { %v7303_v42 = vpop.f32.mrb[0].mxu0  ;;  %v9325_v43 = vpop.f32.mrb[0].mxu1 }
 0x828   :  { %7422 = vst [vmem:[%s14937_s4] sm:$0xff] %v7303_v42  ;;  %9444 = vst [vmem:[%s14937_s4 + $0x180] sm:$0xff] %v9325_v43  ;;  %v7305_v29 = vpop.f32.mrb[1].mxu0  ;;  %v9327_v40 = vpop.f32.mrb[1].mxu1 }
 0x829   :  { %7423 = vst [vmem:[%s14937_s4 + $0x8] sm:$0xff] %v7305_v29  ;;  %9445 = vst [vmem:[%s14937_s4 + $0x188] sm:$0xff] %v9327_v40  ;;  %v7307_v59 = vpop.f32.mrb[2].mxu0  ;;  %v9329_v49 = vpop.f32.mrb[2].mxu1 }
 0x82a   :  { %7424 = vst [vmem:[%s14937_s4 + $0x10] sm:$0xff] %v7307_v59  ;;  %9446 = vst [vmem:[%s14937_s4 + $0x190] sm:$0xff] %v9329_v49  ;;  %v7309_v9 = vpop.f32.mrb[3].mxu0  ;;  %v9331_v41 = vpop.f32.mrb[3].mxu1 }
 0x82b   :  { %7425 = vst [vmem:[%s14937_s4 + $0x18] sm:$0xff] %v7309_v9  ;;  %9447 = vst [vmem:[%s14937_s4 + $0x198] sm:$0xff] %v9331_v41 }
 0x82f   :  { %v7313_v63 = vpop.f32.mrb[4].mxu0  ;;  %v9335_v50 = vpop.f32.mrb[4].mxu1 }
 0x830   :  { %7426 = vst [vmem:[%s14937_s4 + $0x20] sm:$0xff] %v7313_v63  ;;  %9448 = vst [vmem:[%s14937_s4 + $0x1a0] sm:$0xff] %v9335_v50  ;;  %v7315_v19 = vpop.f32.mrb[5].mxu0  ;;  %v9337_v47 = vpop.f32.mrb[5].mxu1 }
 0x831   :  { %7427 = vst [vmem:[%s14937_s4 + $0x28] sm:$0xff] %v7315_v19  ;;  %9449 = vst [vmem:[%s14937_s4 + $0x1a8] sm:$0xff] %v9337_v47  ;;  %v7317_v16 = vpop.f32.mrb[6].mxu0  ;;  %v9339_v13 = vpop.f32.mrb[6].mxu1 }
 0x832   :  { %7428 = vst [vmem:[%s14937_s4 + $0x30] sm:$0xff] %v7317_v16  ;;  %9450 = vst [vmem:[%s14937_s4 + $0x1b0] sm:$0xff] %v9339_v13  ;;  %v7319_v0 = vpop.f32.mrb[7].mxu0  ;;  %v9341_v51 = vpop.f32.mrb[7].mxu1 }
 0x833   :  { %7429 = vst [vmem:[%s14937_s4 + $0x38] sm:$0xff] %v7319_v0  ;;  %9451 = vst [vmem:[%s14937_s4 + $0x1b8] sm:$0xff] %v9341_v51 }
 0x837   :  { %v7323_v35 = vpop.f32.mrb[8].mxu0  ;;  %v9345_v5 = vpop.f32.mrb[8].mxu1 }
 0x838   :  { %7430 = vst [vmem:[%s14937_s4 + $0x40] sm:$0xff] %v7323_v35  ;;  %9452 = vst [vmem:[%s14937_s4 + $0x1c0] sm:$0xff] %v9345_v5  ;;  %v7325_v26 = vpop.f32.mrb[9].mxu0  ;;  %v9347_v27 = vpop.f32.mrb[9].mxu1 }
 0x839   :  { %7431 = vst [vmem:[%s14937_s4 + $0x48] sm:$0xff] %v7325_v26  ;;  %9453 = vst [vmem:[%s14937_s4 + $0x1c8] sm:$0xff] %v9347_v27  ;;  %v7327_v30 = vpop.f32.mrb[10].mxu0  ;;  %v9349_v22 = vpop.f32.mrb[10].mxu1 }
 0x83a   :  { %7432 = vst [vmem:[%s14937_s4 + $0x50] sm:$0xff] %v7327_v30  ;;  %9454 = vst [vmem:[%s14937_s4 + $0x1d0] sm:$0xff] %v9349_v22  ;;  %v7329_v15 = vpop.f32.mrb[11].mxu0  ;;  %v9351_v57 = vpop.f32.mrb[11].mxu1 }
 0x83b   :  { %7433 = vst [vmem:[%s14937_s4 + $0x58] sm:$0xff] %v7329_v15  ;;  %9455 = vst [vmem:[%s14937_s4 + $0x1d8] sm:$0xff] %v9351_v57 }
 0x83f   :  { %v7333_v24 = vpop.f32.mrb[12].mxu0  ;;  %v9355_v38 = vpop.f32.mrb[12].mxu1 }
 0x840   :  { %7434 = vst [vmem:[%s14937_s4 + $0x60] sm:$0xff] %v7333_v24  ;;  %9456 = vst [vmem:[%s14937_s4 + $0x1e0] sm:$0xff] %v9355_v38  ;;  %v7335_v48 = vpop.f32.mrb[13].mxu0  ;;  %v9357_v4 = vpop.f32.mrb[13].mxu1 }
 0x841   :  { %7435 = vst [vmem:[%s14937_s4 + $0x68] sm:$0xff] %v7335_v48  ;;  %9457 = vst [vmem:[%s14937_s4 + $0x1e8] sm:$0xff] %v9357_v4  ;;  %v7337_v34 = vpop.f32.mrb[14].mxu0  ;;  %v9359_v7 = vpop.f32.mrb[14].mxu1 }
 0x842   :  { %7436 = vst [vmem:[%s14937_s4 + $0x70] sm:$0xff] %v7337_v34  ;;  %9458 = vst [vmem:[%s14937_s4 + $0x1f0] sm:$0xff] %v9359_v7  ;;  %v7339_v45 = vpop.f32.mrb[15].mxu0  ;;  %v9361_v62 = vpop.f32.mrb[15].mxu1 }
 0x843   :  { %7437 = vst [vmem:[%s14937_s4 + $0x78] sm:$0xff] %v7339_v45  ;;  %9459 = vst [vmem:[%s14937_s4 + $0x1f8] sm:$0xff] %v9361_v62 }
 0x847   :  { %v7343_v60 = vpop.f32.mrb[16].mxu0  ;;  %v9365_v58 = vpop.f32.mrb[16].mxu1 }
 0x848   :  { %7438 = vst [vmem:[%s14937_s4 + $0x80] sm:$0xff] %v7343_v60  ;;  %9460 = vst [vmem:[%s14937_s4 + $0x200] sm:$0xff] %v9365_v58  ;;  %v7345_v61 = vpop.f32.mrb[17].mxu0  ;;  %v9367_v55 = vpop.f32.mrb[17].mxu1 }
 0x849   :  { %7439 = vst [vmem:[%s14937_s4 + $0x88] sm:$0xff] %v7345_v61  ;;  %9461 = vst [vmem:[%s14937_s4 + $0x208] sm:$0xff] %v9367_v55  ;;  %v7347_v11 = vpop.f32.mrb[18].mxu0  ;;  %v9369_v46 = vpop.f32.mrb[18].mxu1 }
 0x84a   :  { %7440 = vst [vmem:[%s14937_s4 + $0x90] sm:$0xff] %v7347_v11  ;;  %9462 = vst [vmem:[%s14937_s4 + $0x210] sm:$0xff] %v9369_v46  ;;  %v7349_v12 = vpop.f32.mrb[19].mxu0  ;;  %v9371_v17 = vpop.f32.mrb[19].mxu1 }
 0x84b   :  { %7441 = vst [vmem:[%s14937_s4 + $0x98] sm:$0xff] %v7349_v12  ;;  %9463 = vst [vmem:[%s14937_s4 + $0x218] sm:$0xff] %v9371_v17 }
 0x84f   :  { %v7353_v37 = vpop.f32.mrb[20].mxu0  ;;  %v9375_v32 = vpop.f32.mrb[20].mxu1 }
 0x850   :  { %7442 = vst [vmem:[%s14937_s4 + $0xa0] sm:$0xff] %v7353_v37  ;;  %9464 = vst [vmem:[%s14937_s4 + $0x220] sm:$0xff] %v9375_v32  ;;  %v7355_v54 = vpop.f32.mrb[21].mxu0  ;;  %v9377_v33 = vpop.f32.mrb[21].mxu1 }
 0x851   :  { %7443 = vst [vmem:[%s14937_s4 + $0xa8] sm:$0xff] %v7355_v54  ;;  %9465 = vst [vmem:[%s14937_s4 + $0x228] sm:$0xff] %v9377_v33  ;;  %v7357_v3 = vpop.f32.mrb[22].mxu0  ;;  %v9379_v2 = vpop.f32.mrb[22].mxu1 }
 0x852   :  { %7444 = vst [vmem:[%s14937_s4 + $0xb0] sm:$0xff] %v7357_v3  ;;  %9466 = vst [vmem:[%s14937_s4 + $0x230] sm:$0xff] %v9379_v2  ;;  %v7359_v44 = vpop.f32.mrb[23].mxu0  ;;  %v9381_v14 = vpop.f32.mrb[23].mxu1 }
 0x853   :  { %7445 = vst [vmem:[%s14937_s4 + $0xb8] sm:$0xff] %v7359_v44  ;;  %9467 = vst [vmem:[%s14937_s4 + $0x238] sm:$0xff] %v9381_v14 }
 0x857   :  { %v7363_v56 = vpop.f32.mrb[24].mxu0  ;;  %v9385_v10 = vpop.f32.mrb[24].mxu1 }
 0x858   :  { %7446 = vst [vmem:[%s14937_s4 + $0xc0] sm:$0xff] %v7363_v56  ;;  %9468 = vst [vmem:[%s14937_s4 + $0x240] sm:$0xff] %v9385_v10  ;;  %v7365_v18 = vpop.f32.mrb[25].mxu0  ;;  %v9387_v6 = vpop.f32.mrb[25].mxu1 }
 0x859   :  { %7447 = vst [vmem:[%s14937_s4 + $0xc8] sm:$0xff] %v7365_v18  ;;  %9469 = vst [vmem:[%s14937_s4 + $0x248] sm:$0xff] %v9387_v6  ;;  %v7367_v53 = vpop.f32.mrb[26].mxu0  ;;  %v9389_v28 = vpop.f32.mrb[26].mxu1 }
 0x85a   :  { %7448 = vst [vmem:[%s14937_s4 + $0xd0] sm:$0xff] %v7367_v53  ;;  %9470 = vst [vmem:[%s14937_s4 + $0x250] sm:$0xff] %v9389_v28  ;;  %v7369_v36 = vpop.f32.mrb[27].mxu0  ;;  %v9391_v23 = vpop.f32.mrb[27].mxu1 }
 0x85b   :  { %7449 = vst [vmem:[%s14937_s4 + $0xd8] sm:$0xff] %v7369_v36  ;;  %9471 = vst [vmem:[%s14937_s4 + $0x258] sm:$0xff] %v9391_v23 }
 0x85f   :  { %v7373_v21 = vpop.f32.mrb[28].mxu0  ;;  %v9395_v8 = vpop.f32.mrb[28].mxu1 }
 0x860   :  { %7450 = vst [vmem:[%s14937_s4 + $0xe0] sm:$0xff] %v7373_v21  ;;  %9472 = vst [vmem:[%s14937_s4 + $0x260] sm:$0xff] %v9395_v8  ;;  %v7375_v52 = vpop.f32.mrb[29].mxu0  ;;  %v9397_v1 = vpop.f32.mrb[29].mxu1 }
 0x861   :  { %7451 = vst [vmem:[%s14937_s4 + $0xe8] sm:$0xff] %v7375_v52  ;;  %9473 = vst [vmem:[%s14937_s4 + $0x268] sm:$0xff] %v9397_v1  ;;  %v7377_v20 = vpop.f32.mrb[30].mxu0  ;;  %v9399_v25 = vpop.f32.mrb[30].mxu1 }
 0x862   :  { %7452 = vst [vmem:[%s14937_s4 + $0xf0] sm:$0xff] %v7377_v20  ;;  %9474 = vst [vmem:[%s14937_s4 + $0x270] sm:$0xff] %v9399_v25  ;;  %v7379_v39 = vpop.f32.mrb[31].mxu0  ;;  %v9401_v31 = vpop.f32.mrb[31].mxu1 }
 0x863   :  { %7453 = vst [vmem:[%s14937_s4 + $0xf8] sm:$0xff] %v7379_v39  ;;  %9475 = vst [vmem:[%s14937_s4 + $0x278] sm:$0xff] %v9401_v31 }
 0x867   :  { %v7383_v42 = vpop.f32.mrb[32].mxu0  ;;  %v9405_v43 = vpop.f32.mrb[32].mxu1 }
 0x868   :  { %7454 = vst [vmem:[%s14937_s4 + $0x100] sm:$0xff] %v7383_v42  ;;  %9476 = vst [vmem:[%s14937_s4 + $0x280] sm:$0xff] %v9405_v43  ;;  %v7385_v29 = vpop.f32.mrb[33].mxu0  ;;  %v9407_v40 = vpop.f32.mrb[33].mxu1 }
 0x869   :  { %7455 = vst [vmem:[%s14937_s4 + $0x108] sm:$0xff] %v7385_v29  ;;  %9477 = vst [vmem:[%s14937_s4 + $0x288] sm:$0xff] %v9407_v40  ;;  %v7387_v59 = vpop.f32.mrb[34].mxu0  ;;  %v9409_v49 = vpop.f32.mrb[34].mxu1 }
 0x86a   :  { %7456 = vst [vmem:[%s14937_s4 + $0x110] sm:$0xff] %v7387_v59  ;;  %9478 = vst [vmem:[%s14937_s4 + $0x290] sm:$0xff] %v9409_v49  ;;  %v7389_v9 = vpop.f32.mrb[35].mxu0  ;;  %v9411_v41 = vpop.f32.mrb[35].mxu1 }
 0x86b   :  { %7457 = vst [vmem:[%s14937_s4 + $0x118] sm:$0xff] %v7389_v9  ;;  %9479 = vst [vmem:[%s14937_s4 + $0x298] sm:$0xff] %v9411_v41 }
 0x86f   :  { %v7393_v63 = vpop.f32.mrb[36].mxu0  ;;  %v9415_v50 = vpop.f32.mrb[36].mxu1 }
 0x870   :  { %7458 = vst [vmem:[%s14937_s4 + $0x120] sm:$0xff] %v7393_v63  ;;  %9480 = vst [vmem:[%s14937_s4 + $0x2a0] sm:$0xff] %v9415_v50  ;;  %v7395_v19 = vpop.f32.mrb[37].mxu0  ;;  %v9417_v47 = vpop.f32.mrb[37].mxu1 }
 0x871   :  { %7459 = vst [vmem:[%s14937_s4 + $0x128] sm:$0xff] %v7395_v19  ;;  %9481 = vst [vmem:[%s14937_s4 + $0x2a8] sm:$0xff] %v9417_v47  ;;  %v7397_v16 = vpop.f32.mrb[38].mxu0  ;;  %v9419_v13 = vpop.f32.mrb[38].mxu1 }
 0x872   :  { %7460 = vst [vmem:[%s14937_s4 + $0x130] sm:$0xff] %v7397_v16  ;;  %9482 = vst [vmem:[%s14937_s4 + $0x2b0] sm:$0xff] %v9419_v13  ;;  %v7399_v0 = vpop.f32.mrb[39].mxu0  ;;  %v9421_v51 = vpop.f32.mrb[39].mxu1 }
 0x873   :  { %7461 = vst [vmem:[%s14937_s4 + $0x138] sm:$0xff] %v7399_v0  ;;  %9483 = vst [vmem:[%s14937_s4 + $0x2b8] sm:$0xff] %v9421_v51 }
 0x877   :  { %v7403_v35 = vpop.f32.mrb[40].mxu0  ;;  %v9425_v5 = vpop.f32.mrb[40].mxu1 }
 0x878   :  { %7462 = vst [vmem:[%s14937_s4 + $0x140] sm:$0xff] %v7403_v35  ;;  %9484 = vst [vmem:[%s14937_s4 + $0x2c0] sm:$0xff] %v9425_v5  ;;  %v7405_v26 = vpop.f32.mrb[41].mxu0  ;;  %v9427_v27 = vpop.f32.mrb[41].mxu1 }
 0x879   :  { %7463 = vst [vmem:[%s14937_s4 + $0x148] sm:$0xff] %v7405_v26  ;;  %9485 = vst [vmem:[%s14937_s4 + $0x2c8] sm:$0xff] %v9427_v27  ;;  %v7407_v30 = vpop.f32.mrb[42].mxu0  ;;  %v9429_v22 = vpop.f32.mrb[42].mxu1 }
 0x87a   :  { %7464 = vst [vmem:[%s14937_s4 + $0x150] sm:$0xff] %v7407_v30  ;;  %9486 = vst [vmem:[%s14937_s4 + $0x2d0] sm:$0xff] %v9429_v22  ;;  %v7409_v15 = vpop.f32.mrb[43].mxu0  ;;  %v9431_v57 = vpop.f32.mrb[43].mxu1 }
 0x87b   :  { %7465 = vst [vmem:[%s14937_s4 + $0x158] sm:$0xff] %v7409_v15  ;;  %9487 = vst [vmem:[%s14937_s4 + $0x2d8] sm:$0xff] %v9431_v57 }
 0x87f   :  { %v7413_v24 = vpop.f32.mrb[44].mxu0  ;;  %v9435_v38 = vpop.f32.mrb[44].mxu1 }
 0x880   :  { %7466 = vst [vmem:[%s14937_s4 + $0x160] sm:$0xff] %v7413_v24  ;;  %9488 = vst [vmem:[%s14937_s4 + $0x2e0] sm:$0xff] %v9435_v38  ;;  %v7415_v48 = vpop.f32.mrb[45].mxu0  ;;  %v9437_v4 = vpop.f32.mrb[45].mxu1 }
 0x881   :  { %7467 = vst [vmem:[%s14937_s4 + $0x168] sm:$0xff] %v7415_v48  ;;  %9489 = vst [vmem:[%s14937_s4 + $0x2e8] sm:$0xff] %v9437_v4  ;;  %v7417_v34 = vpop.f32.mrb[46].mxu0  ;;  %v9439_v7 = vpop.f32.mrb[46].mxu1 }
 0x882   :  { %7468 = vst [vmem:[%s14937_s4 + $0x170] sm:$0xff] %v7417_v34  ;;  %9490 = vst [vmem:[%s14937_s4 + $0x2f0] sm:$0xff] %v9439_v7  ;;  %v7419_v45 = vpop.f32.mrb[47].mxu0  ;;  %v9441_v62 = vpop.f32.mrb[47].mxu1 }
 0x883   :  { %7469 = vst [vmem:[%s14937_s4 + $0x178] sm:$0xff] %v7419_v45  ;;  %9491 = vst [vmem:[%s14937_s4 + $0x2f8] sm:$0xff] %v9441_v62 }

</bundles_post_ra>
